<compile_context>
chip_gen: v7x
topology: tpu7x:2x2x1
jax: 0.10.0
libtpu: 0.0.40
codegen_flags: <defaults>
</compile_context>

<pallas_src>
import math
from functools import partial

import jax
import jax.numpy as jnp
from jax.experimental import pallas as pl
from jax.experimental.pallas import tpu as pltpu


# ------------------------------ fused kernel --------------------------------
def _mha_classifier_kernel(num_heads,
                           x_ref,
                           cgw1_ref, cgb1_ref, cgw2_ref, cgb2_ref,
                           acat_ref, bn_ref,
                           wqkv_ref, bqkv_ref, wo_ref, bo_ref,
                           lng_ref, lnb_ref, w1_ref, b1_ref, w2_ref, b2_ref,
                           out_ref):
    f32, bf16 = jnp.float32, jnp.bfloat16
    bt, hw, c = x_ref.shape
    hd = c // num_heads

    def sigmoid(z):                      # tanh form -> EUP slot (not VPU exp+div)
        return 0.5 * (jnp.tanh(0.5 * z) + 1.0)

    def mm(a, b):                        # MXU matmul: bf16 operands, f32 accum
        return jnp.dot(a.astype(bf16), b.astype(bf16),
                       preferred_element_type=f32)

    # activations as one lane-dense 2-D slab (Bt*HW rows, C lanes)
    x2 = x_ref[...].reshape(bt * hw, c)
    xbs = [x2[b * hw:(b + 1) * hw, :] for b in range(bt)]

    # ---------------- ChannelGate: {avg,max} pool -> shared MLP --------------
    pooled = jnp.concatenate(
        [jnp.mean(xb, axis=0, keepdims=True) for xb in xbs]
        + [jnp.max(xb, axis=0, keepdims=True) for xb in xbs], axis=0)  # (2Bt, C)
    hmid = jnp.maximum(mm(pooled, cgw1_ref[...]) + cgb1_ref[...], 0.0)
    att2 = mm(hmid, cgw2_ref[...]) + cgb2_ref[...]                     # (2Bt, C)
    ch_scale = sigmoid(att2[0:bt, :] + att2[bt:2 * bt, :])             # (Bt, C)

    # ------ SpatialGate: ChannelPool -> 7x7 conv (dense op) -> BN -> gate ----
    gamma, beta = bn_ref[:, 0:1], bn_ref[:, 1:2]                       # BN(1) eval
    rmean, rvar = bn_ref[:, 2:3], bn_ref[:, 3:4]
    bn_scale = gamma * jax.lax.rsqrt(rvar + 1e-5)
    acat = acat_ref[...]                  # (HW, 2*HW), shared across the batch
    # TODO(synk): for large H*W replace the dense operator with 49 shifted-adds
    # (pltpu.roll) and flash-tile the (HW,HW) attention scores over KV.
    xc_blocks = []
    for b in range(bt):
        xg_b = xbs[b] * ch_scale[b:b + 1, :]                  # (HW, C)
        cm_b = jnp.concatenate(
            [jnp.max(xg_b, axis=1, keepdims=True),
             jnp.mean(xg_b, axis=1, keepdims=True)], axis=0)  # (2*HW, 1)
        conv_b = mm(acat, cm_b)                               # (HW, 1)
        conv_b = (conv_b - rmean) * bn_scale + beta
        xc_blocks.append(xg_b * sigmoid(conv_b))              # (HW, C)
    xc2 = jnp.concatenate(xc_blocks, axis=0)                  # (Bt*HW, C)

    # ------------ multi-head self-attention (fused QKV, 2-D output proj) -----
    qkv = mm(xc2, wqkv_ref[...]) + bqkv_ref[...]              # (Bt*HW, 3C): 1 MXU push
    inv_sqrt_hd = 1.0 / math.sqrt(hd)
    ctx_heads = []
    for hidx in range(num_heads):
        lo = hidx * hd
        qh = qkv[:, lo:lo + hd].reshape(bt, hw, hd)
        kh = qkv[:, c + lo:c + lo + hd].reshape(bt, hw, hd)
        vh = qkv[:, 2 * c + lo:2 * c + lo + hd].reshape(bt, hw, hd)
        s = jnp.einsum('bqd,bkd->bqk', qh.astype(bf16), kh.astype(bf16),
                       preferred_element_type=f32) * inv_sqrt_hd
        s = s - jnp.max(s, axis=-1, keepdims=True)
        p = jnp.exp(s)                                        # attn dropout = eval no-op
        denom = jnp.sum(p, axis=-1, keepdims=True)
        ctx_h = jnp.einsum('bqk,bkd->bqd', p.astype(bf16), vh.astype(bf16),
                           preferred_element_type=f32)
        ctx_h = ctx_h * pl.reciprocal(denom, approx=True)     # normalize after PV
        ctx_heads.append(ctx_h.reshape(bt * hw, hd))
    ctx2 = jnp.concatenate(ctx_heads, axis=1)                 # (Bt*HW, C)
    attn2 = mm(ctx2, wo_ref[...]) + bo_ref[...]               # output projection
    xres2 = xc2 + attn2                                       # residual

    # ------ classifier: GAP -> LayerNorm -> Linear(512) -> ReLU -> Linear ----
    gap = jnp.concatenate(
        [jnp.mean(xres2[b * hw:(b + 1) * hw, :], axis=0, keepdims=True)
         for b in range(bt)], axis=0)                         # (Bt, C)
    mu = jnp.mean(gap, axis=1, keepdims=True)
    var = jnp.mean((gap - mu) ** 2, axis=1, keepdims=True)
    ln = (gap - mu) * jax.lax.rsqrt(var + 1e-5) * lng_ref[...] + lnb_ref[...]
    h1 = jnp.maximum(mm(ln, w1_ref[...]) + b1_ref[...], 0.0)  # dropouts = eval no-ops
    logits = mm(h1, w2_ref[...]) + b2_ref[...]                # (Bt, ncls_pad) lane-dense
    for b in range(bt):
        out_ref[b, :, :] = logits[b:b + 1, :]


# --------------------------- static weight prep ------------------------------
def _conv7x7_as_matrix(conv_w, H, W):
    """Dense (HW, 2*HW) operator for Conv2d(2->1, k=7, pad=3, bias=False) applied
    to the [max; mean] channel-pool stacked along the rhs column."""
    HW = H * W
    qh = jnp.arange(H).reshape(H, 1, 1, 1)
    qw = jnp.arange(W).reshape(1, W, 1, 1)
    ph = jnp.arange(H).reshape(1, 1, H, 1)
    pw = jnp.arange(W).reshape(1, 1, 1, W)
    ki = ph - qh + 3
    kj = pw - qw + 3
    valid = (ki >= 0) & (ki < 7) & (kj >= 0) & (kj < 7)
    kic = jnp.clip(ki, 0, 6)
    kjc = jnp.clip(kj, 0, 6)

    def one(cidx):
        taps = conv_w[cidx][kic, kjc]                         # (H, W, H, W)
        return jnp.where(valid, taps, 0.0).reshape(HW, HW)

    return jnp.concatenate([one(0), one(1)], axis=1).astype(jnp.float32)


def _prepare_weights(params, H, W, num_classes):
    bf16 = jnp.bfloat16
    acat = _conv7x7_as_matrix(params["conv_w"], H, W).astype(bf16)     # (HW, 2HW)
    wqkv = jnp.concatenate([params["wq"], params["wk"], params["wv"]],
                           axis=1).astype(bf16)                        # (C, 3C)
    bqkv = jnp.concatenate([params["bq"], params["bk"], params["bv"]], axis=1)
    # lane-dense logits: pad classes to a multiple of 128, slice in the wrapper
    ncls_pad = max(128, ((num_classes + 127) // 128) * 128)
    w2p = jnp.zeros((params["w2"].shape[0], ncls_pad), jnp.float32)
    w2p = w2p.at[:, :num_classes].set(params["w2"]).astype(bf16)
    b2p = jnp.zeros((1, ncls_pad), jnp.float32).at[:, :num_classes].set(params["b2"])
    prepped = dict(
        cg_w1=params["cg_w1"].astype(bf16), cg_b1=params["cg_b1"],
        cg_w2=params["cg_w2"].astype(bf16), cg_b2=params["cg_b2"],
        acat=acat, bn=params["bn"],
        wqkv=wqkv, bqkv=bqkv,
        wo=params["wo"].astype(bf16), bo=params["bo"],
        ln_g=params["ln_g"], ln_b=params["ln_b"],
        w1=params["w1"].astype(bf16), b1=params["b1"],
        w2=w2p, b2=b2p)
    return prepped, ncls_pad


# --------------------------- tiling / VMEM budgeting -------------------------
def _pick_batch_block(B):
    # v7x has 2 TensorCores per chip: give the 'parallel' grid axis >= 2 steps.
    # On v5e/v6e (1 TC) keep one fat step (extra steps are pure overhead).
    try:
        kind = jax.devices()[0].device_kind.lower()
    except Exception:
        kind = ""
    if "v7" in kind and B % 2 == 0 and B >= 2:
        return B // 2
    return B


def _vmem_limit_bytes(bt, hw, c, num_heads, ncls_pad, cr):
    f32, bf16 = 4, 2
    act = bt * hw * c * f32
    live = 6 * act                               # x / gated / residual copies + slack
    live += bt * hw * 3 * c * f32                # fused qkv slab
    live += 3 * bt * hw * hw * f32               # per-head scores/probs + slack
    consts = 2 * bf16 * (3 * c * c + c * c + 2 * hw * hw + 512 * c
                         + 512 * ncls_pad + 2 * c * cr)       # double-buffered weights
    est = 2 * act + live + consts + (4 << 20)
    try:
        phys = pltpu.get_tpu_info().vmem_capacity_bytes       # 128 MiB v5e/v6e, 64 MiB v7x
    except Exception:
        phys = 64 << 20
    return int(min(max(est, 32 << 20), int(0.75 * phys)))


# -------------------------------- wrapper ------------------------------------
def multi_head_attention_classifier(x_nchw, params, *, num_heads, num_classes,
                                    batch_block=None):
    B, C, H, W = x_nchw.shape
    HW = H * W
    assert C % num_heads == 0
    if batch_block is None:
        batch_block = _pick_batch_block(B)
    assert B % batch_block == 0
    grid = (B // batch_block,)

    # NCHW -> (B, HW, C) channels-last (pure layout glue, outside the kernel)
    x = jnp.transpose(x_nchw.reshape(B, C, HW), (0, 2, 1)).astype(jnp.float32)
    w, ncls_pad = _prepare_weights(params, H, W, num_classes)

    args = (x,
            w["cg_w1"], w["cg_b1"], w["cg_w2"], w["cg_b2"],
            w["acat"], w["bn"],
            w["wqkv"], w["bqkv"], w["wo"], w["bo"],
            w["ln_g"], w["ln_b"], w["w1"], w["b1"], w["w2"], w["b2"])

    # constants: index_map is grid-invariant (fetched once, kept resident).
    # TODO(synk): pin these to a single buffer (pl.Buffered(1)) once verified on
    # the target jax version; default buffering kept here for compile safety.
    def const_spec(arr):
        n = arr.ndim
        return pl.BlockSpec(arr.shape, lambda b, n=n: (0,) * n)

    in_specs = ([pl.BlockSpec((batch_block, HW, C), lambda b: (b, 0, 0))]
                + [const_spec(a) for a in args[1:]])

    out = pl.pallas_call(
        partial(_mha_classifier_kernel, num_heads),
        out_shape=jax.ShapeDtypeStruct((B, 1, ncls_pad), jnp.float32),
        grid=grid,
        in_specs=in_specs,
        out_specs=pl.BlockSpec((batch_block, 1, ncls_pad), lambda b: (b, 0, 0)),
        compiler_params=pltpu.CompilerParams(
            dimension_semantics=("parallel",),
            vmem_limit_bytes=_vmem_limit_bytes(
                batch_block, HW, C, num_heads, ncls_pad,
                params["cg_w1"].shape[1])),
    )(*args)

    return out.reshape(B, ncls_pad)[:, :num_classes]


# ---------------------------- parameter init ---------------------------------
def init_params(key, feature_dim, num_heads, num_classes):
    C = feature_dim
    Cr = max(1, C // 16)                                # ChannelGate reduction ratio
    ks = jax.random.split(key, 10)

    def lin(k, fan_in, fan_out):                        # (in, out) == nn.Linear weight.T
        kw, kb = jax.random.split(k)
        wm = jax.random.normal(kw, (fan_in, fan_out), jnp.float32) * 0.05
        bm = jax.random.normal(kb, (1, fan_out), jnp.float32) * 0.01
        return wm, bm

    p = {}
    p["cg_w1"], p["cg_b1"] = lin(ks[0], C, Cr)
    p["cg_w2"], p["cg_b2"] = lin(ks[1], Cr, C)
    # SpatialGate conv: PyTorch weight (1, 2, 7, 7), no bias -> (2, 7, 7)
    p["conv_w"] = jax.random.normal(ks[2], (2, 7, 7), jnp.float32) * 0.05
    # BatchNorm2d(1) eval-mode params: [gamma, beta, running_mean, running_var]
    p["bn"] = jnp.array([[1.0, 0.0, 0.0, 1.0]], jnp.float32)
    p["wq"], p["bq"] = lin(ks[3], C, C)
    p["wk"], p["bk"] = lin(ks[4], C, C)
    p["wv"], p["bv"] = lin(ks[5], C, C)
    p["wo"], p["bo"] = lin(ks[6], C, C)
    p["ln_g"] = jnp.ones((1, C), jnp.float32)           # LayerNorm affine defaults
    p["ln_b"] = jnp.zeros((1, C), jnp.float32)
    p["w1"], p["b1"] = lin(ks[7], C, 512)
    p["w2"], p["b2"] = lin(ks[8], 512, num_classes)
    return p


if __name__ == "__main__":
    # feature_dim must be divisible by num_heads (8) and by the CBAM reduction (16)
    B, C, H, W = 2, 32, 8, 8
    num_heads, num_classes = 8, 1

    key = jax.random.PRNGKey(0)
    kx, kp = jax.random.split(key)
    x = jax.random.normal(kx, (B, C, H, W), jnp.float32)
    params = init_params(kp, C, num_heads, num_classes)

    out = multi_head_attention_classifier(x, params,
                                          num_heads=num_heads,
                                          num_classes=num_classes)
    out = jax.block_until_ready(out)
    assert out.shape == (B, num_classes)
    assert bool(jnp.all(jnp.isfinite(out)))
    print("KERNEL_OK")
</pallas_src>

<mosaic_0001>
module attributes {stable_mosaic.version = 11 : i64} {
  func.func @_mha_classifier_kernel(%arg0: i32, %arg1: memref<2x64x32xf32, #tpu.memory_space<vmem>>, %arg2: memref<32x2xbf16, #tpu.memory_space<vmem>>, %arg3: memref<1x2xf32, #tpu.memory_space<vmem>>, %arg4: memref<2x32xbf16, #tpu.memory_space<vmem>>, %arg5: memref<1x32xf32, #tpu.memory_space<vmem>>, %arg6: memref<64x128xbf16, #tpu.memory_space<vmem>>, %arg7: memref<1x4xf32, #tpu.memory_space<vmem>>, %arg8: memref<32x96xbf16, #tpu.memory_space<vmem>>, %arg9: memref<1x96xf32, #tpu.memory_space<vmem>>, %arg10: memref<32x32xbf16, #tpu.memory_space<vmem>>, %arg11: memref<1x32xf32, #tpu.memory_space<vmem>>, %arg12: memref<1x32xf32, #tpu.memory_space<vmem>>, %arg13: memref<1x32xf32, #tpu.memory_space<vmem>>, %arg14: memref<32x512xbf16, #tpu.memory_space<vmem>>, %arg15: memref<1x512xf32, #tpu.memory_space<vmem>>, %arg16: memref<512x128xbf16, #tpu.memory_space<vmem>>, %arg17: memref<1x128xf32, #tpu.memory_space<vmem>>, %arg18: memref<2x1x128xf32, #tpu.memory_space<vmem>>) attributes {dimension_semantics = [#tpu.dimension_semantics<parallel>], iteration_bounds = array<i64: 1>, scalar_prefetch = 0 : i64, scratch_operands = 0 : i64, tpu.core_type = #tpu.core_type<tc>, window_params = [{transform_indices = @transform_0, window_bounds = array<i64: 2, 64, 32>}, {pipeline_mode = #tpu.pipeline_mode<synchronous>, transform_indices = @transform_1, window_bounds = array<i64: 32, 2>}, {pipeline_mode = #tpu.pipeline_mode<synchronous>, transform_indices = @transform_2, window_bounds = array<i64: 1, 2>}, {pipeline_mode = #tpu.pipeline_mode<synchronous>, transform_indices = @transform_3, window_bounds = array<i64: 2, 32>}, {pipeline_mode = #tpu.pipeline_mode<synchronous>, transform_indices = @transform_4, window_bounds = array<i64: 1, 32>}, {pipeline_mode = #tpu.pipeline_mode<synchronous>, transform_indices = @transform_5, window_bounds = array<i64: 64, 128>}, {pipeline_mode = #tpu.pipeline_mode<synchronous>, transform_indices = @transform_6, window_bounds = array<i64: 1, 4>}, {pipeline_mode = #tpu.pipeline_mode<synchronous>, transform_indices = @transform_7, window_bounds = array<i64: 32, 96>}, {pipeline_mode = #tpu.pipeline_mode<synchronous>, transform_indices = @transform_8, window_bounds = array<i64: 1, 96>}, {pipeline_mode = #tpu.pipeline_mode<synchronous>, transform_indices = @transform_9, window_bounds = array<i64: 32, 32>}, {pipeline_mode = #tpu.pipeline_mode<synchronous>, transform_indices = @transform_10, window_bounds = array<i64: 1, 32>}, {pipeline_mode = #tpu.pipeline_mode<synchronous>, transform_indices = @transform_11, window_bounds = array<i64: 1, 32>}, {pipeline_mode = #tpu.pipeline_mode<synchronous>, transform_indices = @transform_12, window_bounds = array<i64: 1, 32>}, {pipeline_mode = #tpu.pipeline_mode<synchronous>, transform_indices = @transform_13, window_bounds = array<i64: 32, 512>}, {pipeline_mode = #tpu.pipeline_mode<synchronous>, transform_indices = @transform_14, window_bounds = array<i64: 1, 512>}, {pipeline_mode = #tpu.pipeline_mode<synchronous>, transform_indices = @transform_15, window_bounds = array<i64: 512, 128>}, {pipeline_mode = #tpu.pipeline_mode<synchronous>, transform_indices = @transform_16, window_bounds = array<i64: 1, 128>}, {transform_indices = @transform_17, window_bounds = array<i64: 2, 1, 128>}]} {
    %c0 = arith.constant 0 : index
    %c0_0 = arith.constant 0 : index
    %c0_1 = arith.constant 0 : index
    %0 = vector.load %arg1[%c0, %c0_0, %c0_1] : memref<2x64x32xf32, #tpu.memory_space<vmem>>, vector<2x64x32xf32>
    %1 = vector.shape_cast %0 : vector<2x64x32xf32> to vector<128x32xf32>
    %2 = vector.extract_strided_slice %1 {offsets = [0, 0], sizes = [64, 32], strides = [1, 1]} : vector<128x32xf32> to vector<64x32xf32>
    %3 = vector.extract_strided_slice %1 {offsets = [64, 0], sizes = [64, 32], strides = [1, 1]} : vector<128x32xf32> to vector<64x32xf32>
    %cst = arith.constant dense<0.000000e+00> : vector<32xf32>
    %4 = vector.multi_reduction <add>, %2, %cst [0] : vector<64x32xf32> to vector<32xf32>
    %5 = vector.shape_cast %4 : vector<32xf32> to vector<1x32xf32>
    %cst_2 = arith.constant 6.400000e+01 : f32
    %6 = vector.broadcast %cst_2 : f32 to vector<1x32xf32>
    %7 = arith.divf %5, %6 : vector<1x32xf32>
    %cst_3 = arith.constant dense<0.000000e+00> : vector<32xf32>
    %8 = vector.multi_reduction <add>, %3, %cst_3 [0] : vector<64x32xf32> to vector<32xf32>
    %9 = vector.shape_cast %8 : vector<32xf32> to vector<1x32xf32>
    %cst_4 = arith.constant 6.400000e+01 : f32
    %10 = vector.broadcast %cst_4 : f32 to vector<1x32xf32>
    %11 = arith.divf %9, %10 : vector<1x32xf32>
    %cst_5 = arith.constant dense<0xFF800000> : vector<32xf32>
    %12 = vector.multi_reduction <maximumf>, %2, %cst_5 [0] : vector<64x32xf32> to vector<32xf32>
    %13 = vector.shape_cast %12 : vector<32xf32> to vector<1x32xf32>
    %cst_6 = arith.constant dense<0xFF800000> : vector<32xf32>
    %14 = vector.multi_reduction <maximumf>, %3, %cst_6 [0] : vector<64x32xf32> to vector<32xf32>
    %15 = vector.shape_cast %14 : vector<32xf32> to vector<1x32xf32>
    %16 = tpu.concatenate %7, %11, %13, %15 in 0 : vector<1x32xf32>, vector<1x32xf32>, vector<1x32xf32>, vector<1x32xf32> -> vector<4x32xf32>
    %c0_7 = arith.constant 0 : index
    %c0_8 = arith.constant 0 : index
    %17 = vector.load %arg2[%c0_7, %c0_8] : memref<32x2xbf16, #tpu.memory_space<vmem>>, vector<32x2xbf16>
    %18 = arith.truncf %16 : vector<4x32xf32> to vector<4x32xbf16>
    %cst_9 = arith.constant dense<0.000000e+00> : vector<4x2xf32>
    %19 = tpu.matmul %18, %17, %cst_9 {dimension_numbers = #tpu.dot_dimension_numbers<[1], [0], [0], [1], [0, 0, 1, 1], [], []>} : vector<4x32xbf16>, vector<32x2xbf16>, vector<4x2xf32> -> vector<4x2xf32>
    %c0_10 = arith.constant 0 : index
    %c0_11 = arith.constant 0 : index
    %20 = vector.load %arg3[%c0_10, %c0_11] : memref<1x2xf32, #tpu.memory_space<vmem>>, vector<1x2xf32>
    %21 = vector.broadcast %20 : vector<1x2xf32> to vector<4x2xf32>
    %22 = arith.addf %19, %21 : vector<4x2xf32>
    %cst_12 = arith.constant 0.000000e+00 : f32
    %23 = vector.broadcast %cst_12 : f32 to vector<4x2xf32>
    %24 = arith.maximumf %22, %23 : vector<4x2xf32>
    %c0_13 = arith.constant 0 : index
    %c0_14 = arith.constant 0 : index
    %25 = vector.load %arg4[%c0_13, %c0_14] : memref<2x32xbf16, #tpu.memory_space<vmem>>, vector<2x32xbf16>
    %26 = arith.truncf %24 : vector<4x2xf32> to vector<4x2xbf16>
    %cst_15 = arith.constant dense<0.000000e+00> : vector<4x32xf32>
    %27 = tpu.matmul %26, %25, %cst_15 {dimension_numbers = #tpu.dot_dimension_numbers<[1], [0], [0], [1], [0, 0, 1, 1], [], []>} : vector<4x2xbf16>, vector<2x32xbf16>, vector<4x32xf32> -> vector<4x32xf32>
    %c0_16 = arith.constant 0 : index
    %c0_17 = arith.constant 0 : index
    %28 = vector.load %arg5[%c0_16, %c0_17] : memref<1x32xf32, #tpu.memory_space<vmem>>, vector<1x32xf32>
    %29 = vector.broadcast %28 : vector<1x32xf32> to vector<4x32xf32>
    %30 = arith.addf %27, %29 : vector<4x32xf32>
    %31 = vector.extract_strided_slice %30 {offsets = [0, 0], sizes = [2, 32], strides = [1, 1]} : vector<4x32xf32> to vector<2x32xf32>
    %32 = vector.extract_strided_slice %30 {offsets = [2, 0], sizes = [2, 32], strides = [1, 1]} : vector<4x32xf32> to vector<2x32xf32>
    %33 = arith.addf %31, %32 : vector<2x32xf32>
    %cst_18 = arith.constant 5.000000e-01 : f32
    %34 = vector.broadcast %cst_18 : f32 to vector<2x32xf32>
    %35 = arith.mulf %34, %33 : vector<2x32xf32>
    %36 = math.tanh %35 : vector<2x32xf32>
    %cst_19 = arith.constant 1.000000e+00 : f32
    %37 = vector.broadcast %cst_19 : f32 to vector<2x32xf32>
    %38 = arith.addf %36, %37 : vector<2x32xf32>
    %cst_20 = arith.constant 5.000000e-01 : f32
    %39 = vector.broadcast %cst_20 : f32 to vector<2x32xf32>
    %40 = arith.mulf %39, %38 : vector<2x32xf32>
    %c0_21 = arith.constant 0 : index
    %c0_22 = arith.constant 0 : index
    %41 = vector.load %arg7[%c0_21, %c0_22] : memref<1x4xf32, #tpu.memory_space<vmem>>, vector<1x1xf32>
    %c0_23 = arith.constant 0 : index
    %c1 = arith.constant 1 : index
    %42 = vector.load %arg7[%c0_23, %c1] : memref<1x4xf32, #tpu.memory_space<vmem>>, vector<1x1xf32>
    %c0_24 = arith.constant 0 : index
    %c2 = arith.constant 2 : index
    %43 = vector.load %arg7[%c0_24, %c2] : memref<1x4xf32, #tpu.memory_space<vmem>>, vector<1x1xf32>
    %c0_25 = arith.constant 0 : index
    %c3 = arith.constant 3 : index
    %44 = vector.load %arg7[%c0_25, %c3] : memref<1x4xf32, #tpu.memory_space<vmem>>, vector<1x1xf32>
    %cst_26 = arith.constant 9.99999974E-6 : f32
    %45 = vector.broadcast %cst_26 : f32 to vector<1x1xf32>
    %46 = arith.addf %44, %45 : vector<1x1xf32>
    %47 = math.rsqrt %46 : vector<1x1xf32>
    %48 = arith.mulf %41, %47 : vector<1x1xf32>
    %c0_27 = arith.constant 0 : index
    %c0_28 = arith.constant 0 : index
    %49 = vector.load %arg6[%c0_27, %c0_28] : memref<64x128xbf16, #tpu.memory_space<vmem>>, vector<64x128xbf16>
    %50 = vector.extract_strided_slice %40 {offsets = [0, 0], sizes = [1, 32], strides = [1, 1]} : vector<2x32xf32> to vector<1x32xf32>
    %51 = vector.broadcast %50 : vector<1x32xf32> to vector<64x32xf32>
    %52 = arith.mulf %2, %51 : vector<64x32xf32>
    %cst_29 = arith.constant dense<0xFF800000> : vector<64xf32>
    %53 = vector.multi_reduction <maximumf>, %52, %cst_29 [1] : vector<64x32xf32> to vector<64xf32>
    %54 = vector.shape_cast %53 : vector<64xf32> to vector<64x1xf32>
    %cst_30 = arith.constant dense<0.000000e+00> : vector<64xf32>
    %55 = vector.multi_reduction <add>, %52, %cst_30 [1] : vector<64x32xf32> to vector<64xf32>
    %56 = vector.shape_cast %55 : vector<64xf32> to vector<64x1xf32>
    %cst_31 = arith.constant 3.200000e+01 : f32
    %57 = vector.broadcast %cst_31 : f32 to vector<64x1xf32>
    %58 = arith.divf %56, %57 : vector<64x1xf32>
    %59 = tpu.concatenate %54, %58 in 0 : vector<64x1xf32>, vector<64x1xf32> -> vector<128x1xf32>
    %60 = arith.truncf %59 : vector<128x1xf32> to vector<128x1xbf16>
    %cst_32 = arith.constant dense<0.000000e+00> : vector<64x1xf32>
    %61 = tpu.matmul %49, %60, %cst_32 {dimension_numbers = #tpu.dot_dimension_numbers<[1], [0], [0], [1], [0, 0, 1, 1], [], []>} : vector<64x128xbf16>, vector<128x1xbf16>, vector<64x1xf32> -> vector<64x1xf32>
    %62 = vector.broadcast %43 : vector<1x1xf32> to vector<64x1xf32>
    %63 = arith.subf %61, %62 : vector<64x1xf32>
    %64 = vector.broadcast %48 : vector<1x1xf32> to vector<64x1xf32>
    %65 = arith.mulf %63, %64 : vector<64x1xf32>
    %66 = vector.broadcast %42 : vector<1x1xf32> to vector<64x1xf32>
    %67 = arith.addf %65, %66 : vector<64x1xf32>
    %cst_33 = arith.constant 5.000000e-01 : f32
    %68 = vector.broadcast %cst_33 : f32 to vector<64x1xf32>
    %69 = arith.mulf %68, %67 : vector<64x1xf32>
    %70 = math.tanh %69 : vector<64x1xf32>
    %cst_34 = arith.constant 1.000000e+00 : f32
    %71 = vector.broadcast %cst_34 : f32 to vector<64x1xf32>
    %72 = arith.addf %70, %71 : vector<64x1xf32>
    %cst_35 = arith.constant 5.000000e-01 : f32
    %73 = vector.broadcast %cst_35 : f32 to vector<64x1xf32>
    %74 = arith.mulf %73, %72 : vector<64x1xf32>
    %75 = vector.broadcast %74 : vector<64x1xf32> to vector<64x32xf32>
    %76 = arith.mulf %52, %75 : vector<64x32xf32>
    %77 = vector.extract_strided_slice %40 {offsets = [1, 0], sizes = [1, 32], strides = [1, 1]} : vector<2x32xf32> to vector<1x32xf32>
    %78 = vector.broadcast %77 : vector<1x32xf32> to vector<64x32xf32>
    %79 = arith.mulf %3, %78 : vector<64x32xf32>
    %cst_36 = arith.constant dense<0xFF800000> : vector<64xf32>
    %80 = vector.multi_reduction <maximumf>, %79, %cst_36 [1] : vector<64x32xf32> to vector<64xf32>
    %81 = vector.shape_cast %80 : vector<64xf32> to vector<64x1xf32>
    %cst_37 = arith.constant dense<0.000000e+00> : vector<64xf32>
    %82 = vector.multi_reduction <add>, %79, %cst_37 [1] : vector<64x32xf32> to vector<64xf32>
    %83 = vector.shape_cast %82 : vector<64xf32> to vector<64x1xf32>
    %cst_38 = arith.constant 3.200000e+01 : f32
    %84 = vector.broadcast %cst_38 : f32 to vector<64x1xf32>
    %85 = arith.divf %83, %84 : vector<64x1xf32>
    %86 = tpu.concatenate %81, %85 in 0 : vector<64x1xf32>, vector<64x1xf32> -> vector<128x1xf32>
    %87 = arith.truncf %86 : vector<128x1xf32> to vector<128x1xbf16>
    %cst_39 = arith.constant dense<0.000000e+00> : vector<64x1xf32>
    %88 = tpu.matmul %49, %87, %cst_39 {dimension_numbers = #tpu.dot_dimension_numbers<[1], [0], [0], [1], [0, 0, 1, 1], [], []>} : vector<64x128xbf16>, vector<128x1xbf16>, vector<64x1xf32> -> vector<64x1xf32>
    %89 = vector.broadcast %43 : vector<1x1xf32> to vector<64x1xf32>
    %90 = arith.subf %88, %89 : vector<64x1xf32>
    %91 = vector.broadcast %48 : vector<1x1xf32> to vector<64x1xf32>
    %92 = arith.mulf %90, %91 : vector<64x1xf32>
    %93 = vector.broadcast %42 : vector<1x1xf32> to vector<64x1xf32>
    %94 = arith.addf %92, %93 : vector<64x1xf32>
    %cst_40 = arith.constant 5.000000e-01 : f32
    %95 = vector.broadcast %cst_40 : f32 to vector<64x1xf32>
    %96 = arith.mulf %95, %94 : vector<64x1xf32>
    %97 = math.tanh %96 : vector<64x1xf32>
    %cst_41 = arith.constant 1.000000e+00 : f32
    %98 = vector.broadcast %cst_41 : f32 to vector<64x1xf32>
    %99 = arith.addf %97, %98 : vector<64x1xf32>
    %cst_42 = arith.constant 5.000000e-01 : f32
    %100 = vector.broadcast %cst_42 : f32 to vector<64x1xf32>
    %101 = arith.mulf %100, %99 : vector<64x1xf32>
    %102 = vector.broadcast %101 : vector<64x1xf32> to vector<64x32xf32>
    %103 = arith.mulf %79, %102 : vector<64x32xf32>
    %104 = tpu.concatenate %76, %103 in 0 : vector<64x32xf32>, vector<64x32xf32> -> vector<128x32xf32>
    %c0_43 = arith.constant 0 : index
    %c0_44 = arith.constant 0 : index
    %105 = vector.load %arg8[%c0_43, %c0_44] : memref<32x96xbf16, #tpu.memory_space<vmem>>, vector<32x96xbf16>
    %106 = arith.truncf %104 : vector<128x32xf32> to vector<128x32xbf16>
    %cst_45 = arith.constant dense<0.000000e+00> : vector<128x96xf32>
    %107 = tpu.matmul %106, %105, %cst_45 {dimension_numbers = #tpu.dot_dimension_numbers<[1], [0], [0], [1], [0, 0, 1, 1], [], []>} : vector<128x32xbf16>, vector<32x96xbf16>, vector<128x96xf32> -> vector<128x96xf32>
    %c0_46 = arith.constant 0 : index
    %c0_47 = arith.constant 0 : index
    %108 = vector.load %arg9[%c0_46, %c0_47] : memref<1x96xf32, #tpu.memory_space<vmem>>, vector<1x96xf32>
    %109 = vector.broadcast %108 : vector<1x96xf32> to vector<128x96xf32>
    %110 = arith.addf %107, %109 : vector<128x96xf32>
    %111 = vector.extract_strided_slice %110 {offsets = [0, 0], sizes = [128, 4], strides = [1, 1]} : vector<128x96xf32> to vector<128x4xf32>
    %112 = vector.shape_cast %111 : vector<128x4xf32> to vector<2x64x4xf32>
    %113 = vector.extract_strided_slice %110 {offsets = [0, 32], sizes = [128, 4], strides = [1, 1]} : vector<128x96xf32> to vector<128x4xf32>
    %114 = vector.shape_cast %113 : vector<128x4xf32> to vector<2x64x4xf32>
    %115 = vector.extract_strided_slice %110 {offsets = [0, 64], sizes = [128, 4], strides = [1, 1]} : vector<128x96xf32> to vector<128x4xf32>
    %116 = vector.shape_cast %115 : vector<128x4xf32> to vector<2x64x4xf32>
    %117 = arith.truncf %112 : vector<2x64x4xf32> to vector<2x64x4xbf16>
    %118 = arith.truncf %114 : vector<2x64x4xf32> to vector<2x64x4xbf16>
    "tpu.trace_start"() <{level = 10 : i32, message = "bqd,bkd->bqk"}> : () -> ()
    %cst_48 = arith.constant dense<0.000000e+00> : vector<2x64x64xf32>
    %119 = tpu.matmul %117, %118, %cst_48 {dimension_numbers = #tpu.dot_dimension_numbers<[2], [2], [1], [1], [0, 0, 0, 1, 1, 1], [0], [0]>} : vector<2x64x4xbf16>, vector<2x64x4xbf16>, vector<2x64x64xf32> -> vector<2x64x64xf32>
    "tpu.trace_stop"() : () -> ()
    %cst_49 = arith.constant 5.000000e-01 : f32
    %120 = vector.broadcast %cst_49 : f32 to vector<2x64x64xf32>
    %121 = arith.mulf %119, %120 : vector<2x64x64xf32>
    %cst_50 = arith.constant dense<0xFF800000> : vector<2x64xf32>
    %122 = vector.multi_reduction <maximumf>, %121, %cst_50 [2] : vector<2x64x64xf32> to vector<2x64xf32>
    %123 = vector.shape_cast %122 : vector<2x64xf32> to vector<2x64x1xf32>
    %124 = vector.broadcast %123 : vector<2x64x1xf32> to vector<2x64x64xf32>
    %125 = arith.subf %121, %124 : vector<2x64x64xf32>
    %126 = math.exp %125 : vector<2x64x64xf32>
    %cst_51 = arith.constant dense<0.000000e+00> : vector<2x64xf32>
    %127 = vector.multi_reduction <add>, %126, %cst_51 [2] : vector<2x64x64xf32> to vector<2x64xf32>
    %128 = vector.shape_cast %127 : vector<2x64xf32> to vector<2x64x1xf32>
    %129 = arith.truncf %126 : vector<2x64x64xf32> to vector<2x64x64xbf16>
    %130 = arith.truncf %116 : vector<2x64x4xf32> to vector<2x64x4xbf16>
    "tpu.trace_start"() <{level = 10 : i32, message = "bqk,bkd->bqd"}> : () -> ()
    %cst_52 = arith.constant dense<0.000000e+00> : vector<2x64x4xf32>
    %131 = tpu.matmul %129, %130, %cst_52 {dimension_numbers = #tpu.dot_dimension_numbers<[2], [1], [1], [2], [0, 0, 0, 1, 1, 2], [0], [0]>} : vector<2x64x64xbf16>, vector<2x64x4xbf16>, vector<2x64x4xf32> -> vector<2x64x4xf32>
    "tpu.trace_stop"() : () -> ()
    %132 = tpu.reciprocal %128 {approx = true} : vector<2x64x1xf32> -> vector<2x64x1xf32>
    %133 = vector.broadcast %132 : vector<2x64x1xf32> to vector<2x64x4xf32>
    %134 = arith.mulf %131, %133 : vector<2x64x4xf32>
    %135 = vector.shape_cast %134 : vector<2x64x4xf32> to vector<128x4xf32>
    %136 = vector.extract_strided_slice %110 {offsets = [0, 4], sizes = [128, 4], strides = [1, 1]} : vector<128x96xf32> to vector<128x4xf32>
    %137 = vector.shape_cast %136 : vector<128x4xf32> to vector<2x64x4xf32>
    %138 = vector.extract_strided_slice %110 {offsets = [0, 36], sizes = [128, 4], strides = [1, 1]} : vector<128x96xf32> to vector<128x4xf32>
    %139 = vector.shape_cast %138 : vector<128x4xf32> to vector<2x64x4xf32>
    %140 = vector.extract_strided_slice %110 {offsets = [0, 68], sizes = [128, 4], strides = [1, 1]} : vector<128x96xf32> to vector<128x4xf32>
    %141 = vector.shape_cast %140 : vector<128x4xf32> to vector<2x64x4xf32>
    %142 = arith.truncf %137 : vector<2x64x4xf32> to vector<2x64x4xbf16>
    %143 = arith.truncf %139 : vector<2x64x4xf32> to vector<2x64x4xbf16>
    "tpu.trace_start"() <{level = 10 : i32, message = "bqd,bkd->bqk"}> : () -> ()
    %cst_53 = arith.constant dense<0.000000e+00> : vector<2x64x64xf32>
    %144 = tpu.matmul %142, %143, %cst_53 {dimension_numbers = #tpu.dot_dimension_numbers<[2], [2], [1], [1], [0, 0, 0, 1, 1, 1], [0], [0]>} : vector<2x64x4xbf16>, vector<2x64x4xbf16>, vector<2x64x64xf32> -> vector<2x64x64xf32>
    "tpu.trace_stop"() : () -> ()
    %cst_54 = arith.constant 5.000000e-01 : f32
    %145 = vector.broadcast %cst_54 : f32 to vector<2x64x64xf32>
    %146 = arith.mulf %144, %145 : vector<2x64x64xf32>
    %cst_55 = arith.constant dense<0xFF800000> : vector<2x64xf32>
    %147 = vector.multi_reduction <maximumf>, %146, %cst_55 [2] : vector<2x64x64xf32> to vector<2x64xf32>
    %148 = vector.shape_cast %147 : vector<2x64xf32> to vector<2x64x1xf32>
    %149 = vector.broadcast %148 : vector<2x64x1xf32> to vector<2x64x64xf32>
    %150 = arith.subf %146, %149 : vector<2x64x64xf32>
    %151 = math.exp %150 : vector<2x64x64xf32>
    %cst_56 = arith.constant dense<0.000000e+00> : vector<2x64xf32>
    %152 = vector.multi_reduction <add>, %151, %cst_56 [2] : vector<2x64x64xf32> to vector<2x64xf32>
    %153 = vector.shape_cast %152 : vector<2x64xf32> to vector<2x64x1xf32>
    %154 = arith.truncf %151 : vector<2x64x64xf32> to vector<2x64x64xbf16>
    %155 = arith.truncf %141 : vector<2x64x4xf32> to vector<2x64x4xbf16>
    "tpu.trace_start"() <{level = 10 : i32, message = "bqk,bkd->bqd"}> : () -> ()
    %cst_57 = arith.constant dense<0.000000e+00> : vector<2x64x4xf32>
    %156 = tpu.matmul %154, %155, %cst_57 {dimension_numbers = #tpu.dot_dimension_numbers<[2], [1], [1], [2], [0, 0, 0, 1, 1, 2], [0], [0]>} : vector<2x64x64xbf16>, vector<2x64x4xbf16>, vector<2x64x4xf32> -> vector<2x64x4xf32>
    "tpu.trace_stop"() : () -> ()
    %157 = tpu.reciprocal %153 {approx = true} : vector<2x64x1xf32> -> vector<2x64x1xf32>
    %158 = vector.broadcast %157 : vector<2x64x1xf32> to vector<2x64x4xf32>
    %159 = arith.mulf %156, %158 : vector<2x64x4xf32>
    %160 = vector.shape_cast %159 : vector<2x64x4xf32> to vector<128x4xf32>
    %161 = vector.extract_strided_slice %110 {offsets = [0, 8], sizes = [128, 4], strides = [1, 1]} : vector<128x96xf32> to vector<128x4xf32>
    %162 = vector.shape_cast %161 : vector<128x4xf32> to vector<2x64x4xf32>
    %163 = vector.extract_strided_slice %110 {offsets = [0, 40], sizes = [128, 4], strides = [1, 1]} : vector<128x96xf32> to vector<128x4xf32>
    %164 = vector.shape_cast %163 : vector<128x4xf32> to vector<2x64x4xf32>
    %165 = vector.extract_strided_slice %110 {offsets = [0, 72], sizes = [128, 4], strides = [1, 1]} : vector<128x96xf32> to vector<128x4xf32>
    %166 = vector.shape_cast %165 : vector<128x4xf32> to vector<2x64x4xf32>
    %167 = arith.truncf %162 : vector<2x64x4xf32> to vector<2x64x4xbf16>
    %168 = arith.truncf %164 : vector<2x64x4xf32> to vector<2x64x4xbf16>
    "tpu.trace_start"() <{level = 10 : i32, message = "bqd,bkd->bqk"}> : () -> ()
    %cst_58 = arith.constant dense<0.000000e+00> : vector<2x64x64xf32>
    %169 = tpu.matmul %167, %168, %cst_58 {dimension_numbers = #tpu.dot_dimension_numbers<[2], [2], [1], [1], [0, 0, 0, 1, 1, 1], [0], [0]>} : vector<2x64x4xbf16>, vector<2x64x4xbf16>, vector<2x64x64xf32> -> vector<2x64x64xf32>
    "tpu.trace_stop"() : () -> ()
    %cst_59 = arith.constant 5.000000e-01 : f32
    %170 = vector.broadcast %cst_59 : f32 to vector<2x64x64xf32>
    %171 = arith.mulf %169, %170 : vector<2x64x64xf32>
    %cst_60 = arith.constant dense<0xFF800000> : vector<2x64xf32>
    %172 = vector.multi_reduction <maximumf>, %171, %cst_60 [2] : vector<2x64x64xf32> to vector<2x64xf32>
    %173 = vector.shape_cast %172 : vector<2x64xf32> to vector<2x64x1xf32>
    %174 = vector.broadcast %173 : vector<2x64x1xf32> to vector<2x64x64xf32>
    %175 = arith.subf %171, %174 : vector<2x64x64xf32>
    %176 = math.exp %175 : vector<2x64x64xf32>
    %cst_61 = arith.constant dense<0.000000e+00> : vector<2x64xf32>
    %177 = vector.multi_reduction <add>, %176, %cst_61 [2] : vector<2x64x64xf32> to vector<2x64xf32>
    %178 = vector.shape_cast %177 : vector<2x64xf32> to vector<2x64x1xf32>
    %179 = arith.truncf %176 : vector<2x64x64xf32> to vector<2x64x64xbf16>
    %180 = arith.truncf %166 : vector<2x64x4xf32> to vector<2x64x4xbf16>
    "tpu.trace_start"() <{level = 10 : i32, message = "bqk,bkd->bqd"}> : () -> ()
    %cst_62 = arith.constant dense<0.000000e+00> : vector<2x64x4xf32>
    %181 = tpu.matmul %179, %180, %cst_62 {dimension_numbers = #tpu.dot_dimension_numbers<[2], [1], [1], [2], [0, 0, 0, 1, 1, 2], [0], [0]>} : vector<2x64x64xbf16>, vector<2x64x4xbf16>, vector<2x64x4xf32> -> vector<2x64x4xf32>
    "tpu.trace_stop"() : () -> ()
    %182 = tpu.reciprocal %178 {approx = true} : vector<2x64x1xf32> -> vector<2x64x1xf32>
    %183 = vector.broadcast %182 : vector<2x64x1xf32> to vector<2x64x4xf32>
    %184 = arith.mulf %181, %183 : vector<2x64x4xf32>
    %185 = vector.shape_cast %184 : vector<2x64x4xf32> to vector<128x4xf32>
    %186 = vector.extract_strided_slice %110 {offsets = [0, 12], sizes = [128, 4], strides = [1, 1]} : vector<128x96xf32> to vector<128x4xf32>
    %187 = vector.shape_cast %186 : vector<128x4xf32> to vector<2x64x4xf32>
    %188 = vector.extract_strided_slice %110 {offsets = [0, 44], sizes = [128, 4], strides = [1, 1]} : vector<128x96xf32> to vector<128x4xf32>
    %189 = vector.shape_cast %188 : vector<128x4xf32> to vector<2x64x4xf32>
    %190 = vector.extract_strided_slice %110 {offsets = [0, 76], sizes = [128, 4], strides = [1, 1]} : vector<128x96xf32> to vector<128x4xf32>
    %191 = vector.shape_cast %190 : vector<128x4xf32> to vector<2x64x4xf32>
    %192 = arith.truncf %187 : vector<2x64x4xf32> to vector<2x64x4xbf16>
    %193 = arith.truncf %189 : vector<2x64x4xf32> to vector<2x64x4xbf16>
    "tpu.trace_start"() <{level = 10 : i32, message = "bqd,bkd->bqk"}> : () -> ()
    %cst_63 = arith.constant dense<0.000000e+00> : vector<2x64x64xf32>
    %194 = tpu.matmul %192, %193, %cst_63 {dimension_numbers = #tpu.dot_dimension_numbers<[2], [2], [1], [1], [0, 0, 0, 1, 1, 1], [0], [0]>} : vector<2x64x4xbf16>, vector<2x64x4xbf16>, vector<2x64x64xf32> -> vector<2x64x64xf32>
    "tpu.trace_stop"() : () -> ()
    %cst_64 = arith.constant 5.000000e-01 : f32
    %195 = vector.broadcast %cst_64 : f32 to vector<2x64x64xf32>
    %196 = arith.mulf %194, %195 : vector<2x64x64xf32>
    %cst_65 = arith.constant dense<0xFF800000> : vector<2x64xf32>
    %197 = vector.multi_reduction <maximumf>, %196, %cst_65 [2] : vector<2x64x64xf32> to vector<2x64xf32>
    %198 = vector.shape_cast %197 : vector<2x64xf32> to vector<2x64x1xf32>
    %199 = vector.broadcast %198 : vector<2x64x1xf32> to vector<2x64x64xf32>
    %200 = arith.subf %196, %199 : vector<2x64x64xf32>
    %201 = math.exp %200 : vector<2x64x64xf32>
    %cst_66 = arith.constant dense<0.000000e+00> : vector<2x64xf32>
    %202 = vector.multi_reduction <add>, %201, %cst_66 [2] : vector<2x64x64xf32> to vector<2x64xf32>
    %203 = vector.shape_cast %202 : vector<2x64xf32> to vector<2x64x1xf32>
    %204 = arith.truncf %201 : vector<2x64x64xf32> to vector<2x64x64xbf16>
    %205 = arith.truncf %191 : vector<2x64x4xf32> to vector<2x64x4xbf16>
    "tpu.trace_start"() <{level = 10 : i32, message = "bqk,bkd->bqd"}> : () -> ()
    %cst_67 = arith.constant dense<0.000000e+00> : vector<2x64x4xf32>
    %206 = tpu.matmul %204, %205, %cst_67 {dimension_numbers = #tpu.dot_dimension_numbers<[2], [1], [1], [2], [0, 0, 0, 1, 1, 2], [0], [0]>} : vector<2x64x64xbf16>, vector<2x64x4xbf16>, vector<2x64x4xf32> -> vector<2x64x4xf32>
    "tpu.trace_stop"() : () -> ()
    %207 = tpu.reciprocal %203 {approx = true} : vector<2x64x1xf32> -> vector<2x64x1xf32>
    %208 = vector.broadcast %207 : vector<2x64x1xf32> to vector<2x64x4xf32>
    %209 = arith.mulf %206, %208 : vector<2x64x4xf32>
    %210 = vector.shape_cast %209 : vector<2x64x4xf32> to vector<128x4xf32>
    %211 = vector.extract_strided_slice %110 {offsets = [0, 16], sizes = [128, 4], strides = [1, 1]} : vector<128x96xf32> to vector<128x4xf32>
    %212 = vector.shape_cast %211 : vector<128x4xf32> to vector<2x64x4xf32>
    %213 = vector.extract_strided_slice %110 {offsets = [0, 48], sizes = [128, 4], strides = [1, 1]} : vector<128x96xf32> to vector<128x4xf32>
    %214 = vector.shape_cast %213 : vector<128x4xf32> to vector<2x64x4xf32>
    %215 = vector.extract_strided_slice %110 {offsets = [0, 80], sizes = [128, 4], strides = [1, 1]} : vector<128x96xf32> to vector<128x4xf32>
    %216 = vector.shape_cast %215 : vector<128x4xf32> to vector<2x64x4xf32>
    %217 = arith.truncf %212 : vector<2x64x4xf32> to vector<2x64x4xbf16>
    %218 = arith.truncf %214 : vector<2x64x4xf32> to vector<2x64x4xbf16>
    "tpu.trace_start"() <{level = 10 : i32, message = "bqd,bkd->bqk"}> : () -> ()
    %cst_68 = arith.constant dense<0.000000e+00> : vector<2x64x64xf32>
    %219 = tpu.matmul %217, %218, %cst_68 {dimension_numbers = #tpu.dot_dimension_numbers<[2], [2], [1], [1], [0, 0, 0, 1, 1, 1], [0], [0]>} : vector<2x64x4xbf16>, vector<2x64x4xbf16>, vector<2x64x64xf32> -> vector<2x64x64xf32>
    "tpu.trace_stop"() : () -> ()
    %cst_69 = arith.constant 5.000000e-01 : f32
    %220 = vector.broadcast %cst_69 : f32 to vector<2x64x64xf32>
    %221 = arith.mulf %219, %220 : vector<2x64x64xf32>
    %cst_70 = arith.constant dense<0xFF800000> : vector<2x64xf32>
    %222 = vector.multi_reduction <maximumf>, %221, %cst_70 [2] : vector<2x64x64xf32> to vector<2x64xf32>
    %223 = vector.shape_cast %222 : vector<2x64xf32> to vector<2x64x1xf32>
    %224 = vector.broadcast %223 : vector<2x64x1xf32> to vector<2x64x64xf32>
    %225 = arith.subf %221, %224 : vector<2x64x64xf32>
    %226 = math.exp %225 : vector<2x64x64xf32>
    %cst_71 = arith.constant dense<0.000000e+00> : vector<2x64xf32>
    %227 = vector.multi_reduction <add>, %226, %cst_71 [2] : vector<2x64x64xf32> to vector<2x64xf32>
    %228 = vector.shape_cast %227 : vector<2x64xf32> to vector<2x64x1xf32>
    %229 = arith.truncf %226 : vector<2x64x64xf32> to vector<2x64x64xbf16>
    %230 = arith.truncf %216 : vector<2x64x4xf32> to vector<2x64x4xbf16>
    "tpu.trace_start"() <{level = 10 : i32, message = "bqk,bkd->bqd"}> : () -> ()
    %cst_72 = arith.constant dense<0.000000e+00> : vector<2x64x4xf32>
    %231 = tpu.matmul %229, %230, %cst_72 {dimension_numbers = #tpu.dot_dimension_numbers<[2], [1], [1], [2], [0, 0, 0, 1, 1, 2], [0], [0]>} : vector<2x64x64xbf16>, vector<2x64x4xbf16>, vector<2x64x4xf32> -> vector<2x64x4xf32>
    "tpu.trace_stop"() : () -> ()
    %232 = tpu.reciprocal %228 {approx = true} : vector<2x64x1xf32> -> vector<2x64x1xf32>
    %233 = vector.broadcast %232 : vector<2x64x1xf32> to vector<2x64x4xf32>
    %234 = arith.mulf %231, %233 : vector<2x64x4xf32>
    %235 = vector.shape_cast %234 : vector<2x64x4xf32> to vector<128x4xf32>
    %236 = vector.extract_strided_slice %110 {offsets = [0, 20], sizes = [128, 4], strides = [1, 1]} : vector<128x96xf32> to vector<128x4xf32>
    %237 = vector.shape_cast %236 : vector<128x4xf32> to vector<2x64x4xf32>
    %238 = vector.extract_strided_slice %110 {offsets = [0, 52], sizes = [128, 4], strides = [1, 1]} : vector<128x96xf32> to vector<128x4xf32>
    %239 = vector.shape_cast %238 : vector<128x4xf32> to vector<2x64x4xf32>
    %240 = vector.extract_strided_slice %110 {offsets = [0, 84], sizes = [128, 4], strides = [1, 1]} : vector<128x96xf32> to vector<128x4xf32>
    %241 = vector.shape_cast %240 : vector<128x4xf32> to vector<2x64x4xf32>
    %242 = arith.truncf %237 : vector<2x64x4xf32> to vector<2x64x4xbf16>
    %243 = arith.truncf %239 : vector<2x64x4xf32> to vector<2x64x4xbf16>
    "tpu.trace_start"() <{level = 10 : i32, message = "bqd,bkd->bqk"}> : () -> ()
    %cst_73 = arith.constant dense<0.000000e+00> : vector<2x64x64xf32>
    %244 = tpu.matmul %242, %243, %cst_73 {dimension_numbers = #tpu.dot_dimension_numbers<[2], [2], [1], [1], [0, 0, 0, 1, 1, 1], [0], [0]>} : vector<2x64x4xbf16>, vector<2x64x4xbf16>, vector<2x64x64xf32> -> vector<2x64x64xf32>
    "tpu.trace_stop"() : () -> ()
    %cst_74 = arith.constant 5.000000e-01 : f32
    %245 = vector.broadcast %cst_74 : f32 to vector<2x64x64xf32>
    %246 = arith.mulf %244, %245 : vector<2x64x64xf32>
    %cst_75 = arith.constant dense<0xFF800000> : vector<2x64xf32>
    %247 = vector.multi_reduction <maximumf>, %246, %cst_75 [2] : vector<2x64x64xf32> to vector<2x64xf32>
    %248 = vector.shape_cast %247 : vector<2x64xf32> to vector<2x64x1xf32>
    %249 = vector.broadcast %248 : vector<2x64x1xf32> to vector<2x64x64xf32>
    %250 = arith.subf %246, %249 : vector<2x64x64xf32>
    %251 = math.exp %250 : vector<2x64x64xf32>
    %cst_76 = arith.constant dense<0.000000e+00> : vector<2x64xf32>
    %252 = vector.multi_reduction <add>, %251, %cst_76 [2] : vector<2x64x64xf32> to vector<2x64xf32>
    %253 = vector.shape_cast %252 : vector<2x64xf32> to vector<2x64x1xf32>
    %254 = arith.truncf %251 : vector<2x64x64xf32> to vector<2x64x64xbf16>
    %255 = arith.truncf %241 : vector<2x64x4xf32> to vector<2x64x4xbf16>
    "tpu.trace_start"() <{level = 10 : i32, message = "bqk,bkd->bqd"}> : () -> ()
    %cst_77 = arith.constant dense<0.000000e+00> : vector<2x64x4xf32>
    %256 = tpu.matmul %254, %255, %cst_77 {dimension_numbers = #tpu.dot_dimension_numbers<[2], [1], [1], [2], [0, 0, 0, 1, 1, 2], [0], [0]>} : vector<2x64x64xbf16>, vector<2x64x4xbf16>, vector<2x64x4xf32> -> vector<2x64x4xf32>
    "tpu.trace_stop"() : () -> ()
    %257 = tpu.reciprocal %253 {approx = true} : vector<2x64x1xf32> -> vector<2x64x1xf32>
    %258 = vector.broadcast %257 : vector<2x64x1xf32> to vector<2x64x4xf32>
    %259 = arith.mulf %256, %258 : vector<2x64x4xf32>
    %260 = vector.shape_cast %259 : vector<2x64x4xf32> to vector<128x4xf32>
    %261 = vector.extract_strided_slice %110 {offsets = [0, 24], sizes = [128, 4], strides = [1, 1]} : vector<128x96xf32> to vector<128x4xf32>
    %262 = vector.shape_cast %261 : vector<128x4xf32> to vector<2x64x4xf32>
    %263 = vector.extract_strided_slice %110 {offsets = [0, 56], sizes = [128, 4], strides = [1, 1]} : vector<128x96xf32> to vector<128x4xf32>
    %264 = vector.shape_cast %263 : vector<128x4xf32> to vector<2x64x4xf32>
    %265 = vector.extract_strided_slice %110 {offsets = [0, 88], sizes = [128, 4], strides = [1, 1]} : vector<128x96xf32> to vector<128x4xf32>
    %266 = vector.shape_cast %265 : vector<128x4xf32> to vector<2x64x4xf32>
    %267 = arith.truncf %262 : vector<2x64x4xf32> to vector<2x64x4xbf16>
    %268 = arith.truncf %264 : vector<2x64x4xf32> to vector<2x64x4xbf16>
    "tpu.trace_start"() <{level = 10 : i32, message = "bqd,bkd->bqk"}> : () -> ()
    %cst_78 = arith.constant dense<0.000000e+00> : vector<2x64x64xf32>
    %269 = tpu.matmul %267, %268, %cst_78 {dimension_numbers = #tpu.dot_dimension_numbers<[2], [2], [1], [1], [0, 0, 0, 1, 1, 1], [0], [0]>} : vector<2x64x4xbf16>, vector<2x64x4xbf16>, vector<2x64x64xf32> -> vector<2x64x64xf32>
    "tpu.trace_stop"() : () -> ()
    %cst_79 = arith.constant 5.000000e-01 : f32
    %270 = vector.broadcast %cst_79 : f32 to vector<2x64x64xf32>
    %271 = arith.mulf %269, %270 : vector<2x64x64xf32>
    %cst_80 = arith.constant dense<0xFF800000> : vector<2x64xf32>
    %272 = vector.multi_reduction <maximumf>, %271, %cst_80 [2] : vector<2x64x64xf32> to vector<2x64xf32>
    %273 = vector.shape_cast %272 : vector<2x64xf32> to vector<2x64x1xf32>
    %274 = vector.broadcast %273 : vector<2x64x1xf32> to vector<2x64x64xf32>
    %275 = arith.subf %271, %274 : vector<2x64x64xf32>
    %276 = math.exp %275 : vector<2x64x64xf32>
    %cst_81 = arith.constant dense<0.000000e+00> : vector<2x64xf32>
    %277 = vector.multi_reduction <add>, %276, %cst_81 [2] : vector<2x64x64xf32> to vector<2x64xf32>
    %278 = vector.shape_cast %277 : vector<2x64xf32> to vector<2x64x1xf32>
    %279 = arith.truncf %276 : vector<2x64x64xf32> to vector<2x64x64xbf16>
    %280 = arith.truncf %266 : vector<2x64x4xf32> to vector<2x64x4xbf16>
    "tpu.trace_start"() <{level = 10 : i32, message = "bqk,bkd->bqd"}> : () -> ()
    %cst_82 = arith.constant dense<0.000000e+00> : vector<2x64x4xf32>
    %281 = tpu.matmul %279, %280, %cst_82 {dimension_numbers = #tpu.dot_dimension_numbers<[2], [1], [1], [2], [0, 0, 0, 1, 1, 2], [0], [0]>} : vector<2x64x64xbf16>, vector<2x64x4xbf16>, vector<2x64x4xf32> -> vector<2x64x4xf32>
    "tpu.trace_stop"() : () -> ()
    %282 = tpu.reciprocal %278 {approx = true} : vector<2x64x1xf32> -> vector<2x64x1xf32>
    %283 = vector.broadcast %282 : vector<2x64x1xf32> to vector<2x64x4xf32>
    %284 = arith.mulf %281, %283 : vector<2x64x4xf32>
    %285 = vector.shape_cast %284 : vector<2x64x4xf32> to vector<128x4xf32>
    %286 = vector.extract_strided_slice %110 {offsets = [0, 28], sizes = [128, 4], strides = [1, 1]} : vector<128x96xf32> to vector<128x4xf32>
    %287 = vector.shape_cast %286 : vector<128x4xf32> to vector<2x64x4xf32>
    %288 = vector.extract_strided_slice %110 {offsets = [0, 60], sizes = [128, 4], strides = [1, 1]} : vector<128x96xf32> to vector<128x4xf32>
    %289 = vector.shape_cast %288 : vector<128x4xf32> to vector<2x64x4xf32>
    %290 = vector.extract_strided_slice %110 {offsets = [0, 92], sizes = [128, 4], strides = [1, 1]} : vector<128x96xf32> to vector<128x4xf32>
    %291 = vector.shape_cast %290 : vector<128x4xf32> to vector<2x64x4xf32>
    %292 = arith.truncf %287 : vector<2x64x4xf32> to vector<2x64x4xbf16>
    %293 = arith.truncf %289 : vector<2x64x4xf32> to vector<2x64x4xbf16>
    "tpu.trace_start"() <{level = 10 : i32, message = "bqd,bkd->bqk"}> : () -> ()
    %cst_83 = arith.constant dense<0.000000e+00> : vector<2x64x64xf32>
    %294 = tpu.matmul %292, %293, %cst_83 {dimension_numbers = #tpu.dot_dimension_numbers<[2], [2], [1], [1], [0, 0, 0, 1, 1, 1], [0], [0]>} : vector<2x64x4xbf16>, vector<2x64x4xbf16>, vector<2x64x64xf32> -> vector<2x64x64xf32>
    "tpu.trace_stop"() : () -> ()
    %cst_84 = arith.constant 5.000000e-01 : f32
    %295 = vector.broadcast %cst_84 : f32 to vector<2x64x64xf32>
    %296 = arith.mulf %294, %295 : vector<2x64x64xf32>
    %cst_85 = arith.constant dense<0xFF800000> : vector<2x64xf32>
    %297 = vector.multi_reduction <maximumf>, %296, %cst_85 [2] : vector<2x64x64xf32> to vector<2x64xf32>
    %298 = vector.shape_cast %297 : vector<2x64xf32> to vector<2x64x1xf32>
    %299 = vector.broadcast %298 : vector<2x64x1xf32> to vector<2x64x64xf32>
    %300 = arith.subf %296, %299 : vector<2x64x64xf32>
    %301 = math.exp %300 : vector<2x64x64xf32>
    %cst_86 = arith.constant dense<0.000000e+00> : vector<2x64xf32>
    %302 = vector.multi_reduction <add>, %301, %cst_86 [2] : vector<2x64x64xf32> to vector<2x64xf32>
    %303 = vector.shape_cast %302 : vector<2x64xf32> to vector<2x64x1xf32>
    %304 = arith.truncf %301 : vector<2x64x64xf32> to vector<2x64x64xbf16>
    %305 = arith.truncf %291 : vector<2x64x4xf32> to vector<2x64x4xbf16>
    "tpu.trace_start"() <{level = 10 : i32, message = "bqk,bkd->bqd"}> : () -> ()
    %cst_87 = arith.constant dense<0.000000e+00> : vector<2x64x4xf32>
    %306 = tpu.matmul %304, %305, %cst_87 {dimension_numbers = #tpu.dot_dimension_numbers<[2], [1], [1], [2], [0, 0, 0, 1, 1, 2], [0], [0]>} : vector<2x64x64xbf16>, vector<2x64x4xbf16>, vector<2x64x4xf32> -> vector<2x64x4xf32>
    "tpu.trace_stop"() : () -> ()
    %307 = tpu.reciprocal %303 {approx = true} : vector<2x64x1xf32> -> vector<2x64x1xf32>
    %308 = vector.broadcast %307 : vector<2x64x1xf32> to vector<2x64x4xf32>
    %309 = arith.mulf %306, %308 : vector<2x64x4xf32>
    %310 = vector.shape_cast %309 : vector<2x64x4xf32> to vector<128x4xf32>
    %311 = tpu.concatenate %135, %160, %185, %210, %235, %260, %285, %310 in 1 : vector<128x4xf32>, vector<128x4xf32>, vector<128x4xf32>, vector<128x4xf32>, vector<128x4xf32>, vector<128x4xf32>, vector<128x4xf32>, vector<128x4xf32> -> vector<128x32xf32>
    %c0_88 = arith.constant 0 : index
    %c0_89 = arith.constant 0 : index
    %312 = vector.load %arg10[%c0_88, %c0_89] : memref<32x32xbf16, #tpu.memory_space<vmem>>, vector<32x32xbf16>
    %313 = arith.truncf %311 : vector<128x32xf32> to vector<128x32xbf16>
    %cst_90 = arith.constant dense<0.000000e+00> : vector<128x32xf32>
    %314 = tpu.matmul %313, %312, %cst_90 {dimension_numbers = #tpu.dot_dimension_numbers<[1], [0], [0], [1], [0, 0, 1, 1], [], []>} : vector<128x32xbf16>, vector<32x32xbf16>, vector<128x32xf32> -> vector<128x32xf32>
    %c0_91 = arith.constant 0 : index
    %c0_92 = arith.constant 0 : index
    %315 = vector.load %arg11[%c0_91, %c0_92] : memref<1x32xf32, #tpu.memory_space<vmem>>, vector<1x32xf32>
    %316 = vector.broadcast %315 : vector<1x32xf32> to vector<128x32xf32>
    %317 = arith.addf %314, %316 : vector<128x32xf32>
    %318 = arith.addf %104, %317 : vector<128x32xf32>
    %319 = vector.extract_strided_slice %318 {offsets = [0, 0], sizes = [64, 32], strides = [1, 1]} : vector<128x32xf32> to vector<64x32xf32>
    %cst_93 = arith.constant dense<0.000000e+00> : vector<32xf32>
    %320 = vector.multi_reduction <add>, %319, %cst_93 [0] : vector<64x32xf32> to vector<32xf32>
    %321 = vector.shape_cast %320 : vector<32xf32> to vector<1x32xf32>
    %cst_94 = arith.constant 6.400000e+01 : f32
    %322 = vector.broadcast %cst_94 : f32 to vector<1x32xf32>
    %323 = arith.divf %321, %322 : vector<1x32xf32>
    %324 = vector.extract_strided_slice %318 {offsets = [64, 0], sizes = [64, 32], strides = [1, 1]} : vector<128x32xf32> to vector<64x32xf32>
    %cst_95 = arith.constant dense<0.000000e+00> : vector<32xf32>
    %325 = vector.multi_reduction <add>, %324, %cst_95 [0] : vector<64x32xf32> to vector<32xf32>
    %326 = vector.shape_cast %325 : vector<32xf32> to vector<1x32xf32>
    %cst_96 = arith.constant 6.400000e+01 : f32
    %327 = vector.broadcast %cst_96 : f32 to vector<1x32xf32>
    %328 = arith.divf %326, %327 : vector<1x32xf32>
    %329 = tpu.concatenate %323, %328 in 0 : vector<1x32xf32>, vector<1x32xf32> -> vector<2x32xf32>
    %cst_97 = arith.constant dense<0.000000e+00> : vector<2xf32>
    %330 = vector.multi_reduction <add>, %329, %cst_97 [1] : vector<2x32xf32> to vector<2xf32>
    %331 = vector.shape_cast %330 : vector<2xf32> to vector<2x1xf32>
    %cst_98 = arith.constant 3.200000e+01 : f32
    %332 = vector.broadcast %cst_98 : f32 to vector<2x1xf32>
    %333 = arith.divf %331, %332 : vector<2x1xf32>
    %334 = vector.broadcast %333 : vector<2x1xf32> to vector<2x32xf32>
    %335 = arith.subf %329, %334 : vector<2x32xf32>
    %336 = arith.mulf %335, %335 : vector<2x32xf32>
    %cst_99 = arith.constant dense<0.000000e+00> : vector<2xf32>
    %337 = vector.multi_reduction <add>, %336, %cst_99 [1] : vector<2x32xf32> to vector<2xf32>
    %338 = vector.shape_cast %337 : vector<2xf32> to vector<2x1xf32>
    %cst_100 = arith.constant 3.200000e+01 : f32
    %339 = vector.broadcast %cst_100 : f32 to vector<2x1xf32>
    %340 = arith.divf %338, %339 : vector<2x1xf32>
    %341 = vector.broadcast %333 : vector<2x1xf32> to vector<2x32xf32>
    %342 = arith.subf %329, %341 : vector<2x32xf32>
    %cst_101 = arith.constant 9.99999974E-6 : f32
    %343 = vector.broadcast %cst_101 : f32 to vector<2x1xf32>
    %344 = arith.addf %340, %343 : vector<2x1xf32>
    %345 = math.rsqrt %344 : vector<2x1xf32>
    %346 = vector.broadcast %345 : vector<2x1xf32> to vector<2x32xf32>
    %347 = arith.mulf %342, %346 : vector<2x32xf32>
    %c0_102 = arith.constant 0 : index
    %c0_103 = arith.constant 0 : index
    %348 = vector.load %arg12[%c0_102, %c0_103] : memref<1x32xf32, #tpu.memory_space<vmem>>, vector<1x32xf32>
    %349 = vector.broadcast %348 : vector<1x32xf32> to vector<2x32xf32>
    %350 = arith.mulf %347, %349 : vector<2x32xf32>
    %c0_104 = arith.constant 0 : index
    %c0_105 = arith.constant 0 : index
    %351 = vector.load %arg13[%c0_104, %c0_105] : memref<1x32xf32, #tpu.memory_space<vmem>>, vector<1x32xf32>
    %352 = vector.broadcast %351 : vector<1x32xf32> to vector<2x32xf32>
    %353 = arith.addf %350, %352 : vector<2x32xf32>
    %c0_106 = arith.constant 0 : index
    %c0_107 = arith.constant 0 : index
    %354 = vector.load %arg14[%c0_106, %c0_107] : memref<32x512xbf16, #tpu.memory_space<vmem>>, vector<32x512xbf16>
    %355 = arith.truncf %353 : vector<2x32xf32> to vector<2x32xbf16>
    %cst_108 = arith.constant dense<0.000000e+00> : vector<2x512xf32>
    %356 = tpu.matmul %355, %354, %cst_108 {dimension_numbers = #tpu.dot_dimension_numbers<[1], [0], [0], [1], [0, 0, 1, 1], [], []>} : vector<2x32xbf16>, vector<32x512xbf16>, vector<2x512xf32> -> vector<2x512xf32>
    %c0_109 = arith.constant 0 : index
    %c0_110 = arith.constant 0 : index
    %357 = vector.load %arg15[%c0_109, %c0_110] : memref<1x512xf32, #tpu.memory_space<vmem>>, vector<1x512xf32>
    %358 = vector.broadcast %357 : vector<1x512xf32> to vector<2x512xf32>
    %359 = arith.addf %356, %358 : vector<2x512xf32>
    %cst_111 = arith.constant 0.000000e+00 : f32
    %360 = vector.broadcast %cst_111 : f32 to vector<2x512xf32>
    %361 = arith.maximumf %359, %360 : vector<2x512xf32>
    %c0_112 = arith.constant 0 : index
    %c0_113 = arith.constant 0 : index
    %362 = vector.load %arg16[%c0_112, %c0_113] : memref<512x128xbf16, #tpu.memory_space<vmem>>, vector<512x128xbf16>
    %363 = arith.truncf %361 : vector<2x512xf32> to vector<2x512xbf16>
    %cst_114 = arith.constant dense<0.000000e+00> : vector<2x128xf32>
    %364 = tpu.matmul %363, %362, %cst_114 {dimension_numbers = #tpu.dot_dimension_numbers<[1], [0], [0], [1], [0, 0, 1, 1], [], []>} : vector<2x512xbf16>, vector<512x128xbf16>, vector<2x128xf32> -> vector<2x128xf32>
    %c0_115 = arith.constant 0 : index
    %c0_116 = arith.constant 0 : index
    %365 = vector.load %arg17[%c0_115, %c0_116] : memref<1x128xf32, #tpu.memory_space<vmem>>, vector<1x128xf32>
    %366 = vector.broadcast %365 : vector<1x128xf32> to vector<2x128xf32>
    %367 = arith.addf %364, %366 : vector<2x128xf32>
    %368 = vector.extract_strided_slice %367 {offsets = [0, 0], sizes = [1, 128], strides = [1, 1]} : vector<2x128xf32> to vector<1x128xf32>
    %c0_117 = arith.constant 0 : index
    %c0_118 = arith.constant 0 : index
    %c0_119 = arith.constant 0 : index
    %369 = vector.load %arg18[%c0_117, %c0_118, %c0_119] : memref<2x1x128xf32, #tpu.memory_space<vmem>>, vector<1x1x128xf32>
    %370 = vector.shape_cast %369 : vector<1x1x128xf32> to vector<1x128xf32>
    %371 = vector.shape_cast %368 : vector<1x128xf32> to vector<1x1x128xf32>
    tpu.vector_store %arg18[%c0_117, %c0_118, %c0_119], %371 {strides = array<i32>} : memref<2x1x128xf32, #tpu.memory_space<vmem>>, vector<1x1x128xf32>,
    %372 = vector.extract_strided_slice %367 {offsets = [1, 0], sizes = [1, 128], strides = [1, 1]} : vector<2x128xf32> to vector<1x128xf32>
    %c1_120 = arith.constant 1 : index
    %c0_121 = arith.constant 0 : index
    %c0_122 = arith.constant 0 : index
    %373 = vector.load %arg18[%c1_120, %c0_121, %c0_122] : memref<2x1x128xf32, #tpu.memory_space<vmem>>, vector<1x1x128xf32>
    %374 = vector.shape_cast %373 : vector<1x1x128xf32> to vector<1x128xf32>
    %375 = vector.shape_cast %372 : vector<1x128xf32> to vector<1x1x128xf32>
    tpu.vector_store %arg18[%c1_120, %c0_121, %c0_122], %375 {strides = array<i32>} : memref<2x1x128xf32, #tpu.memory_space<vmem>>, vector<1x1x128xf32>,
    return
  }
  func.func @transform_0(%arg0: i32) -> (i32, i32, i32) {
    %c0_i32 = arith.constant 0 : i32
    %c0_i32_0 = arith.constant 0 : i32
    %c0_i32_1 = arith.constant 0 : i32
    return %arg0, %c0_i32, %c0_i32_0 : i32, i32, i32
  }
  func.func @transform_1(%arg0: i32) -> (i32, i32) {
    %c0_i32 = arith.constant 0 : i32
    %c0_i32_0 = arith.constant 0 : i32
    %c0_i32_1 = arith.constant 0 : i32
    return %c0_i32, %c0_i32_0 : i32, i32
  }
  func.func @transform_2(%arg0: i32) -> (i32, i32) {
    %c0_i32 = arith.constant 0 : i32
    %c0_i32_0 = arith.constant 0 : i32
    %c0_i32_1 = arith.constant 0 : i32
    return %c0_i32, %c0_i32_0 : i32, i32
  }
  func.func @transform_3(%arg0: i32) -> (i32, i32) {
    %c0_i32 = arith.constant 0 : i32
    %c0_i32_0 = arith.constant 0 : i32
    %c0_i32_1 = arith.constant 0 : i32
    return %c0_i32, %c0_i32_0 : i32, i32
  }
  func.func @transform_4(%arg0: i32) -> (i32, i32) {
    %c0_i32 = arith.constant 0 : i32
    %c0_i32_0 = arith.constant 0 : i32
    %c0_i32_1 = arith.constant 0 : i32
    return %c0_i32, %c0_i32_0 : i32, i32
  }
  func.func @transform_5(%arg0: i32) -> (i32, i32) {
    %c0_i32 = arith.constant 0 : i32
    %c0_i32_0 = arith.constant 0 : i32
    %c0_i32_1 = arith.constant 0 : i32
    return %c0_i32, %c0_i32_0 : i32, i32
  }
  func.func @transform_6(%arg0: i32) -> (i32, i32) {
    %c0_i32 = arith.constant 0 : i32
    %c0_i32_0 = arith.constant 0 : i32
    %c0_i32_1 = arith.constant 0 : i32
    return %c0_i32, %c0_i32_0 : i32, i32
  }
  func.func @transform_7(%arg0: i32) -> (i32, i32) {
    %c0_i32 = arith.constant 0 : i32
    %c0_i32_0 = arith.constant 0 : i32
    %c0_i32_1 = arith.constant 0 : i32
    return %c0_i32, %c0_i32_0 : i32, i32
  }
  func.func @transform_8(%arg0: i32) -> (i32, i32) {
    %c0_i32 = arith.constant 0 : i32
    %c0_i32_0 = arith.constant 0 : i32
    %c0_i32_1 = arith.constant 0 : i32
    return %c0_i32, %c0_i32_0 : i32, i32
  }
  func.func @transform_9(%arg0: i32) -> (i32, i32) {
    %c0_i32 = arith.constant 0 : i32
    %c0_i32_0 = arith.constant 0 : i32
    %c0_i32_1 = arith.constant 0 : i32
    return %c0_i32, %c0_i32_0 : i32, i32
  }
  func.func @transform_10(%arg0: i32) -> (i32, i32) {
    %c0_i32 = arith.constant 0 : i32
    %c0_i32_0 = arith.constant 0 : i32
    %c0_i32_1 = arith.constant 0 : i32
    return %c0_i32, %c0_i32_0 : i32, i32
  }
  func.func @transform_11(%arg0: i32) -> (i32, i32) {
    %c0_i32 = arith.constant 0 : i32
    %c0_i32_0 = arith.constant 0 : i32
    %c0_i32_1 = arith.constant 0 : i32
    return %c0_i32, %c0_i32_0 : i32, i32
  }
  func.func @transform_12(%arg0: i32) -> (i32, i32) {
    %c0_i32 = arith.constant 0 : i32
    %c0_i32_0 = arith.constant 0 : i32
    %c0_i32_1 = arith.constant 0 : i32
    return %c0_i32, %c0_i32_0 : i32, i32
  }
  func.func @transform_13(%arg0: i32) -> (i32, i32) {
    %c0_i32 = arith.constant 0 : i32
    %c0_i32_0 = arith.constant 0 : i32
    %c0_i32_1 = arith.constant 0 : i32
    return %c0_i32, %c0_i32_0 : i32, i32
  }
  func.func @transform_14(%arg0: i32) -> (i32, i32) {
    %c0_i32 = arith.constant 0 : i32
    %c0_i32_0 = arith.constant 0 : i32
    %c0_i32_1 = arith.constant 0 : i32
    return %c0_i32, %c0_i32_0 : i32, i32
  }
  func.func @transform_15(%arg0: i32) -> (i32, i32) {
    %c0_i32 = arith.constant 0 : i32
    %c0_i32_0 = arith.constant 0 : i32
    %c0_i32_1 = arith.constant 0 : i32
    return %c0_i32, %c0_i32_0 : i32, i32
  }
  func.func @transform_16(%arg0: i32) -> (i32, i32) {
    %c0_i32 = arith.constant 0 : i32
    %c0_i32_0 = arith.constant 0 : i32
    %c0_i32_1 = arith.constant 0 : i32
    return %c0_i32, %c0_i32_0 : i32, i32
  }
  func.func @transform_17(%arg0: i32) -> (i32, i32, i32) {
    %c0_i32 = arith.constant 0 : i32
    %c0_i32_0 = arith.constant 0 : i32
    %c0_i32_1 = arith.constant 0 : i32
    return %arg0, %c0_i32, %c0_i32_0 : i32, i32, i32
  }
}

</mosaic_0001>

<bundles_post_ra>
// kernel: tpu_custom_call.1
= control target key start
LH: loop header
LB: loop body
LE: loop exit
PB: predicated region body
PF: predicated region fallthrough
CT: control target
= control target key end

     0   :  { %s13441_s0 = inlined_call_operand.vmem [shape: f32[2,64,32], index: 0, kind: input, shape index: {}]   ;;  %s13442_s1 = inlined_call_operand.vmem [shape: bf16[32,2], index: 1, kind: input, shape index: {}]   ;;  %s13443_s2 = inlined_call_operand.vmem [shape: f32[1,2], index: 2, kind: input, shape index: {}]   ;;  %s13444_s3 = inlined_call_operand.vmem [shape: bf16[2,32], index: 3, kind: input, shape index: {}]   ;;  %s13445_s4 = inlined_call_operand.vmem [shape: f32[1,32], index: 4, kind: input, shape index: {}]   ;;  %s13446_s5 = inlined_call_operand.hbm [shape: bf16[64,128], index: 5, kind: input, shape index: {}]   ;;  %s13447_s6 = inlined_call_operand.vmem [shape: f32[1,4], index: 6, kind: input, shape index: {}]   ;;  %s13448_s7 = inlined_call_operand.hbm [shape: bf16[32,96], index: 7, kind: input, shape index: {}]   ;;  %s13449_s8 = inlined_call_operand.vmem [shape: f32[1,96], index: 8, kind: input, shape index: {}]   ;;  %s13450_s9 = inlined_call_operand.hbm [shape: bf16[32,32], index: 9, kind: input, shape index: {}]   ;;  %s13451_s10 = inlined_call_operand.hbm [shape: f32[1,32], index: 10, kind: input, shape index: {}]   ;;  %s13452_s11 = inlined_call_operand.hbm [shape: f32[1,32], index: 11, kind: input, shape index: {}]   ;;  %s13453_s12 = inlined_call_operand.hbm [shape: f32[1,32], index: 12, kind: input, shape index: {}]   ;;  %s13454_s13 = inlined_call_operand.hbm [shape: bf16[32,512], index: 13, kind: input, shape index: {}]   ;;  %s13455_s14 = inlined_call_operand.vmem [shape: f32[1,512], index: 14, kind: input, shape index: {}]   ;;  %s13456_s15 = inlined_call_operand.vmem [shape: bf16[512,128], index: 15, kind: input, shape index: {}]   ;;  %s13457_s16 = inlined_call_operand.vmem [shape: f32[1,128], index: 16, kind: input, shape index: {}]   ;;  %s13458_s17 = inlined_call_operand.hbm [shape: f32[2,1,128], index: 17, kind: output, shape index: {}]  }
   0x1   :  { %13596 = sst [smem:[#allocation209_spill]] %s13441_s0 }
   0x2   :  { %13597 = sst [smem:[#allocation210_spill]] %s13442_s1 }
   0x3   :  { %22 = vsyncpa [#allocation3], 0 }
   0x4   :  { %23 = vsyncpa [#allocation6], 0 }
   0x5   :  { %24 = vsyncpa [#allocation9], 0 }
   0x6   :  { %25 = vsyncpa [#allocation12], 0 }
   0x7   :  { %26 = vsyncpa [#allocation4], 0  ;;  %s9492_s24 = smov [#allocation5]   ;;  %s9493_s26 = smov [#allocation8]  }
   0x8   :  { %s56_s25 = sshll.u32 %s9492_s24, 4  ;;  %s83_s27 = sshll.u32 %s9493_s26, 4  ;;  %s57_s25 = int_to_ptr.vmem [resolvable:$true] %s56_s25  ;;  %s9628_s27 = int_to_ptr.vmem [resolvable:$true] %s83_s27 }
   0x9   :  { %s9306_s0 = scalar_lea.hbm %s13448_s7, 256 }
   0xa   :  { %p9307_p0 = scmp.ne.s32.totalorder %s13448_s7, %s9306_s0  ;;  %p9310_p1 = scmp.lt.u32.totalorder %s9306_s0, %s13448_s7 }
   0xc   :  { %p9312_p2 = pnand %p9310_p1, %p9307_p0 }
   0xe   :  { %9315 = shalt.err (!%p9312_p2)
}
   0xf   :  { %s9316_s20 = scalar_lea.vmem %s57_s25, 256  ;;  %p9321_p4 = scmp.lt.s32.totalorder %s57_s25, %s57_s25 }
  0x10   :  { %p9317_p3 = scmp.ne.s32.totalorder %s57_s25, %s9316_s20  ;;  %p9322_p5 = scmp.lt.s32.totalorder %s9316_s20, %s9316_s20 }
  0x12   :  { %p9323_p6 = por %p9322_p5, %p9321_p4 }
  0x14   :  { %p9324_p7 = pnand %p9323_p6, %p9317_p3 }
  0x16   :  { %9327 = shalt.err (!%p9324_p7)
}
  0x17   :  { %s9494_s21 = smov 64   ;;  %s9495_s22 = smov 4  }
  0x18   :  { %62 = dma.hbm_to_vmem [thread:$0]  %s13448_s7, 256, %s57_s25, [#allocation6], %s9494_s21, %s9494_s21, %s9495_s22  }
  0x19   :  { %s9328_s29 = scalar_lea.hbm %s13451_s10, 16 }
  0x1a   :  { %p9329_p8 = scmp.ne.s32.totalorder %s13451_s10, %s9328_s29  ;;  %p9332_p9 = scmp.lt.u32.totalorder %s9328_s29, %s13451_s10 }
  0x1c   :  { %p9334_p10 = pnand %p9332_p9, %p9329_p8 }
  0x1e   :  { %9337 = shalt.err (!%p9334_p10)
}
  0x1f   :  { %s9338_s1 = scalar_lea.vmem %s9628_s27, 16  ;;  %s9342_s7 = scalar_lea.vmem %s9628_s27, 32 }
  0x20   :  { %p9339_p11 = scmp.ne.s32.totalorder %s9628_s27, %s9338_s1  ;;  %p9343_p12 = scmp.lt.s32.totalorder %s9628_s27, %s9628_s27 }
  0x21   :  { %p9344_p13 = scmp.lt.s32.totalorder %s9342_s7, %s9338_s1 }
  0x23   :  { %p9345_p0 = por %p9344_p13, %p9343_p12 }
  0x25   :  { %p9346_p1 = pnand %p9345_p0, %p9339_p11 }
  0x27   :  { %9349 = shalt.err (!%p9346_p1)
}
  0x28   :  { %86 = dma.hbm_to_vmem [thread:$0]  %s13451_s10, 16, %s9628_s27, [#allocation9]  }
  0x29   :  { %s9496_s23 = smov [#allocation11]   ;;  %s9497_s26 = smov [#allocation2]  }
  0x2a   :  { %s103_s24 = sshll.u32 %s9496_s23, 4  ;;  %s42_s28 = sshll.u32 %s9497_s26, 4  ;;  %s104_s24 = int_to_ptr.vmem [resolvable:$true] %s103_s24  ;;  %s9663_s28 = int_to_ptr.vmem [resolvable:$true] %s42_s28 }
  0x2b   :  { %s9350_s30 = scalar_lea.hbm %s13453_s12, 16 }
  0x2c   :  { %p9351_p2 = scmp.ne.s32.totalorder %s13453_s12, %s9350_s30  ;;  %p9354_p3 = scmp.lt.u32.totalorder %s9350_s30, %s13453_s12 }
  0x2e   :  { %p9356_p4 = pnand %p9354_p3, %p9351_p2 }
  0x30   :  { %9359 = shalt.err (!%p9356_p4)
}
  0x31   :  { %s9360_s10 = scalar_lea.vmem %s104_s24, 16  ;;  %s9364_s27 = scalar_lea.vmem %s104_s24, 32 }
  0x32   :  { %p9361_p5 = scmp.ne.s32.totalorder %s104_s24, %s9360_s10  ;;  %p9365_p6 = scmp.lt.s32.totalorder %s104_s24, %s104_s24 }
  0x33   :  { %p9366_p7 = scmp.lt.s32.totalorder %s9364_s27, %s9360_s10 }
  0x35   :  { %p9367_p8 = por %p9366_p7, %p9365_p6 }
  0x37   :  { %p9368_p9 = pnand %p9367_p8, %p9361_p5 }
  0x39   :  { %9371 = shalt.err (!%p9368_p9)
}
  0x3a   :  { %106 = dma.hbm_to_vmem [thread:$0]  %s13453_s12, 16, %s104_s24, [#allocation12]  }
  0x3b   :  { %s9372_s29 = scalar_lea.hbm %s13446_s5, 512 }
  0x3c   :  { %p9373_p10 = scmp.ne.s32.totalorder %s13446_s5, %s9372_s29  ;;  %p9376_p11 = scmp.lt.u32.totalorder %s9372_s29, %s13446_s5 }
  0x3e   :  { %p9378_p12 = pnand %p9376_p11, %p9373_p10 }
  0x40   :  { %9381 = shalt.err (!%p9378_p12)
}
  0x41   :  { %s9382_s1 = scalar_lea.vmem %s9663_s28, 512  ;;  %p9387_p0 = scmp.lt.s32.totalorder %s9663_s28, %s9663_s28 }
  0x42   :  { %p9383_p13 = scmp.ne.s32.totalorder %s9663_s28, %s9382_s1  ;;  %p9388_p1 = scmp.lt.s32.totalorder %s9382_s1, %s9382_s1 }
  0x44   :  { %p9389_p2 = por %p9388_p1, %p9387_p0 }
  0x46   :  { %p9390_p3 = pnand %p9389_p2, %p9383_p13 }
  0x48   :  { %9393 = shalt.err (!%p9390_p3)
}
  0x49   :  { %48 = dma.hbm_to_vmem [thread:$0]  %s13446_s5, 512, %s9663_s28, [#allocation3], %s9494_s21, %s9494_s21, %s9495_s22  }
  0x4a   :  { %s9498_s7 = smov [#allocation7]   ;;  %s9499_s27 = smov [#allocation10]  }
  0x4b   :  { %s70_s10 = sshll.u32 %s9498_s7, 4  ;;  %s93_s25 = sshll.u32 %s9499_s27, 4  ;;  %s71_s10 = int_to_ptr.vmem [resolvable:$true] %s70_s10  ;;  %s94_s25 = int_to_ptr.vmem [resolvable:$true] %s93_s25 }
  0x4c   :  { %s9394_s26 = scalar_lea.hbm %s13450_s9, 256 }
  0x4d   :  { %p9395_p4 = scmp.ne.s32.totalorder %s13450_s9, %s9394_s26  ;;  %p9398_p5 = scmp.lt.u32.totalorder %s9394_s26, %s13450_s9 }
  0x4f   :  { %p9400_p6 = pnand %p9398_p5, %p9395_p4 }
  0x51   :  { %9403 = shalt.err (!%p9400_p6)
}
  0x52   :  { %s9404_s5 = scalar_lea.vmem %s71_s10, 256  ;;  %p9409_p8 = scmp.lt.s32.totalorder %s71_s10, %s71_s10 }
  0x53   :  { %p9405_p7 = scmp.ne.s32.totalorder %s71_s10, %s9404_s5  ;;  %p9410_p9 = scmp.lt.s32.totalorder %s9404_s5, %s9404_s5 }
  0x55   :  { %p9411_p10 = por %p9410_p9, %p9409_p8 }
  0x57   :  { %p9412_p11 = pnand %p9411_p10, %p9405_p7 }
  0x59   :  { %9415 = shalt.err (!%p9412_p11)
}
  0x5a   :  { %76 = dma.hbm_to_vmem [thread:$0]  %s13450_s9, 256, %s71_s10, [#allocation6], %s9494_s21, %s9494_s21, %s9495_s22  }
  0x5b   :  { %s9416_s24 = scalar_lea.hbm %s13452_s11, 16 }
  0x5c   :  { %p9417_p12 = scmp.ne.s32.totalorder %s13452_s11, %s9416_s24  ;;  %p9420_p13 = scmp.lt.u32.totalorder %s9416_s24, %s13452_s11 }
  0x5e   :  { %p9422_p0 = pnand %p9420_p13, %p9417_p12 }
  0x60   :  { %9425 = shalt.err (!%p9422_p0)
}
  0x61   :  { %s9426_s26 = scalar_lea.vmem %s94_s25, 16  ;;  %s9430_s29 = scalar_lea.vmem %s94_s25, 32 }
  0x62   :  { %p9427_p1 = scmp.ne.s32.totalorder %s94_s25, %s9426_s26  ;;  %p9431_p2 = scmp.lt.s32.totalorder %s94_s25, %s94_s25 }
  0x63   :  { %p9432_p3 = scmp.lt.s32.totalorder %s9430_s29, %s9426_s26 }
  0x65   :  { %p9433_p4 = por %p9432_p3, %p9431_p2 }
  0x67   :  { %p9434_p5 = pnand %p9433_p4, %p9427_p1 }
  0x69   :  { %9437 = shalt.err (!%p9434_p5)
}
  0x6a   :  { %96 = dma.hbm_to_vmem [thread:$0]  %s13452_s11, 16, %s94_s25, [#allocation9]  }
  0x6b   :  { %s9500_s0 = smov [#allocation13]   ;;  %s9438_s28 = scalar_lea.hbm %s13454_s13, 1024 }
  0x6c   :  { %s112_s30 = sshll.u32 %s9500_s0, 4  ;;  %p9439_p6 = scmp.ne.s32.totalorder %s13454_s13, %s9438_s28  ;;  %s113_s30 = int_to_ptr.vmem [resolvable:$true] %s112_s30 }
  0x6d   :  { %p9442_p7 = scmp.lt.u32.totalorder %s9438_s28, %s13454_s13 }
  0x6f   :  { %p9444_p8 = pnand %p9442_p7, %p9439_p6 }
  0x71   :  { %9447 = shalt.err (!%p9444_p8)
}
  0x72   :  { %s9448_s7 = scalar_lea.vmem %s113_s30, 1024  ;;  %p9453_p10 = scmp.lt.s32.totalorder %s113_s30, %s113_s30 }
  0x73   :  { %p9449_p9 = scmp.ne.s32.totalorder %s113_s30, %s9448_s7  ;;  %p9454_p11 = scmp.lt.s32.totalorder %s9448_s7, %s9448_s7 }
  0x75   :  { %p9455_p12 = por %p9454_p11, %p9453_p10 }
  0x77   :  { %p9456_p13 = pnand %p9455_p12, %p9449_p9 }
  0x79   :  { %9459 = shalt.err (!%p9456_p13)
}
  0x7a   :  { %s9501_s11 = smov 256   ;;  %s9502_s25 = smov 16  }
  0x7b   :  { %118 = dma.hbm_to_vmem [thread:$0]  %s13454_s13, 1024, %s113_s30, [#allocation12], %s9501_s11, %s9501_s11, %s9502_s25  }
  0x7c   :  { %9482 = dma.done.wait [#allocation3], 512  }
  0x7d   :  { %9483 = vsyncadd [#allocation3], 4294966784 }
  0x7e   :  { %9484 = dma.done.wait [#allocation6], 512  }
  0x7f   :  { %9485 = vsyncadd [#allocation6], 4294966784 }
  0x80   :  { %9486 = dma.done.wait [#allocation9], 32  }
  0x81   :  { %9487 = vsyncadd [#allocation9], 4294967264 }
  0x82   :  { %9488 = dma.done.wait [#allocation12], 1040  }
  0x83   :  { %9489 = vsyncadd [#allocation12], 4294966256  ;;  %v9503_v0 = vmov 0.0   ;;  %vm9504_vm0 = vmmov 0   ;;  %s13598_s29 = sld [smem:[#allocation210_spill]]  ;;  %vm163_vm1 = vcmask 261120  }
  0x84   :  { %7688 = vmatprep.subr.bf16.mxu0 %v9503_v0  ;;  %7692 = vmatprep.mubr.msk.bf16.mxu0 %vm9504_vm0, %v9503_v0  ;;  %s13599_s30 = sld [smem:[#allocation209_spill]]  ;;  %vm251_vm2 = vcmask 1040384   ;;  %vm253_vm3 = vcmask 1041408   ;;  %vm255_vm4 = vcmask 1042432   ;;  %vm334_vm5 = vcmask 15360   ;;  %s9506_s0 = smov 127  }
  0x85   :  { %7696 = vmatprep.subr.bf16.mxu1 %v9503_v0  ;;  %7698 = vmatprep.mubr.msk.bf16.mxu1 %vm9504_vm0, %v9503_v0  ;;  %s9507_s18 = smov 125   ;;  %vm1109_vm6 = vcmask 31744   ;;  %s9509_s28 = smov 96   ;;  %vm1316_vm7 = vcmask 523264   ;;  %vm6259_vm8 = vcmask 64512   ;;  %vm6276_vm9 = vcmask 97280  }
  0x86   :  { %s9512_s19 = smov 60   ;;  %s9513_s1 = smov 88   ;;  %vm6293_vm10 = vcmask 130048   ;;  %vm6310_vm11 = vcmask 162816   ;;  %vm6327_vm12 = vcmask 195584   ;;  %vm6344_vm13 = vcmask 228352  }
  0x87   :  { %s9514_s12 = smov 120   ;;  %s9515_s24 = smov 56   ;;  %vm6574_vm14 = vcmask 254976  }
  0x88   :  { %s9516_s7 = smov 84   ;;  %s9517_s11 = smov 116  }
  0x89   :  { %v8702_v1 = vld [vmem:[%s13598_s29] sm:$0xff]   ;;  %v8703_v2 = vld [vmem:[%s13598_s29 + $0x8] sm:$0xff]   ;;  %s9518_s27 = smov 52   ;;  %s9519_s20 = smov 80  }
  0x8a   :  { %7689 = vmatpush3.bf16.msra.mxu0 %v8702_v1  ;;  %v9746_v3 = vld [vmem:[%s13599_s30] sm:$0xff]  ;;  %v9751_v4 = vld [vmem:[%s13599_s30 + $0x8] sm:$0xff]  ;;  %v9756_v5 = vld [vmem:[%s13599_s30 + $0x10] sm:$0xff]  ;;  %s9520_s23 = smov 112   ;;  %s9522_s26 = smov 76  }
  0x8b   :  { %7690 = vmatprep.subr.bf16.mxu0 %v9503_v0  ;;  %v9761_v6 = vld [vmem:[%s13599_s30 + $0x18] sm:$0xff]  ;;  %v9766_v7 = vld [vmem:[%s13599_s30 + $0x20] sm:$0xff]  ;;  %v9771_v8 = vld [vmem:[%s13599_s30 + $0x28] sm:$0xff]  ;;  %v164_v9 = vsel %vm163_vm1, %v9746_v3, 0.0  ;;  %v165_v10 = vsel %vm163_vm1, %v9751_v4, 0.0  ;;  %v167_v11 = vsel %vm163_vm1, %v9756_v5, 0.0 }
  0x8c   :  { %v9782_v12 = vld [vmem:[%s13599_s30 + $0x30] sm:$0xff]  ;;  %v9787_v13 = vld [vmem:[%s13599_s30 + $0x38] sm:$0xff]  ;;  %v9792_v14 = vld [vmem:[%s13599_s30 + $0x40] sm:$0xff]  ;;  %v166_v15 = vadd.f32 %v165_v10, %v164_v9  ;;  %v169_v16 = vsel %vm163_vm1, %v9761_v6, 0.0  ;;  %v171_v17 = vsel %vm163_vm1, %v9766_v7, 0.0  ;;  %v173_v18 = vsel %vm163_vm1, %v9771_v8, 0.0 }
  0x8d   :  { %v9803_v19 = vld [vmem:[%s13599_s30 + $0x48] sm:$0xff]  ;;  %v9808_v20 = vld [vmem:[%s13599_s30 + $0x50] sm:$0xff]  ;;  %v9813_v21 = vld [vmem:[%s13599_s30 + $0x58] sm:$0xff]  ;;  %v175_v22 = vsel %vm163_vm1, %v9782_v12, 0.0  ;;  %v177_v23 = vsel %vm163_vm1, %v9787_v13, 0.0  ;;  %v187_v24 = vsel %vm163_vm1, %v9792_v14, 0.0 }
  0x8e   :  { %7691 = vmatpush3.bf16.msra.mxu0 %v8703_v2  ;;  %v9824_v25 = vld [vmem:[%s13599_s30 + $0x60] sm:$0xff]  ;;  %v9829_v26 = vld [vmem:[%s13599_s30 + $0x68] sm:$0xff]  ;;  %v9834_v27 = vld [vmem:[%s13599_s30 + $0x70] sm:$0xff]  ;;  %v168_v28 = vadd.f32 %v167_v11, %v166_v15  ;;  %v188_v29 = vsel %vm163_vm1, %v9803_v19, 0.0  ;;  %v190_v30 = vsel %vm163_vm1, %v9808_v20, 0.0  ;;  %v192_v31 = vsel %vm163_vm1, %v9813_v21, 0.0 }
  0x8f   :  { %v9845_v32 = vld [vmem:[%s13599_s30 + $0x78] sm:$0xff]  ;;  %v189_v33 = vadd.f32 %v188_v29, %v187_v24  ;;  %v194_v34 = vsel %vm163_vm1, %v9824_v25, 0.0  ;;  %v196_v35 = vsel %vm163_vm1, %v9829_v26, 0.0  ;;  %v198_v36 = vsel %vm163_vm1, %v9834_v27, 0.0  ;;  %s9521_s30 = smov 48   ;;  %s9523_s29 = smov 108  }
  0x90   :  { %v170_v37 = vadd.f32 %v169_v16, %v168_v28  ;;  %v200_v38 = vsel %vm163_vm1, %v9845_v32, 0.0  ;;  %v209_v39 = vsel %vm163_vm1, %v9746_v3, -inf  ;;  %v210_v40 = vsel %vm163_vm1, %v9751_v4, -inf  ;;  %s9524_s13 = smov 44   ;;  %s9525_s9 = smov 72  }
  0x91   :  { %v191_v41 = vadd.f32 %v190_v30, %v189_v33  ;;  %v211_v42 = vsel %vm163_vm1, %v9756_v5, -inf  ;;  %v212_v43 = vsel %vm163_vm1, %v9761_v6, -inf  ;;  %v213_v44 = vsel %vm163_vm1, %v9766_v7, -inf  ;;  %s9526_s10 = smov 104   ;;  %s9533_s5 = smov 8  }
  0x92   :  { %v172_v45 = vadd.f32 %v171_v17, %v170_v37  ;;  %v214_v46 = vmax.f32 %v209_v39, %v213_v44  ;;  %v215_v47 = vsel %vm163_vm1, %v9771_v8, -inf  ;;  %v217_v48 = vsel %vm163_vm1, %v9782_v12, -inf }
  0x93   :  { %v193_v49 = vadd.f32 %v192_v31, %v191_v41  ;;  %v216_v50 = vmax.f32 %v210_v40, %v215_v47  ;;  %v218_v51 = vmax.f32 %v211_v42, %v217_v48  ;;  %v219_v52 = vsel %vm163_vm1, %v9787_v13, -inf }
  0x94   :  { %v174_v53 = vadd.f32 %v173_v18, %v172_v45  ;;  %v220_v54 = vmax.f32 %v212_v43, %v219_v52  ;;  %v230_v55 = vsel %vm163_vm1, %v9792_v14, -inf  ;;  %v231_v56 = vsel %vm163_vm1, %v9803_v19, -inf }
  0x95   :  { %v195_v57 = vadd.f32 %v194_v34, %v193_v49  ;;  %v221_v58 = vmax.f32 %v214_v46, %v216_v50  ;;  %v232_v59 = vsel %vm163_vm1, %v9808_v20, -inf  ;;  %v233_v60 = vsel %vm163_vm1, %v9813_v21, -inf }
  0x96   :  { %v176_v61 = vadd.f32 %v175_v22, %v174_v53  ;;  %v222_v62 = vmax.f32 %v218_v51, %v220_v54  ;;  %v234_v63 = vsel %vm163_vm1, %v9824_v25, -inf  ;;  %v236_v0 = vsel %vm163_vm1, %v9829_v26, -inf }
  0x97   :  { %v197_v1 = vadd.f32 %v196_v35, %v195_v57  ;;  %v235_v2 = vmax.f32 %v230_v55, %v234_v63  ;;  %v237_v9 = vmax.f32 %v231_v56, %v236_v0  ;;  %v238_v10 = vsel %vm163_vm1, %v9834_v27, -inf  ;;  %v7134_v63 = vld [vmem:[%s13443_s2] ss:$0 sm:$0xff]  ;;  %s9527_s2 = smov 40  }
  0x98   :  { %v178_v11 = vadd.f32 %v177_v23, %v176_v61  ;;  %v223_v15 = vmax.f32 %v221_v58, %v222_v62  ;;  %v239_v16 = vmax.f32 %v232_v59, %v238_v10  ;;  %v240_v17 = vsel %vm163_vm1, %v9845_v32, -inf  ;;  %v325_v61 = vld [vmem:[%s13444_s3] sm:$0x1]  ;;  %s9528_s3 = smov 68  }
  0x99   :  { %v199_v18 = vadd.f32 %v198_v36, %v197_v1  ;;  %v241_v22 = vmax.f32 %v233_v60, %v240_v17  ;;  %v242_v24 = vmax.f32 %v235_v2, %v237_v9  ;;  %v339_v62 = vsel %vm251_vm2, %v325_v61, 0 }
  0x9a   :  { %v179_v28 = vrot.slane %v178_v11, 4  ;;  %v224_v29 = vrot.slane %v223_v15, 4  ;;  %7697 = vmatpush3.bf16.msra.mxu1 %v339_v62 }
  0x9b   :  { %v201_v30 = vadd.f32 %v200_v38, %v199_v18  ;;  %v243_v31 = vmax.f32 %v239_v16, %v241_v22  ;;  %v7138_v16 = vld [vmem:[%s13445_s4] ss:$0 sm:$0xff]  ;;  %s9505_s4 = smov 126  }
  0x9c   :  { %v180_v33 = vadd.f32 %v179_v28, %v178_v11  ;;  %v225_v34 = vmax.f32 %v223_v15, %v224_v29 }
  0x9d   :  { %v202_v35 = vrot.slane %v201_v30, 4  ;;  %v244_v37 = vmax.f32 %v242_v24, %v243_v31 }
  0x9e   :  { %v181_v39 = vrot.slane %v180_v33, 2  ;;  %v226_v40 = vrot.slane %v225_v34, 2 }
  0x9f   :  { %v203_v41 = vadd.f32 %v202_v35, %v201_v30  ;;  %v245_v23 = vrot.slane %v244_v37, 4 }
  0xa0   :  { %v182_v42 = vadd.f32 %v181_v39, %v180_v33  ;;  %v227_v43 = vmax.f32 %v225_v34, %v226_v40  ;;  %v405_v33 = vlaneseq }
  0xa1   :  { %v204_v44 = vrot.slane %v203_v41, 2  ;;  %v246_v45 = vmax.f32 %v244_v37, %v245_v23 }
  0xa2   :  { %v183_v46 = vrot.slane %v182_v42, 1  ;;  %v228_v47 = vrot.slane %v227_v43, 1  ;;  %v9899_v34 = vshrl.u32 %v405_v33, 7 }
  0xa3   :  { %v205_v36 = vadd.f32 %v204_v44, %v203_v41  ;;  %v247_v48 = vrot.slane %v246_v45, 2 }
  0xa4   :  { %v184_v49 = vadd.f32 %v183_v46, %v182_v42  ;;  %v229_v54 = vmax.f32 %v227_v43, %v228_v47  ;;  %13600 = vst [vmem:[#allocation20_spill] sm:$0xff] %v9899_v34  ;;  %v9902_v39 = vsub.s32 0, %v9899_v34 }
  0xa5   :  { %v206_v50 = vrot.slane %v205_v36, 1  ;;  %v248_v38 = vmax.f32 %v246_v45, %v247_v48 }
  0xa6   :  { %v186_v51 = vmul.f32 0.015625, %v184_v49  ;;  %13601 = vst [vmem:[#allocation21_spill] sm:$0xff] %v9902_v39 }
  0xa7   :  { %v207_v52 = vadd.f32 %v206_v50, %v205_v36  ;;  %v249_v53 = vrot.slane %v248_v38, 1 }
  0xa9   :  { %v208_v55 = vmul.f32 0.015625, %v207_v52  ;;  %v250_v56 = vmax.f32 %v248_v38, %v249_v53 }
  0xab   :  { %v252_v57 = vsel %vm251_vm2, %v186_v51, %v208_v55 }
  0xac   :  { %v254_v58 = vsel %vm253_vm3, %v252_v57, %v229_v54 }
  0xad   :  { %v256_v59 = vsel %vm255_vm4, %v254_v58, %v250_v56 }
  0xae   :  { %v261_v60 = vpack.c.bf16 %v256_v59, %v256_v59 }
  0xb0   :  { %7693 = vmatmul.mubr.msk.bf16.vlgmr.msra.gmra.mrb[0].mxu0 %vm163_vm1, %v261_v60 }
 0x183   :  { %v318_v0 = vpop.f32.mrb[0].mxu0 }
 0x184   :  { %v319_v1 = vadd.f32 %v7134_v63, %v318_v0  ;;  %v7694_v2 = vpop.f32.mrb[1].mxu0 }
 0x185   :  { %v321_v9 = vpop.f32.mrb[2].mxu0 }
 0x186   :  { %v324_v10 = vmax.f32 %v319_v1, 0.0  ;;  %v7695_v11 = vpop.f32.mrb[3].mxu0 }
 0x188   :  { %v326_v15 = vpack.c.bf16 %v324_v10, %v324_v10 }
 0x18a   :  { %7699 = vmatmul.mubr.msk.bf16.vlgmr.msra.gmra.mrb[0].mxu1 %vm334_vm5, %v326_v15 }
 0x25d   :  { %v375_v17 = vpop.f32.mrb[0].mxu1 }
 0x25e   :  { %v376_v18 = vadd.f32 %v7138_v16, %v375_v17  ;;  %v7700_v22 = vpop.f32.mrb[1].mxu1 }
 0x25f   :  { %v378_v24 = vpop.f32.mrb[2].mxu1  ;;  %v10023_v22 = vld [vmem:[%s13447_s6] sm:$0x1]  ;;  %s9532_s6 = smov 20  }
 0x260   :  { %v382_v28 = vrot.slane %v376_v18, 2  ;;  %v7701_v29 = vpop.f32.mrb[3].mxu1  ;;  %v390_v24 = vadd.f32 1e-05, %v10023_v22 }
 0x262   :  { %v384_v30 = vadd.f32 %v382_v28, %v376_v18  ;;  %v8704_v18 = vld [vmem:[#allocation2] sm:$0xff]   ;;  %v575_v28 = vrot.slane %v10023_v22, %v9902_v39 }
 0x263   :  { %7718 = vmatprep.mubr.bf16.mxu1 %v8704_v18  ;;  %7742 = vmatprep.mubr.bf16.mxu0 %v8704_v18 }
 0x264   :  { %v385_v31 = vmul.f32 0.5, %v384_v30 }
 0x266   :  { %8756 = vtanh.f32 %v385_v31 }
 0x267   :  { %8758 = vrsqrt.f32 %v390_v24 }
 0x270   :  { %v8757_v35 = vpop.eup %8756 }
 0x271   :  { %v387_v37 = vadd.f32 1.0, %v8757_v35  ;;  %v8759_v29 = vpop.eup %8758 }
 0x273   :  { %v388_v40 = vmul.f32 0.5, %v387_v37 }
 0x275   :  { %v408_v41 = vrot.slane %v388_v40, %v9902_v39 }
 0x277   :  { %v9906_v23 = vmul.f32 %v408_v41, %v9756_v5  ;;  %v9909_v42 = vmul.f32 %v408_v41, %v9746_v3  ;;  %v9916_v45 = vmul.f32 %v408_v41, %v9761_v6  ;;  %v9919_v46 = vmul.f32 %v408_v41, %v9751_v4 }
 0x278   :  { %v9926_v36 = vmul.f32 %v408_v41, %v9771_v8  ;;  %v9929_v47 = vmul.f32 %v408_v41, %v9766_v7  ;;  %v13461_v6 = vsub.s32 1, %v9899_v34  ;;  %v9937_v49 = vmul.f32 %v408_v41, %v9787_v13 }
 0x279   :  { %v423_v43 = vsel %vm163_vm1, %v9906_v23, -inf  ;;  %v417_v44 = vsel %vm163_vm1, %v9909_v42, -inf  ;;  %v426_v5 = vsel %vm163_vm1, %v9916_v45, -inf  ;;  %v420_v3 = vsel %vm163_vm1, %v9919_v46, -inf }
 0x27a   :  { %424 = vmax.xlane.f32.xlu1 %v423_v43  ;;  %418 = vmax.xlane.f32.xlu0 %v417_v44  ;;  %v432_v4 = vsel %vm163_vm1, %v9926_v36, -inf  ;;  %v429_v48 = vsel %vm163_vm1, %v9929_v47, -inf  ;;  %v9940_v50 = vmul.f32 %v408_v41, %v9782_v12  ;;  %v695_v7 = vrot.slane %v388_v40, %v13461_v6 }
 0x27b   :  { %v438_v8 = vsel %vm163_vm1, %v9937_v49, -inf  ;;  %v444_v13 = vsel %vm163_vm1, %v9919_v46, 0.0  ;;  %v441_v12 = vsel %vm163_vm1, %v9909_v42, 0.0  ;;  %v450_v55 = vsel %vm163_vm1, %v9916_v45, 0.0 }
 0x27c   :  { %v435_v38 = vsel %vm163_vm1, %v9940_v50, -inf  ;;  %v9953_v51 = vmul.f32 %v695_v7, %v9803_v19  ;;  %v9956_v52 = vmul.f32 %v695_v7, %v9792_v14  ;;  %v447_v19 = vsel %vm163_vm1, %v9906_v23, 0.0 }
 0x27d   :  { %v9967_v56 = vmul.f32 %v695_v7, %v9813_v21  ;;  %v9970_v14 = vmul.f32 %v695_v7, %v9808_v20  ;;  %v456_v59 = vsel %vm163_vm1, %v9926_v36, 0.0  ;;  %v453_v21 = vsel %vm163_vm1, %v9929_v47, 0.0 }
 0x27e   :  { %427 = vmax.xlane.f32.xlu1 %v426_v5  ;;  %421 = vmax.xlane.f32.xlu0 %v420_v3  ;;  %v707_v53 = vsel %vm163_vm1, %v9953_v51, -inf  ;;  %v704_v54 = vsel %vm163_vm1, %v9956_v52, -inf  ;;  %v9981_v60 = vmul.f32 %v695_v7, %v9829_v26  ;;  %v9984_v20 = vmul.f32 %v695_v7, %v9824_v25 }
 0x27f   :  { %v713_v57 = vsel %vm163_vm1, %v9967_v56, -inf  ;;  %v710_v58 = vsel %vm163_vm1, %v9970_v14, -inf  ;;  %v462_v63 = vsel %vm163_vm1, %v9937_v49, 0.0  ;;  %v459_v26 = vsel %vm163_vm1, %v9940_v50, 0.0 }
 0x280   :  { %v719_v61 = vsel %vm163_vm1, %v9981_v60, -inf  ;;  %v716_v62 = vsel %vm163_vm1, %v9984_v20, -inf  ;;  %v9995_v0 = vmul.f32 %v695_v7, %v9845_v32  ;;  %v9998_v25 = vmul.f32 %v695_v7, %v9834_v27 }
 0x281   :  { %v731_v9 = vsel %vm163_vm1, %v9953_v51, 0.0  ;;  %v728_v32 = vsel %vm163_vm1, %v9956_v52, 0.0  ;;  %v737_v27 = vsel %vm163_vm1, %v9967_v56, 0.0  ;;  %v734_v10 = vsel %vm163_vm1, %v9970_v14, 0.0 }
 0x282   :  { %433 = vmax.xlane.f32.xlu1 %v432_v4  ;;  %430 = vmax.xlane.f32.xlu0 %v429_v48  ;;  %v725_v1 = vsel %vm163_vm1, %v9995_v0, -inf  ;;  %v722_v2 = vsel %vm163_vm1, %v9998_v25, -inf  ;;  %v743_v11 = vsel %vm163_vm1, %v9981_v60, 0.0  ;;  %v740_v15 = vsel %vm163_vm1, %v9984_v20, 0.0 }
 0x283   :  { %v749_v16 = vsel %vm163_vm1, %v9995_v0, 0.0  ;;  %v746_v17 = vsel %vm163_vm1, %v9998_v25, 0.0 }
 0x286   :  { %439 = vmax.xlane.f32.xlu1 %v438_v8  ;;  %436 = vmax.xlane.f32.xlu0 %v435_v38 }
 0x28a   :  { %445 = vadd.xlane.f32.xlu1 %v444_v13  ;;  %442 = vadd.xlane.f32.xlu0 %v441_v12 }
 0x28e   :  { %708 = vmax.xlane.f32.xlu1 %v707_v53  ;;  %705 = vmax.xlane.f32.xlu0 %v704_v54 }
 0x292   :  { %451 = vadd.xlane.f32.xlu1 %v450_v55  ;;  %448 = vadd.xlane.f32.xlu0 %v447_v19 }
 0x296   :  { %714 = vmax.xlane.f32.xlu1 %v713_v57  ;;  %711 = vmax.xlane.f32.xlu0 %v710_v58 }
 0x29a   :  { %457 = vadd.xlane.f32.xlu1 %v456_v59  ;;  %454 = vadd.xlane.f32.xlu0 %v453_v21 }
 0x29e   :  { %720 = vmax.xlane.f32.xlu1 %v719_v61  ;;  %717 = vmax.xlane.f32.xlu0 %v716_v62 }
 0x2a2   :  { %463 = vadd.xlane.f32.xlu1 %v462_v63  ;;  %460 = vadd.xlane.f32.xlu0 %v459_v26 }
 0x2a6   :  { %726 = vmax.xlane.f32.xlu1 %v725_v1  ;;  %723 = vmax.xlane.f32.xlu0 %v722_v2 }
 0x2aa   :  { %732 = vadd.xlane.f32.xlu1 %v731_v9  ;;  %729 = vadd.xlane.f32.xlu0 %v728_v32 }
 0x2ae   :  { %738 = vadd.xlane.f32.xlu1 %v737_v27  ;;  %735 = vadd.xlane.f32.xlu0 %v734_v10 }
 0x2b2   :  { %744 = vadd.xlane.f32.xlu1 %v743_v11  ;;  %741 = vadd.xlane.f32.xlu0 %v740_v15 }
 0x2b6   :  { %750 = vadd.xlane.f32.xlu1 %v749_v16  ;;  %747 = vadd.xlane.f32.xlu0 %v746_v17 }
 0x2c7   :  { %576 = vrot.lane.b32.xlu1 %v575_v28, %s9505_s4  ;;  %s9529_s4 = smov 100  }
 0x2cb   :  { %601 = vrot.lane.b32.xlu1 %v575_v28, %s9506_s0  ;;  %s9530_s0 = smov 36  }
 0x2cc   :  { %393 = vrot.lane.b32.xlu0 %v8759_v29, %s9507_s18  ;;  %s9531_s18 = smov 12  }
 0x307   :  { %v425_v30 = vpop.xlane.xlu1 %424  ;;  %v419_v31 = vpop.xlane.xlu0 %418 }
 0x30b   :  { %v428_v33 = vpop.xlane.xlu1 %427  ;;  %v422_v35 = vpop.xlane.xlu0 %421 }
 0x30c   :  { %v474_v37 = vpack.c.bf16 %v422_v35, %v419_v31  ;;  %v475_v40 = vpack.c.bf16 %v428_v33, %v425_v30  ;;  %v8705_v30 = vld [vmem:[#allocation2 + $0x8] sm:$0xff]   ;;  %v8706_v31 = vld [vmem:[#allocation2 + $0x10] sm:$0xff]  }
 0x30e   :  { %7702 = vmatprep.subr.bf16.mxu1 %v474_v37 }
 0x30f   :  { %v434_v41 = vpop.xlane.xlu1 %433  ;;  %7703 = vmatpush3.bf16.msra.mxu1 %v474_v37  ;;  %v431_v43 = vpop.xlane.xlu0 %430 }
 0x310   :  { %7704 = vmatprep.subr.bf16.mxu1 %v475_v40  ;;  %v476_v44 = vpack.c.bf16 %v434_v41, %v431_v43 }
 0x313   :  { %v440_v5 = vpop.xlane.xlu1 %439  ;;  %7705 = vmatpush3.bf16.msra.mxu1 %v475_v40  ;;  %v437_v3 = vpop.xlane.xlu0 %436 }
 0x314   :  { %7706 = vmatprep.subr.bf16.mxu1 %v476_v44  ;;  %v477_v4 = vpack.c.bf16 %v440_v5, %v437_v3 }
 0x317   :  { %v446_v48 = vpop.xlane.xlu1 %445  ;;  %7707 = vmatpush3.bf16.msra.mxu1 %v476_v44  ;;  %v443_v7 = vpop.xlane.xlu0 %442 }
 0x318   :  { %v467_v8 = vmul.f32 0.03125, %v446_v48  ;;  %v466_v38 = vmul.f32 0.03125, %v443_v7  ;;  %7708 = vmatprep.subr.bf16.mxu1 %v477_v4 }
 0x31a   :  { %v478_v13 = vpack.c.bf16 %v467_v8, %v466_v38 }
 0x31b   :  { %v709_v12 = vpop.xlane.xlu1 %708  ;;  %7709 = vmatpush3.bf16.msra.mxu1 %v477_v4  ;;  %v706_v53 = vpop.xlane.xlu0 %705  ;;  %v8707_v4 = vld [vmem:[#allocation2 + $0x18] sm:$0xff]  }
 0x31c   :  { %v760_v54 = vpack.c.bf16 %v709_v12, %v706_v53  ;;  %7710 = vmatprep.subr.bf16.mxu1 %v478_v13 }
 0x31e   :  { %7726 = vmatprep.subr.bf16.mxu0 %v760_v54 }
 0x31f   :  { %v452_v55 = vpop.xlane.xlu1 %451  ;;  %7711 = vmatpush3.bf16.msra.mxu1 %v478_v13  ;;  %7727 = vmatpush3.bf16.msra.mxu0 %v760_v54  ;;  %v449_v19 = vpop.xlane.xlu0 %448 }
 0x320   :  { %v469_v57 = vmul.f32 0.03125, %v452_v55  ;;  %v468_v58 = vmul.f32 0.03125, %v449_v19 }
 0x322   :  { %v479_v59 = vpack.c.bf16 %v469_v57, %v468_v58  ;;  %v13462_v58 = vmov 0  }
 0x323   :  { %v715_v21 = vpop.xlane.xlu1 %714  ;;  %v712_v61 = vpop.xlane.xlu0 %711  ;;  %8420 = vset.pattern.permute.xlu1 %v13462_v58  ;;  %8421 = vset.pattern.permute.xlu0 %v13462_v58 }
 0x324   :  { %v761_v62 = vpack.c.bf16 %v715_v21, %v712_v61  ;;  %7712 = vmatprep.subr.bf16.mxu1 %v479_v59 }
 0x325   :  { %7713 = vmatpush3.bf16.msra.mxu1 %v479_v59  ;;  %v8708_v59 = vld [vmem:[#allocation5] sm:$0xff]  }
 0x326   :  { %7728 = vmatprep.subr.bf16.mxu0 %v761_v62 }
 0x327   :  { %v458_v63 = vpop.xlane.xlu1 %457  ;;  %7729 = vmatpush3.bf16.msra.mxu0 %v761_v62  ;;  %v455_v26 = vpop.xlane.xlu0 %454 }
 0x328   :  { %v471_v1 = vmul.f32 0.03125, %v458_v63  ;;  %v470_v2 = vmul.f32 0.03125, %v455_v26 }
 0x32a   :  { %v480_v9 = vpack.c.bf16 %v471_v1, %v470_v2 }
 0x32b   :  { %v721_v32 = vpop.xlane.xlu1 %720  ;;  %v718_v27 = vpop.xlane.xlu0 %717 }
 0x32c   :  { %v762_v10 = vpack.c.bf16 %v721_v32, %v718_v27  ;;  %7714 = vmatprep.subr.bf16.mxu1 %v480_v9 }
 0x32d   :  { %7715 = vmatpush3.bf16.msra.mxu1 %v480_v9 }
 0x32e   :  { %7730 = vmatprep.subr.bf16.mxu0 %v762_v10 }
 0x32f   :  { %v464_v11 = vpop.xlane.xlu1 %463  ;;  %7731 = vmatpush3.bf16.msra.mxu0 %v762_v10  ;;  %v461_v15 = vpop.xlane.xlu0 %460 }
 0x330   :  { %v473_v16 = vmul.f32 0.03125, %v464_v11  ;;  %v472_v17 = vmul.f32 0.03125, %v461_v15 }
 0x332   :  { %v481_v18 = vpack.c.bf16 %v473_v16, %v472_v17 }
 0x333   :  { %v727_v24 = vpop.xlane.xlu1 %726  ;;  %v724_v28 = vpop.xlane.xlu0 %723 }
 0x334   :  { %v763_v29 = vpack.c.bf16 %v727_v24, %v724_v28  ;;  %7716 = vmatprep.subr.bf16.mxu1 %v481_v18 }
 0x335   :  { %7717 = vmatpush3.bf16.msra.mxu1 %v481_v18 }
 0x336   :  { %7732 = vmatprep.subr.bf16.mxu0 %v763_v29  ;;  %7750 = vmatprep.subr.bf16.mxu1 %v8708_v59 }
 0x337   :  { %v733_v33 = vpop.xlane.xlu1 %732  ;;  %7733 = vmatpush3.bf16.msra.mxu0 %v763_v29  ;;  %v730_v35 = vpop.xlane.xlu0 %729 }
 0x338   :  { %v753_v37 = vmul.f32 0.03125, %v733_v33  ;;  %v752_v40 = vmul.f32 0.03125, %v730_v35  ;;  %7719 = vmatmul.mubr.bf16.vlgmr.msra.gmra.mrb[4].mxu1 %v8705_v30 }
 0x339   :  { %7722 = vmatprep.mubr.bf16.mxu1 %v8706_v31  ;;  %7751 = vmatpush3.bf16.msra.mxu1 %v8708_v59 }
 0x33a   :  { %v764_v41 = vpack.c.bf16 %v753_v37, %v752_v40 }
 0x33b   :  { %v739_v43 = vpop.xlane.xlu1 %738  ;;  %v736_v44 = vpop.xlane.xlu0 %735 }
 0x33c   :  { %v755_v5 = vmul.f32 0.03125, %v739_v43  ;;  %v754_v3 = vmul.f32 0.03125, %v736_v44  ;;  %7734 = vmatprep.subr.bf16.mxu0 %v764_v41 }
 0x33d   :  { %7735 = vmatpush3.bf16.msra.mxu0 %v764_v41 }
 0x33e   :  { %v765_v48 = vpack.c.bf16 %v755_v5, %v754_v3 }
 0x33f   :  { %v745_v7 = vpop.xlane.xlu1 %744  ;;  %v742_v8 = vpop.xlane.xlu0 %741 }
 0x340   :  { %v757_v38 = vmul.f32 0.03125, %v745_v7  ;;  %v756_v13 = vmul.f32 0.03125, %v742_v8  ;;  %7723 = vmatmul.mubr.bf16.gmra.mrb[8].mxu1 %v8707_v4  ;;  %7736 = vmatprep.subr.bf16.mxu0 %v765_v48 }
 0x341   :  { %7737 = vmatpush3.bf16.msra.mxu0 %v765_v48 }
 0x342   :  { %v766_v12 = vpack.c.bf16 %v757_v38, %v756_v13 }
 0x343   :  { %v751_v53 = vpop.xlane.xlu1 %750  ;;  %v748_v54 = vpop.xlane.xlu0 %747 }
 0x344   :  { %v759_v55 = vmul.f32 0.03125, %v751_v53  ;;  %v758_v19 = vmul.f32 0.03125, %v748_v54  ;;  %7738 = vmatprep.subr.bf16.mxu0 %v766_v12 }
 0x345   :  { %7739 = vmatpush3.bf16.msra.mxu0 %v766_v12 }
 0x346   :  { %v767_v57 = vpack.c.bf16 %v759_v55, %v758_v19 }
 0x347   :  { %v394_v21 = vpop.permute.xlu0 %393  ;;  %v10031_v62 = vpop.permute.xlu1 %576 }
 0x348   :  { %7740 = vmatprep.subr.bf16.mxu0 %v767_v57  ;;  %v396_v61 = vmul.f32 %v394_v21, %v10023_v22 }
 0x349   :  { %7741 = vmatpush3.bf16.msra.mxu0 %v767_v57 }
 0x34a   :  { %v10034_v63 = vrot.slane %v396_v61, %v9902_v39 }
 0x34b   :  { %v10038_v27 = vpop.permute.xlu1 %601 }
 0x34c   :  { %7743 = vmatmul.mubr.bf16.vlgmr.msra.gmra.mrb[4].mxu0 %v8705_v30 }
 0x34d   :  { %7746 = vmatprep.mubr.bf16.mxu0 %v8706_v31 }
 0x354   :  { %7747 = vmatmul.mubr.bf16.gmra.mrb[8].mxu0 %v8707_v4 }
 0x40b   :  { %v7720_v26 = vpop.f32.mrb[4].mxu1 }
 0x40c   :  { %v540_v1 = vpop.f32.mrb[5].mxu1  ;;  %v581_v2 = vsub.f32 %v7720_v26, %v10031_v62 }
 0x40d   :  { %v579_v9 = vsub.f32 %v540_v1, %v10031_v62  ;;  %v7721_v32 = vpop.f32.mrb[6].mxu1 }
 0x40e   :  { %v582_v10 = vsub.f32 %v7721_v32, %v10031_v62  ;;  %v543_v11 = vpop.f32.mrb[7].mxu1  ;;  %v595_v15 = vmul.f32 %v10034_v63, %v581_v2 }
 0x40f   :  { %v593_v22 = vmul.f32 %v10034_v63, %v579_v9  ;;  %v580_v16 = vsub.f32 %v543_v11, %v10031_v62 }
 0x410   :  { %v596_v17 = vmul.f32 %v10034_v63, %v582_v10  ;;  %v606_v18 = vadd.f32 %v10038_v27, %v595_v15 }
 0x411   :  { %v594_v24 = vmul.f32 %v10034_v63, %v580_v16  ;;  %v604_v28 = vadd.f32 %v10038_v27, %v593_v22 }
 0x412   :  { %v614_v29 = vmul.f32 0.5, %v606_v18  ;;  %v607_v30 = vadd.f32 %v10038_v27, %v596_v17 }
 0x413   :  { %v7724_v31 = vpop.f32.mrb[8].mxu1  ;;  %v612_v33 = vmul.f32 0.5, %v604_v28  ;;  %v605_v35 = vadd.f32 %v10038_v27, %v594_v24 }
 0x414   :  { %v585_v37 = vsub.f32 %v7724_v31, %v10031_v62  ;;  %v556_v40 = vpop.f32.mrb[9].mxu1  ;;  %8760 = vtanh.f32 %v614_v29  ;;  %v615_v41 = vmul.f32 0.5, %v607_v30 }
 0x415   :  { %v583_v43 = vsub.f32 %v556_v40, %v10031_v62  ;;  %v7725_v44 = vpop.f32.mrb[10].mxu1  ;;  %8762 = vtanh.f32 %v612_v33  ;;  %v613_v5 = vmul.f32 0.5, %v605_v35 }
 0x416   :  { %v599_v3 = vmul.f32 %v10034_v63, %v585_v37  ;;  %v586_v4 = vsub.f32 %v7725_v44, %v10031_v62  ;;  %v559_v48 = vpop.f32.mrb[11].mxu1  ;;  %8764 = vtanh.f32 %v615_v41 }
 0x417   :  { %v597_v7 = vmul.f32 %v10034_v63, %v583_v43  ;;  %v584_v8 = vsub.f32 %v559_v48, %v10031_v62  ;;  %8766 = vtanh.f32 %v613_v5 }
 0x418   :  { %v610_v38 = vadd.f32 %v10038_v27, %v599_v3  ;;  %v600_v13 = vmul.f32 %v10034_v63, %v586_v4 }
 0x419   :  { %v608_v12 = vadd.f32 %v10038_v27, %v597_v7  ;;  %v598_v53 = vmul.f32 %v10034_v63, %v584_v8 }
 0x41a   :  { %v618_v54 = vmul.f32 0.5, %v610_v38  ;;  %v611_v55 = vadd.f32 %v10038_v27, %v600_v13 }
 0x41b   :  { %v616_v19 = vmul.f32 0.5, %v608_v12  ;;  %v609_v57 = vadd.f32 %v10038_v27, %v598_v53 }
 0x41c   :  { %8768 = vtanh.f32 %v618_v54  ;;  %v619_v59 = vmul.f32 0.5, %v611_v55 }
 0x41d   :  { %8770 = vtanh.f32 %v616_v19  ;;  %v617_v21 = vmul.f32 0.5, %v609_v57  ;;  %v8709_v19 = vld [vmem:[#allocation5 + $0x8] sm:$0xff]  }
 0x41e   :  { %v8761_v61 = vpop.eup %8760  ;;  %7752 = vmatprep.subr.bf16.mxu1 %v8709_v19 }
 0x41f   :  { %v8763_v26 = vpop.eup %8762  ;;  %8772 = vtanh.f32 %v617_v21  ;;  %v7744_v1 = vpop.f32.mrb[4].mxu0  ;;  %v630_v16 = vadd.f32 1.0, %v8761_v61  ;;  %7753 = vmatpush3.bf16.msra.mxu1 %v8709_v19 }
 0x420   :  { %v8765_v2 = vpop.eup %8764  ;;  %v835_v9 = vsub.f32 %v7744_v1, %v10031_v62  ;;  %v802_v32 = vpop.f32.mrb[5].mxu0  ;;  %v628_v10 = vadd.f32 1.0, %v8763_v26  ;;  %8774 = vtanh.f32 %v619_v59 }
 0x421   :  { %v8767_v11 = vpop.eup %8766  ;;  %v833_v15 = vsub.f32 %v802_v32, %v10031_v62  ;;  %v7745_v22 = vpop.f32.mrb[6].mxu0  ;;  %v631_v33 = vadd.f32 1.0, %v8765_v2  ;;  %v638_v4 = vmul.f32 0.5, %v630_v16 }
 0x422   :  { %v843_v17 = vmul.f32 %v835_v9, %v10034_v63  ;;  %v836_v18 = vsub.f32 %v7745_v22, %v10031_v62  ;;  %v805_v24 = vpop.f32.mrb[7].mxu0  ;;  %v636_v28 = vmul.f32 0.5, %v628_v10  ;;  %v629_v29 = vadd.f32 1.0, %v8767_v11 }
 0x423   :  { %v841_v30 = vmul.f32 %v833_v15, %v10034_v63  ;;  %v834_v31 = vsub.f32 %v805_v24, %v10031_v62  ;;  %v639_v13 = vmul.f32 0.5, %v631_v33 }
 0x424   :  { %v851_v35 = vadd.f32 %v843_v17, %v10038_v27  ;;  %v844_v37 = vmul.f32 %v836_v18, %v10034_v63  ;;  %646 = vperm.xlu1 %8420, %v636_v28   ;;  %v637_v40 = vmul.f32 0.5, %v629_v29 }
 0x425   :  { %v849_v41 = vadd.f32 %v841_v30, %v10038_v27  ;;  %v842_v43 = vmul.f32 %v834_v31, %v10034_v63 }
 0x426   :  { %v8769_v44 = vpop.eup %8768  ;;  %v859_v5 = vmul.f32 0.5, %v851_v35  ;;  %v852_v3 = vadd.f32 %v844_v37, %v10038_v27  ;;  %651 = vperm.xlu0 %8421, %v637_v40  }
 0x427   :  { %v8771_v48 = vpop.eup %8770  ;;  %v857_v7 = vmul.f32 0.5, %v849_v41  ;;  %v850_v8 = vadd.f32 %v842_v43, %v10038_v27  ;;  %v7748_v38 = vpop.f32.mrb[8].mxu0  ;;  %v634_v26 = vadd.f32 1.0, %v8769_v44 }
 0x428   :  { %8776 = vtanh.f32 %v859_v5  ;;  %v860_v12 = vmul.f32 0.5, %v852_v3  ;;  %v839_v53 = vsub.f32 %v7748_v38, %v10031_v62  ;;  %656 = vperm.xlu1 %8420, %v638_v4   ;;  %v818_v54 = vpop.f32.mrb[9].mxu0  ;;  %v632_v55 = vadd.f32 1.0, %v8771_v48 }
 0x429   :  { %v8773_v57 = vpop.eup %8772  ;;  %8778 = vtanh.f32 %v857_v7  ;;  %v858_v59 = vmul.f32 0.5, %v850_v8  ;;  %v837_v21 = vsub.f32 %v818_v54, %v10031_v62  ;;  %v7749_v61 = vpop.f32.mrb[10].mxu0  ;;  %v642_v28 = vmul.f32 0.5, %v634_v26 }
 0x42a   :  { %8780 = vtanh.f32 %v860_v12  ;;  %v847_v1 = vmul.f32 %v839_v53, %v10034_v63  ;;  %v840_v2 = vsub.f32 %v7749_v61, %v10031_v62  ;;  %v821_v9 = vpop.f32.mrb[11].mxu0  ;;  %v640_v32 = vmul.f32 0.5, %v632_v55  ;;  %v8775_v10 = vpop.eup %8774 }
 0x42b   :  { %8782 = vtanh.f32 %v858_v59  ;;  %v845_v11 = vmul.f32 %v837_v21, %v10034_v63  ;;  %v838_v15 = vsub.f32 %v821_v9, %v10031_v62  ;;  %v633_v22 = vadd.f32 1.0, %v8773_v57 }
 0x42c   :  { %v855_v16 = vadd.f32 %v847_v1, %v10038_v27  ;;  %v848_v17 = vmul.f32 %v840_v2, %v10034_v63  ;;  %661 = vperm.xlu1 %8420, %v639_v13   ;;  %666 = vperm.xlu0 %8421, %v640_v32   ;;  %v635_v33 = vadd.f32 1.0, %v8775_v10 }
 0x42d   :  { %v853_v18 = vadd.f32 %v845_v11, %v10038_v27  ;;  %v846_v24 = vmul.f32 %v838_v15, %v10034_v63  ;;  %v641_v31 = vmul.f32 0.5, %v633_v22 }
 0x42e   :  { %v863_v29 = vmul.f32 0.5, %v855_v16  ;;  %v856_v30 = vadd.f32 %v848_v17, %v10038_v27  ;;  %v643_v43 = vmul.f32 0.5, %v635_v33 }
 0x42f   :  { %v861_v35 = vmul.f32 0.5, %v853_v18  ;;  %v854_v62 = vadd.f32 %v846_v24, %v10038_v27 }
 0x430   :  { %8784 = vtanh.f32 %v863_v29  ;;  %v864_v37 = vmul.f32 0.5, %v856_v30  ;;  %676 = vperm.xlu0 %8421, %v642_v28   ;;  %671 = vperm.xlu1 %8420, %v641_v31  }
 0x431   :  { %8786 = vtanh.f32 %v861_v35  ;;  %v862_v40 = vmul.f32 0.5, %v854_v62 }
 0x432   :  { %v8777_v41 = vpop.eup %8776  ;;  %8788 = vtanh.f32 %v864_v37 }
 0x433   :  { %v8779_v44 = vpop.eup %8778  ;;  %8790 = vtanh.f32 %v862_v40  ;;  %v875_v7 = vadd.f32 1.0, %v8777_v41 }
 0x434   :  { %v8781_v63 = vpop.eup %8780  ;;  %681 = vperm.xlu1 %8420, %v643_v43   ;;  %v873_v5 = vadd.f32 1.0, %v8779_v44 }
 0x435   :  { %v8783_v3 = vpop.eup %8782  ;;  %v876_v8 = vadd.f32 1.0, %v8781_v63  ;;  %v883_v13 = vmul.f32 0.5, %v875_v7  ;;  %v7144_v7 = vld [vmem:[%s13449_s8] ss:$0 sm:$0xff]  ;;  %s9510_s8 = smov 92  }
 0x436   :  { %v881_v4 = vmul.f32 0.5, %v873_v5  ;;  %v874_v48 = vadd.f32 1.0, %v8783_v3 }
 0x437   :  { %v884_v54 = vmul.f32 0.5, %v876_v8 }
 0x438   :  { %891 = vperm.xlu0 %8421, %v881_v4   ;;  %v882_v27 = vmul.f32 0.5, %v874_v48 }
 0x43a   :  { %v8785_v38 = vpop.eup %8784  ;;  %896 = vperm.xlu1 %8420, %v882_v27  }
 0x43b   :  { %v8787_v12 = vpop.eup %8786  ;;  %v879_v21 = vadd.f32 1.0, %v8785_v38 }
 0x43c   :  { %v8789_v53 = vpop.eup %8788  ;;  %901 = vperm.xlu0 %8421, %v883_v13   ;;  %v877_v55 = vadd.f32 1.0, %v8787_v12 }
 0x43d   :  { %v8791_v19 = vpop.eup %8790  ;;  %v880_v26 = vadd.f32 1.0, %v8789_v53  ;;  %v887_v1 = vmul.f32 0.5, %v879_v21 }
 0x43e   :  { %906 = vperm.xlu1 %8420, %v884_v54   ;;  %v885_v57 = vmul.f32 0.5, %v877_v55  ;;  %v878_v59 = vadd.f32 1.0, %v8791_v19 }
 0x43f   :  { %v888_v2 = vmul.f32 0.5, %v880_v26 }
 0x440   :  { %911 = vperm.xlu0 %8421, %v885_v57   ;;  %v886_v61 = vmul.f32 0.5, %v878_v59 }
 0x442   :  { %916 = vperm.xlu1 %8420, %v886_v61  }
 0x444   :  { %921 = vperm.xlu0 %8421, %v887_v1  }
 0x446   :  { %926 = vperm.xlu1 %8420, %v888_v2  }
 0x4a3   :  { %v647_v9 = vpop.permute.xlu1 %646 }
 0x4a4   :  { %v10087_v10 = vmul.f32 %v647_v9, %v9909_v42 }
 0x4a5   :  { %v652_v32 = vpop.permute.xlu0 %651 }
 0x4a6   :  { %13602 = vst [vmem:[#allocation22_spill] sm:$0xff] %v10087_v10  ;;  %v10090_v11 = vmul.f32 %v652_v32, %v9919_v46 }
 0x4a7   :  { %v657_v15 = vpop.permute.xlu1 %656 }
 0x4a8   :  { %13603 = vst [vmem:[#allocation23_spill] sm:$0xff] %v10090_v11  ;;  %v941_v22 = vpack.c.bf16 %v10090_v11, %v10087_v10  ;;  %v10096_v18 = vmul.f32 %v657_v15, %v9906_v23 }
 0x4aa   :  { %7754 = vmatprep.mubr.msk.bf16.mxu1 %vm163_vm1, %v941_v22  ;;  %13604 = vst [vmem:[#allocation24_spill] sm:$0xff] %v10096_v18 }
 0x4ab   :  { %v662_v16 = vpop.permute.xlu1 %661  ;;  %v667_v17 = vpop.permute.xlu0 %666 }
 0x4ac   :  { %v10099_v24 = vmul.f32 %v662_v16, %v9916_v45  ;;  %v10104_v46 = vmul.f32 %v667_v17, %v9929_v47 }
 0x4ae   :  { %13605 = vst [vmem:[#allocation25_spill] sm:$0xff] %v10099_v24  ;;  %v942_v42 = vpack.c.bf16 %v10099_v24, %v10096_v18  ;;  %13606 = vst [vmem:[#allocation26_spill] sm:$0xff] %v10104_v46 }
 0x4af   :  { %v672_v28 = vpop.permute.xlu1 %671  ;;  %v677_v30 = vpop.permute.xlu0 %676 }
 0x4b0   :  { %v10107_v29 = vmul.f32 %v672_v28, %v9926_v36  ;;  %7755 = vmatmul.mubr.msk.bf16.vlgmr.msra.gmra.mrb[12].mxu1 %vm163_vm1, %v942_v42  ;;  %v10113_v45 = vmul.f32 %v677_v30, %v9940_v50 }
 0x4b2   :  { %13607 = vst [vmem:[#allocation27_spill] sm:$0xff] %v10107_v29  ;;  %v943_v23 = vpack.c.bf16 %v10107_v29, %v10104_v46  ;;  %13608 = vst [vmem:[#allocation28_spill] sm:$0xff] %v10113_v45 }
 0x4b3   :  { %v682_v31 = vpop.permute.xlu1 %681 }
 0x4b4   :  { %v10116_v33 = vmul.f32 %v682_v31, %v9937_v49  ;;  %7758 = vmatprep.mubr.msk.bf16.mxu1 %vm163_vm1, %v943_v23 }
 0x4b6   :  { %13609 = vst [vmem:[#allocation29_spill] sm:$0xff] %v10116_v33  ;;  %v944_v47 = vpack.c.bf16 %v10116_v33, %v10113_v45 }
 0x4b7   :  { %v892_v36 = vpop.permute.xlu0 %891 }
 0x4b8   :  { %7759 = vmatmul.mubr.msk.bf16.gmra.mrb[16].mxu1 %vm163_vm1, %v944_v47  ;;  %v10123_v62 = vmul.f32 %v892_v36, %v9956_v52 }
 0x4b9   :  { %v897_v35 = vpop.permute.xlu1 %896 }
 0x4ba   :  { %13610 = vst [vmem:[#allocation30_spill] sm:$0xff] %v10123_v62  ;;  %v10126_v37 = vmul.f32 %v897_v35, %v9953_v51 }
 0x4bb   :  { %v902_v50 = vpop.permute.xlu0 %901 }
 0x4bc   :  { %13611 = vst [vmem:[#allocation31_spill] sm:$0xff] %v10126_v37  ;;  %v945_v49 = vpack.c.bf16 %v10126_v37, %v10123_v62  ;;  %v10131_v41 = vmul.f32 %v902_v50, %v9970_v14 }
 0x4bd   :  { %v907_v40 = vpop.permute.xlu1 %906 }
 0x4be   :  { %13612 = vst [vmem:[#allocation32_spill] sm:$0xff] %v10131_v41  ;;  %v10134_v43 = vmul.f32 %v907_v40, %v9967_v56  ;;  %7762 = vmatprep.mubr.msk.bf16.mxu1 %vm163_vm1, %v945_v49 }
 0x4bf   :  { %v912_v44 = vpop.permute.xlu0 %911 }
 0x4c0   :  { %13613 = vst [vmem:[#allocation33_spill] sm:$0xff] %v10134_v43  ;;  %v946_v52 = vpack.c.bf16 %v10134_v43, %v10131_v41  ;;  %v10140_v51 = vmul.f32 %v912_v44, %v9984_v20 }
 0x4c1   :  { %v917_v63 = vpop.permute.xlu1 %916 }
 0x4c2   :  { %13614 = vst [vmem:[#allocation34_spill] sm:$0xff] %v10140_v51  ;;  %v10143_v5 = vmul.f32 %v917_v63, %v9981_v60  ;;  %7763 = vmatmul.mubr.msk.bf16.gmra.mrb[20].mxu1 %vm163_vm1, %v946_v52 }
 0x4c3   :  { %v922_v14 = vpop.permute.xlu0 %921 }
 0x4c4   :  { %13615 = vst [vmem:[#allocation35_spill] sm:$0xff] %v10143_v5  ;;  %v947_v56 = vpack.c.bf16 %v10143_v5, %v10140_v51  ;;  %v10149_v4 = vmul.f32 %v922_v14, %v9998_v25 }
 0x4c5   :  { %v927_v3 = vpop.permute.xlu1 %926 }
 0x4c6   :  { %13616 = vst [vmem:[#allocation36_spill] sm:$0xff] %v10149_v4  ;;  %v10152_v48 = vmul.f32 %v927_v3, %v9995_v0  ;;  %7766 = vmatprep.mubr.msk.bf16.mxu1 %vm163_vm1, %v947_v56 }
 0x4c8   :  { %13617 = vst [vmem:[#allocation37_spill] sm:$0xff] %v10152_v48  ;;  %v948_v20 = vpack.c.bf16 %v10152_v48, %v10149_v4 }
 0x4ca   :  { %7767 = vmatmul.mubr.msk.bf16.gmra.mrb[24].mxu1 %vm163_vm1, %v948_v20 }
 0x583   :  { %v7756_v60 = vpop.f32.mrb[12].mxu1 }
 0x584   :  { %v1026_v27 = vpop.f32.mrb[13].mxu1  ;;  %v1035_v38 = vadd.f32 %v7756_v60, %v7144_v7 }
 0x585   :  { %v7757_v8 = vpop.f32.mrb[14].mxu1  ;;  %v1027_v12 = vadd.f32 %v7144_v7, %v1026_v27 }
 0x586   :  { %v1038_v25 = vadd.f32 %v7757_v8, %v7144_v7  ;;  %v1029_v13 = vpop.f32.mrb[15].mxu1 }
 0x587   :  { %v1030_v0 = vadd.f32 %v7144_v7, %v1029_v13 }
 0x588   :  { %v10161_v53 = vpack.c.bf16 %v1038_v25, %v1035_v38 }
 0x589   :  { %v10163_v54 = vpack.c.bf16 %v1030_v0, %v1027_v12 }
 0x58a   :  { %1103 = vrot.lane.b32.xlu1 %v10161_v53, %s9509_s28 }
 0x58b   :  { %v7760_v55 = vpop.f32.mrb[16].mxu1  ;;  %7778 = vmatprep.mubr.msk.bf16.mxu0 %vm1109_vm6, %v10163_v54  ;;  %1101 = vrot.lane.b32.xlu0 %v10163_v54, %s9509_s28 }
 0x58c   :  { %v1042_v19 = vpop.f32.mrb[17].mxu1  ;;  %v1051_v59 = vadd.f32 %v7760_v55, %v7144_v7 }
 0x58d   :  { %v7761_v57 = vpop.f32.mrb[18].mxu1  ;;  %v1043_v26 = vadd.f32 %v7144_v7, %v1042_v19 }
 0x58e   :  { %v1054_v21 = vadd.f32 %v7761_v57, %v7144_v7  ;;  %v1045_v61 = vpop.f32.mrb[19].mxu1 }
 0x58f   :  { %v1046_v1 = vadd.f32 %v7144_v7, %v1045_v61 }
 0x590   :  { %v10171_v2 = vpack.c.bf16 %v1054_v21, %v1051_v59 }
 0x591   :  { %v10173_v9 = vpack.c.bf16 %v1046_v1, %v1043_v26 }
 0x593   :  { %1105 = vrot.lane.b32.xlu0 %v10173_v9, %s9509_s28 }
 0x595   :  { %v7764_v32 = vpop.f32.mrb[20].mxu1 }
 0x596   :  { %v1058_v15 = vpop.f32.mrb[21].mxu1  ;;  %v1067_v16 = vadd.f32 %v7764_v32, %v7144_v7 }
 0x597   :  { %v7765_v22 = vpop.f32.mrb[22].mxu1  ;;  %1107 = vrot.lane.b32.xlu0 %v10171_v2, %s9509_s28  ;;  %v1059_v28 = vadd.f32 %v7144_v7, %v1058_v15 }
 0x598   :  { %v1070_v17 = vadd.f32 %v7765_v22, %v7144_v7  ;;  %v1061_v42 = vpop.f32.mrb[23].mxu1 }
 0x599   :  { %v1062_v30 = vadd.f32 %v7144_v7, %v1061_v42 }
 0x59a   :  { %v10179_v23 = vpack.c.bf16 %v1070_v17, %v1067_v16 }
 0x59b   :  { %v10181_v31 = vpack.c.bf16 %v1062_v30, %v1059_v28 }
 0x59d   :  { %1203 = vrot.lane.b32.xlu1 %v10181_v31, %s9509_s28  ;;  %v7768_v47 = vpop.f32.mrb[24].mxu1  ;;  %7794 = vmatprep.mubr.msk.bf16.mxu1 %vm1109_vm6, %v10181_v31 }
 0x59e   :  { %v1074_v36 = vpop.f32.mrb[25].mxu1  ;;  %v1083_v50 = vadd.f32 %v7768_v47, %v7144_v7 }
 0x59f   :  { %v7769_v35 = vpop.f32.mrb[26].mxu1  ;;  %v1075_v44 = vadd.f32 %v7144_v7, %v1074_v36 }
 0x5a0   :  { %v1086_v49 = vadd.f32 %v7769_v35, %v7144_v7  ;;  %v1077_v40 = vpop.f32.mrb[27].mxu1 }
 0x5a1   :  { %v1078_v52 = vadd.f32 %v7144_v7, %v1077_v40  ;;  %1205 = vrot.lane.b32.xlu1 %v10179_v23, %s9509_s28 }
 0x5a2   :  { %v10189_v63 = vpack.c.bf16 %v1086_v49, %v1083_v50 }
 0x5a3   :  { %v10191_v14 = vpack.c.bf16 %v1078_v52, %v1075_v44 }
 0x5a5   :  { %1209 = vrot.lane.b32.xlu1 %v10189_v63, %s9509_s28  ;;  %1207 = vrot.lane.b32.xlu0 %v10191_v14, %s9509_s28  ;;  %s9534_s28 = smov 24  }
 0x5a9   :  { %1471 = vrot.lane.b32.xlu1 %v10161_v53, %s9494_s21  ;;  %1469 = vrot.lane.b32.xlu0 %v10163_v54, %s9494_s21 }
 0x5ad   :  { %1475 = vrot.lane.b32.xlu1 %v10171_v2, %s9494_s21  ;;  %1473 = vrot.lane.b32.xlu0 %v10173_v9, %s9494_s21 }
 0x5b1   :  { %1560 = vrot.lane.b32.xlu1 %v10179_v23, %s9494_s21  ;;  %1558 = vrot.lane.b32.xlu0 %v10181_v31, %s9494_s21 }
 0x5b5   :  { %1687 = vrot.lane.b32.xlu1 %v10163_v54, %s9510_s8  ;;  %1564 = vrot.lane.b32.xlu0 %v10189_v63, %s9494_s21 }
 0x5b9   :  { %1691 = vrot.lane.b32.xlu1 %v10173_v9, %s9510_s8  ;;  %1689 = vrot.lane.b32.xlu0 %v10161_v53, %s9510_s8 }
 0x5bd   :  { %1794 = vrot.lane.b32.xlu1 %v10179_v23, %s9510_s8  ;;  %1792 = vrot.lane.b32.xlu0 %v10181_v31, %s9510_s8 }
 0x5c1   :  { %1562 = vrot.lane.b32.xlu1 %v10191_v14, %s9494_s21  ;;  %1693 = vrot.lane.b32.xlu0 %v10171_v2, %s9510_s8  ;;  %s9511_s21 = smov 124  }
 0x5fc   :  { %v1104_v20 = vpop.permute.xlu1 %1103 }
 0x5fd   :  { %v1102_v56 = vpop.permute.xlu0 %1101  ;;  %v1126_v60 = vsel %vm1109_vm6, %v1104_v20, 0 }
 0x5fe   :  { %8310 = vmatprep.subr.msk.bf16.mxu0 %vm1109_vm6, %v1102_v56  ;;  %v1123_v3 = vsel %vm1109_vm6, %v1102_v56, 0 }
 0x5ff   :  { %7771 = vmatpush3.bf16.xpose.msra.mxu0 %v1123_v3 }
 0x600   :  { %8311 = vmatprep.subr.msk.bf16.mxu0 %vm1109_vm6, %v1104_v20 }
 0x605   :  { %v1106_v7 = vpop.permute.xlu0 %1105 }
 0x606   :  { %v1129_v27 = vsel %vm1109_vm6, %v1106_v7, 0 }
 0x607   :  { %7773 = vmatpush3.bf16.xpose.msra.mxu0 %v1126_v60 }
 0x608   :  { %8312 = vmatprep.subr.msk.bf16.mxu0 %vm1109_vm6, %v1106_v7 }
 0x609   :  { %v1108_v8 = vpop.permute.xlu0 %1107 }
 0x60a   :  { %v1132_v12 = vsel %vm1109_vm6, %v1108_v8, 0 }
 0x60f   :  { %7775 = vmatpush3.bf16.xpose.msra.mxu0 %v1129_v27  ;;  %v1204_v38 = vpop.permute.xlu1 %1203 }
 0x610   :  { %8313 = vmatprep.subr.msk.bf16.mxu0 %vm1109_vm6, %v1108_v8  ;;  %8314 = vmatprep.subr.msk.bf16.mxu1 %vm1109_vm6, %v1204_v38  ;;  %v1224_v25 = vsel %vm1109_vm6, %v1204_v38, 0 }
 0x611   :  { %7787 = vmatpush3.bf16.xpose.msra.mxu1 %v1224_v25 }
 0x613   :  { %v1206_v13 = vpop.permute.xlu1 %1205 }
 0x614   :  { %8315 = vmatprep.subr.msk.bf16.mxu1 %vm1109_vm6, %v1206_v13  ;;  %v1227_v19 = vsel %vm1109_vm6, %v1206_v13, 0 }
 0x617   :  { %v1208_v0 = vpop.permute.xlu0 %1207  ;;  %7777 = vmatpush3.bf16.xpose.msra.mxu0 %v1132_v12  ;;  %v1210_v55 = vpop.permute.xlu1 %1209 }
 0x618   :  { %v1230_v61 = vsel %vm1109_vm6, %v1208_v0, 0  ;;  %v1233_v15 = vsel %vm1109_vm6, %v1210_v55, 0 }
 0x619   :  { %7789 = vmatpush3.bf16.xpose.msra.mxu1 %v1227_v19 }
 0x61a   :  { %8316 = vmatprep.subr.msk.bf16.mxu1 %vm1109_vm6, %v1208_v0 }
 0x61b   :  { %v1470_v57 = vpop.permute.xlu0 %1469  ;;  %v1472_v59 = vpop.permute.xlu1 %1471 }
 0x61c   :  { %7802 = vmatprep.subr.bf16.mxu0 %v1470_v57 }
 0x61e   :  { %7779 = vmatmul.mubr.msk.bf16.vlgmr.msra.gmra.mrb[12].mxu0 %vm1109_vm6, %v10161_v53 }
 0x61f   :  { %7782 = vmatprep.mubr.msk.bf16.mxu0 %vm1109_vm6, %v10173_v9  ;;  %7803 = vmatpush3.bf16.msra.mxu0 %v1470_v57  ;;  %v1476_v21 = vpop.permute.xlu1 %1475  ;;  %v1474_v26 = vpop.permute.xlu0 %1473 }
 0x620   :  { %7804 = vmatprep.subr.bf16.mxu0 %v1472_v59 }
 0x621   :  { %7791 = vmatpush3.bf16.xpose.msra.mxu1 %v1230_v61 }
 0x622   :  { %8317 = vmatprep.subr.msk.bf16.mxu1 %vm1109_vm6, %v1210_v55 }
 0x623   :  { %7805 = vmatpush3.bf16.msra.mxu0 %v1472_v59  ;;  %v1561_v1 = vpop.permute.xlu1 %1560  ;;  %v1559_v22 = vpop.permute.xlu0 %1558 }
 0x624   :  { %7806 = vmatprep.subr.bf16.mxu0 %v1474_v26 }
 0x626   :  { %7783 = vmatmul.mubr.msk.bf16.gmra.mrb[16].mxu0 %vm1109_vm6, %v10171_v2 }
 0x627   :  { %7807 = vmatpush3.bf16.msra.mxu0 %v1474_v26  ;;  %v10246_v32 = vpop.permute.xlu1 %1687  ;;  %v1565_v42 = vpop.permute.xlu0 %1564 }
 0x628   :  { %7808 = vmatprep.subr.bf16.mxu0 %v1476_v21 }
 0x629   :  { %7793 = vmatpush3.bf16.xpose.msra.mxu1 %v1233_v15 }
 0x62a   :  { %7818 = vmatprep.subr.bf16.mxu1 %v1559_v22 }
 0x62b   :  { %7809 = vmatpush3.bf16.msra.mxu0 %v1476_v21  ;;  %v10249_v16 = vpop.permute.xlu1 %1691  ;;  %v10259_v30 = vpop.permute.xlu0 %1689 }
 0x62c   :  { %8318 = vmatprep.subr.msk.bf16.mxu0 %vm1109_vm6, %v10246_v32 }
 0x62f   :  { %v10253_v17 = vpop.permute.xlu1 %1794  ;;  %v10263_v47 = vpop.permute.xlu0 %1792 }
 0x630   :  { %7795 = vmatmul.mubr.msk.bf16.vlgmr.msra.gmra.mrb[28].mxu1 %vm1109_vm6, %v10179_v23 }
 0x631   :  { %7798 = vmatprep.mubr.msk.bf16.mxu1 %vm1109_vm6, %v10191_v14  ;;  %7819 = vmatpush3.bf16.msra.mxu1 %v1559_v22 }
 0x632   :  { %7820 = vmatprep.subr.bf16.mxu1 %v1561_v1 }
 0x633   :  { %v1563_v28 = vpop.permute.xlu1 %1562 }
 0x635   :  { %7821 = vmatpush3.bf16.msra.mxu1 %v1561_v1 }
 0x636   :  { %7822 = vmatprep.subr.bf16.mxu1 %v1563_v28 }
 0x638   :  { %7799 = vmatmul.mubr.msk.bf16.gmra.mrb[32].mxu1 %vm1109_vm6, %v10189_v63 }
 0x639   :  { %7823 = vmatpush3.bf16.msra.mxu1 %v1563_v28 }
 0x63a   :  { %7824 = vmatprep.subr.bf16.mxu1 %v1565_v42 }
 0x63d   :  { %7825 = vmatpush3.bf16.msra.mxu1 %v1565_v42 }
 0x63e   :  { %8322 = vmatprep.subr.msk.bf16.mxu1 %vm1109_vm6, %v10263_v47 }
 0x6f1   :  { %v7780_v36 = vpop.f32.mrb[12].mxu0 }
 0x6f2   :  { %v10267_v35 = vmul.f32 0.5, %v7780_v36  ;;  %v1168_v50 = vpop.f32.mrb[13].mxu0 }
 0x6f3   :  { %v7781_v49 = vpop.f32.mrb[14].mxu0  ;;  %v10269_v40 = vmul.f32 0.5, %v1168_v50 }
 0x6f4   :  { %v1171_v44 = vpop.f32.mrb[15].mxu0  ;;  %v1323_v52 = vsel %vm1316_vm7, %v10267_v35, -inf  ;;  %v10277_v20 = vmul.f32 0.5, %v7781_v49 }
 0x6f5   :  { %v10273_v56 = vmul.f32 0.5, %v1171_v44  ;;  %1324 = vmax.xlane.f32.xlu0 %v1323_v52  ;;  %v1317_v60 = vsel %vm1316_vm7, %v10269_v40, -inf }
 0x6f6   :  { %v1326_v12 = vsel %vm1316_vm7, %v10277_v20, -inf }
 0x6f7   :  { %v1320_v3 = vsel %vm1316_vm7, %v10273_v56, -inf }
 0x6f8   :  { %1321 = vmax.xlane.f32.xlu1 %v1320_v3 }
 0x6f9   :  { %1318 = vmax.xlane.f32.xlu0 %v1317_v60  ;;  %v7784_v7 = vpop.f32.mrb[16].mxu0 }
 0x6fa   :  { %v1184_v27 = vpop.f32.mrb[17].mxu0  ;;  %v10283_v25 = vmul.f32 0.5, %v7784_v7 }
 0x6fb   :  { %v10281_v8 = vmul.f32 0.5, %v1184_v27  ;;  %v7785_v38 = vpop.f32.mrb[18].mxu0 }
 0x6fc   :  { %v1187_v13 = vpop.f32.mrb[19].mxu0  ;;  %v10287_v0 = vmul.f32 0.5, %v7785_v38  ;;  %v1335_v57 = vsel %vm1316_vm7, %v10283_v25, -inf }
 0x6fd   :  { %1327 = vmax.xlane.f32.xlu0 %v1326_v12  ;;  %v1329_v55 = vsel %vm1316_vm7, %v10281_v8, -inf  ;;  %v10291_v19 = vmul.f32 0.5, %v1187_v13 }
 0x6fe   :  { %1330 = vmax.xlane.f32.xlu1 %v1329_v55  ;;  %v1338_v59 = vsel %vm1316_vm7, %v10287_v0, -inf }
 0x6ff   :  { %v1332_v1 = vsel %vm1316_vm7, %v10291_v19, -inf }
 0x701   :  { %1336 = vmax.xlane.f32.xlu0 %v1335_v57 }
 0x702   :  { %1339 = vmax.xlane.f32.xlu1 %v1338_v59 }
 0x703   :  { %v7796_v21 = vpop.f32.mrb[28].mxu1 }
 0x704   :  { %v10297_v61 = vmul.f32 0.5, %v7796_v21  ;;  %v1269_v26 = vpop.f32.mrb[29].mxu1 }
 0x705   :  { %v10301_v15 = vmul.f32 0.5, %v1269_v26  ;;  %1333 = vmax.xlane.f32.xlu0 %v1332_v1  ;;  %v7797_v22 = vpop.f32.mrb[30].mxu1  ;;  %v10357_v1 = vpop.permute.xlu0 %1693 }
 0x706   :  { %v1272_v42 = vpop.f32.mrb[31].mxu1  ;;  %v10303_v28 = vmul.f32 0.5, %v7797_v22  ;;  %v1347_v49 = vsel %vm1316_vm7, %v10297_v61, -inf }
 0x707   :  { %v1341_v36 = vsel %vm1316_vm7, %v10301_v15, -inf  ;;  %v10307_v50 = vmul.f32 0.5, %v1272_v42 }
 0x708   :  { %1342 = vmax.xlane.f32.xlu1 %v1341_v36  ;;  %v1350_v52 = vsel %vm1316_vm7, %v10303_v28, -inf }
 0x709   :  { %1348 = vmax.xlane.f32.xlu0 %v1347_v49  ;;  %v1344_v60 = vsel %vm1316_vm7, %v10307_v50, -inf }
 0x70b   :  { %v7800_v44 = vpop.f32.mrb[32].mxu1 }
 0x70c   :  { %1351 = vmax.xlane.f32.xlu1 %v1350_v52  ;;  %v1285_v3 = vpop.f32.mrb[33].mxu1  ;;  %v10317_v38 = vmul.f32 0.5, %v7800_v44 }
 0x70d   :  { %1345 = vmax.xlane.f32.xlu0 %v1344_v60  ;;  %v7801_v7 = vpop.f32.mrb[34].mxu1  ;;  %v10321_v12 = vmul.f32 0.5, %v1285_v3 }
 0x70e   :  { %v1288_v27 = vpop.f32.mrb[35].mxu1  ;;  %v1359_v55 = vsel %vm1316_vm7, %v10317_v38, -inf  ;;  %v10327_v59 = vmul.f32 0.5, %v7801_v7 }
 0x70f   :  { %v10319_v13 = vmul.f32 0.5, %v1288_v27  ;;  %v1353_v21 = vsel %vm1316_vm7, %v10321_v12, -inf }
 0x710   :  { %v1362_v26 = vsel %vm1316_vm7, %v10327_v59, -inf }
 0x711   :  { %v1356_v57 = vsel %vm1316_vm7, %v10319_v13, -inf }
 0x71d   :  { %1681 = vrot.lane.b32.xlu1 %v10161_v53, %s9511_s21 }
 0x723   :  { %1679 = vrot.lane.b32.xlu0 %v10163_v54, %s9511_s21 }
 0x741   :  { %1360 = vmax.xlane.f32.xlu1 %v1359_v55 }
 0x742   :  { %1357 = vmax.xlane.f32.xlu0 %v1356_v57 }
 0x745   :  { %1354 = vmax.xlane.f32.xlu1 %v1353_v21 }
 0x749   :  { %1363 = vmax.xlane.f32.xlu1 %v1362_v26 }
 0x758   :  { %1796 = vrot.lane.b32.xlu0 %v10191_v14, %s9510_s8 }
 0x75a   :  { %1798 = vrot.lane.b32.xlu1 %v10189_v63, %s9510_s8 }
 0x75c   :  { %1784 = vrot.lane.b32.xlu0 %v10181_v31, %s9511_s21 }
 0x75e   :  { %1786 = vrot.lane.b32.xlu1 %v10179_v23, %s9511_s21 }
 0x760   :  { %1683 = vrot.lane.b32.xlu0 %v10173_v9, %s9511_s21 }
 0x762   :  { %1685 = vrot.lane.b32.xlu1 %v10171_v2, %s9511_s21 }
 0x764   :  { %1788 = vrot.lane.b32.xlu0 %v10191_v14, %s9511_s21 }
 0x766   :  { %1790 = vrot.lane.b32.xlu1 %v10189_v63, %s9511_s21 }
 0x768   :  { %2057 = vrot.lane.b32.xlu0 %v10163_v54, %s9512_s19 }
 0x76a   :  { %2059 = vrot.lane.b32.xlu1 %v10161_v53, %s9512_s19 }
 0x76c   :  { %2061 = vrot.lane.b32.xlu0 %v10173_v9, %s9512_s19 }
 0x76e   :  { %2063 = vrot.lane.b32.xlu1 %v10171_v2, %s9512_s19 }
 0x770   :  { %2146 = vrot.lane.b32.xlu0 %v10181_v31, %s9512_s19 }
 0x772   :  { %2148 = vrot.lane.b32.xlu1 %v10179_v23, %s9512_s19 }
 0x774   :  { %2152 = vrot.lane.b32.xlu0 %v10189_v63, %s9512_s19 }
 0x776   :  { %2275 = vrot.lane.b32.xlu1 %v10163_v54, %s9513_s1 }
 0x778   :  { %2277 = vrot.lane.b32.xlu0 %v10161_v53, %s9513_s1 }
 0x77a   :  { %2150 = vrot.lane.b32.xlu1 %v10191_v14, %s9512_s19 }
 0x77c   :  { %2380 = vrot.lane.b32.xlu0 %v10181_v31, %s9513_s1 }
 0x77e   :  { %2279 = vrot.lane.b32.xlu1 %v10173_v9, %s9513_s1 }
 0x780   :  { %2281 = vrot.lane.b32.xlu0 %v10171_v2, %s9513_s1 }
 0x782   :  { %v1325_v22 = vpop.xlane.xlu0 %1324  ;;  %2382 = vrot.lane.b32.xlu1 %v10179_v23, %s9513_s1 }
 0x783   :  { %v1367_v36 = vsub.f32 %v10267_v35, %v1325_v22 }
 0x785   :  { %v1322_v42 = vpop.xlane.xlu1 %1321  ;;  %v1385_v7 = vmul.f32 1.442695, %v1367_v36 }
 0x786   :  { %v1366_v49 = vsub.f32 %v10273_v56, %v1322_v42  ;;  %v1319_v44 = vpop.xlane.xlu0 %1318 }
 0x787   :  { %v1365_v52 = vsub.f32 %v10269_v40, %v1319_v44 }
 0x788   :  { %v1383_v3 = vmul.f32 1.442695, %v1366_v49 }
 0x789   :  { %v1381_v60 = vmul.f32 1.442695, %v1365_v52 }
 0x78a   :  { %8792 = vpow2.f32 %v1383_v3  ;;  %v1328_v27 = vpop.xlane.xlu0 %1327 }
 0x78b   :  { %8794 = vpow2.f32 %v1381_v60  ;;  %v1368_v55 = vsub.f32 %v10277_v20, %v1328_v27  ;;  %v1331_v57 = vpop.xlane.xlu1 %1330 }
 0x78c   :  { %v1369_v21 = vsub.f32 %v10281_v8, %v1331_v57  ;;  %8796 = vpow2.f32 %v1385_v7 }
 0x78d   :  { %v1387_v26 = vmul.f32 1.442695, %v1368_v55 }
 0x78e   :  { %v1337_v6 = vpop.xlane.xlu0 %1336  ;;  %v1389_v22 = vmul.f32 1.442695, %v1369_v21 }
 0x78f   :  { %8798 = vpow2.f32 %v1387_v26  ;;  %v1371_v35 = vsub.f32 %v10283_v25, %v1337_v6  ;;  %v1340_v56 = vpop.xlane.xlu1 %1339 }
 0x790   :  { %v1372_v40 = vsub.f32 %v10287_v0, %v1340_v56  ;;  %8800 = vpow2.f32 %v1389_v22 }
 0x791   :  { %v1393_v42 = vmul.f32 1.442695, %v1371_v35 }
 0x792   :  { %v1395_v36 = vmul.f32 1.442695, %v1372_v40  ;;  %v1334_v49 = vpop.xlane.xlu0 %1333 }
 0x793   :  { %v1370_v44 = vsub.f32 %v10291_v19, %v1334_v49  ;;  %8802 = vpow2.f32 %v1393_v42 }
 0x794   :  { %v10373_v52 = vpop.eup %8792  ;;  %8804 = vpow2.f32 %v1395_v36  ;;  %v1711_v36 = vsel %vm1109_vm6, %v10259_v30, 0 }
 0x795   :  { %13618 = vst [vmem:[#allocation38_spill] sm:$0xff] %v10373_v52  ;;  %v10375_v20 = vpop.eup %8794  ;;  %v1391_v8 = vmul.f32 1.442695, %v1370_v44  ;;  %v1343_v3 = vpop.xlane.xlu1 %1342 }
 0x796   :  { %13619 = vst [vmem:[#allocation39_spill] sm:$0xff] %v10375_v20  ;;  %v1373_v6 = vsub.f32 %v10301_v15, %v1343_v3  ;;  %v1349_v25 = vpop.xlane.xlu0 %1348  ;;  %v1461_v0 = vpack.c.bf16 %v10373_v52, %v10375_v20  ;;  %v10380_v60 = vpop.eup %8796 }
 0x797   :  { %8806 = vpow2.f32 %v1391_v8  ;;  %13620 = vst [vmem:[#allocation40_spill] sm:$0xff] %v10380_v60  ;;  %v1375_v19 = vsub.f32 %v10297_v61, %v1349_v25  ;;  %v1708_v61 = vsel %vm1109_vm6, %v10246_v32, 0 }
 0x798   :  { %7810 = vmatprep.mubr.msk.bf16.mxu0 %vm1316_vm7, %v1461_v0  ;;  %v1397_v27 = vmul.f32 1.442695, %v1373_v6 }
 0x799   :  { %v10384_v7 = vpop.eup %8798  ;;  %v1352_v55 = vpop.xlane.xlu1 %1351  ;;  %v1401_v35 = vmul.f32 1.442695, %v1375_v19  ;;  %v1714_v19 = vsel %vm1109_vm6, %v10249_v16, 0 }
 0x79a   :  { %13621 = vst [vmem:[#allocation41_spill] sm:$0xff] %v10384_v7  ;;  %v1462_v57 = vpack.c.bf16 %v10384_v7, %v10380_v60  ;;  %v1376_v15 = vsub.f32 %v10303_v28, %v1352_v55  ;;  %v1346_v21 = vpop.xlane.xlu0 %1345  ;;  %8808 = vpow2.f32 %v1397_v27  ;;  %v10393_v40 = vpop.eup %8800  ;;  %v1813_v27 = vsel %vm1109_vm6, %v10263_v47, 0 }
 0x79b   :  { %v1374_v26 = vsub.f32 %v10307_v50, %v1346_v21  ;;  %13622 = vst [vmem:[#allocation42_spill] sm:$0xff] %v10393_v40  ;;  %v1717_v55 = vsel %vm1109_vm6, %v10357_v1, 0 }
 0x79c   :  { %v1403_v56 = vmul.f32 1.442695, %v1376_v15  ;;  %7811 = vmatmul.mubr.msk.bf16.vlgmr.msra.gmra.mrb[20].mxu0 %vm1316_vm7, %v1462_v57 }
 0x79d   :  { %v1399_v22 = vmul.f32 1.442695, %v1374_v26  ;;  %7835 = vmatpush3.bf16.xpose.msra.mxu0 %v1708_v61  ;;  %v10397_v28 = vpop.eup %8802  ;;  %v1682_v57 = vpop.permute.xlu1 %1681 }
 0x79e   :  { %8810 = vpow2.f32 %v1403_v56  ;;  %8319 = vmatprep.subr.msk.bf16.mxu0 %vm1109_vm6, %v10259_v30  ;;  %13623 = vst [vmem:[#allocation43_spill] sm:$0xff] %v10397_v28  ;;  %v10399_v50 = vpop.eup %8804  ;;  %v1680_v44 = vpop.permute.xlu0 %1679 }
 0x79f   :  { %8812 = vpow2.f32 %v1399_v22  ;;  %13624 = vst [vmem:[#allocation44_spill] sm:$0xff] %v10399_v50  ;;  %v1464_v49 = vpack.c.bf16 %v10399_v50, %v10397_v28 }
 0x7a0   :  { %8814 = vpow2.f32 %v1401_v35 }
 0x7a1   :  { %v10401_v42 = vpop.eup %8806 }
 0x7a2   :  { %13625 = vst [vmem:[#allocation45_spill] sm:$0xff] %v10401_v42  ;;  %v1463_v32 = vpack.c.bf16 %v10401_v42, %v10393_v40 }
 0x7a4   :  { %7814 = vmatprep.mubr.msk.bf16.mxu0 %vm1316_vm7, %v1463_v32  ;;  %v10413_v8 = vpop.eup %8808 }
 0x7a5   :  { %7837 = vmatpush3.bf16.xpose.msra.mxu0 %v1711_v36  ;;  %13626 = vst [vmem:[#allocation46_spill] sm:$0xff] %v10413_v8 }
 0x7a6   :  { %7815 = vmatmul.mubr.msk.bf16.gmra.mrb[24].mxu0 %vm1316_vm7, %v1464_v49  ;;  %8320 = vmatprep.subr.msk.bf16.mxu0 %vm1109_vm6, %v10249_v16  ;;  %v1816_v16 = vsel %vm1109_vm6, %v10253_v17, 0 }
 0x7a7   :  { %7842 = vmatprep.mubr.msk.bf16.mxu0 %vm1109_vm6, %v1680_v44 }
 0x7a8   :  { %v10416_v3 = vpop.eup %8810 }
 0x7a9   :  { %13627 = vst [vmem:[#allocation47_spill] sm:$0xff] %v10416_v3  ;;  %v10418_v6 = vpop.eup %8812 }
 0x7aa   :  { %13628 = vst [vmem:[#allocation48_spill] sm:$0xff] %v10418_v6  ;;  %v10420_v25 = vpop.eup %8814  ;;  %v1465_v30 = vpack.c.bf16 %v10418_v6, %v10413_v8 }
 0x7ab   :  { %13629 = vst [vmem:[#allocation49_spill] sm:$0xff] %v10420_v25  ;;  %v1466_v0 = vpack.c.bf16 %v10416_v3, %v10420_v25 }
 0x7ac   :  { %7826 = vmatprep.mubr.msk.bf16.mxu1 %vm1316_vm7, %v1465_v30 }
 0x7ad   :  { %7839 = vmatpush3.bf16.xpose.msra.mxu0 %v1714_v19  ;;  %7827 = vmatmul.mubr.msk.bf16.vlgmr.msra.gmra.mrb[36].mxu1 %vm1316_vm7, %v1466_v0 }
 0x7ae   :  { %8321 = vmatprep.subr.msk.bf16.mxu0 %vm1109_vm6, %v10357_v1  ;;  %7851 = vmatpush3.bf16.xpose.msra.mxu1 %v1813_v27 }
 0x7af   :  { %8323 = vmatprep.subr.msk.bf16.mxu1 %vm1109_vm6, %v10253_v17 }
 0x7b5   :  { %7841 = vmatpush3.bf16.xpose.msra.mxu0 %v1717_v55 }
 0x7b6   :  { %7853 = vmatpush3.bf16.xpose.msra.mxu1 %v1816_v16 }
 0x7bc   :  { %7843 = vmatmul.mubr.msk.bf16.vlgmr.msra.gmra.mrb[28].mxu0 %vm1109_vm6, %v1682_v57 }
 0x7ce   :  { %v1361_v15 = vpop.xlane.xlu1 %1360 }
 0x7cf   :  { %v1358_v47 = vpop.xlane.xlu0 %1357  ;;  %v1379_v26 = vsub.f32 %v10317_v38, %v1361_v15 }
 0x7d0   :  { %v1378_v21 = vsub.f32 %v10319_v13, %v1358_v47 }
 0x7d1   :  { %v1409_v32 = vmul.f32 1.442695, %v1379_v26 }
 0x7d2   :  { %v1407_v35 = vmul.f32 1.442695, %v1378_v21  ;;  %v1355_v56 = vpop.xlane.xlu1 %1354 }
 0x7d3   :  { %v1377_v61 = vsub.f32 %v10321_v12, %v1355_v56  ;;  %v1797_v22 = vpop.permute.xlu0 %1796 }
 0x7d4   :  { %8324 = vmatprep.subr.msk.bf16.mxu1 %vm1109_vm6, %v1797_v22  ;;  %v1819_v1 = vsel %vm1109_vm6, %v1797_v22, 0  ;;  %8816 = vpow2.f32 %v1407_v35 }
 0x7d5   :  { %v1405_v17 = vmul.f32 1.442695, %v1377_v61  ;;  %7855 = vmatpush3.bf16.xpose.msra.mxu1 %v1819_v1 }
 0x7d6   :  { %v1364_v36 = vpop.xlane.xlu1 %1363 }
 0x7d7   :  { %8818 = vpow2.f32 %v1405_v17  ;;  %v1380_v49 = vsub.f32 %v10327_v59, %v1364_v36  ;;  %v1785_v13 = vpop.permute.xlu0 %1784 }
 0x7d8   :  { %8820 = vpow2.f32 %v1409_v32 }
 0x7d9   :  { %v1411_v44 = vmul.f32 1.442695, %v1380_v49 }
 0x7da   :  { %v1799_v38 = vpop.permute.xlu1 %1798 }
 0x7db   :  { %8822 = vpow2.f32 %v1411_v44  ;;  %v1684_v30 = vpop.permute.xlu0 %1683  ;;  %8325 = vmatprep.subr.msk.bf16.mxu1 %vm1109_vm6, %v1799_v38  ;;  %v1822_v12 = vsel %vm1109_vm6, %v1799_v38, 0 }
 0x7dc   :  { %7846 = vmatprep.mubr.msk.bf16.mxu0 %vm1109_vm6, %v1684_v30 }
 0x7dd   :  { %7857 = vmatpush3.bf16.xpose.msra.mxu1 %v1822_v12 }
 0x7de   :  { %v1787_v0 = vpop.permute.xlu1 %1786  ;;  %v10450_v27 = vpop.eup %8816 }
 0x7df   :  { %v1789_v19 = vpop.permute.xlu0 %1788  ;;  %13630 = vst [vmem:[#allocation50_spill] sm:$0xff] %v10450_v27 }
 0x7e1   :  { %v10452_v55 = vpop.eup %8818 }
 0x7e2   :  { %13631 = vst [vmem:[#allocation51_spill] sm:$0xff] %v10452_v55  ;;  %v1686_v59 = vpop.permute.xlu1 %1685  ;;  %v1467_v16 = vpack.c.bf16 %v10450_v27, %v10452_v55  ;;  %v10457_v15 = vpop.eup %8820 }
 0x7e3   :  { %v2058_v57 = vpop.permute.xlu0 %2057  ;;  %7847 = vmatmul.mubr.msk.bf16.gmra.mrb[32].mxu0 %vm1109_vm6, %v1686_v59  ;;  %13632 = vst [vmem:[#allocation52_spill] sm:$0xff] %v10457_v15 }
 0x7e4   :  { %7830 = vmatprep.mubr.msk.bf16.mxu1 %vm1316_vm7, %v1467_v16  ;;  %7866 = vmatprep.subr.bf16.mxu0 %v2058_v57 }
 0x7e5   :  { %v10460_v47 = vpop.eup %8822  ;;  %7867 = vmatpush3.bf16.msra.mxu0 %v2058_v57 }
 0x7e6   :  { %13633 = vst [vmem:[#allocation53_spill] sm:$0xff] %v10460_v47  ;;  %v1791_v21 = vpop.permute.xlu1 %1790  ;;  %v1468_v26 = vpack.c.bf16 %v10460_v47, %v10457_v15 }
 0x7e7   :  { %v2062_v35 = vpop.permute.xlu0 %2061 }
 0x7e8   :  { %7831 = vmatmul.mubr.msk.bf16.gmra.mrb[40].mxu1 %vm1316_vm7, %v1468_v26 }
 0x7e9   :  { %7858 = vmatprep.mubr.msk.bf16.mxu1 %vm1109_vm6, %v1785_v13 }
 0x7ea   :  { %v2060_v56 = vpop.permute.xlu1 %2059 }
 0x7eb   :  { %v2147_v61 = vpop.permute.xlu0 %2146  ;;  %7868 = vmatprep.subr.bf16.mxu0 %v2060_v56 }
 0x7ec   :  { %7869 = vmatpush3.bf16.msra.mxu0 %v2060_v56  ;;  %7882 = vmatprep.subr.bf16.mxu1 %v2147_v61 }
 0x7ed   :  { %7870 = vmatprep.subr.bf16.mxu0 %v2062_v35 }
 0x7ee   :  { %v2064_v22 = vpop.permute.xlu1 %2063 }
 0x7ef   :  { %v2153_v17 = vpop.permute.xlu0 %2152 }
 0x7f0   :  { %7859 = vmatmul.mubr.msk.bf16.vlgmr.msra.gmra.mrb[44].mxu1 %vm1109_vm6, %v1787_v0  ;;  %7871 = vmatpush3.bf16.msra.mxu0 %v2062_v35 }
 0x7f1   :  { %7883 = vmatpush3.bf16.msra.mxu1 %v2147_v61  ;;  %7862 = vmatprep.mubr.msk.bf16.mxu1 %vm1109_vm6, %v1789_v19 }
 0x7f2   :  { %7872 = vmatprep.subr.bf16.mxu0 %v2064_v22  ;;  %v2149_v1 = vpop.permute.xlu1 %2148 }
 0x7f3   :  { %7884 = vmatprep.subr.bf16.mxu1 %v2149_v1  ;;  %v10473_v36 = vpop.permute.xlu0 %2277 }
 0x7f4   :  { %7873 = vmatpush3.bf16.msra.mxu0 %v2064_v22 }
 0x7f5   :  { %7885 = vmatpush3.bf16.msra.mxu1 %v2149_v1 }
 0x7f6   :  { %v10468_v32 = vpop.permute.xlu1 %2275 }
 0x7f7   :  { %8326 = vmatprep.subr.msk.bf16.mxu0 %vm1109_vm6, %v10468_v32  ;;  %v10475_v13 = vpop.permute.xlu0 %2380 }
 0x7f8   :  { %7863 = vmatmul.mubr.msk.bf16.gmra.mrb[48].mxu1 %vm1109_vm6, %v1791_v21 }
 0x7fa   :  { %v2151_v49 = vpop.permute.xlu1 %2150 }
 0x7fb   :  { %7886 = vmatprep.subr.bf16.mxu1 %v2151_v49 }
 0x7fc   :  { %7887 = vmatpush3.bf16.msra.mxu1 %v2151_v49 }
 0x7fd   :  { %7888 = vmatprep.subr.bf16.mxu1 %v2153_v17 }
 0x800   :  { %7889 = vmatpush3.bf16.msra.mxu1 %v2153_v17 }
 0x801   :  { %8330 = vmatprep.subr.msk.bf16.mxu1 %vm1109_vm6, %v10475_v13 }
 0x86f   :  { %v10479_v44 = vpop.f32.mrb[20].mxu0 }
 0x870   :  { %13634 = vst [vmem:[#allocation54_spill] sm:$0xff] %v10479_v44  ;;  %v10481_v38 = vpop.f32.mrb[21].mxu0 }
 0x871   :  { %13635 = vst [vmem:[#allocation55_spill] sm:$0xff] %v10481_v38  ;;  %v10483_v30 = vpop.f32.mrb[22].mxu0 }
 0x872   :  { %13636 = vst [vmem:[#allocation56_spill] sm:$0xff] %v10483_v30  ;;  %v10485_v12 = vpop.f32.mrb[23].mxu0 }
 0x873   :  { %13637 = vst [vmem:[#allocation57_spill] sm:$0xff] %v10485_v12 }
 0x879   :  { %v10487_v0 = vpop.f32.mrb[24].mxu0 }
 0x87a   :  { %13638 = vst [vmem:[#allocation58_spill] sm:$0xff] %v10487_v0  ;;  %v10489_v19 = vpop.f32.mrb[25].mxu0 }
 0x87b   :  { %13639 = vst [vmem:[#allocation59_spill] sm:$0xff] %v10489_v19  ;;  %v10491_v59 = vpop.f32.mrb[26].mxu0 }
 0x87c   :  { %13640 = vst [vmem:[#allocation60_spill] sm:$0xff] %v10491_v59  ;;  %v10493_v16 = vpop.f32.mrb[27].mxu0 }
 0x87d   :  { %13641 = vst [vmem:[#allocation61_spill] sm:$0xff] %v10493_v16 }
 0x880   :  { %v10495_v57 = vpop.f32.mrb[36].mxu1 }
 0x881   :  { %13642 = vst [vmem:[#allocation62_spill] sm:$0xff] %v10495_v57  ;;  %v10497_v21 = vpop.f32.mrb[37].mxu1 }
 0x882   :  { %13643 = vst [vmem:[#allocation63_spill] sm:$0xff] %v10497_v21  ;;  %v10499_v26 = vpop.f32.mrb[38].mxu1 }
 0x883   :  { %13644 = vst [vmem:[#allocation64_spill] sm:$0xff] %v10499_v26  ;;  %v10501_v35 = vpop.f32.mrb[39].mxu1 }
 0x884   :  { %13645 = vst [vmem:[#allocation65_spill] sm:$0xff] %v10501_v35 }
 0x88f   :  { %v7844_v56 = vpop.f32.mrb[28].mxu0 }
 0x890   :  { %v10503_v61 = vmul.f32 0.5, %v7844_v56  ;;  %v1753_v22 = vpop.f32.mrb[29].mxu0 }
 0x891   :  { %v7845_v1 = vpop.f32.mrb[30].mxu0  ;;  %v10505_v17 = vmul.f32 0.5, %v1753_v22 }
 0x892   :  { %v1756_v49 = vpop.f32.mrb[31].mxu0  ;;  %v1911_v58 = vsel %vm1316_vm7, %v10503_v61, -inf  ;;  %v10513_v48 = vmul.f32 0.5, %v7845_v1 }
 0x893   :  { %v10509_v34 = vmul.f32 0.5, %v1756_v49  ;;  %1912 = vmax.xlane.f32.xlu0 %v1911_v58  ;;  %v1905_v56 = vsel %vm1316_vm7, %v10505_v17, -inf }
 0x894   :  { %v1914_v22 = vsel %vm1316_vm7, %v10513_v48, -inf }
 0x895   :  { %v1908_v39 = vsel %vm1316_vm7, %v10509_v34, -inf }
 0x896   :  { %1909 = vmax.xlane.f32.xlu1 %v1908_v39 }
 0x897   :  { %1906 = vmax.xlane.f32.xlu0 %v1905_v56 }
 0x89b   :  { %1915 = vmax.xlane.f32.xlu0 %v1914_v22 }
 0x8b6   :  { %v7848_v5 = vpop.f32.mrb[32].mxu0 }
 0x8b7   :  { %v10519_v4 = vmul.f32 0.5, %v7848_v5  ;;  %v1769_v49 = vpop.f32.mrb[33].mxu0 }
 0x8b8   :  { %v10521_v51 = vmul.f32 0.5, %v1769_v49  ;;  %v7849_v58 = vpop.f32.mrb[34].mxu0 }
 0x8b9   :  { %v1772_v43 = vpop.f32.mrb[35].mxu0  ;;  %v1923_v1 = vsel %vm1316_vm7, %v10519_v4, -inf  ;;  %v10525_v39 = vmul.f32 0.5, %v7849_v58 }
 0x8ba   :  { %v10527_v37 = vmul.f32 0.5, %v1772_v43  ;;  %1924 = vmax.xlane.f32.xlu0 %v1923_v1  ;;  %v1917_v56 = vsel %vm1316_vm7, %v10521_v51, -inf }
 0x8bb   :  { %v10531_v22 = vpop.f32.mrb[40].mxu1  ;;  %1918 = vmax.xlane.f32.xlu1 %v1917_v56  ;;  %v1926_v43 = vsel %vm1316_vm7, %v10525_v39, -inf }
 0x8bc   :  { %13646 = vst [vmem:[#allocation66_spill] sm:$0xff] %v10531_v22  ;;  %v10533_v5 = vpop.f32.mrb[41].mxu1  ;;  %v1920_v49 = vsel %vm1316_vm7, %v10527_v37, -inf }
 0x8bd   :  { %13647 = vst [vmem:[#allocation67_spill] sm:$0xff] %v10533_v5  ;;  %v10537_v41 = vpop.f32.mrb[42].mxu1 }
 0x8be   :  { %13648 = vst [vmem:[#allocation68_spill] sm:$0xff] %v10537_v41  ;;  %v10539_v62 = vpop.f32.mrb[43].mxu1  ;;  %1921 = vmax.xlane.f32.xlu0 %v1920_v49 }
 0x8bf   :  { %13649 = vst [vmem:[#allocation69_spill] sm:$0xff] %v10539_v62  ;;  %1927 = vmax.xlane.f32.xlu1 %v1926_v43 }
 0x8c3   :  { %v7860_v58 = vpop.f32.mrb[44].mxu1 }
 0x8c4   :  { %v10543_v1 = vmul.f32 0.5, %v7860_v58  ;;  %v1858_v33 = vpop.f32.mrb[45].mxu1 }
 0x8c5   :  { %v10545_v29 = vmul.f32 0.5, %v1858_v33  ;;  %v7861_v56 = vpop.f32.mrb[46].mxu1 }
 0x8c6   :  { %v1861_v45 = vpop.f32.mrb[47].mxu1  ;;  %v1935_v46 = vsel %vm1316_vm7, %v10543_v1, -inf  ;;  %v10549_v24 = vmul.f32 0.5, %v7861_v56 }
 0x8c7   :  { %v10551_v11 = vmul.f32 0.5, %v1861_v45  ;;  %1936 = vmax.xlane.f32.xlu0 %v1935_v46  ;;  %v1929_v49 = vsel %vm1316_vm7, %v10545_v29, -inf }
 0x8c8   :  { %1930 = vmax.xlane.f32.xlu1 %v1929_v49  ;;  %v1938_v58 = vsel %vm1316_vm7, %v10549_v24, -inf }
 0x8c9   :  { %v1932_v43 = vsel %vm1316_vm7, %v10551_v11, -inf }
 0x8cb   :  { %1933 = vmax.xlane.f32.xlu0 %v1932_v43  ;;  %v7864_v33 = vpop.f32.mrb[48].mxu1 }
 0x8cc   :  { %1939 = vmax.xlane.f32.xlu1 %v1938_v58  ;;  %v1874_v18 = vpop.f32.mrb[49].mxu1  ;;  %v10565_v45 = vmul.f32 0.5, %v7864_v33 }
 0x8cd   :  { %v7865_v10 = vpop.f32.mrb[50].mxu1  ;;  %v10569_v43 = vmul.f32 0.5, %v1874_v18  ;;  %v2280_v18 = vpop.permute.xlu1 %2279 }
 0x8ce   :  { %v1877_v56 = vpop.f32.mrb[51].mxu1  ;;  %v1947_v58 = vsel %vm1316_vm7, %v10565_v45, -inf  ;;  %v10573_v41 = vmul.f32 0.5, %v7865_v10  ;;  %v10585_v10 = vpop.permute.xlu0 %2281 }
 0x8cf   :  { %v10563_v46 = vmul.f32 0.5, %v1877_v56  ;;  %v1941_v62 = vsel %vm1316_vm7, %v10569_v43, -inf }
 0x8d0   :  { %v1950_v33 = vsel %vm1316_vm7, %v10573_v41, -inf }
 0x8d1   :  { %v1944_v49 = vsel %vm1316_vm7, %v10563_v46, -inf }
 0x8dd   :  { %2269 = vrot.lane.b32.xlu1 %v10161_v53, %s9514_s12 }
 0x8e1   :  { %2267 = vrot.lane.b32.xlu0 %v10163_v54, %s9514_s12 }
 0x900   :  { %1945 = vmax.xlane.f32.xlu0 %v1944_v49 }
 0x901   :  { %1948 = vmax.xlane.f32.xlu1 %v1947_v58 }
 0x905   :  { %1942 = vmax.xlane.f32.xlu1 %v1941_v62  ;;  %v10591_v62 = vpop.permute.xlu1 %2382 }
 0x909   :  { %1951 = vmax.xlane.f32.xlu1 %v1950_v33 }
 0x916   :  { %2384 = vrot.lane.b32.xlu0 %v10191_v14, %s9513_s1 }
 0x91a   :  { %2386 = vrot.lane.b32.xlu1 %v10189_v63, %s9513_s1  ;;  %2372 = vrot.lane.b32.xlu0 %v10181_v31, %s9514_s12 }
 0x91e   :  { %2374 = vrot.lane.b32.xlu1 %v10179_v23, %s9514_s12  ;;  %2271 = vrot.lane.b32.xlu0 %v10173_v9, %s9514_s12 }
 0x920   :  { %v1913_v56 = vpop.xlane.xlu0 %1912 }
 0x921   :  { %v1955_v58 = vsub.f32 %v10503_v61, %v1913_v56  ;;  %v2296_v61 = vsel %vm1109_vm6, %v10468_v32, 0 }
 0x922   :  { %2273 = vrot.lane.b32.xlu1 %v10171_v2, %s9514_s12  ;;  %2376 = vrot.lane.b32.xlu0 %v10191_v14, %s9514_s12 }
 0x923   :  { %v1910_v49 = vpop.xlane.xlu1 %1909  ;;  %v1973_v5 = vmul.f32 1.442695, %v1955_v58  ;;  %v2302_v58 = vsel %vm1109_vm6, %v2280_v18, 0 }
 0x924   :  { %v1954_v33 = vsub.f32 %v10509_v34, %v1910_v49  ;;  %v1907_v26 = vpop.xlane.xlu0 %1906 }
 0x925   :  { %v1953_v35 = vsub.f32 %v10505_v17, %v1907_v26  ;;  %v2299_v17 = vsel %vm1109_vm6, %v10473_v36, 0 }
 0x926   :  { %v1971_v22 = vmul.f32 1.442695, %v1954_v33  ;;  %2378 = vrot.lane.b32.xlu1 %v10189_v63, %s9514_s12  ;;  %2645 = vrot.lane.b32.xlu0 %v10163_v54, %s9515_s24 }
 0x927   :  { %v1969_v59 = vmul.f32 1.442695, %v1953_v35 }
 0x928   :  { %8824 = vpow2.f32 %v1971_v22  ;;  %v1916_v16 = vpop.xlane.xlu0 %1915 }
 0x929   :  { %8826 = vpow2.f32 %v1969_v59  ;;  %v1956_v57 = vsub.f32 %v10513_v48, %v1916_v16 }
 0x92a   :  { %2647 = vrot.lane.b32.xlu1 %v10161_v53, %s9515_s24  ;;  %2649 = vrot.lane.b32.xlu0 %v10173_v9, %s9515_s24  ;;  %8828 = vpow2.f32 %v1973_v5 }
 0x92b   :  { %v1975_v34 = vmul.f32 1.442695, %v1956_v57 }
 0x92d   :  { %8830 = vpow2.f32 %v1975_v34 }
 0x92e   :  { %2651 = vrot.lane.b32.xlu1 %v10171_v2, %s9515_s24  ;;  %2734 = vrot.lane.b32.xlu0 %v10181_v31, %s9515_s24 }
 0x932   :  { %v10608_v26 = vpop.eup %8824  ;;  %2736 = vrot.lane.b32.xlu1 %v10179_v23, %s9515_s24  ;;  %2740 = vrot.lane.b32.xlu0 %v10189_v63, %s9515_s24 }
 0x933   :  { %v10612_v59 = vpop.eup %8826 }
 0x934   :  { %v2049_v48 = vpack.c.bf16 %v10608_v26, %v10612_v59  ;;  %v10616_v16 = vpop.eup %8828 }
 0x936   :  { %7874 = vmatprep.mubr.msk.bf16.mxu0 %vm1316_vm7, %v2049_v48  ;;  %2863 = vrot.lane.b32.xlu1 %v10163_v54, %s9516_s7 }
 0x937   :  { %v10621_v57 = vpop.eup %8830  ;;  %2865 = vrot.lane.b32.xlu0 %v10161_v53, %s9516_s7 }
 0x938   :  { %v2050_v35 = vpack.c.bf16 %v10621_v57, %v10616_v16 }
 0x93a   :  { %7875 = vmatmul.mubr.msk.bf16.vlgmr.msra.gmra.mrb[36].mxu0 %vm1316_vm7, %v2050_v35  ;;  %2738 = vrot.lane.b32.xlu1 %v10191_v14, %s9515_s24 }
 0x93b   :  { %7899 = vmatpush3.bf16.xpose.msra.mxu0 %v2296_v61  ;;  %2968 = vrot.lane.b32.xlu0 %v10181_v31, %s9516_s7 }
 0x93c   :  { %8327 = vmatprep.subr.msk.bf16.mxu0 %vm1109_vm6, %v10473_v36 }
 0x93e   :  { %2867 = vrot.lane.b32.xlu1 %v10173_v9, %s9516_s7 }
 0x93f   :  { %2869 = vrot.lane.b32.xlu0 %v10171_v2, %s9516_s7 }
 0x942   :  { %2970 = vrot.lane.b32.xlu1 %v10179_v23, %s9516_s7 }
 0x943   :  { %7901 = vmatpush3.bf16.xpose.msra.mxu0 %v2299_v17 }
 0x944   :  { %8328 = vmatprep.subr.msk.bf16.mxu0 %vm1109_vm6, %v2280_v18 }
 0x947   :  { %v1925_v32 = vpop.xlane.xlu0 %1924 }
 0x948   :  { %v1959_v22 = vsub.f32 %v10519_v4, %v1925_v32  ;;  %v1919_v5 = vpop.xlane.xlu1 %1918 }
 0x949   :  { %v1957_v56 = vsub.f32 %v10521_v51, %v1919_v5  ;;  %v2305_v51 = vsel %vm1109_vm6, %v10585_v10, 0 }
 0x94a   :  { %v1981_v49 = vmul.f32 1.442695, %v1959_v22 }
 0x94b   :  { %v1977_v33 = vmul.f32 1.442695, %v1957_v56  ;;  %7903 = vmatpush3.bf16.xpose.msra.mxu0 %v2302_v58  ;;  %v1922_v34 = vpop.xlane.xlu0 %1921 }
 0x94c   :  { %8329 = vmatprep.subr.msk.bf16.mxu0 %vm1109_vm6, %v10585_v10  ;;  %v1958_v36 = vsub.f32 %v10527_v37, %v1922_v34  ;;  %v1928_v48 = vpop.xlane.xlu1 %1927  ;;  %8832 = vpow2.f32 %v1981_v49 }
 0x94d   :  { %v1960_v35 = vsub.f32 %v10525_v39, %v1928_v48  ;;  %8834 = vpow2.f32 %v1977_v33 }
 0x94e   :  { %v1979_v61 = vmul.f32 1.442695, %v1958_v36 }
 0x94f   :  { %v1983_v4 = vmul.f32 1.442695, %v1960_v35 }
 0x950   :  { %8836 = vpow2.f32 %v1979_v61 }
 0x951   :  { %8838 = vpow2.f32 %v1983_v4 }
 0x953   :  { %7905 = vmatpush3.bf16.xpose.msra.mxu0 %v2305_v51 }
 0x954   :  { %v1937_v18 = vpop.xlane.xlu0 %1936 }
 0x955   :  { %v1963_v17 = vsub.f32 %v10543_v1, %v1937_v18  ;;  %v1931_v32 = vpop.xlane.xlu1 %1930 }
 0x956   :  { %v1961_v22 = vsub.f32 %v10545_v29, %v1931_v32  ;;  %v10655_v5 = vpop.eup %8832 }
 0x957   :  { %v1989_v37 = vmul.f32 1.442695, %v1963_v17  ;;  %v10657_v49 = vpop.eup %8834 }
 0x958   :  { %v1985_v39 = vmul.f32 1.442695, %v1961_v22  ;;  %v1934_v56 = vpop.xlane.xlu0 %1933  ;;  %v2401_v22 = vsel %vm1109_vm6, %v10475_v13, 0 }
 0x959   :  { %v1962_v58 = vsub.f32 %v10551_v11, %v1934_v56  ;;  %v1940_v33 = vpop.xlane.xlu1 %1939  ;;  %8840 = vpow2.f32 %v1989_v37  ;;  %v2404_v37 = vsel %vm1109_vm6, %v10591_v62, 0 }
 0x95a   :  { %v10660_v34 = vpop.eup %8836  ;;  %v1964_v10 = vsub.f32 %v10549_v24, %v1940_v33  ;;  %8842 = vpow2.f32 %v1985_v39 }
 0x95b   :  { %v10663_v36 = vpop.eup %8838  ;;  %v1987_v1 = vmul.f32 1.442695, %v1962_v58  ;;  %v2051_v29 = vpack.c.bf16 %v10660_v34, %v10657_v49 }
 0x95c   :  { %v1991_v48 = vmul.f32 1.442695, %v1964_v10  ;;  %v2052_v35 = vpack.c.bf16 %v10663_v36, %v10655_v5  ;;  %v2268_v11 = vpop.permute.xlu0 %2267 }
 0x95d   :  { %8844 = vpow2.f32 %v1987_v1  ;;  %7878 = vmatprep.mubr.msk.bf16.mxu0 %vm1316_vm7, %v2051_v29  ;;  %v2270_v61 = vpop.permute.xlu1 %2269 }
 0x95e   :  { %8846 = vpow2.f32 %v1991_v48  ;;  %7879 = vmatmul.mubr.msk.bf16.gmra.mrb[40].mxu0 %vm1316_vm7, %v2052_v35 }
 0x95f   :  { %7906 = vmatprep.mubr.msk.bf16.mxu0 %vm1109_vm6, %v2268_v11 }
 0x963   :  { %v10672_v24 = vpop.eup %8840 }
 0x964   :  { %13650 = vst [vmem:[#allocation70_spill] sm:$0xff] %v10672_v24  ;;  %v10674_v4 = vpop.eup %8842 }
 0x965   :  { %13651 = vst [vmem:[#allocation71_spill] sm:$0xff] %v10674_v4 }
 0x966   :  { %7907 = vmatmul.mubr.msk.bf16.vlgmr.msra.gmra.mrb[44].mxu0 %vm1109_vm6, %v2270_v61 }
 0x967   :  { %v10677_v51 = vpop.eup %8844 }
 0x968   :  { %13652 = vst [vmem:[#allocation72_spill] sm:$0xff] %v10677_v51  ;;  %v10679_v18 = vpop.eup %8846  ;;  %v2053_v17 = vpack.c.bf16 %v10677_v51, %v10674_v4 }
 0x969   :  { %13653 = vst [vmem:[#allocation73_spill] sm:$0xff] %v10679_v18  ;;  %v2054_v32 = vpack.c.bf16 %v10679_v18, %v10672_v24 }
 0x96a   :  { %7890 = vmatprep.mubr.msk.bf16.mxu1 %vm1316_vm7, %v2053_v17 }
 0x96b   :  { %7891 = vmatmul.mubr.msk.bf16.vlgmr.msra.gmra.mrb[52].mxu1 %vm1316_vm7, %v2054_v32 }
 0x96c   :  { %7915 = vmatpush3.bf16.xpose.msra.mxu1 %v2401_v22 }
 0x96d   :  { %8331 = vmatprep.subr.msk.bf16.mxu1 %vm1109_vm6, %v10591_v62 }
 0x974   :  { %7917 = vmatpush3.bf16.xpose.msra.mxu1 %v2404_v37 }
 0x98d   :  { %v1946_v39 = vpop.xlane.xlu0 %1945 }
 0x98e   :  { %v1966_v56 = vsub.f32 %v10563_v46, %v1946_v39  ;;  %v1949_v58 = vpop.xlane.xlu1 %1948 }
 0x98f   :  { %v1967_v1 = vsub.f32 %v10565_v45, %v1949_v58 }
 0x990   :  { %v1995_v10 = vmul.f32 1.442695, %v1966_v56 }
 0x991   :  { %v2385_v33 = vpop.permute.xlu0 %2384  ;;  %v1997_v62 = vmul.f32 1.442695, %v1967_v1 }
 0x992   :  { %8332 = vmatprep.subr.msk.bf16.mxu1 %vm1109_vm6, %v2385_v33  ;;  %v1943_v29 = vpop.xlane.xlu1 %1942  ;;  %v2407_v13 = vsel %vm1109_vm6, %v2385_v33, 0  ;;  %8848 = vpow2.f32 %v1995_v10 }
 0x993   :  { %v1965_v48 = vsub.f32 %v10569_v43, %v1943_v29  ;;  %7919 = vmatpush3.bf16.xpose.msra.mxu1 %v2407_v13 }
 0x995   :  { %v1993_v35 = vmul.f32 1.442695, %v1965_v48  ;;  %v2373_v11 = vpop.permute.xlu0 %2372 }
 0x996   :  { %v1952_v61 = vpop.xlane.xlu1 %1951 }
 0x997   :  { %8850 = vpow2.f32 %v1993_v35  ;;  %v1968_v46 = vsub.f32 %v10573_v41, %v1952_v61 }
 0x998   :  { %8852 = vpow2.f32 %v1997_v62 }
 0x999   :  { %v1999_v17 = vmul.f32 1.442695, %v1968_v46  ;;  %v2272_v32 = vpop.permute.xlu0 %2271 }
 0x99a   :  { %7910 = vmatprep.mubr.msk.bf16.mxu0 %vm1109_vm6, %v2272_v32  ;;  %v2387_v45 = vpop.permute.xlu1 %2386 }
 0x99b   :  { %8854 = vpow2.f32 %v1999_v17  ;;  %8333 = vmatprep.subr.msk.bf16.mxu1 %vm1109_vm6, %v2387_v45  ;;  %v2410_v43 = vsel %vm1109_vm6, %v2387_v45, 0 }
 0x99c   :  { %7921 = vmatpush3.bf16.xpose.msra.mxu1 %v2410_v43  ;;  %v10702_v39 = vpop.eup %8848 }
 0x99d   :  { %v2377_v22 = vpop.permute.xlu0 %2376  ;;  %13654 = vst [vmem:[#allocation74_spill] sm:$0xff] %v10702_v39 }
 0x99e   :  { %v2375_v37 = vpop.permute.xlu1 %2374 }
 0x9a1   :  { %v10704_v56 = vpop.eup %8850  ;;  %v2646_v58 = vpop.permute.xlu0 %2645 }
 0x9a2   :  { %13655 = vst [vmem:[#allocation75_spill] sm:$0xff] %v10704_v56  ;;  %7930 = vmatprep.subr.bf16.mxu0 %v2646_v58  ;;  %v2274_v41 = vpop.permute.xlu1 %2273  ;;  %v2055_v33 = vpack.c.bf16 %v10702_v39, %v10704_v56  ;;  %v10709_v10 = vpop.eup %8852 }
 0x9a3   :  { %7911 = vmatmul.mubr.msk.bf16.gmra.mrb[48].mxu0 %vm1109_vm6, %v2274_v41  ;;  %13656 = vst [vmem:[#allocation76_spill] sm:$0xff] %v10709_v10 }
 0x9a4   :  { %7931 = vmatpush3.bf16.msra.mxu0 %v2646_v58  ;;  %7894 = vmatprep.mubr.msk.bf16.mxu1 %vm1316_vm7, %v2055_v33 }
 0x9a5   :  { %v10712_v1 = vpop.eup %8854  ;;  %v2650_v29 = vpop.permute.xlu0 %2649 }
 0x9a6   :  { %13657 = vst [vmem:[#allocation77_spill] sm:$0xff] %v10712_v1  ;;  %v2379_v13 = vpop.permute.xlu1 %2378  ;;  %v2056_v48 = vpack.c.bf16 %v10712_v1, %v10709_v10 }
 0x9a8   :  { %7895 = vmatmul.mubr.msk.bf16.gmra.mrb[56].mxu1 %vm1316_vm7, %v2056_v48 }
 0x9a9   :  { %v2735_v35 = vpop.permute.xlu0 %2734  ;;  %7922 = vmatprep.mubr.msk.bf16.mxu1 %vm1109_vm6, %v2373_v11 }
 0x9aa   :  { %7946 = vmatprep.subr.bf16.mxu1 %v2735_v35  ;;  %v2648_v62 = vpop.permute.xlu1 %2647 }
 0x9ab   :  { %7932 = vmatprep.subr.bf16.mxu0 %v2648_v62 }
 0x9ac   :  { %7933 = vmatpush3.bf16.msra.mxu0 %v2648_v62 }
 0x9ad   :  { %7934 = vmatprep.subr.bf16.mxu0 %v2650_v29  ;;  %v2741_v17 = vpop.permute.xlu0 %2740 }
 0x9ae   :  { %v2652_v61 = vpop.permute.xlu1 %2651 }
 0x9b0   :  { %7923 = vmatmul.mubr.msk.bf16.vlgmr.msra.gmra.mrb[60].mxu1 %vm1109_vm6, %v2375_v37  ;;  %7935 = vmatpush3.bf16.msra.mxu0 %v2650_v29 }
 0x9b1   :  { %7947 = vmatpush3.bf16.msra.mxu1 %v2735_v35  ;;  %7926 = vmatprep.mubr.msk.bf16.mxu1 %vm1109_vm6, %v2377_v22  ;;  %v10725_v11 = vpop.permute.xlu0 %2865 }
 0x9b2   :  { %7936 = vmatprep.subr.bf16.mxu0 %v2652_v61  ;;  %v2737_v46 = vpop.permute.xlu1 %2736 }
 0x9b3   :  { %7948 = vmatprep.subr.bf16.mxu1 %v2737_v46 }
 0x9b4   :  { %7937 = vmatpush3.bf16.msra.mxu0 %v2652_v61 }
 0x9b5   :  { %7949 = vmatpush3.bf16.msra.mxu1 %v2737_v46  ;;  %v10727_v43 = vpop.permute.xlu0 %2968 }
 0x9b6   :  { %v10720_v32 = vpop.permute.xlu1 %2863 }
 0x9b7   :  { %8334 = vmatprep.subr.msk.bf16.mxu0 %vm1109_vm6, %v10720_v32 }
 0x9b8   :  { %7927 = vmatmul.mubr.msk.bf16.gmra.mrb[64].mxu1 %vm1109_vm6, %v2379_v13 }
 0x9ba   :  { %v2739_v45 = vpop.permute.xlu1 %2738 }
 0x9bb   :  { %7950 = vmatprep.subr.bf16.mxu1 %v2739_v45 }
 0x9bc   :  { %7951 = vmatpush3.bf16.msra.mxu1 %v2739_v45 }
 0x9bd   :  { %7952 = vmatprep.subr.bf16.mxu1 %v2741_v17 }
 0x9be   :  { %v2868_v28 = vpop.permute.xlu1 %2867 }
 0x9c0   :  { %7953 = vmatpush3.bf16.msra.mxu1 %v2741_v17 }
 0x9c1   :  { %8338 = vmatprep.subr.msk.bf16.mxu1 %vm1109_vm6, %v10727_v43 }
 0x9c2   :  { %v10831_v20 = vpop.permute.xlu1 %2970 }
 0xa0d   :  { %v10731_v22 = vpop.f32.mrb[36].mxu0 }
 0xa0e   :  { %13658 = vst [vmem:[#allocation78_spill] sm:$0xff] %v10731_v22  ;;  %v10733_v37 = vpop.f32.mrb[37].mxu0 }
 0xa0f   :  { %13659 = vst [vmem:[#allocation79_spill] sm:$0xff] %v10733_v37  ;;  %v10735_v58 = vpop.f32.mrb[38].mxu0 }
 0xa10   :  { %13660 = vst [vmem:[#allocation80_spill] sm:$0xff] %v10735_v58  ;;  %v10737_v41 = vpop.f32.mrb[39].mxu0 }
 0xa11   :  { %13661 = vst [vmem:[#allocation81_spill] sm:$0xff] %v10737_v41 }
 0xa31   :  { %v10739_v33 = vpop.f32.mrb[40].mxu0 }
 0xa32   :  { %13662 = vst [vmem:[#allocation82_spill] sm:$0xff] %v10739_v33  ;;  %v10741_v29 = vpop.f32.mrb[41].mxu0 }
 0xa33   :  { %13663 = vst [vmem:[#allocation83_spill] sm:$0xff] %v10741_v29  ;;  %v10743_v13 = vpop.f32.mrb[42].mxu0 }
 0xa34   :  { %13664 = vst [vmem:[#allocation84_spill] sm:$0xff] %v10743_v13  ;;  %v10745_v48 = vpop.f32.mrb[43].mxu0 }
 0xa35   :  { %13665 = vst [vmem:[#allocation85_spill] sm:$0xff] %v10745_v48 }
 0xa39   :  { %v7908_v35 = vpop.f32.mrb[44].mxu0 }
 0xa3a   :  { %v10747_v62 = vmul.f32 0.5, %v7908_v35  ;;  %v2341_v61 = vpop.f32.mrb[45].mxu0 }
 0xa3b   :  { %v7909_v46 = vpop.f32.mrb[46].mxu0  ;;  %v10749_v17 = vmul.f32 0.5, %v2341_v61 }
 0xa3c   :  { %v2344_v45 = vpop.f32.mrb[47].mxu0  ;;  %v2499_v30 = vsel %vm1316_vm7, %v10747_v62, -inf  ;;  %v10761_v35 = vmul.f32 0.5, %v7909_v46 }
 0xa3d   :  { %v10753_v21 = vmul.f32 0.5, %v2344_v45  ;;  %2500 = vmax.xlane.f32.xlu0 %v2499_v30  ;;  %v2493_v61 = vsel %vm1316_vm7, %v10749_v17, -inf }
 0xa3e   :  { %v10755_v12 = vpop.f32.mrb[52].mxu1  ;;  %v2502_v30 = vsel %vm1316_vm7, %v10761_v35, -inf }
 0xa3f   :  { %13666 = vst [vmem:[#allocation86_spill] sm:$0xff] %v10755_v12  ;;  %v10757_v0 = vpop.f32.mrb[53].mxu1  ;;  %v2496_v19 = vsel %vm1316_vm7, %v10753_v21, -inf }
 0xa40   :  { %13667 = vst [vmem:[#allocation87_spill] sm:$0xff] %v10757_v0  ;;  %v10763_v44 = vpop.f32.mrb[54].mxu1  ;;  %2497 = vmax.xlane.f32.xlu1 %v2496_v19 }
 0xa41   :  { %13668 = vst [vmem:[#allocation88_spill] sm:$0xff] %v10763_v44  ;;  %v10767_v38 = vpop.f32.mrb[55].mxu1  ;;  %2494 = vmax.xlane.f32.xlu0 %v2493_v61 }
 0xa42   :  { %13669 = vst [vmem:[#allocation89_spill] sm:$0xff] %v10767_v38 }
 0xa45   :  { %2503 = vmax.xlane.f32.xlu0 %v2502_v30 }
 0xa76   :  { %v7912_v45 = vpop.f32.mrb[48].mxu0 }
 0xa77   :  { %v10771_v47 = vmul.f32 0.5, %v7912_v45  ;;  %v2357_v27 = vpop.f32.mrb[49].mxu0 }
 0xa78   :  { %v10773_v3 = vmul.f32 0.5, %v2357_v27  ;;  %v7913_v46 = vpop.f32.mrb[50].mxu0 }
 0xa79   :  { %v2360_v6 = vpop.f32.mrb[51].mxu0  ;;  %v2511_v19 = vsel %vm1316_vm7, %v10771_v47, -inf  ;;  %v10777_v15 = vmul.f32 0.5, %v7913_v46 }
 0xa7a   :  { %v10779_v50 = vmul.f32 0.5, %v2360_v6  ;;  %2512 = vmax.xlane.f32.xlu0 %v2511_v19  ;;  %v2505_v61 = vsel %vm1316_vm7, %v10773_v3, -inf }
 0xa7b   :  { %v10783_v30 = vpop.f32.mrb[56].mxu1  ;;  %2506 = vmax.xlane.f32.xlu1 %v2505_v61  ;;  %v2514_v6 = vsel %vm1316_vm7, %v10777_v15, -inf }
 0xa7c   :  { %13670 = vst [vmem:[#allocation90_spill] sm:$0xff] %v10783_v30  ;;  %v10785_v45 = vpop.f32.mrb[57].mxu1  ;;  %v2508_v27 = vsel %vm1316_vm7, %v10779_v50, -inf }
 0xa7d   :  { %13671 = vst [vmem:[#allocation91_spill] sm:$0xff] %v10785_v45  ;;  %v10789_v55 = vpop.f32.mrb[58].mxu1 }
 0xa7e   :  { %13672 = vst [vmem:[#allocation92_spill] sm:$0xff] %v10789_v55  ;;  %v10791_v42 = vpop.f32.mrb[59].mxu1  ;;  %2509 = vmax.xlane.f32.xlu0 %v2508_v27 }
 0xa7f   :  { %13673 = vst [vmem:[#allocation93_spill] sm:$0xff] %v10791_v42  ;;  %2515 = vmax.xlane.f32.xlu1 %v2514_v6 }
 0xa83   :  { %v7924_v46 = vpop.f32.mrb[60].mxu1 }
 0xa84   :  { %v10795_v19 = vmul.f32 0.5, %v7924_v46  ;;  %v2446_v25 = vpop.f32.mrb[61].mxu1 }
 0xa85   :  { %v10797_v30 = vmul.f32 0.5, %v2446_v25  ;;  %v7925_v61 = vpop.f32.mrb[62].mxu1 }
 0xa86   :  { %v2449_v45 = vpop.f32.mrb[63].mxu1  ;;  %v2523_v7 = vsel %vm1316_vm7, %v10795_v19, -inf  ;;  %v10801_v8 = vmul.f32 0.5, %v7925_v61 }
 0xa87   :  { %v10803_v55 = vmul.f32 0.5, %v2449_v45  ;;  %2524 = vmax.xlane.f32.xlu0 %v2523_v7  ;;  %v2517_v27 = vsel %vm1316_vm7, %v10797_v30, -inf }
 0xa88   :  { %2518 = vmax.xlane.f32.xlu1 %v2517_v27  ;;  %v2526_v46 = vsel %vm1316_vm7, %v10801_v8, -inf }
 0xa89   :  { %v2520_v6 = vsel %vm1316_vm7, %v10803_v55, -inf }
 0xa8b   :  { %2521 = vmax.xlane.f32.xlu0 %v2520_v6  ;;  %v7928_v25 = vpop.f32.mrb[64].mxu1 }
 0xa8c   :  { %2527 = vmax.xlane.f32.xlu1 %v2526_v46  ;;  %v2462_v42 = vpop.f32.mrb[65].mxu1  ;;  %v10817_v45 = vmul.f32 0.5, %v7928_v25 }
 0xa8d   :  { %v7929_v52 = vpop.f32.mrb[66].mxu1  ;;  %v10821_v6 = vmul.f32 0.5, %v2462_v42 }
 0xa8e   :  { %v2465_v61 = vpop.f32.mrb[67].mxu1  ;;  %v2535_v46 = vsel %vm1316_vm7, %v10817_v45, -inf  ;;  %v10825_v40 = vmul.f32 0.5, %v7929_v52 }
 0xa8f   :  { %v10815_v7 = vmul.f32 0.5, %v2465_v61  ;;  %v2529_v60 = vsel %vm1316_vm7, %v10821_v6, -inf  ;;  %v2870_v61 = vpop.permute.xlu0 %2869 }
 0xa90   :  { %v2538_v25 = vsel %vm1316_vm7, %v10825_v40, -inf }
 0xa91   :  { %v2532_v27 = vsel %vm1316_vm7, %v10815_v7, -inf }
 0xa9d   :  { %2857 = vrot.lane.b32.xlu1 %v10161_v53, %s9517_s11 }
 0xaa1   :  { %2855 = vrot.lane.b32.xlu0 %v10163_v54, %s9517_s11 }
 0xac0   :  { %2533 = vmax.xlane.f32.xlu0 %v2532_v27 }
 0xac1   :  { %2536 = vmax.xlane.f32.xlu1 %v2535_v46 }
 0xac5   :  { %2530 = vmax.xlane.f32.xlu1 %v2529_v60 }
 0xac9   :  { %2539 = vmax.xlane.f32.xlu1 %v2538_v25 }
 0xaca   :  { %v2501_v42 = vpop.xlane.xlu0 %2500 }
 0xacb   :  { %v2543_v1 = vsub.f32 %v10747_v62, %v2501_v42 }
 0xacd   :  { %v2498_v27 = vpop.xlane.xlu1 %2497  ;;  %v2561_v44 = vmul.f32 1.442695, %v2543_v1  ;;  %v2887_v1 = vsel %vm1109_vm6, %v10725_v11, 0 }
 0xace   :  { %v2542_v46 = vsub.f32 %v10753_v21, %v2498_v27  ;;  %v2495_v39 = vpop.xlane.xlu0 %2494 }
 0xacf   :  { %v2541_v52 = vsub.f32 %v10749_v17, %v2495_v39 }
 0xad0   :  { %v2559_v10 = vmul.f32 1.442695, %v2542_v46 }
 0xad1   :  { %v2557_v56 = vmul.f32 1.442695, %v2541_v52 }
 0xad2   :  { %8856 = vpow2.f32 %v2559_v10  ;;  %v2504_v60 = vpop.xlane.xlu0 %2503  ;;  %v2884_v10 = vsel %vm1109_vm6, %v10720_v32, 0  ;;  %v2890_v32 = vsel %vm1109_vm6, %v2868_v28, 0 }
 0xad3   :  { %8858 = vpow2.f32 %v2557_v56  ;;  %v2544_v12 = vsub.f32 %v10761_v35, %v2504_v60 }
 0xad4   :  { %8860 = vpow2.f32 %v2561_v44 }
 0xad5   :  { %v2563_v38 = vmul.f32 1.442695, %v2544_v12 }
 0xad6   :  { %2972 = vrot.lane.b32.xlu0 %v10191_v14, %s9516_s7 }
 0xad7   :  { %8862 = vpow2.f32 %v2563_v38 }
 0xada   :  { %2974 = vrot.lane.b32.xlu1 %v10189_v63, %s9516_s7  ;;  %2960 = vrot.lane.b32.xlu0 %v10181_v31, %s9517_s11 }
 0xadc   :  { %v10843_v21 = vpop.eup %8856 }
 0xadd   :  { %v10845_v39 = vpop.eup %8858 }
 0xade   :  { %2962 = vrot.lane.b32.xlu1 %v10179_v23, %s9517_s11  ;;  %2859 = vrot.lane.b32.xlu0 %v10173_v9, %s9517_s11  ;;  %v2637_v44 = vpack.c.bf16 %v10843_v21, %v10845_v39  ;;  %v10853_v38 = vpop.eup %8860 }
 0xae0   :  { %7938 = vmatprep.mubr.msk.bf16.mxu0 %vm1316_vm7, %v2637_v44 }
 0xae1   :  { %v10856_v12 = vpop.eup %8862 }
 0xae2   :  { %v2638_v56 = vpack.c.bf16 %v10856_v12, %v10853_v38  ;;  %2861 = vrot.lane.b32.xlu1 %v10171_v2, %s9517_s11  ;;  %2964 = vrot.lane.b32.xlu0 %v10191_v14, %s9517_s11 }
 0xae4   :  { %7939 = vmatmul.mubr.msk.bf16.vlgmr.msra.gmra.mrb[52].mxu0 %vm1316_vm7, %v2638_v56 }
 0xae5   :  { %7963 = vmatpush3.bf16.xpose.msra.mxu0 %v2884_v10 }
 0xae6   :  { %8335 = vmatprep.subr.msk.bf16.mxu0 %vm1109_vm6, %v10725_v11  ;;  %2966 = vrot.lane.b32.xlu1 %v10189_v63, %s9517_s11  ;;  %v2893_v11 = vsel %vm1109_vm6, %v2870_v61, 0 }
 0xae7   :  { %3233 = vrot.lane.b32.xlu0 %v10163_v54, %s9518_s27 }
 0xaea   :  { %3235 = vrot.lane.b32.xlu1 %v10161_v53, %s9518_s27 }
 0xaeb   :  { %3237 = vrot.lane.b32.xlu0 %v10173_v9, %s9518_s27 }
 0xaed   :  { %7965 = vmatpush3.bf16.xpose.msra.mxu0 %v2887_v1 }
 0xaee   :  { %8336 = vmatprep.subr.msk.bf16.mxu0 %vm1109_vm6, %v2868_v28  ;;  %3239 = vrot.lane.b32.xlu1 %v10171_v2, %s9518_s27 }
 0xaef   :  { %3322 = vrot.lane.b32.xlu0 %v10181_v31, %s9518_s27 }
 0xaf2   :  { %3324 = vrot.lane.b32.xlu1 %v10179_v23, %s9518_s27 }
 0xaf3   :  { %3328 = vrot.lane.b32.xlu0 %v10189_v63, %s9518_s27 }
 0xaf5   :  { %7967 = vmatpush3.bf16.xpose.msra.mxu0 %v2890_v32 }
 0xaf6   :  { %8337 = vmatprep.subr.msk.bf16.mxu0 %vm1109_vm6, %v2870_v61  ;;  %3451 = vrot.lane.b32.xlu1 %v10163_v54, %s9519_s20 }
 0xaf7   :  { %3453 = vrot.lane.b32.xlu0 %v10161_v53, %s9519_s20 }
 0xafa   :  { %3326 = vrot.lane.b32.xlu1 %v10191_v14, %s9518_s27 }
 0xafb   :  { %3556 = vrot.lane.b32.xlu0 %v10181_v31, %s9519_s20 }
 0xafd   :  { %7969 = vmatpush3.bf16.xpose.msra.mxu0 %v2893_v11 }
 0xafe   :  { %3455 = vrot.lane.b32.xlu1 %v10173_v9, %s9519_s20 }
 0xaff   :  { %3457 = vrot.lane.b32.xlu0 %v10171_v2, %s9519_s20 }
 0xb02   :  { %3558 = vrot.lane.b32.xlu1 %v10179_v23, %s9519_s20 }
 0xb07   :  { %v2513_v28 = vpop.xlane.xlu0 %2512 }
 0xb08   :  { %v2547_v62 = vsub.f32 %v10771_v47, %v2513_v28  ;;  %v2507_v17 = vpop.xlane.xlu1 %2506 }
 0xb09   :  { %v2545_v35 = vsub.f32 %v10773_v3, %v2507_v17 }
 0xb0a   :  { %v2569_v25 = vmul.f32 1.442695, %v2547_v62 }
 0xb0b   :  { %v2565_v42 = vmul.f32 1.442695, %v2545_v35  ;;  %v2510_v27 = vpop.xlane.xlu0 %2509 }
 0xb0c   :  { %v2546_v61 = vsub.f32 %v10779_v50, %v2510_v27  ;;  %v2516_v46 = vpop.xlane.xlu1 %2515  ;;  %8864 = vpow2.f32 %v2569_v25 }
 0xb0d   :  { %v2548_v52 = vsub.f32 %v10777_v15, %v2516_v46  ;;  %8866 = vpow2.f32 %v2565_v42 }
 0xb0e   :  { %v2567_v60 = vmul.f32 1.442695, %v2546_v61 }
 0xb0f   :  { %v2571_v44 = vmul.f32 1.442695, %v2548_v52 }
 0xb10   :  { %8868 = vpow2.f32 %v2567_v60 }
 0xb11   :  { %8870 = vpow2.f32 %v2571_v44 }
 0xb14   :  { %v2525_v56 = vpop.xlane.xlu0 %2524 }
 0xb15   :  { %v2551_v47 = vsub.f32 %v10795_v19, %v2525_v56  ;;  %v2519_v10 = vpop.xlane.xlu1 %2518 }
 0xb16   :  { %v2549_v3 = vsub.f32 %v10797_v30, %v2519_v10  ;;  %v10903_v32 = vpop.eup %8864  ;;  %v2992_v10 = vsel %vm1109_vm6, %v10831_v20, 0 }
 0xb17   :  { %v2577_v1 = vmul.f32 1.442695, %v2551_v47  ;;  %13674 = vst [vmem:[#allocation94_spill] sm:$0xff] %v10903_v32  ;;  %v10905_v28 = vpop.eup %8866  ;;  %v2989_v47 = vsel %vm1109_vm6, %v10727_v43, 0 }
 0xb18   :  { %v2573_v11 = vmul.f32 1.442695, %v2549_v3  ;;  %v2522_v50 = vpop.xlane.xlu0 %2521  ;;  %13675 = vst [vmem:[#allocation95_spill] sm:$0xff] %v10905_v28 }
 0xb19   :  { %v2550_v15 = vsub.f32 %v10803_v55, %v2522_v50  ;;  %v2528_v62 = vpop.xlane.xlu1 %2527  ;;  %8872 = vpow2.f32 %v2577_v1 }
 0xb1a   :  { %v10908_v17 = vpop.eup %8868  ;;  %v2552_v35 = vsub.f32 %v10801_v8, %v2528_v62  ;;  %8874 = vpow2.f32 %v2573_v11 }
 0xb1b   :  { %v10911_v25 = vpop.eup %8870  ;;  %v2575_v19 = vmul.f32 1.442695, %v2550_v15  ;;  %v2639_v30 = vpack.c.bf16 %v10908_v17, %v10905_v28 }
 0xb1c   :  { %13676 = vst [vmem:[#allocation96_spill] sm:$0xff] %v10911_v25  ;;  %v2579_v42 = vmul.f32 1.442695, %v2552_v35  ;;  %v2640_v27 = vpack.c.bf16 %v10911_v25, %v10903_v32  ;;  %v2856_v55 = vpop.permute.xlu0 %2855 }
 0xb1d   :  { %8876 = vpow2.f32 %v2575_v19  ;;  %7942 = vmatprep.mubr.msk.bf16.mxu0 %vm1316_vm7, %v2639_v30  ;;  %v2858_v61 = vpop.permute.xlu1 %2857 }
 0xb1e   :  { %8878 = vpow2.f32 %v2579_v42  ;;  %7943 = vmatmul.mubr.msk.bf16.gmra.mrb[56].mxu0 %vm1316_vm7, %v2640_v27 }
 0xb1f   :  { %7970 = vmatprep.mubr.msk.bf16.mxu0 %vm1109_vm6, %v2856_v55 }
 0xb23   :  { %v10920_v8 = vpop.eup %8872 }
 0xb24   :  { %13677 = vst [vmem:[#allocation97_spill] sm:$0xff] %v10920_v8  ;;  %v10922_v46 = vpop.eup %8874 }
 0xb25   :  { %13678 = vst [vmem:[#allocation98_spill] sm:$0xff] %v10922_v46 }
 0xb26   :  { %7971 = vmatmul.mubr.msk.bf16.vlgmr.msra.gmra.mrb[60].mxu0 %vm1109_vm6, %v2858_v61 }
 0xb27   :  { %v10925_v52 = vpop.eup %8876 }
 0xb28   :  { %13679 = vst [vmem:[#allocation99_spill] sm:$0xff] %v10925_v52  ;;  %v10927_v60 = vpop.eup %8878  ;;  %v2641_v44 = vpack.c.bf16 %v10925_v52, %v10922_v46 }
 0xb29   :  { %13680 = vst [vmem:[#allocation100_spill] sm:$0xff] %v10927_v60  ;;  %v2642_v56 = vpack.c.bf16 %v10927_v60, %v10920_v8 }
 0xb2a   :  { %7954 = vmatprep.mubr.msk.bf16.mxu1 %vm1316_vm7, %v2641_v44 }
 0xb2b   :  { %7955 = vmatmul.mubr.msk.bf16.vlgmr.msra.gmra.mrb[68].mxu1 %vm1316_vm7, %v2642_v56 }
 0xb2c   :  { %7979 = vmatpush3.bf16.xpose.msra.mxu1 %v2989_v47 }
 0xb2d   :  { %8339 = vmatprep.subr.msk.bf16.mxu1 %vm1109_vm6, %v10831_v20 }
 0xb34   :  { %7981 = vmatpush3.bf16.xpose.msra.mxu1 %v2992_v10 }
 0xb4d   :  { %v2534_v3 = vpop.xlane.xlu0 %2533 }
 0xb4e   :  { %v2554_v1 = vsub.f32 %v10815_v7, %v2534_v3  ;;  %v2537_v11 = vpop.xlane.xlu1 %2536 }
 0xb4f   :  { %v2555_v62 = vsub.f32 %v10817_v45, %v2537_v11 }
 0xb50   :  { %v2583_v15 = vmul.f32 1.442695, %v2554_v1 }
 0xb51   :  { %v2973_v50 = vpop.permute.xlu0 %2972  ;;  %v2585_v20 = vmul.f32 1.442695, %v2555_v62 }
 0xb52   :  { %8340 = vmatprep.subr.msk.bf16.mxu1 %vm1109_vm6, %v2973_v50  ;;  %v2531_v35 = vpop.xlane.xlu1 %2530  ;;  %v2995_v43 = vsel %vm1109_vm6, %v2973_v50, 0  ;;  %8880 = vpow2.f32 %v2583_v15 }
 0xb53   :  { %v2553_v19 = vsub.f32 %v10821_v6, %v2531_v35  ;;  %7983 = vmatpush3.bf16.xpose.msra.mxu1 %v2995_v43 }
 0xb55   :  { %v2581_v30 = vmul.f32 1.442695, %v2553_v19  ;;  %v2961_v42 = vpop.permute.xlu0 %2960 }
 0xb56   :  { %v2540_v27 = vpop.xlane.xlu1 %2539 }
 0xb57   :  { %8882 = vpow2.f32 %v2581_v30  ;;  %v2556_v7 = vsub.f32 %v10825_v40, %v2540_v27 }
 0xb58   :  { %8884 = vpow2.f32 %v2585_v20 }
 0xb59   :  { %v2587_v55 = vmul.f32 1.442695, %v2556_v7  ;;  %v2860_v61 = vpop.permute.xlu0 %2859 }
 0xb5a   :  { %7974 = vmatprep.mubr.msk.bf16.mxu0 %vm1109_vm6, %v2860_v61  ;;  %v2975_v45 = vpop.permute.xlu1 %2974 }
 0xb5b   :  { %8886 = vpow2.f32 %v2587_v55  ;;  %8341 = vmatprep.subr.msk.bf16.mxu1 %vm1109_vm6, %v2975_v45  ;;  %v2998_v6 = vsel %vm1109_vm6, %v2975_v45, 0 }
 0xb5c   :  { %7985 = vmatpush3.bf16.xpose.msra.mxu1 %v2998_v6  ;;  %v10950_v47 = vpop.eup %8880 }
 0xb5d   :  { %v2965_v44 = vpop.permute.xlu0 %2964  ;;  %13681 = vst [vmem:[#allocation101_spill] sm:$0xff] %v10950_v47 }
 0xb5e   :  { %v2963_v56 = vpop.permute.xlu1 %2962 }
 0xb61   :  { %v10952_v10 = vpop.eup %8882  ;;  %v3234_v3 = vpop.permute.xlu0 %3233 }
 0xb62   :  { %13682 = vst [vmem:[#allocation102_spill] sm:$0xff] %v10952_v10  ;;  %7994 = vmatprep.subr.bf16.mxu0 %v3234_v3  ;;  %v2862_v40 = vpop.permute.xlu1 %2861  ;;  %v2643_v1 = vpack.c.bf16 %v10950_v47, %v10952_v10  ;;  %v10957_v11 = vpop.eup %8884 }
 0xb63   :  { %7975 = vmatmul.mubr.msk.bf16.gmra.mrb[64].mxu0 %vm1109_vm6, %v2862_v40  ;;  %13683 = vst [vmem:[#allocation103_spill] sm:$0xff] %v10957_v11 }
 0xb64   :  { %7995 = vmatpush3.bf16.msra.mxu0 %v3234_v3  ;;  %7958 = vmatprep.mubr.msk.bf16.mxu1 %vm1316_vm7, %v2643_v1 }
 0xb65   :  { %v10960_v50 = vpop.eup %8886  ;;  %v3238_v15 = vpop.permute.xlu0 %3237 }
 0xb66   :  { %13684 = vst [vmem:[#allocation104_spill] sm:$0xff] %v10960_v50  ;;  %v2967_v62 = vpop.permute.xlu1 %2966  ;;  %v2644_v35 = vpack.c.bf16 %v10960_v50, %v10957_v11 }
 0xb68   :  { %7959 = vmatmul.mubr.msk.bf16.gmra.mrb[72].mxu1 %vm1316_vm7, %v2644_v35 }
 0xb69   :  { %v3323_v43 = vpop.permute.xlu0 %3322  ;;  %7986 = vmatprep.mubr.msk.bf16.mxu1 %vm1109_vm6, %v2961_v42 }
 0xb6a   :  { %8010 = vmatprep.subr.bf16.mxu1 %v3323_v43  ;;  %v3236_v19 = vpop.permute.xlu1 %3235 }
 0xb6b   :  { %7996 = vmatprep.subr.bf16.mxu0 %v3236_v19 }
 0xb6c   :  { %7997 = vmatpush3.bf16.msra.mxu0 %v3236_v19 }
 0xb6d   :  { %7998 = vmatprep.subr.bf16.mxu0 %v3238_v15  ;;  %v3329_v27 = vpop.permute.xlu0 %3328 }
 0xb6e   :  { %v3240_v30 = vpop.permute.xlu1 %3239 }
 0xb70   :  { %7987 = vmatmul.mubr.msk.bf16.vlgmr.msra.gmra.mrb[76].mxu1 %vm1109_vm6, %v2963_v56  ;;  %7999 = vmatpush3.bf16.msra.mxu0 %v3238_v15 }
 0xb71   :  { %8011 = vmatpush3.bf16.msra.mxu1 %v3323_v43  ;;  %7990 = vmatprep.mubr.msk.bf16.mxu1 %vm1109_vm6, %v2965_v44  ;;  %v10973_v42 = vpop.permute.xlu0 %3453 }
 0xb72   :  { %8000 = vmatprep.subr.bf16.mxu0 %v3240_v30  ;;  %v3325_v20 = vpop.permute.xlu1 %3324 }
 0xb73   :  { %8012 = vmatprep.subr.bf16.mxu1 %v3325_v20 }
 0xb74   :  { %8001 = vmatpush3.bf16.msra.mxu0 %v3240_v30 }
 0xb75   :  { %8013 = vmatpush3.bf16.msra.mxu1 %v3325_v20  ;;  %v10975_v61 = vpop.permute.xlu0 %3556 }
 0xb76   :  { %v10968_v7 = vpop.permute.xlu1 %3451 }
 0xb77   :  { %8342 = vmatprep.subr.msk.bf16.mxu0 %vm1109_vm6, %v10968_v7 }
 0xb78   :  { %7991 = vmatmul.mubr.msk.bf16.gmra.mrb[80].mxu1 %vm1109_vm6, %v2967_v62 }
 0xb7a   :  { %v3327_v55 = vpop.permute.xlu1 %3326 }
 0xb7b   :  { %8014 = vmatprep.subr.bf16.mxu1 %v3327_v55 }
 0xb7c   :  { %8015 = vmatpush3.bf16.msra.mxu1 %v3327_v55 }
 0xb7d   :  { %8016 = vmatprep.subr.bf16.mxu1 %v3329_v27 }
 0xb80   :  { %8017 = vmatpush3.bf16.msra.mxu1 %v3329_v27 }
 0xb81   :  { %8346 = vmatprep.subr.msk.bf16.mxu1 %vm1109_vm6, %v10975_v61 }
 0xbb7   :  { %v10979_v45 = vpop.f32.mrb[52].mxu0 }
 0xbb8   :  { %13685 = vst [vmem:[#allocation105_spill] sm:$0xff] %v10979_v45  ;;  %v10981_v6 = vpop.f32.mrb[53].mxu0 }
 0xbb9   :  { %13686 = vst [vmem:[#allocation106_spill] sm:$0xff] %v10981_v6  ;;  %v10983_v44 = vpop.f32.mrb[54].mxu0 }
 0xbba   :  { %13687 = vst [vmem:[#allocation107_spill] sm:$0xff] %v10983_v44  ;;  %v10985_v56 = vpop.f32.mrb[55].mxu0  ;;  %v3456_v44 = vpop.permute.xlu1 %3455 }
 0xbbb   :  { %13688 = vst [vmem:[#allocation108_spill] sm:$0xff] %v10985_v56 }
 0xbbe   :  { %v11079_v6 = vpop.permute.xlu1 %3558 }
 0xbf1   :  { %v10987_v3 = vpop.f32.mrb[56].mxu0 }
 0xbf2   :  { %13689 = vst [vmem:[#allocation109_spill] sm:$0xff] %v10987_v3  ;;  %v10989_v40 = vpop.f32.mrb[57].mxu0 }
 0xbf3   :  { %13690 = vst [vmem:[#allocation110_spill] sm:$0xff] %v10989_v40  ;;  %v10991_v1 = vpop.f32.mrb[58].mxu0 }
 0xbf4   :  { %13691 = vst [vmem:[#allocation111_spill] sm:$0xff] %v10991_v1  ;;  %v10993_v15 = vpop.f32.mrb[59].mxu0 }
 0xbf5   :  { %13692 = vst [vmem:[#allocation112_spill] sm:$0xff] %v10993_v15 }
 0xbf9   :  { %v7972_v62 = vpop.f32.mrb[60].mxu0 }
 0xbfa   :  { %v10995_v35 = vmul.f32 0.5, %v7972_v62  ;;  %v2929_v43 = vpop.f32.mrb[61].mxu0 }
 0xbfb   :  { %v7973_v19 = vpop.f32.mrb[62].mxu0  ;;  %v10997_v30 = vmul.f32 0.5, %v2929_v43 }
 0xbfc   :  { %v2932_v20 = vpop.f32.mrb[63].mxu0  ;;  %v3087_v27 = vsel %vm1316_vm7, %v10995_v35, -inf  ;;  %v11009_v62 = vmul.f32 0.5, %v7973_v19 }
 0xbfd   :  { %v11001_v55 = vmul.f32 0.5, %v2932_v20  ;;  %3088 = vmax.xlane.f32.xlu0 %v3087_v27  ;;  %v3081_v43 = vsel %vm1316_vm7, %v10997_v30, -inf }
 0xbfe   :  { %v11003_v50 = vpop.f32.mrb[68].mxu1  ;;  %v3090_v20 = vsel %vm1316_vm7, %v11009_v62, -inf }
 0xbff   :  { %13693 = vst [vmem:[#allocation113_spill] sm:$0xff] %v11003_v50  ;;  %v11005_v47 = vpop.f32.mrb[69].mxu1  ;;  %v3084_v11 = vsel %vm1316_vm7, %v11001_v55, -inf }
 0xc00   :  { %13694 = vst [vmem:[#allocation114_spill] sm:$0xff] %v11005_v47  ;;  %v11011_v10 = vpop.f32.mrb[70].mxu1  ;;  %3085 = vmax.xlane.f32.xlu1 %v3084_v11 }
 0xc01   :  { %13695 = vst [vmem:[#allocation115_spill] sm:$0xff] %v11011_v10  ;;  %v11015_v0 = vpop.f32.mrb[71].mxu1  ;;  %3082 = vmax.xlane.f32.xlu0 %v3081_v43 }
 0xc02   :  { %13696 = vst [vmem:[#allocation116_spill] sm:$0xff] %v11015_v0 }
 0xc05   :  { %3091 = vmax.xlane.f32.xlu0 %v3090_v20 }
 0xc36   :  { %v7976_v27 = vpop.f32.mrb[64].mxu0 }
 0xc37   :  { %v11019_v50 = vmul.f32 0.5, %v7976_v27  ;;  %v2945_v47 = vpop.f32.mrb[65].mxu0 }
 0xc38   :  { %v11021_v1 = vmul.f32 0.5, %v2945_v47  ;;  %v7977_v19 = vpop.f32.mrb[66].mxu0 }
 0xc39   :  { %v2948_v3 = vpop.f32.mrb[67].mxu0  ;;  %v3099_v11 = vsel %vm1316_vm7, %v11019_v50, -inf  ;;  %v11025_v10 = vmul.f32 0.5, %v7977_v19 }
 0xc3a   :  { %v11027_v15 = vmul.f32 0.5, %v2948_v3  ;;  %3100 = vmax.xlane.f32.xlu0 %v3099_v11  ;;  %v3093_v43 = vsel %vm1316_vm7, %v11021_v1, -inf }
 0xc3b   :  { %v11031_v20 = vpop.f32.mrb[72].mxu1  ;;  %3094 = vmax.xlane.f32.xlu1 %v3093_v43  ;;  %v3102_v3 = vsel %vm1316_vm7, %v11025_v10, -inf }
 0xc3c   :  { %13697 = vst [vmem:[#allocation117_spill] sm:$0xff] %v11031_v20  ;;  %v11033_v27 = vpop.f32.mrb[73].mxu1  ;;  %v3096_v47 = vsel %vm1316_vm7, %v11027_v15, -inf }
 0xc3d   :  { %13698 = vst [vmem:[#allocation118_spill] sm:$0xff] %v11033_v27  ;;  %v11037_v0 = vpop.f32.mrb[74].mxu1 }
 0xc3e   :  { %13699 = vst [vmem:[#allocation119_spill] sm:$0xff] %v11037_v0  ;;  %v11039_v40 = vpop.f32.mrb[75].mxu1  ;;  %3097 = vmax.xlane.f32.xlu0 %v3096_v47 }
 0xc3f   :  { %13700 = vst [vmem:[#allocation120_spill] sm:$0xff] %v11039_v40  ;;  %3103 = vmax.xlane.f32.xlu1 %v3102_v3 }
 0xc43   :  { %v7988_v19 = vpop.f32.mrb[76].mxu1 }
 0xc44   :  { %v11043_v11 = vmul.f32 0.5, %v7988_v19  ;;  %v3034_v13 = vpop.f32.mrb[77].mxu1 }
 0xc45   :  { %v11045_v20 = vmul.f32 0.5, %v3034_v13  ;;  %v7989_v43 = vpop.f32.mrb[78].mxu1 }
 0xc46   :  { %v3037_v27 = vpop.f32.mrb[79].mxu1  ;;  %v3111_v33 = vsel %vm1316_vm7, %v11043_v11, -inf  ;;  %v11049_v48 = vmul.f32 0.5, %v7989_v43 }
 0xc47   :  { %v11051_v0 = vmul.f32 0.5, %v3037_v27  ;;  %3112 = vmax.xlane.f32.xlu0 %v3111_v33  ;;  %v3105_v47 = vsel %vm1316_vm7, %v11045_v20, -inf }
 0xc48   :  { %3106 = vmax.xlane.f32.xlu1 %v3105_v47  ;;  %v3114_v19 = vsel %vm1316_vm7, %v11049_v48, -inf }
 0xc49   :  { %v3108_v3 = vsel %vm1316_vm7, %v11051_v0, -inf }
 0xc4b   :  { %3109 = vmax.xlane.f32.xlu0 %v3108_v3  ;;  %v7992_v13 = vpop.f32.mrb[80].mxu1 }
 0xc4c   :  { %3115 = vmax.xlane.f32.xlu1 %v3114_v19  ;;  %v3050_v40 = vpop.f32.mrb[81].mxu1  ;;  %v11065_v27 = vmul.f32 0.5, %v7992_v13 }
 0xc4d   :  { %v7993_v29 = vpop.f32.mrb[82].mxu1  ;;  %v11069_v3 = vmul.f32 0.5, %v3050_v40 }
 0xc4e   :  { %v3053_v43 = vpop.f32.mrb[83].mxu1  ;;  %v3123_v19 = vsel %vm1316_vm7, %v11065_v27, -inf  ;;  %v11073_v45 = vmul.f32 0.5, %v7993_v29 }
 0xc4f   :  { %v11063_v33 = vmul.f32 0.5, %v3053_v43  ;;  %v3117_v56 = vsel %vm1316_vm7, %v11069_v3, -inf  ;;  %v3458_v43 = vpop.permute.xlu0 %3457 }
 0xc50   :  { %v3126_v13 = vsel %vm1316_vm7, %v11073_v45, -inf }
 0xc51   :  { %v3120_v47 = vsel %vm1316_vm7, %v11063_v33, -inf }
 0xc5d   :  { %3445 = vrot.lane.b32.xlu1 %v10161_v53, %s9520_s23 }
 0xc61   :  { %3443 = vrot.lane.b32.xlu0 %v10163_v54, %s9520_s23 }
 0xc80   :  { %3121 = vmax.xlane.f32.xlu0 %v3120_v47 }
 0xc81   :  { %3124 = vmax.xlane.f32.xlu1 %v3123_v19 }
 0xc85   :  { %3118 = vmax.xlane.f32.xlu1 %v3117_v56 }
 0xc89   :  { %3127 = vmax.xlane.f32.xlu1 %v3126_v13 }
 0xc8a   :  { %v3089_v40 = vpop.xlane.xlu0 %3088 }
 0xc8b   :  { %v3131_v58 = vsub.f32 %v10995_v35, %v3089_v40  ;;  %v3475_v35 = vsel %vm1109_vm6, %v10973_v42, 0 }
 0xc8d   :  { %v3086_v47 = vpop.xlane.xlu1 %3085  ;;  %v3149_v8 = vmul.f32 1.442695, %v3131_v58 }
 0xc8e   :  { %v3130_v19 = vsub.f32 %v11001_v55, %v3086_v47  ;;  %v3083_v22 = vpop.xlane.xlu0 %3082 }
 0xc8f   :  { %v3129_v29 = vsub.f32 %v10997_v30, %v3083_v22 }
 0xc90   :  { %v3147_v41 = vmul.f32 1.442695, %v3130_v19 }
 0xc91   :  { %v3145_v37 = vmul.f32 1.442695, %v3129_v29 }
 0xc92   :  { %8888 = vpow2.f32 %v3147_v41  ;;  %v3092_v56 = vpop.xlane.xlu0 %3091 }
 0xc93   :  { %8890 = vpow2.f32 %v3145_v37  ;;  %v3132_v46 = vsub.f32 %v11009_v62, %v3092_v56 }
 0xc94   :  { %8892 = vpow2.f32 %v3149_v8 }
 0xc95   :  { %v3151_v60 = vmul.f32 1.442695, %v3132_v46 }
 0xc96   :  { %3560 = vrot.lane.b32.xlu0 %v10191_v14, %s9519_s20 }
 0xc97   :  { %8894 = vpow2.f32 %v3151_v60  ;;  %v3472_v60 = vsel %vm1109_vm6, %v10968_v7, 0  ;;  %v3478_v7 = vsel %vm1109_vm6, %v3456_v44, 0 }
 0xc9a   :  { %3562 = vrot.lane.b32.xlu1 %v10189_v63, %s9519_s20  ;;  %3548 = vrot.lane.b32.xlu0 %v10181_v31, %s9520_s23 }
 0xc9c   :  { %v11091_v22 = vpop.eup %8888 }
 0xc9d   :  { %v11093_v58 = vpop.eup %8890 }
 0xc9e   :  { %3550 = vrot.lane.b32.xlu1 %v10179_v23, %s9520_s23  ;;  %3447 = vrot.lane.b32.xlu0 %v10173_v9, %s9520_s23  ;;  %v3225_v37 = vpack.c.bf16 %v11091_v22, %v11093_v58  ;;  %v11101_v41 = vpop.eup %8892 }
 0xca0   :  { %8002 = vmatprep.mubr.msk.bf16.mxu0 %vm1316_vm7, %v3225_v37 }
 0xca1   :  { %v11104_v8 = vpop.eup %8894 }
 0xca2   :  { %v3226_v46 = vpack.c.bf16 %v11104_v8, %v11101_v41  ;;  %3449 = vrot.lane.b32.xlu1 %v10171_v2, %s9520_s23  ;;  %3552 = vrot.lane.b32.xlu0 %v10191_v14, %s9520_s23 }
 0xca4   :  { %8003 = vmatmul.mubr.msk.bf16.vlgmr.msra.gmra.mrb[68].mxu0 %vm1316_vm7, %v3226_v46 }
 0xca5   :  { %8027 = vmatpush3.bf16.xpose.msra.mxu0 %v3472_v60 }
 0xca6   :  { %8343 = vmatprep.subr.msk.bf16.mxu0 %vm1109_vm6, %v10973_v42  ;;  %3554 = vrot.lane.b32.xlu1 %v10189_v63, %s9520_s23  ;;  %v3481_v42 = vsel %vm1109_vm6, %v3458_v43, 0 }
 0xca7   :  { %3821 = vrot.lane.b32.xlu0 %v10163_v54, %s9521_s30 }
 0xcaa   :  { %3823 = vrot.lane.b32.xlu1 %v10161_v53, %s9521_s30 }
 0xcab   :  { %3825 = vrot.lane.b32.xlu0 %v10173_v9, %s9521_s30 }
 0xcad   :  { %8029 = vmatpush3.bf16.xpose.msra.mxu0 %v3475_v35 }
 0xcae   :  { %8344 = vmatprep.subr.msk.bf16.mxu0 %vm1109_vm6, %v3456_v44  ;;  %3827 = vrot.lane.b32.xlu1 %v10171_v2, %s9521_s30 }
 0xcaf   :  { %3910 = vrot.lane.b32.xlu0 %v10181_v31, %s9521_s30 }
 0xcb2   :  { %3912 = vrot.lane.b32.xlu1 %v10179_v23, %s9521_s30 }
 0xcb3   :  { %3916 = vrot.lane.b32.xlu0 %v10189_v63, %s9521_s30 }
 0xcb5   :  { %8031 = vmatpush3.bf16.xpose.msra.mxu0 %v3478_v7 }
 0xcb6   :  { %8345 = vmatprep.subr.msk.bf16.mxu0 %vm1109_vm6, %v3458_v43  ;;  %4039 = vrot.lane.b32.xlu1 %v10163_v54, %s9522_s26 }
 0xcb7   :  { %4041 = vrot.lane.b32.xlu0 %v10161_v53, %s9522_s26 }
 0xcba   :  { %3914 = vrot.lane.b32.xlu1 %v10191_v14, %s9521_s30 }
 0xcbb   :  { %4144 = vrot.lane.b32.xlu0 %v10181_v31, %s9522_s26 }
 0xcbd   :  { %8033 = vmatpush3.bf16.xpose.msra.mxu0 %v3481_v42 }
 0xcbe   :  { %4043 = vrot.lane.b32.xlu1 %v10173_v9, %s9522_s26 }
 0xcbf   :  { %4045 = vrot.lane.b32.xlu0 %v10171_v2, %s9522_s26 }
 0xcc2   :  { %4146 = vrot.lane.b32.xlu1 %v10179_v23, %s9522_s26 }
 0xcc7   :  { %v3101_v44 = vpop.xlane.xlu0 %3100 }
 0xcc8   :  { %v3135_v30 = vsub.f32 %v11019_v50, %v3101_v44  ;;  %v3095_v55 = vpop.xlane.xlu1 %3094 }
 0xcc9   :  { %v3133_v62 = vsub.f32 %v11021_v1, %v3095_v55 }
 0xcca   :  { %v3157_v13 = vmul.f32 1.442695, %v3135_v30 }
 0xccb   :  { %v3153_v40 = vmul.f32 1.442695, %v3133_v62  ;;  %v3098_v47 = vpop.xlane.xlu0 %3097 }
 0xccc   :  { %v3134_v43 = vsub.f32 %v11027_v15, %v3098_v47  ;;  %v3104_v19 = vpop.xlane.xlu1 %3103  ;;  %8896 = vpow2.f32 %v3157_v13 }
 0xccd   :  { %v3136_v29 = vsub.f32 %v11025_v10, %v3104_v19  ;;  %8898 = vpow2.f32 %v3153_v40 }
 0xcce   :  { %v3155_v56 = vmul.f32 1.442695, %v3134_v43 }
 0xccf   :  { %v3159_v37 = vmul.f32 1.442695, %v3136_v29 }
 0xcd0   :  { %8900 = vpow2.f32 %v3155_v56 }
 0xcd1   :  { %8902 = vpow2.f32 %v3159_v37 }
 0xcd4   :  { %v3113_v46 = vpop.xlane.xlu0 %3112 }
 0xcd5   :  { %v3139_v50 = vsub.f32 %v11043_v11, %v3113_v46  ;;  %v3107_v60 = vpop.xlane.xlu1 %3106 }
 0xcd6   :  { %v3137_v1 = vsub.f32 %v11045_v20, %v3107_v60  ;;  %v11151_v7 = vpop.eup %8896  ;;  %v3580_v60 = vsel %vm1109_vm6, %v11079_v6, 0 }
 0xcd7   :  { %v3165_v35 = vmul.f32 1.442695, %v3139_v50  ;;  %13701 = vst [vmem:[#allocation121_spill] sm:$0xff] %v11151_v7  ;;  %v11153_v44 = vpop.eup %8898  ;;  %v3577_v50 = vsel %vm1109_vm6, %v10975_v61, 0 }
 0xcd8   :  { %v3161_v42 = vmul.f32 1.442695, %v3137_v1  ;;  %v3110_v15 = vpop.xlane.xlu0 %3109  ;;  %13702 = vst [vmem:[#allocation122_spill] sm:$0xff] %v11153_v44 }
 0xcd9   :  { %v3138_v10 = vsub.f32 %v11051_v0, %v3110_v15  ;;  %v3116_v30 = vpop.xlane.xlu1 %3115  ;;  %8904 = vpow2.f32 %v3165_v35 }
 0xcda   :  { %v11156_v55 = vpop.eup %8900  ;;  %v3140_v62 = vsub.f32 %v11049_v48, %v3116_v30  ;;  %8906 = vpow2.f32 %v3161_v42 }
 0xcdb   :  { %13703 = vst [vmem:[#allocation123_spill] sm:$0xff] %v11156_v55  ;;  %v11159_v13 = vpop.eup %8902  ;;  %v3163_v11 = vmul.f32 1.442695, %v3138_v10  ;;  %v3227_v20 = vpack.c.bf16 %v11156_v55, %v11153_v44 }
 0xcdc   :  { %13704 = vst [vmem:[#allocation124_spill] sm:$0xff] %v11159_v13  ;;  %v3167_v40 = vmul.f32 1.442695, %v3140_v62  ;;  %v3228_v47 = vpack.c.bf16 %v11159_v13, %v11151_v7  ;;  %v3444_v0 = vpop.permute.xlu0 %3443 }
 0xcdd   :  { %8908 = vpow2.f32 %v3163_v11  ;;  %8006 = vmatprep.mubr.msk.bf16.mxu0 %vm1316_vm7, %v3227_v20  ;;  %v3446_v43 = vpop.permute.xlu1 %3445 }
 0xcde   :  { %8910 = vpow2.f32 %v3167_v40  ;;  %8007 = vmatmul.mubr.msk.bf16.gmra.mrb[72].mxu0 %vm1316_vm7, %v3228_v47 }
 0xcdf   :  { %8034 = vmatprep.mubr.msk.bf16.mxu0 %vm1109_vm6, %v3444_v0 }
 0xce3   :  { %v11168_v48 = vpop.eup %8904 }
 0xce4   :  { %13705 = vst [vmem:[#allocation125_spill] sm:$0xff] %v11168_v48  ;;  %v11170_v19 = vpop.eup %8906 }
 0xce5   :  { %13706 = vst [vmem:[#allocation126_spill] sm:$0xff] %v11170_v19 }
 0xce6   :  { %8035 = vmatmul.mubr.msk.bf16.vlgmr.msra.gmra.mrb[76].mxu0 %vm1109_vm6, %v3446_v43 }
 0xce7   :  { %v11173_v29 = vpop.eup %8908 }
 0xce8   :  { %13707 = vst [vmem:[#allocation127_spill] sm:$0xff] %v11173_v29  ;;  %v11175_v56 = vpop.eup %8910  ;;  %v3229_v37 = vpack.c.bf16 %v11173_v29, %v11170_v19 }
 0xce9   :  { %13708 = vst [vmem:[#allocation128_spill] sm:$0xff] %v11175_v56  ;;  %v3230_v46 = vpack.c.bf16 %v11175_v56, %v11168_v48 }
 0xcea   :  { %8018 = vmatprep.mubr.msk.bf16.mxu1 %vm1316_vm7, %v3229_v37 }
 0xceb   :  { %8019 = vmatmul.mubr.msk.bf16.vlgmr.msra.gmra.mrb[84].mxu1 %vm1316_vm7, %v3230_v46 }
 0xcec   :  { %8043 = vmatpush3.bf16.xpose.msra.mxu1 %v3577_v50 }
 0xced   :  { %8347 = vmatprep.subr.msk.bf16.mxu1 %vm1109_vm6, %v11079_v6 }
 0xcf4   :  { %8045 = vmatpush3.bf16.xpose.msra.mxu1 %v3580_v60 }
 0xd0d   :  { %v3122_v1 = vpop.xlane.xlu0 %3121 }
 0xd0e   :  { %v3142_v35 = vsub.f32 %v11063_v33, %v3122_v1  ;;  %v3125_v42 = vpop.xlane.xlu1 %3124 }
 0xd0f   :  { %v3143_v30 = vsub.f32 %v11065_v27, %v3125_v42 }
 0xd10   :  { %v3171_v10 = vmul.f32 1.442695, %v3142_v35 }
 0xd11   :  { %v3561_v15 = vpop.permute.xlu0 %3560  ;;  %v3173_v6 = vmul.f32 1.442695, %v3143_v30 }
 0xd12   :  { %8348 = vmatprep.subr.msk.bf16.mxu1 %vm1109_vm6, %v3561_v15  ;;  %v3119_v62 = vpop.xlane.xlu1 %3118  ;;  %v3583_v61 = vsel %vm1109_vm6, %v3561_v15, 0  ;;  %8912 = vpow2.f32 %v3171_v10 }
 0xd13   :  { %v3141_v11 = vsub.f32 %v11069_v3, %v3119_v62  ;;  %8047 = vmatpush3.bf16.xpose.msra.mxu1 %v3583_v61 }
 0xd15   :  { %v3169_v20 = vmul.f32 1.442695, %v3141_v11  ;;  %v3549_v40 = vpop.permute.xlu0 %3548 }
 0xd16   :  { %v3128_v47 = vpop.xlane.xlu1 %3127 }
 0xd17   :  { %8914 = vpow2.f32 %v3169_v20  ;;  %v3144_v33 = vsub.f32 %v11073_v45, %v3128_v47 }
 0xd18   :  { %8916 = vpow2.f32 %v3173_v6 }
 0xd19   :  { %v3175_v0 = vmul.f32 1.442695, %v3144_v33  ;;  %v3448_v43 = vpop.permute.xlu0 %3447 }
 0xd1a   :  { %8038 = vmatprep.mubr.msk.bf16.mxu0 %vm1109_vm6, %v3448_v43  ;;  %v3563_v27 = vpop.permute.xlu1 %3562 }
 0xd1b   :  { %8918 = vpow2.f32 %v3175_v0  ;;  %8349 = vmatprep.subr.msk.bf16.mxu1 %vm1109_vm6, %v3563_v27  ;;  %v3586_v3 = vsel %vm1109_vm6, %v3563_v27, 0 }
 0xd1c   :  { %8049 = vmatpush3.bf16.xpose.msra.mxu1 %v3586_v3  ;;  %v11198_v50 = vpop.eup %8912 }
 0xd1d   :  { %v3553_v37 = vpop.permute.xlu0 %3552  ;;  %13709 = vst [vmem:[#allocation129_spill] sm:$0xff] %v11198_v50 }
 0xd1e   :  { %v3551_v46 = vpop.permute.xlu1 %3550 }
 0xd21   :  { %v11200_v60 = vpop.eup %8914  ;;  %v3822_v1 = vpop.permute.xlu0 %3821 }
 0xd22   :  { %13710 = vst [vmem:[#allocation130_spill] sm:$0xff] %v11200_v60  ;;  %8058 = vmatprep.subr.bf16.mxu0 %v3822_v1  ;;  %v3450_v45 = vpop.permute.xlu1 %3449  ;;  %v3231_v35 = vpack.c.bf16 %v11198_v50, %v11200_v60  ;;  %v11205_v42 = vpop.eup %8916 }
 0xd23   :  { %8039 = vmatmul.mubr.msk.bf16.gmra.mrb[80].mxu0 %vm1109_vm6, %v3450_v45  ;;  %13711 = vst [vmem:[#allocation131_spill] sm:$0xff] %v11205_v42 }
 0xd24   :  { %8059 = vmatpush3.bf16.msra.mxu0 %v3822_v1  ;;  %8022 = vmatprep.mubr.msk.bf16.mxu1 %vm1316_vm7, %v3231_v35 }
 0xd25   :  { %v11208_v15 = vpop.eup %8918  ;;  %v3826_v10 = vpop.permute.xlu0 %3825 }
 0xd26   :  { %13712 = vst [vmem:[#allocation132_spill] sm:$0xff] %v11208_v15  ;;  %v3555_v30 = vpop.permute.xlu1 %3554  ;;  %v3232_v62 = vpack.c.bf16 %v11208_v15, %v11205_v42 }
 0xd28   :  { %8023 = vmatmul.mubr.msk.bf16.gmra.mrb[88].mxu1 %vm1316_vm7, %v3232_v62 }
 0xd29   :  { %v3911_v61 = vpop.permute.xlu0 %3910  ;;  %8050 = vmatprep.mubr.msk.bf16.mxu1 %vm1109_vm6, %v3549_v40 }
 0xd2a   :  { %8074 = vmatprep.subr.bf16.mxu1 %v3911_v61  ;;  %v3824_v11 = vpop.permute.xlu1 %3823 }
 0xd2b   :  { %8060 = vmatprep.subr.bf16.mxu0 %v3824_v11 }
 0xd2c   :  { %8061 = vmatpush3.bf16.msra.mxu0 %v3824_v11 }
 0xd2d   :  { %8062 = vmatprep.subr.bf16.mxu0 %v3826_v10  ;;  %v3917_v47 = vpop.permute.xlu0 %3916 }
 0xd2e   :  { %v3828_v20 = vpop.permute.xlu1 %3827 }
 0xd30   :  { %8051 = vmatmul.mubr.msk.bf16.vlgmr.msra.gmra.mrb[92].mxu1 %vm1109_vm6, %v3551_v46  ;;  %8063 = vmatpush3.bf16.msra.mxu0 %v3826_v10 }
 0xd31   :  { %8075 = vmatpush3.bf16.msra.mxu1 %v3911_v61  ;;  %8054 = vmatprep.mubr.msk.bf16.mxu1 %vm1109_vm6, %v3553_v37  ;;  %v11221_v40 = vpop.permute.xlu0 %4041 }
 0xd32   :  { %8064 = vmatprep.subr.bf16.mxu0 %v3828_v20  ;;  %v3913_v6 = vpop.permute.xlu1 %3912 }
 0xd33   :  { %8076 = vmatprep.subr.bf16.mxu1 %v3913_v6 }
 0xd34   :  { %8065 = vmatpush3.bf16.msra.mxu0 %v3828_v20 }
 0xd35   :  { %8077 = vmatpush3.bf16.msra.mxu1 %v3913_v6  ;;  %v11223_v43 = vpop.permute.xlu0 %4144 }
 0xd36   :  { %v11216_v33 = vpop.permute.xlu1 %4039 }
 0xd37   :  { %8350 = vmatprep.subr.msk.bf16.mxu0 %vm1109_vm6, %v11216_v33 }
 0xd38   :  { %8055 = vmatmul.mubr.msk.bf16.gmra.mrb[96].mxu1 %vm1109_vm6, %v3555_v30 }
 0xd3a   :  { %v3915_v0 = vpop.permute.xlu1 %3914 }
 0xd3b   :  { %8078 = vmatprep.subr.bf16.mxu1 %v3915_v0 }
 0xd3c   :  { %8079 = vmatpush3.bf16.msra.mxu1 %v3915_v0 }
 0xd3d   :  { %8080 = vmatprep.subr.bf16.mxu1 %v3917_v47 }
 0xd3e   :  { %v4044_v19 = vpop.permute.xlu1 %4043 }
 0xd40   :  { %8081 = vmatpush3.bf16.msra.mxu1 %v3917_v47 }
 0xd41   :  { %8354 = vmatprep.subr.msk.bf16.mxu1 %vm1109_vm6, %v11223_v43 }
 0xd42   :  { %v11327_v24 = vpop.permute.xlu1 %4146 }
 0xd77   :  { %v11227_v27 = vpop.f32.mrb[68].mxu0 }
 0xd78   :  { %13713 = vst [vmem:[#allocation133_spill] sm:$0xff] %v11227_v27  ;;  %v11229_v3 = vpop.f32.mrb[69].mxu0 }
 0xd79   :  { %13714 = vst [vmem:[#allocation134_spill] sm:$0xff] %v11229_v3  ;;  %v11231_v37 = vpop.f32.mrb[70].mxu0 }
 0xd7a   :  { %13715 = vst [vmem:[#allocation135_spill] sm:$0xff] %v11231_v37  ;;  %v11233_v46 = vpop.f32.mrb[71].mxu0 }
 0xd7b   :  { %13716 = vst [vmem:[#allocation136_spill] sm:$0xff] %v11233_v46 }
 0xdb1   :  { %v11235_v1 = vpop.f32.mrb[72].mxu0 }
 0xdb2   :  { %13717 = vst [vmem:[#allocation137_spill] sm:$0xff] %v11235_v1  ;;  %v11237_v45 = vpop.f32.mrb[73].mxu0 }
 0xdb3   :  { %13718 = vst [vmem:[#allocation138_spill] sm:$0xff] %v11237_v45  ;;  %v11239_v35 = vpop.f32.mrb[74].mxu0 }
 0xdb4   :  { %13719 = vst [vmem:[#allocation139_spill] sm:$0xff] %v11239_v35  ;;  %v11241_v10 = vpop.f32.mrb[75].mxu0 }
 0xdb5   :  { %13720 = vst [vmem:[#allocation140_spill] sm:$0xff] %v11241_v10 }
 0xdb9   :  { %v8036_v30 = vpop.f32.mrb[76].mxu0 }
 0xdba   :  { %v11243_v62 = vmul.f32 0.5, %v8036_v30  ;;  %v3517_v61 = vpop.f32.mrb[77].mxu0 }
 0xdbb   :  { %v8037_v11 = vpop.f32.mrb[78].mxu0  ;;  %v11245_v20 = vmul.f32 0.5, %v3517_v61 }
 0xdbc   :  { %v3520_v6 = vpop.f32.mrb[79].mxu0  ;;  %v3675_v47 = vsel %vm1316_vm7, %v11243_v62, -inf  ;;  %v11257_v30 = vmul.f32 0.5, %v8037_v11 }
 0xdbd   :  { %v11249_v0 = vmul.f32 0.5, %v3520_v6  ;;  %3676 = vmax.xlane.f32.xlu0 %v3675_v47  ;;  %v3669_v61 = vsel %vm1316_vm7, %v11245_v20, -inf }
 0xdbe   :  { %v11251_v15 = vpop.f32.mrb[84].mxu1  ;;  %v3678_v6 = vsel %vm1316_vm7, %v11257_v30, -inf }
 0xdbf   :  { %13721 = vst [vmem:[#allocation141_spill] sm:$0xff] %v11251_v15  ;;  %v11253_v50 = vpop.f32.mrb[85].mxu1  ;;  %v3672_v42 = vsel %vm1316_vm7, %v11249_v0, -inf }
 0xdc0   :  { %13722 = vst [vmem:[#allocation142_spill] sm:$0xff] %v11253_v50  ;;  %v11259_v60 = vpop.f32.mrb[86].mxu1  ;;  %3673 = vmax.xlane.f32.xlu1 %v3672_v42 }
 0xdc1   :  { %13723 = vst [vmem:[#allocation143_spill] sm:$0xff] %v11259_v60  ;;  %v11263_v35 = vpop.f32.mrb[87].mxu1  ;;  %3670 = vmax.xlane.f32.xlu0 %v3669_v61 }
 0xdc2   :  { %13724 = vst [vmem:[#allocation144_spill] sm:$0xff] %v11263_v35 }
 0xdc5   :  { %3679 = vmax.xlane.f32.xlu0 %v3678_v6 }
 0xdf6   :  { %v8040_v47 = vpop.f32.mrb[80].mxu0 }
 0xdf7   :  { %v11267_v15 = vmul.f32 0.5, %v8040_v47  ;;  %v3533_v50 = vpop.f32.mrb[81].mxu0 }
 0xdf8   :  { %v11269_v1 = vmul.f32 0.5, %v3533_v50  ;;  %v8041_v11 = vpop.f32.mrb[82].mxu0 }
 0xdf9   :  { %v3536_v10 = vpop.f32.mrb[83].mxu0  ;;  %v3687_v42 = vsel %vm1316_vm7, %v11267_v15, -inf  ;;  %v11273_v60 = vmul.f32 0.5, %v8041_v11 }
 0xdfa   :  { %v11275_v45 = vmul.f32 0.5, %v3536_v10  ;;  %3688 = vmax.xlane.f32.xlu0 %v3687_v42  ;;  %v3681_v61 = vsel %vm1316_vm7, %v11269_v1, -inf }
 0xdfb   :  { %v11279_v6 = vpop.f32.mrb[88].mxu1  ;;  %3682 = vmax.xlane.f32.xlu1 %v3681_v61  ;;  %v3690_v10 = vsel %vm1316_vm7, %v11273_v60, -inf }
 0xdfc   :  { %13725 = vst [vmem:[#allocation145_spill] sm:$0xff] %v11279_v6  ;;  %v11281_v47 = vpop.f32.mrb[89].mxu1  ;;  %v3684_v50 = vsel %vm1316_vm7, %v11275_v45, -inf }
 0xdfd   :  { %13726 = vst [vmem:[#allocation146_spill] sm:$0xff] %v11281_v47  ;;  %v11285_v35 = vpop.f32.mrb[90].mxu1 }
 0xdfe   :  { %13727 = vst [vmem:[#allocation147_spill] sm:$0xff] %v11285_v35  ;;  %v11287_v37 = vpop.f32.mrb[91].mxu1  ;;  %3685 = vmax.xlane.f32.xlu0 %v3684_v50 }
 0xdff   :  { %13728 = vst [vmem:[#allocation148_spill] sm:$0xff] %v11287_v37  ;;  %3691 = vmax.xlane.f32.xlu1 %v3690_v10 }
 0xe03   :  { %v8052_v11 = vpop.f32.mrb[92].mxu1 }
 0xe04   :  { %v11291_v42 = vmul.f32 0.5, %v8052_v11  ;;  %v3622_v27 = vpop.f32.mrb[93].mxu1 }
 0xe05   :  { %v11293_v6 = vmul.f32 0.5, %v3622_v27  ;;  %v8053_v61 = vpop.f32.mrb[94].mxu1 }
 0xe06   :  { %v3625_v47 = vpop.f32.mrb[95].mxu1  ;;  %v3699_v46 = vsel %vm1316_vm7, %v11291_v42, -inf  ;;  %v11297_v3 = vmul.f32 0.5, %v8053_v61 }
 0xe07   :  { %v11299_v35 = vmul.f32 0.5, %v3625_v47  ;;  %3700 = vmax.xlane.f32.xlu0 %v3699_v46  ;;  %v3693_v50 = vsel %vm1316_vm7, %v11293_v6, -inf }
 0xe08   :  { %3694 = vmax.xlane.f32.xlu1 %v3693_v50  ;;  %v3702_v11 = vsel %vm1316_vm7, %v11297_v3, -inf }
 0xe09   :  { %v3696_v10 = vsel %vm1316_vm7, %v11299_v35, -inf }
 0xe0b   :  { %3697 = vmax.xlane.f32.xlu0 %v3696_v10  ;;  %v8056_v27 = vpop.f32.mrb[96].mxu1 }
 0xe0c   :  { %3703 = vmax.xlane.f32.xlu1 %v3702_v11  ;;  %v3638_v37 = vpop.f32.mrb[97].mxu1  ;;  %v11313_v47 = vmul.f32 0.5, %v8056_v27 }
 0xe0d   :  { %v8057_v48 = vpop.f32.mrb[98].mxu1  ;;  %v11317_v10 = vmul.f32 0.5, %v3638_v37 }
 0xe0e   :  { %v3641_v61 = vpop.f32.mrb[99].mxu1  ;;  %v3711_v11 = vsel %vm1316_vm7, %v11313_v47, -inf  ;;  %v11321_v56 = vmul.f32 0.5, %v8057_v48 }
 0xe0f   :  { %v11311_v46 = vmul.f32 0.5, %v3641_v61  ;;  %v3705_v29 = vsel %vm1316_vm7, %v11317_v10, -inf  ;;  %v4046_v61 = vpop.permute.xlu0 %4045 }
 0xe10   :  { %v3714_v27 = vsel %vm1316_vm7, %v11321_v56, -inf }
 0xe11   :  { %v3708_v50 = vsel %vm1316_vm7, %v11311_v46, -inf }
 0xe1d   :  { %4033 = vrot.lane.b32.xlu1 %v10161_v53, %s9523_s29 }
 0xe21   :  { %4031 = vrot.lane.b32.xlu0 %v10163_v54, %s9523_s29 }
 0xe40   :  { %3709 = vmax.xlane.f32.xlu0 %v3708_v50 }
 0xe41   :  { %3712 = vmax.xlane.f32.xlu1 %v3711_v11 }
 0xe45   :  { %3706 = vmax.xlane.f32.xlu1 %v3705_v29 }
 0xe49   :  { %3715 = vmax.xlane.f32.xlu1 %v3714_v27 }
 0xe4a   :  { %v3677_v37 = vpop.xlane.xlu0 %3676 }
 0xe4b   :  { %v3719_v52 = vsub.f32 %v11243_v62, %v3677_v37  ;;  %v4063_v62 = vsel %vm1109_vm6, %v11221_v40, 0 }
 0xe4d   :  { %v3674_v50 = vpop.xlane.xlu1 %3673  ;;  %v3737_v7 = vmul.f32 1.442695, %v3719_v52 }
 0xe4e   :  { %v3718_v11 = vsub.f32 %v11249_v0, %v3674_v50  ;;  %v3671_v4 = vpop.xlane.xlu0 %3670 }
 0xe4f   :  { %v3717_v48 = vsub.f32 %v11245_v20, %v3671_v4 }
 0xe50   :  { %v3735_v18 = vmul.f32 1.442695, %v3718_v11 }
 0xe51   :  { %v3733_v51 = vmul.f32 1.442695, %v3717_v48 }
 0xe52   :  { %8920 = vpow2.f32 %v3735_v18  ;;  %v3680_v29 = vpop.xlane.xlu0 %3679 }
 0xe53   :  { %8922 = vpow2.f32 %v3733_v51  ;;  %v3720_v44 = vsub.f32 %v11257_v30, %v3680_v29 }
 0xe54   :  { %8924 = vpow2.f32 %v3737_v7 }
 0xe55   :  { %v3739_v13 = vmul.f32 1.442695, %v3720_v44 }
 0xe56   :  { %4148 = vrot.lane.b32.xlu0 %v10191_v14, %s9522_s26 }
 0xe57   :  { %8926 = vpow2.f32 %v3739_v13  ;;  %v4060_v13 = vsel %vm1109_vm6, %v11216_v33, 0  ;;  %v4066_v33 = vsel %vm1109_vm6, %v4044_v19, 0 }
 0xe5a   :  { %4150 = vrot.lane.b32.xlu1 %v10189_v63, %s9522_s26  ;;  %4136 = vrot.lane.b32.xlu0 %v10181_v31, %s9523_s29 }
 0xe5c   :  { %v11339_v4 = vpop.eup %8920 }
 0xe5d   :  { %v11341_v52 = vpop.eup %8922 }
 0xe5e   :  { %4138 = vrot.lane.b32.xlu1 %v10179_v23, %s9523_s29  ;;  %4035 = vrot.lane.b32.xlu0 %v10173_v9, %s9523_s29  ;;  %v3813_v51 = vpack.c.bf16 %v11339_v4, %v11341_v52  ;;  %v11349_v18 = vpop.eup %8924 }
 0xe60   :  { %8066 = vmatprep.mubr.msk.bf16.mxu0 %vm1316_vm7, %v3813_v51 }
 0xe61   :  { %v11352_v7 = vpop.eup %8926 }
 0xe62   :  { %v3814_v44 = vpack.c.bf16 %v11352_v7, %v11349_v18  ;;  %4037 = vrot.lane.b32.xlu1 %v10171_v2, %s9523_s29  ;;  %4140 = vrot.lane.b32.xlu0 %v10191_v14, %s9523_s29 }
 0xe64   :  { %8067 = vmatmul.mubr.msk.bf16.vlgmr.msra.gmra.mrb[84].mxu0 %vm1316_vm7, %v3814_v44 }
 0xe65   :  { %8091 = vmatpush3.bf16.xpose.msra.mxu0 %v4060_v13 }
 0xe66   :  { %8351 = vmatprep.subr.msk.bf16.mxu0 %vm1109_vm6, %v11221_v40  ;;  %4142 = vrot.lane.b32.xlu1 %v10189_v63, %s9523_s29  ;;  %v4069_v40 = vsel %vm1109_vm6, %v4046_v61, 0 }
 0xe67   :  { %4409 = vrot.lane.b32.xlu0 %v10163_v54, %s9524_s13 }
 0xe6a   :  { %4411 = vrot.lane.b32.xlu1 %v10161_v53, %s9524_s13 }
 0xe6b   :  { %4413 = vrot.lane.b32.xlu0 %v10173_v9, %s9524_s13 }
 0xe6d   :  { %8093 = vmatpush3.bf16.xpose.msra.mxu0 %v4063_v62 }
 0xe6e   :  { %8352 = vmatprep.subr.msk.bf16.mxu0 %vm1109_vm6, %v4044_v19  ;;  %4415 = vrot.lane.b32.xlu1 %v10171_v2, %s9524_s13 }
 0xe6f   :  { %4498 = vrot.lane.b32.xlu0 %v10181_v31, %s9524_s13 }
 0xe72   :  { %4500 = vrot.lane.b32.xlu1 %v10179_v23, %s9524_s13 }
 0xe73   :  { %4504 = vrot.lane.b32.xlu0 %v10189_v63, %s9524_s13 }
 0xe75   :  { %8095 = vmatpush3.bf16.xpose.msra.mxu0 %v4066_v33 }
 0xe76   :  { %8353 = vmatprep.subr.msk.bf16.mxu0 %vm1109_vm6, %v4046_v61  ;;  %4627 = vrot.lane.b32.xlu1 %v10163_v54, %s9525_s9 }
 0xe77   :  { %4629 = vrot.lane.b32.xlu0 %v10161_v53, %s9525_s9 }
 0xe7a   :  { %4502 = vrot.lane.b32.xlu1 %v10191_v14, %s9524_s13  ;;  %s9536_s13 = smov [#allocation14]  }
 0xe7b   :  { %4732 = vrot.lane.b32.xlu0 %v10181_v31, %s9525_s9 }
 0xe7d   :  { %8097 = vmatpush3.bf16.xpose.msra.mxu0 %v4069_v40 }
 0xe7e   :  { %4631 = vrot.lane.b32.xlu1 %v10173_v9, %s9525_s9 }
 0xe7f   :  { %4633 = vrot.lane.b32.xlu0 %v10171_v2, %s9525_s9 }
 0xe82   :  { %4734 = vrot.lane.b32.xlu1 %v10179_v23, %s9525_s9 }
 0xe87   :  { %v3689_v19 = vpop.xlane.xlu0 %3688 }
 0xe88   :  { %v3723_v20 = vsub.f32 %v11267_v15, %v3689_v19  ;;  %v3683_v0 = vpop.xlane.xlu1 %3682 }
 0xe89   :  { %v3721_v30 = vsub.f32 %v11269_v1, %v3683_v0 }
 0xe8a   :  { %v3745_v27 = vmul.f32 1.442695, %v3723_v20 }
 0xe8b   :  { %v3741_v37 = vmul.f32 1.442695, %v3721_v30  ;;  %v3686_v50 = vpop.xlane.xlu0 %3685 }
 0xe8c   :  { %v3722_v61 = vsub.f32 %v11275_v45, %v3686_v50  ;;  %v3692_v11 = vpop.xlane.xlu1 %3691  ;;  %8928 = vpow2.f32 %v3745_v27 }
 0xe8d   :  { %v3724_v48 = vsub.f32 %v11273_v60, %v3692_v11  ;;  %8930 = vpow2.f32 %v3741_v37 }
 0xe8e   :  { %v3743_v29 = vmul.f32 1.442695, %v3722_v61 }
 0xe8f   :  { %v3747_v51 = vmul.f32 1.442695, %v3724_v48 }
 0xe90   :  { %8932 = vpow2.f32 %v3743_v29 }
 0xe91   :  { %8934 = vpow2.f32 %v3747_v51 }
 0xe94   :  { %v3701_v44 = vpop.xlane.xlu0 %3700 }
 0xe95   :  { %v3727_v15 = vsub.f32 %v11291_v42, %v3701_v44  ;;  %v3695_v13 = vpop.xlane.xlu1 %3694 }
 0xe96   :  { %v3725_v1 = vsub.f32 %v11293_v6, %v3695_v13  ;;  %v11399_v33 = vpop.eup %8928  ;;  %v4168_v13 = vsel %vm1109_vm6, %v11327_v24, 0 }
 0xe97   :  { %v3753_v62 = vmul.f32 1.442695, %v3727_v15  ;;  %13729 = vst [vmem:[#allocation149_spill] sm:$0xff] %v11399_v33  ;;  %v11401_v19 = vpop.eup %8930  ;;  %v4165_v15 = vsel %vm1109_vm6, %v11223_v43, 0 }
 0xe98   :  { %v3749_v40 = vmul.f32 1.442695, %v3725_v1  ;;  %v3698_v45 = vpop.xlane.xlu0 %3697  ;;  %13730 = vst [vmem:[#allocation150_spill] sm:$0xff] %v11401_v19 }
 0xe99   :  { %v3726_v60 = vsub.f32 %v11299_v35, %v3698_v45  ;;  %v3704_v20 = vpop.xlane.xlu1 %3703  ;;  %8936 = vpow2.f32 %v3753_v62 }
 0xe9a   :  { %v11404_v0 = vpop.eup %8932  ;;  %v3728_v30 = vsub.f32 %v11297_v3, %v3704_v20  ;;  %8938 = vpow2.f32 %v3749_v40 }
 0xe9b   :  { %13731 = vst [vmem:[#allocation151_spill] sm:$0xff] %v11404_v0  ;;  %v11407_v27 = vpop.eup %8934  ;;  %v3751_v42 = vmul.f32 1.442695, %v3726_v60  ;;  %v3815_v6 = vpack.c.bf16 %v11404_v0, %v11401_v19 }
 0xe9c   :  { %13732 = vst [vmem:[#allocation152_spill] sm:$0xff] %v11407_v27  ;;  %v3755_v37 = vmul.f32 1.442695, %v3728_v30  ;;  %v3816_v50 = vpack.c.bf16 %v11407_v27, %v11399_v33  ;;  %v4032_v35 = vpop.permute.xlu0 %4031 }
 0xe9d   :  { %8940 = vpow2.f32 %v3751_v42  ;;  %8070 = vmatprep.mubr.msk.bf16.mxu0 %vm1316_vm7, %v3815_v6  ;;  %v4034_v61 = vpop.permute.xlu1 %4033 }
 0xe9e   :  { %8942 = vpow2.f32 %v3755_v37  ;;  %8071 = vmatmul.mubr.msk.bf16.gmra.mrb[88].mxu0 %vm1316_vm7, %v3816_v50 }
 0xe9f   :  { %8098 = vmatprep.mubr.msk.bf16.mxu0 %vm1109_vm6, %v4032_v35 }
 0xea3   :  { %v11416_v3 = vpop.eup %8936 }
 0xea4   :  { %13733 = vst [vmem:[#allocation153_spill] sm:$0xff] %v11416_v3  ;;  %v11418_v11 = vpop.eup %8938 }
 0xea5   :  { %13734 = vst [vmem:[#allocation154_spill] sm:$0xff] %v11418_v11 }
 0xea6   :  { %8099 = vmatmul.mubr.msk.bf16.vlgmr.msra.gmra.mrb[92].mxu0 %vm1109_vm6, %v4034_v61 }
 0xea7   :  { %v11421_v48 = vpop.eup %8940 }
 0xea8   :  { %13735 = vst [vmem:[#allocation155_spill] sm:$0xff] %v11421_v48  ;;  %v11423_v29 = vpop.eup %8942  ;;  %v3817_v51 = vpack.c.bf16 %v11421_v48, %v11418_v11 }
 0xea9   :  { %13736 = vst [vmem:[#allocation156_spill] sm:$0xff] %v11423_v29  ;;  %v3818_v44 = vpack.c.bf16 %v11423_v29, %v11416_v3 }
 0xeaa   :  { %8082 = vmatprep.mubr.msk.bf16.mxu1 %vm1316_vm7, %v3817_v51 }
 0xeab   :  { %8083 = vmatmul.mubr.msk.bf16.vlgmr.msra.gmra.mrb[100].mxu1 %vm1316_vm7, %v3818_v44 }
 0xeac   :  { %8107 = vmatpush3.bf16.xpose.msra.mxu1 %v4165_v15 }
 0xead   :  { %8355 = vmatprep.subr.msk.bf16.mxu1 %vm1109_vm6, %v11327_v24 }
 0xeb4   :  { %8109 = vmatpush3.bf16.xpose.msra.mxu1 %v4168_v13 }
 0xecd   :  { %v3710_v1 = vpop.xlane.xlu0 %3709 }
 0xece   :  { %v3730_v62 = vsub.f32 %v11311_v46, %v3710_v1  ;;  %v3713_v40 = vpop.xlane.xlu1 %3712 }
 0xecf   :  { %v3731_v20 = vsub.f32 %v11313_v47, %v3713_v40 }
 0xed0   :  { %v3759_v60 = vmul.f32 1.442695, %v3730_v62 }
 0xed1   :  { %v4149_v45 = vpop.permute.xlu0 %4148  ;;  %v3761_v24 = vmul.f32 1.442695, %v3731_v20 }
 0xed2   :  { %8356 = vmatprep.subr.msk.bf16.mxu1 %vm1109_vm6, %v4149_v45  ;;  %v3707_v30 = vpop.xlane.xlu1 %3706  ;;  %v4171_v43 = vsel %vm1109_vm6, %v4149_v45, 0  ;;  %8944 = vpow2.f32 %v3759_v60 }
 0xed3   :  { %v3729_v42 = vsub.f32 %v11317_v10, %v3707_v30  ;;  %8111 = vmatpush3.bf16.xpose.msra.mxu1 %v4171_v43 }
 0xed5   :  { %v3757_v6 = vmul.f32 1.442695, %v3729_v42  ;;  %v4137_v37 = vpop.permute.xlu0 %4136 }
 0xed6   :  { %v3716_v50 = vpop.xlane.xlu1 %3715 }
 0xed7   :  { %8946 = vpow2.f32 %v3757_v6  ;;  %v3732_v46 = vsub.f32 %v11321_v56, %v3716_v50 }
 0xed8   :  { %8948 = vpow2.f32 %v3761_v24 }
 0xed9   :  { %v3763_v35 = vmul.f32 1.442695, %v3732_v46  ;;  %v4036_v61 = vpop.permute.xlu0 %4035 }
 0xeda   :  { %8102 = vmatprep.mubr.msk.bf16.mxu0 %vm1109_vm6, %v4036_v61  ;;  %v4151_v47 = vpop.permute.xlu1 %4150 }
 0xedb   :  { %8950 = vpow2.f32 %v3763_v35  ;;  %8357 = vmatprep.subr.msk.bf16.mxu1 %vm1109_vm6, %v4151_v47  ;;  %v4174_v10 = vsel %vm1109_vm6, %v4151_v47, 0 }
 0xedc   :  { %8113 = vmatpush3.bf16.xpose.msra.mxu1 %v4174_v10  ;;  %v11446_v15 = vpop.eup %8944 }
 0xedd   :  { %v4141_v51 = vpop.permute.xlu0 %4140  ;;  %13737 = vst [vmem:[#allocation157_spill] sm:$0xff] %v11446_v15 }
 0xede   :  { %v4139_v44 = vpop.permute.xlu1 %4138 }
 0xee1   :  { %v11448_v13 = vpop.eup %8946  ;;  %v4410_v1 = vpop.permute.xlu0 %4409 }
 0xee2   :  { %13738 = vst [vmem:[#allocation158_spill] sm:$0xff] %v11448_v13  ;;  %8122 = vmatprep.subr.bf16.mxu0 %v4410_v1  ;;  %v4038_v56 = vpop.permute.xlu1 %4037  ;;  %v3819_v62 = vpack.c.bf16 %v11446_v15, %v11448_v13  ;;  %v11453_v40 = vpop.eup %8948 }
 0xee3   :  { %8103 = vmatmul.mubr.msk.bf16.gmra.mrb[96].mxu0 %vm1109_vm6, %v4038_v56  ;;  %13739 = vst [vmem:[#allocation159_spill] sm:$0xff] %v11453_v40 }
 0xee4   :  { %8123 = vmatpush3.bf16.msra.mxu0 %v4410_v1  ;;  %8086 = vmatprep.mubr.msk.bf16.mxu1 %vm1316_vm7, %v3819_v62 }
 0xee5   :  { %v11456_v45 = vpop.eup %8950  ;;  %v4414_v60 = vpop.permute.xlu0 %4413 }
 0xee6   :  { %13740 = vst [vmem:[#allocation160_spill] sm:$0xff] %v11456_v45  ;;  %v4143_v20 = vpop.permute.xlu1 %4142  ;;  %v3820_v30 = vpack.c.bf16 %v11456_v45, %v11453_v40 }
 0xee8   :  { %8087 = vmatmul.mubr.msk.bf16.gmra.mrb[104].mxu1 %vm1316_vm7, %v3820_v30 }
 0xee9   :  { %v4499_v43 = vpop.permute.xlu0 %4498  ;;  %8114 = vmatprep.mubr.msk.bf16.mxu1 %vm1109_vm6, %v4137_v37 }
 0xeea   :  { %8138 = vmatprep.subr.bf16.mxu1 %v4499_v43  ;;  %v4412_v42 = vpop.permute.xlu1 %4411 }
 0xeeb   :  { %8124 = vmatprep.subr.bf16.mxu0 %v4412_v42 }
 0xeec   :  { %8125 = vmatpush3.bf16.msra.mxu0 %v4412_v42 }
 0xeed   :  { %8126 = vmatprep.subr.bf16.mxu0 %v4414_v60  ;;  %v4505_v50 = vpop.permute.xlu0 %4504 }
 0xeee   :  { %v4416_v6 = vpop.permute.xlu1 %4415 }
 0xef0   :  { %8115 = vmatmul.mubr.msk.bf16.vlgmr.msra.gmra.mrb[108].mxu1 %vm1109_vm6, %v4139_v44  ;;  %8127 = vmatpush3.bf16.msra.mxu0 %v4414_v60 }
 0xef1   :  { %8139 = vmatpush3.bf16.msra.mxu1 %v4499_v43  ;;  %8118 = vmatprep.mubr.msk.bf16.mxu1 %vm1109_vm6, %v4141_v51  ;;  %v11469_v37 = vpop.permute.xlu0 %4629 }
 0xef2   :  { %8128 = vmatprep.subr.bf16.mxu0 %v4416_v6  ;;  %v4501_v24 = vpop.permute.xlu1 %4500 }
 0xef3   :  { %8140 = vmatprep.subr.bf16.mxu1 %v4501_v24 }
 0xef4   :  { %8129 = vmatpush3.bf16.msra.mxu0 %v4416_v6 }
 0xef5   :  { %8141 = vmatpush3.bf16.msra.mxu1 %v4501_v24  ;;  %v11471_v61 = vpop.permute.xlu0 %4732 }
 0xef6   :  { %v11464_v46 = vpop.permute.xlu1 %4627 }
 0xef7   :  { %8358 = vmatprep.subr.msk.bf16.mxu0 %vm1109_vm6, %v11464_v46 }
 0xef8   :  { %8119 = vmatmul.mubr.msk.bf16.gmra.mrb[112].mxu1 %vm1109_vm6, %v4143_v20 }
 0xefa   :  { %v4503_v35 = vpop.permute.xlu1 %4502 }
 0xefb   :  { %8142 = vmatprep.subr.bf16.mxu1 %v4503_v35 }
 0xefc   :  { %8143 = vmatpush3.bf16.msra.mxu1 %v4503_v35 }
 0xefd   :  { %8144 = vmatprep.subr.bf16.mxu1 %v4505_v50 }
 0xf00   :  { %8145 = vmatpush3.bf16.msra.mxu1 %v4505_v50 }
 0xf01   :  { %8362 = vmatprep.subr.msk.bf16.mxu1 %vm1109_vm6, %v11471_v61 }
 0xf37   :  { %v11475_v47 = vpop.f32.mrb[84].mxu0 }
 0xf38   :  { %13741 = vst [vmem:[#allocation161_spill] sm:$0xff] %v11475_v47  ;;  %v11477_v10 = vpop.f32.mrb[85].mxu0  ;;  %v4632_v47 = vpop.permute.xlu1 %4631 }
 0xf39   :  { %13742 = vst [vmem:[#allocation162_spill] sm:$0xff] %v11477_v10  ;;  %v11479_v51 = vpop.f32.mrb[86].mxu0 }
 0xf3a   :  { %13743 = vst [vmem:[#allocation163_spill] sm:$0xff] %v11479_v51  ;;  %v11481_v44 = vpop.f32.mrb[87].mxu0 }
 0xf3b   :  { %13744 = vst [vmem:[#allocation164_spill] sm:$0xff] %v11481_v44 }
 0xf3c   :  { %v11575_v33 = vpop.permute.xlu1 %4734 }
 0xf71   :  { %v11483_v1 = vpop.f32.mrb[88].mxu0 }
 0xf72   :  { %13745 = vst [vmem:[#allocation165_spill] sm:$0xff] %v11483_v1  ;;  %v11485_v56 = vpop.f32.mrb[89].mxu0 }
 0xf73   :  { %13746 = vst [vmem:[#allocation166_spill] sm:$0xff] %v11485_v56  ;;  %v11487_v62 = vpop.f32.mrb[90].mxu0 }
 0xf74   :  { %13747 = vst [vmem:[#allocation167_spill] sm:$0xff] %v11487_v62  ;;  %v11489_v60 = vpop.f32.mrb[91].mxu0 }
 0xf75   :  { %13748 = vst [vmem:[#allocation168_spill] sm:$0xff] %v11489_v60 }
 0xf79   :  { %v8100_v20 = vpop.f32.mrb[92].mxu0 }
 0xf7a   :  { %v11491_v30 = vmul.f32 0.5, %v8100_v20  ;;  %v4105_v43 = vpop.f32.mrb[93].mxu0 }
 0xf7b   :  { %v8101_v42 = vpop.f32.mrb[94].mxu0  ;;  %v11493_v6 = vmul.f32 0.5, %v4105_v43 }
 0xf7c   :  { %v4108_v24 = vpop.f32.mrb[95].mxu0  ;;  %v4263_v50 = vsel %vm1316_vm7, %v11491_v30, -inf  ;;  %v11505_v20 = vmul.f32 0.5, %v8101_v42 }
 0xf7d   :  { %v11497_v35 = vmul.f32 0.5, %v4108_v24  ;;  %4264 = vmax.xlane.f32.xlu0 %v4263_v50  ;;  %v4257_v43 = vsel %vm1316_vm7, %v11493_v6, -inf }
 0xf7e   :  { %v11499_v45 = vpop.f32.mrb[100].mxu1  ;;  %v4266_v24 = vsel %vm1316_vm7, %v11505_v20, -inf }
 0xf7f   :  { %13749 = vst [vmem:[#allocation169_spill] sm:$0xff] %v11499_v45  ;;  %v11501_v15 = vpop.f32.mrb[101].mxu1  ;;  %v4260_v40 = vsel %vm1316_vm7, %v11497_v35, -inf }
 0xf80   :  { %13750 = vst [vmem:[#allocation170_spill] sm:$0xff] %v11501_v15  ;;  %v11507_v13 = vpop.f32.mrb[102].mxu1  ;;  %4261 = vmax.xlane.f32.xlu1 %v4260_v40 }
 0xf81   :  { %13751 = vst [vmem:[#allocation171_spill] sm:$0xff] %v11507_v13  ;;  %v11511_v3 = vpop.f32.mrb[103].mxu1  ;;  %4258 = vmax.xlane.f32.xlu0 %v4257_v43 }
 0xf82   :  { %13752 = vst [vmem:[#allocation172_spill] sm:$0xff] %v11511_v3 }
 0xf85   :  { %4267 = vmax.xlane.f32.xlu0 %v4266_v24 }
 0xfb6   :  { %v8104_v50 = vpop.f32.mrb[96].mxu0 }
 0xfb7   :  { %v11515_v45 = vmul.f32 0.5, %v8104_v50  ;;  %v4121_v15 = vpop.f32.mrb[97].mxu0 }
 0xfb8   :  { %v11517_v29 = vmul.f32 0.5, %v4121_v15  ;;  %v8105_v42 = vpop.f32.mrb[98].mxu0 }
 0xfb9   :  { %v4124_v11 = vpop.f32.mrb[99].mxu0  ;;  %v4275_v40 = vsel %vm1316_vm7, %v11515_v45, -inf  ;;  %v11521_v13 = vmul.f32 0.5, %v8105_v42 }
 0xfba   :  { %v11523_v48 = vmul.f32 0.5, %v4124_v11  ;;  %4276 = vmax.xlane.f32.xlu0 %v4275_v40  ;;  %v4269_v43 = vsel %vm1316_vm7, %v11517_v29, -inf }
 0xfbb   :  { %v11527_v24 = vpop.f32.mrb[104].mxu1  ;;  %4270 = vmax.xlane.f32.xlu1 %v4269_v43  ;;  %v4278_v11 = vsel %vm1316_vm7, %v11521_v13, -inf }
 0xfbc   :  { %13753 = vst [vmem:[#allocation173_spill] sm:$0xff] %v11527_v24  ;;  %v11529_v50 = vpop.f32.mrb[105].mxu1  ;;  %v4272_v15 = vsel %vm1316_vm7, %v11523_v48, -inf }
 0xfbd   :  { %13754 = vst [vmem:[#allocation174_spill] sm:$0xff] %v11529_v50  ;;  %v11533_v3 = vpop.f32.mrb[106].mxu1 }
 0xfbe   :  { %13755 = vst [vmem:[#allocation175_spill] sm:$0xff] %v11533_v3  ;;  %v11535_v62 = vpop.f32.mrb[107].mxu1  ;;  %4273 = vmax.xlane.f32.xlu0 %v4272_v15 }
 0xfbf   :  { %13756 = vst [vmem:[#allocation176_spill] sm:$0xff] %v11535_v62  ;;  %4279 = vmax.xlane.f32.xlu1 %v4278_v11 }
 0xfc3   :  { %v8116_v42 = vpop.f32.mrb[108].mxu1 }
 0xfc4   :  { %v11539_v40 = vmul.f32 0.5, %v8116_v42  ;;  %v4210_v1 = vpop.f32.mrb[109].mxu1 }
 0xfc5   :  { %v11541_v24 = vmul.f32 0.5, %v4210_v1  ;;  %v8117_v43 = vpop.f32.mrb[110].mxu1 }
 0xfc6   :  { %v4213_v50 = vpop.f32.mrb[111].mxu1  ;;  %v4287_v60 = vsel %vm1316_vm7, %v11539_v40, -inf  ;;  %v11545_v56 = vmul.f32 0.5, %v8117_v43 }
 0xfc7   :  { %v11547_v3 = vmul.f32 0.5, %v4213_v50  ;;  %4288 = vmax.xlane.f32.xlu0 %v4287_v60  ;;  %v4281_v15 = vsel %vm1316_vm7, %v11541_v24, -inf }
 0xfc8   :  { %4282 = vmax.xlane.f32.xlu1 %v4281_v15  ;;  %v4290_v42 = vsel %vm1316_vm7, %v11545_v56, -inf }
 0xfc9   :  { %v4284_v11 = vsel %vm1316_vm7, %v11547_v3, -inf }
 0xfcb   :  { %4285 = vmax.xlane.f32.xlu0 %v4284_v11  ;;  %v8120_v1 = vpop.f32.mrb[112].mxu1 }
 0xfcc   :  { %4291 = vmax.xlane.f32.xlu1 %v4290_v42  ;;  %v4226_v62 = vpop.f32.mrb[113].mxu1  ;;  %v11561_v50 = vmul.f32 0.5, %v8120_v1 }
 0xfcd   :  { %v8121_v51 = vpop.f32.mrb[114].mxu1  ;;  %v11565_v11 = vmul.f32 0.5, %v4226_v62 }
 0xfce   :  { %v4229_v43 = vpop.f32.mrb[115].mxu1  ;;  %v4299_v42 = vsel %vm1316_vm7, %v11561_v50, -inf  ;;  %v11569_v44 = vmul.f32 0.5, %v8121_v51 }
 0xfcf   :  { %v11559_v60 = vmul.f32 0.5, %v4229_v43  ;;  %v4293_v10 = vsel %vm1316_vm7, %v11565_v11, -inf  ;;  %v4634_v43 = vpop.permute.xlu0 %4633 }
 0xfd0   :  { %v4302_v1 = vsel %vm1316_vm7, %v11569_v44, -inf }
 0xfd1   :  { %v4296_v15 = vsel %vm1316_vm7, %v11559_v60, -inf }
 0xfdd   :  { %4621 = vrot.lane.b32.xlu1 %v10161_v53, %s9526_s10 }
 0xfe1   :  { %4619 = vrot.lane.b32.xlu0 %v10163_v54, %s9526_s10 }
0x1000   :  { %4297 = vmax.xlane.f32.xlu0 %v4296_v15 }
0x1001   :  { %4300 = vmax.xlane.f32.xlu1 %v4299_v42 }
0x1005   :  { %4294 = vmax.xlane.f32.xlu1 %v4293_v10 }
0x1009   :  { %4303 = vmax.xlane.f32.xlu1 %v4302_v1 }
0x100a   :  { %v4265_v62 = vpop.xlane.xlu0 %4264 }
0x100b   :  { %v4307_v19 = vsub.f32 %v11491_v30, %v4265_v62  ;;  %v4651_v30 = vsel %vm1109_vm6, %v11469_v37, 0 }
0x100d   :  { %v4262_v15 = vpop.xlane.xlu1 %4261  ;;  %v4325_v55 = vmul.f32 1.442695, %v4307_v19 }
0x100e   :  { %v4306_v42 = vsub.f32 %v11497_v35, %v4262_v15  ;;  %v4259_v27 = vpop.xlane.xlu0 %4258 }
0x100f   :  { %v4305_v51 = vsub.f32 %v11493_v6, %v4259_v27 }
0x1010   :  { %v4323_v0 = vmul.f32 1.442695, %v4306_v42 }
0x1011   :  { %v4321_v32 = vmul.f32 1.442695, %v4305_v51 }
0x1012   :  { %8952 = vpow2.f32 %v4323_v0  ;;  %v4268_v10 = vpop.xlane.xlu0 %4267  ;;  %v4648_v0 = vsel %vm1109_vm6, %v11464_v46, 0  ;;  %v4654_v46 = vsel %vm1109_vm6, %v4632_v47, 0 }
0x1013   :  { %8954 = vpow2.f32 %v4321_v32  ;;  %v4308_v28 = vsub.f32 %v11505_v20, %v4268_v10 }
0x1014   :  { %8956 = vpow2.f32 %v4325_v55 }
0x1015   :  { %v4327_v25 = vmul.f32 1.442695, %v4308_v28 }
0x1016   :  { %4736 = vrot.lane.b32.xlu0 %v10191_v14, %s9525_s9 }
0x1017   :  { %8958 = vpow2.f32 %v4327_v25 }
0x101a   :  { %4738 = vrot.lane.b32.xlu1 %v10189_v63, %s9525_s9  ;;  %4724 = vrot.lane.b32.xlu0 %v10181_v31, %s9526_s10  ;;  %s7119_s9 = sshll.u32 %s9536_s13, 4  ;;  %s7120_s9 = int_to_ptr.vmem [resolvable:$true] %s7119_s9 }
0x101b   :  { %p9465_p1 = scmp.lt.s32.totalorder %s7120_s9, %s7120_s9 }
0x101c   :  { %v11587_v27 = vpop.eup %8952 }
0x101d   :  { %v11589_v19 = vpop.eup %8954 }
0x101e   :  { %4726 = vrot.lane.b32.xlu1 %v10179_v23, %s9526_s10  ;;  %4623 = vrot.lane.b32.xlu0 %v10173_v9, %s9526_s10  ;;  %v4401_v32 = vpack.c.bf16 %v11587_v27, %v11589_v19  ;;  %v11597_v28 = vpop.eup %8956 }
0x1020   :  { %8130 = vmatprep.mubr.msk.bf16.mxu0 %vm1316_vm7, %v4401_v32 }
0x1021   :  { %v11600_v25 = vpop.eup %8958 }
0x1022   :  { %v4402_v55 = vpack.c.bf16 %v11600_v25, %v11597_v28  ;;  %4625 = vrot.lane.b32.xlu1 %v10171_v2, %s9526_s10  ;;  %4728 = vrot.lane.b32.xlu0 %v10191_v14, %s9526_s10 }
0x1024   :  { %8131 = vmatmul.mubr.msk.bf16.vlgmr.msra.gmra.mrb[100].mxu0 %vm1316_vm7, %v4402_v55 }
0x1025   :  { %8155 = vmatpush3.bf16.xpose.msra.mxu0 %v4648_v0 }
0x1026   :  { %8359 = vmatprep.subr.msk.bf16.mxu0 %vm1109_vm6, %v11469_v37  ;;  %4730 = vrot.lane.b32.xlu1 %v10189_v63, %s9526_s10  ;;  %v4657_v37 = vsel %vm1109_vm6, %v4634_v43, 0  ;;  %s9460_s10 = scalar_lea.vmem %s7120_s9, 32 }
0x1027   :  { %4997 = vrot.lane.b32.xlu0 %v10163_v54, %s9527_s2  ;;  %p9461_p0 = scmp.ne.s32.totalorder %s7120_s9, %s9460_s10  ;;  %p9466_p2 = scmp.lt.s32.totalorder %s9460_s10, %s9460_s10 }
0x1029   :  { %p9467_p3 = por %p9466_p2, %p9465_p1 }
0x102a   :  { %4999 = vrot.lane.b32.xlu1 %v10161_v53, %s9527_s2 }
0x102b   :  { %5001 = vrot.lane.b32.xlu0 %v10173_v9, %s9527_s2  ;;  %p9468_p4 = pnand %p9467_p3, %p9461_p0 }
0x102d   :  { %8157 = vmatpush3.bf16.xpose.msra.mxu0 %v4651_v30 }
0x102e   :  { %8360 = vmatprep.subr.msk.bf16.mxu0 %vm1109_vm6, %v4632_v47  ;;  %5003 = vrot.lane.b32.xlu1 %v10171_v2, %s9527_s2 }
0x102f   :  { %5086 = vrot.lane.b32.xlu0 %v10181_v31, %s9527_s2 }
0x1032   :  { %5088 = vrot.lane.b32.xlu1 %v10179_v23, %s9527_s2 }
0x1033   :  { %5092 = vrot.lane.b32.xlu0 %v10189_v63, %s9527_s2 }
0x1035   :  { %8159 = vmatpush3.bf16.xpose.msra.mxu0 %v4654_v46 }
0x1036   :  { %8361 = vmatprep.subr.msk.bf16.mxu0 %vm1109_vm6, %v4634_v43  ;;  %5215 = vrot.lane.b32.xlu1 %v10163_v54, %s9528_s3 }
0x1037   :  { %5217 = vrot.lane.b32.xlu0 %v10161_v53, %s9528_s3 }
0x103a   :  { %5090 = vrot.lane.b32.xlu1 %v10191_v14, %s9527_s2 }
0x103b   :  { %5320 = vrot.lane.b32.xlu0 %v10181_v31, %s9528_s3 }
0x103d   :  { %8161 = vmatpush3.bf16.xpose.msra.mxu0 %v4657_v37 }
0x103e   :  { %5219 = vrot.lane.b32.xlu1 %v10173_v9, %s9528_s3 }
0x103f   :  { %5221 = vrot.lane.b32.xlu0 %v10171_v2, %s9528_s3 }
0x1042   :  { %5322 = vrot.lane.b32.xlu1 %v10179_v23, %s9528_s3 }
0x1047   :  { %v4277_v47 = vpop.xlane.xlu0 %4276 }
0x1048   :  { %v4311_v6 = vsub.f32 %v11515_v45, %v4277_v47  ;;  %v4271_v35 = vpop.xlane.xlu1 %4270 }
0x1049   :  { %v4309_v20 = vsub.f32 %v11517_v29, %v4271_v35 }
0x104a   :  { %v4333_v1 = vmul.f32 1.442695, %v4311_v6 }
0x104b   :  { %v4329_v62 = vmul.f32 1.442695, %v4309_v20  ;;  %v4274_v15 = vpop.xlane.xlu0 %4273 }
0x104c   :  { %v4310_v43 = vsub.f32 %v11523_v48, %v4274_v15  ;;  %v4280_v42 = vpop.xlane.xlu1 %4279  ;;  %8960 = vpow2.f32 %v4333_v1 }
0x104d   :  { %v4312_v51 = vsub.f32 %v11521_v13, %v4280_v42  ;;  %8962 = vpow2.f32 %v4329_v62 }
0x104e   :  { %v4331_v10 = vmul.f32 1.442695, %v4310_v43 }
0x104f   :  { %v4335_v32 = vmul.f32 1.442695, %v4312_v51 }
0x1050   :  { %8964 = vpow2.f32 %v4331_v10 }
0x1051   :  { %8966 = vpow2.f32 %v4335_v32 }
0x1054   :  { %v4289_v55 = vpop.xlane.xlu0 %4288 }
0x1055   :  { %v4315_v45 = vsub.f32 %v11539_v40, %v4289_v55  ;;  %v4283_v0 = vpop.xlane.xlu1 %4282 }
0x1056   :  { %v4313_v29 = vsub.f32 %v11541_v24, %v4283_v0  ;;  %v11647_v46 = vpop.eup %8960  ;;  %v4756_v0 = vsel %vm1109_vm6, %v11575_v33, 0 }
0x1057   :  { %v4341_v30 = vmul.f32 1.442695, %v4315_v45  ;;  %13757 = vst [vmem:[#allocation177_spill] sm:$0xff] %v11647_v46  ;;  %v11649_v47 = vpop.eup %8962  ;;  %v4753_v45 = vsel %vm1109_vm6, %v11471_v61, 0 }
0x1058   :  { %v4337_v37 = vmul.f32 1.442695, %v4313_v29  ;;  %v4286_v48 = vpop.xlane.xlu0 %4285  ;;  %13758 = vst [vmem:[#allocation178_spill] sm:$0xff] %v11649_v47 }
0x1059   :  { %v4314_v13 = vsub.f32 %v11547_v3, %v4286_v48  ;;  %v4292_v6 = vpop.xlane.xlu1 %4291  ;;  %8968 = vpow2.f32 %v4341_v30 }
0x105a   :  { %v11652_v35 = vpop.eup %8964  ;;  %v4316_v20 = vsub.f32 %v11545_v56, %v4292_v6  ;;  %8970 = vpow2.f32 %v4337_v37 }
0x105b   :  { %13759 = vst [vmem:[#allocation179_spill] sm:$0xff] %v11652_v35  ;;  %v11655_v1 = vpop.eup %8966  ;;  %v4339_v40 = vmul.f32 1.442695, %v4314_v13  ;;  %v4403_v24 = vpack.c.bf16 %v11652_v35, %v11649_v47 }
0x105c   :  { %13760 = vst [vmem:[#allocation180_spill] sm:$0xff] %v11655_v1  ;;  %v4343_v62 = vmul.f32 1.442695, %v4316_v20  ;;  %v4404_v15 = vpack.c.bf16 %v11655_v1, %v11647_v46  ;;  %v4620_v3 = vpop.permute.xlu0 %4619 }
0x105d   :  { %8972 = vpow2.f32 %v4339_v40  ;;  %8134 = vmatprep.mubr.msk.bf16.mxu0 %vm1316_vm7, %v4403_v24  ;;  %v4622_v43 = vpop.permute.xlu1 %4621 }
0x105e   :  { %8974 = vpow2.f32 %v4343_v62  ;;  %8135 = vmatmul.mubr.msk.bf16.gmra.mrb[104].mxu0 %vm1316_vm7, %v4404_v15 }
0x105f   :  { %8162 = vmatprep.mubr.msk.bf16.mxu0 %vm1109_vm6, %v4620_v3 }
0x1063   :  { %v11664_v56 = vpop.eup %8968 }
0x1064   :  { %13761 = vst [vmem:[#allocation181_spill] sm:$0xff] %v11664_v56  ;;  %v11666_v42 = vpop.eup %8970 }
0x1065   :  { %13762 = vst [vmem:[#allocation182_spill] sm:$0xff] %v11666_v42 }
0x1066   :  { %8163 = vmatmul.mubr.msk.bf16.vlgmr.msra.gmra.mrb[108].mxu0 %vm1109_vm6, %v4622_v43 }
0x1067   :  { %v11669_v51 = vpop.eup %8972 }
0x1068   :  { %13763 = vst [vmem:[#allocation183_spill] sm:$0xff] %v11669_v51  ;;  %v11671_v10 = vpop.eup %8974  ;;  %v4405_v32 = vpack.c.bf16 %v11669_v51, %v11666_v42 }
0x1069   :  { %13764 = vst [vmem:[#allocation184_spill] sm:$0xff] %v11671_v10  ;;  %v4406_v55 = vpack.c.bf16 %v11671_v10, %v11664_v56 }
0x106a   :  { %8146 = vmatprep.mubr.msk.bf16.mxu1 %vm1316_vm7, %v4405_v32 }
0x106b   :  { %8147 = vmatmul.mubr.msk.bf16.vlgmr.msra.gmra.mrb[116].mxu1 %vm1316_vm7, %v4406_v55 }
0x106c   :  { %8171 = vmatpush3.bf16.xpose.msra.mxu1 %v4753_v45 }
0x106d   :  { %8363 = vmatprep.subr.msk.bf16.mxu1 %vm1109_vm6, %v11575_v33 }
0x1074   :  { %8173 = vmatpush3.bf16.xpose.msra.mxu1 %v4756_v0 }
0x108d   :  { %v4298_v29 = vpop.xlane.xlu0 %4297 }
0x108e   :  { %v4318_v30 = vsub.f32 %v11559_v60, %v4298_v29  ;;  %v4301_v37 = vpop.xlane.xlu1 %4300 }
0x108f   :  { %v4319_v6 = vsub.f32 %v11561_v50, %v4301_v37 }
0x1090   :  { %v4347_v13 = vmul.f32 1.442695, %v4318_v30 }
0x1091   :  { %v4737_v48 = vpop.permute.xlu0 %4736  ;;  %v4349_v33 = vmul.f32 1.442695, %v4319_v6 }
0x1092   :  { %8364 = vmatprep.subr.msk.bf16.mxu1 %vm1109_vm6, %v4737_v48  ;;  %v4295_v20 = vpop.xlane.xlu1 %4294  ;;  %v4759_v61 = vsel %vm1109_vm6, %v4737_v48, 0  ;;  %8976 = vpow2.f32 %v4347_v13 }
0x1093   :  { %v4317_v40 = vsub.f32 %v11565_v11, %v4295_v20  ;;  %8175 = vmatpush3.bf16.xpose.msra.mxu1 %v4759_v61 }
0x1095   :  { %v4345_v24 = vmul.f32 1.442695, %v4317_v40  ;;  %v4725_v62 = vpop.permute.xlu0 %4724 }
0x1096   :  { %v4304_v15 = vpop.xlane.xlu1 %4303 }
0x1097   :  { %8978 = vpow2.f32 %v4345_v24  ;;  %v4320_v60 = vsub.f32 %v11569_v44, %v4304_v15 }
0x1098   :  { %8980 = vpow2.f32 %v4349_v33 }
0x1099   :  { %v4351_v3 = vmul.f32 1.442695, %v4320_v60  ;;  %v4624_v43 = vpop.permute.xlu0 %4623 }
0x109a   :  { %8166 = vmatprep.mubr.msk.bf16.mxu0 %vm1109_vm6, %v4624_v43  ;;  %v4739_v50 = vpop.permute.xlu1 %4738 }
0x109b   :  { %8982 = vpow2.f32 %v4351_v3  ;;  %8365 = vmatprep.subr.msk.bf16.mxu1 %vm1109_vm6, %v4739_v50  ;;  %v4762_v11 = vsel %vm1109_vm6, %v4739_v50, 0 }
0x109c   :  { %8177 = vmatpush3.bf16.xpose.msra.mxu1 %v4762_v11  ;;  %v11694_v45 = vpop.eup %8976 }
0x109d   :  { %v4729_v32 = vpop.permute.xlu0 %4728  ;;  %13765 = vst [vmem:[#allocation185_spill] sm:$0xff] %v11694_v45 }
0x109e   :  { %v4727_v55 = vpop.permute.xlu1 %4726 }
0x10a1   :  { %v11696_v0 = vpop.eup %8978  ;;  %v4998_v29 = vpop.permute.xlu0 %4997 }
0x10a2   :  { %13766 = vst [vmem:[#allocation186_spill] sm:$0xff] %v11696_v0  ;;  %8186 = vmatprep.subr.bf16.mxu0 %v4998_v29  ;;  %v4626_v44 = vpop.permute.xlu1 %4625  ;;  %v4407_v30 = vpack.c.bf16 %v11694_v45, %v11696_v0  ;;  %v11701_v37 = vpop.eup %8980 }
0x10a3   :  { %8167 = vmatmul.mubr.msk.bf16.gmra.mrb[112].mxu0 %vm1109_vm6, %v4626_v44  ;;  %13767 = vst [vmem:[#allocation187_spill] sm:$0xff] %v11701_v37 }
0x10a4   :  { %8187 = vmatpush3.bf16.msra.mxu0 %v4998_v29  ;;  %8150 = vmatprep.mubr.msk.bf16.mxu1 %vm1316_vm7, %v4407_v30 }
0x10a5   :  { %v11704_v48 = vpop.eup %8982  ;;  %v5002_v13 = vpop.permute.xlu0 %5001 }
0x10a6   :  { %13768 = vst [vmem:[#allocation188_spill] sm:$0xff] %v11704_v48  ;;  %v4731_v6 = vpop.permute.xlu1 %4730  ;;  %v4408_v20 = vpack.c.bf16 %v11704_v48, %v11701_v37 }
0x10a8   :  { %8151 = vmatmul.mubr.msk.bf16.gmra.mrb[120].mxu1 %vm1316_vm7, %v4408_v20 }
0x10a9   :  { %v5087_v61 = vpop.permute.xlu0 %5086  ;;  %8178 = vmatprep.mubr.msk.bf16.mxu1 %vm1109_vm6, %v4725_v62 }
0x10aa   :  { %8202 = vmatprep.subr.bf16.mxu1 %v5087_v61  ;;  %v5000_v40 = vpop.permute.xlu1 %4999 }
0x10ab   :  { %8188 = vmatprep.subr.bf16.mxu0 %v5000_v40 }
0x10ac   :  { %8189 = vmatpush3.bf16.msra.mxu0 %v5000_v40 }
0x10ad   :  { %8190 = vmatprep.subr.bf16.mxu0 %v5002_v13  ;;  %v5093_v15 = vpop.permute.xlu0 %5092 }
0x10ae   :  { %v5004_v24 = vpop.permute.xlu1 %5003 }
0x10b0   :  { %8179 = vmatmul.mubr.msk.bf16.vlgmr.msra.gmra.mrb[124].mxu1 %vm1109_vm6, %v4727_v55  ;;  %8191 = vmatpush3.bf16.msra.mxu0 %v5002_v13 }
0x10b1   :  { %8203 = vmatpush3.bf16.msra.mxu1 %v5087_v61  ;;  %8182 = vmatprep.mubr.msk.bf16.mxu1 %vm1109_vm6, %v4729_v32  ;;  %v11717_v62 = vpop.permute.xlu0 %5217 }
0x10b2   :  { %8192 = vmatprep.subr.bf16.mxu0 %v5004_v24  ;;  %v5089_v33 = vpop.permute.xlu1 %5088 }
0x10b3   :  { %8204 = vmatprep.subr.bf16.mxu1 %v5089_v33 }
0x10b4   :  { %8193 = vmatpush3.bf16.msra.mxu0 %v5004_v24 }
0x10b5   :  { %8205 = vmatpush3.bf16.msra.mxu1 %v5089_v33  ;;  %v11719_v43 = vpop.permute.xlu0 %5320 }
0x10b6   :  { %v11712_v60 = vpop.permute.xlu1 %5215 }
0x10b7   :  { %8366 = vmatprep.subr.msk.bf16.mxu0 %vm1109_vm6, %v11712_v60 }
0x10b8   :  { %8183 = vmatmul.mubr.msk.bf16.gmra.mrb[128].mxu1 %vm1109_vm6, %v4731_v6 }
0x10ba   :  { %v5091_v3 = vpop.permute.xlu1 %5090 }
0x10bb   :  { %8206 = vmatprep.subr.bf16.mxu1 %v5091_v3 }
0x10bc   :  { %8207 = vmatpush3.bf16.msra.mxu1 %v5091_v3 }
0x10bd   :  { %8208 = vmatprep.subr.bf16.mxu1 %v5093_v15 }
0x10c0   :  { %8209 = vmatpush3.bf16.msra.mxu1 %v5093_v15 }
0x10c1   :  { %8370 = vmatprep.subr.msk.bf16.mxu1 %vm1109_vm6, %v11719_v43 }
0x10f7   :  { %v11723_v50 = vpop.f32.mrb[100].mxu0 }
0x10f8   :  { %13769 = vst [vmem:[#allocation189_spill] sm:$0xff] %v11723_v50  ;;  %v11725_v11 = vpop.f32.mrb[101].mxu0  ;;  %v5220_v50 = vpop.permute.xlu1 %5219 }
0x10f9   :  { %13770 = vst [vmem:[#allocation190_spill] sm:$0xff] %v11725_v11  ;;  %v11727_v32 = vpop.f32.mrb[102].mxu0 }
0x10fa   :  { %13771 = vst [vmem:[#allocation191_spill] sm:$0xff] %v11727_v32  ;;  %v11729_v55 = vpop.f32.mrb[103].mxu0 }
0x10fb   :  { %13772 = vst [vmem:[#allocation192_spill] sm:$0xff] %v11729_v55 }
0x10fc   :  { %v11823_v46 = vpop.permute.xlu1 %5322 }
0x1131   :  { %v11731_v29 = vpop.f32.mrb[104].mxu0 }
0x1132   :  { %13773 = vst [vmem:[#allocation193_spill] sm:$0xff] %v11731_v29  ;;  %v11733_v44 = vpop.f32.mrb[105].mxu0 }
0x1133   :  { %13774 = vst [vmem:[#allocation194_spill] sm:$0xff] %v11733_v44  ;;  %v11735_v30 = vpop.f32.mrb[106].mxu0 }
0x1134   :  { %13775 = vst [vmem:[#allocation195_spill] sm:$0xff] %v11735_v30  ;;  %v11737_v13 = vpop.f32.mrb[107].mxu0 }
0x1135   :  { %13776 = vst [vmem:[#allocation196_spill] sm:$0xff] %v11737_v13 }
0x1139   :  { %v8164_v6 = vpop.f32.mrb[108].mxu0 }
0x113a   :  { %v11739_v20 = vmul.f32 0.5, %v8164_v6  ;;  %v4693_v61 = vpop.f32.mrb[109].mxu0 }
0x113b   :  { %v8165_v40 = vpop.f32.mrb[110].mxu0  ;;  %v11741_v24 = vmul.f32 0.5, %v4693_v61 }
0x113c   :  { %v4696_v33 = vpop.f32.mrb[111].mxu0  ;;  %v4851_v15 = vsel %vm1316_vm7, %v11739_v20, -inf  ;;  %v11753_v6 = vmul.f32 0.5, %v8165_v40 }
0x113d   :  { %v11745_v3 = vmul.f32 0.5, %v4696_v33  ;;  %4852 = vmax.xlane.f32.xlu0 %v4851_v15  ;;  %v4845_v61 = vsel %vm1316_vm7, %v11741_v24, -inf }
0x113e   :  { %v11747_v48 = vpop.f32.mrb[116].mxu1  ;;  %v4854_v33 = vsel %vm1316_vm7, %v11753_v6, -inf }
0x113f   :  { %13777 = vst [vmem:[#allocation197_spill] sm:$0xff] %v11747_v48  ;;  %v11749_v45 = vpop.f32.mrb[117].mxu1  ;;  %v4848_v37 = vsel %vm1316_vm7, %v11745_v3, -inf }
0x1140   :  { %13778 = vst [vmem:[#allocation198_spill] sm:$0xff] %v11749_v45  ;;  %v11755_v0 = vpop.f32.mrb[118].mxu1  ;;  %4849 = vmax.xlane.f32.xlu1 %v4848_v37 }
0x1141   :  { %13779 = vst [vmem:[#allocation199_spill] sm:$0xff] %v11755_v0  ;;  %v11759_v10 = vpop.f32.mrb[119].mxu1  ;;  %4846 = vmax.xlane.f32.xlu0 %v4845_v61 }
0x1142   :  { %13780 = vst [vmem:[#allocation200_spill] sm:$0xff] %v11759_v10 }
0x1145   :  { %4855 = vmax.xlane.f32.xlu0 %v4854_v33 }
0x1176   :  { %v8168_v15 = vpop.f32.mrb[112].mxu0 }
0x1177   :  { %v11763_v48 = vmul.f32 0.5, %v8168_v15  ;;  %v4709_v45 = vpop.f32.mrb[113].mxu0 }
0x1178   :  { %v11765_v51 = vmul.f32 0.5, %v4709_v45  ;;  %v8169_v40 = vpop.f32.mrb[114].mxu0 }
0x1179   :  { %v4712_v56 = vpop.f32.mrb[115].mxu0  ;;  %v4863_v37 = vsel %vm1316_vm7, %v11763_v48, -inf  ;;  %v11769_v0 = vmul.f32 0.5, %v8169_v40 }
0x117a   :  { %v11771_v42 = vmul.f32 0.5, %v4712_v56  ;;  %4864 = vmax.xlane.f32.xlu0 %v4863_v37  ;;  %v4857_v61 = vsel %vm1316_vm7, %v11765_v51, -inf }
0x117b   :  { %v11775_v33 = vpop.f32.mrb[120].mxu1  ;;  %4858 = vmax.xlane.f32.xlu1 %v4857_v61  ;;  %v4866_v56 = vsel %vm1316_vm7, %v11769_v0, -inf }
0x117c   :  { %13781 = vst [vmem:[#allocation201_spill] sm:$0xff] %v11775_v33  ;;  %v11777_v15 = vpop.f32.mrb[121].mxu1  ;;  %v4860_v45 = vsel %vm1316_vm7, %v11771_v42, -inf }
0x117d   :  { %13782 = vst [vmem:[#allocation202_spill] sm:$0xff] %v11777_v15  ;;  %v11781_v10 = vpop.f32.mrb[122].mxu1 }
0x117e   :  { %13783 = vst [vmem:[#allocation203_spill] sm:$0xff] %v11781_v10  ;;  %v11783_v30 = vpop.f32.mrb[123].mxu1  ;;  %4861 = vmax.xlane.f32.xlu0 %v4860_v45 }
0x117f   :  { %13784 = vst [vmem:[#allocation204_spill] sm:$0xff] %v11783_v30  ;;  %4867 = vmax.xlane.f32.xlu1 %v4866_v56 }
0x1183   :  { %v8180_v40 = vpop.f32.mrb[124].mxu1 }
0x1184   :  { %v11787_v37 = vmul.f32 0.5, %v8180_v40  ;;  %v4798_v29 = vpop.f32.mrb[125].mxu1 }
0x1185   :  { %v11789_v33 = vmul.f32 0.5, %v4798_v29  ;;  %v8181_v61 = vpop.f32.mrb[126].mxu1 }
0x1186   :  { %v4801_v15 = vpop.f32.mrb[127].mxu1  ;;  %v4875_v13 = vsel %vm1316_vm7, %v11787_v37, -inf  ;;  %v11793_v44 = vmul.f32 0.5, %v8181_v61 }
0x1187   :  { %v11795_v10 = vmul.f32 0.5, %v4801_v15  ;;  %4876 = vmax.xlane.f32.xlu0 %v4875_v13  ;;  %v4869_v45 = vsel %vm1316_vm7, %v11789_v33, -inf }
0x1188   :  { %4870 = vmax.xlane.f32.xlu1 %v4869_v45  ;;  %v4878_v40 = vsel %vm1316_vm7, %v11793_v44, -inf }
0x1189   :  { %v4872_v56 = vsel %vm1316_vm7, %v11795_v10, -inf }
0x118b   :  { %4873 = vmax.xlane.f32.xlu0 %v4872_v56  ;;  %v8184_v29 = vpop.f32.mrb[128].mxu1 }
0x118c   :  { %4879 = vmax.xlane.f32.xlu1 %v4878_v40  ;;  %v4814_v30 = vpop.f32.mrb[129].mxu1  ;;  %v11809_v15 = vmul.f32 0.5, %v8184_v29 }
0x118d   :  { %v8185_v32 = vpop.f32.mrb[130].mxu1  ;;  %v11813_v56 = vmul.f32 0.5, %v4814_v30 }
0x118e   :  { %v4817_v61 = vpop.f32.mrb[131].mxu1  ;;  %13786 = vst [vmem:[#allocation206_spill] sm:$0xff] %v11809_v15  ;;  %v4887_v40 = vsel %vm1316_vm7, %v11809_v15, -inf  ;;  %v11817_v55 = vmul.f32 0.5, %v8185_v32 }
0x118f   :  { %v11807_v13 = vmul.f32 0.5, %v4817_v61  ;;  %13787 = vst [vmem:[#allocation207_spill] sm:$0xff] %v11813_v56  ;;  %v4881_v11 = vsel %vm1316_vm7, %v11813_v56, -inf  ;;  %v5222_v61 = vpop.permute.xlu0 %5221 }
0x1190   :  { %13788 = vst [vmem:[#allocation208_spill] sm:$0xff] %v11817_v55  ;;  %v4890_v29 = vsel %vm1316_vm7, %v11817_v55, -inf }
0x1191   :  { %13785 = vst [vmem:[#allocation205_spill] sm:$0xff] %v11807_v13  ;;  %v4884_v45 = vsel %vm1316_vm7, %v11807_v13, -inf }
0x119d   :  { %5209 = vrot.lane.b32.xlu1 %v10161_v53, %s9529_s4 }
0x11a1   :  { %5207 = vrot.lane.b32.xlu0 %v10163_v54, %s9529_s4 }
0x11c0   :  { %4885 = vmax.xlane.f32.xlu0 %v4884_v45 }
0x11c1   :  { %4888 = vmax.xlane.f32.xlu1 %v4887_v40 }
0x11c5   :  { %4882 = vmax.xlane.f32.xlu1 %v4881_v11 }
0x11c9   :  { %4891 = vmax.xlane.f32.xlu1 %v4890_v29 }
0x11ca   :  { %v4853_v30 = vpop.xlane.xlu0 %4852 }
0x11cb   :  { %v4895_v47 = vsub.f32 %v11739_v20, %v4853_v30  ;;  %v2004_v30 = vsel %vm1316_vm7, %v10608_v26, 0.0  ;;  %v2592_v26 = vsel %vm1316_vm7, %v10843_v21, 0.0  ;;  %v2010_v21 = vsel %vm1316_vm7, %v10621_v57, 0.0 }
0x11cd   :  { %v4850_v45 = vpop.xlane.xlu1 %4849  ;;  %v4913_v56 = vmul.f32 1.442695, %v4895_v47 }
0x11ce   :  { %v4894_v40 = vsub.f32 %v11745_v3, %v4850_v45  ;;  %v4847_v1 = vpop.xlane.xlu0 %4846  ;;  %v5236_v3 = vsel %vm1109_vm6, %v11712_v60, 0 }
0x11cf   :  { %v4893_v32 = vsub.f32 %v11741_v24, %v4847_v1 }
0x11d0   :  { %v4911_v35 = vmul.f32 1.442695, %v4894_v40 }
0x11d1   :  { %v4909_v15 = vmul.f32 1.442695, %v4893_v32 }
0x11d2   :  { %8984 = vpow2.f32 %v4911_v35  ;;  %v4856_v11 = vpop.xlane.xlu0 %4855 }
0x11d3   :  { %8986 = vpow2.f32 %v4909_v15  ;;  %v4896_v55 = vsub.f32 %v11753_v6, %v4856_v11  ;;  %v5239_v6 = vsel %vm1109_vm6, %v11717_v62, 0 }
0x11d4   :  { %8988 = vpow2.f32 %v4913_v56 }
0x11d5   :  { %v4915_v13 = vmul.f32 1.442695, %v4896_v55 }
0x11d6   :  { %5324 = vrot.lane.b32.xlu0 %v10191_v14, %s9528_s3 }
0x11d7   :  { %8990 = vpow2.f32 %v4915_v13 }
0x11da   :  { %5211 = vrot.lane.b32.xlu1 %v10173_v9, %s9529_s4  ;;  %5213 = vrot.lane.b32.xlu0 %v10171_v2, %s9529_s4 }
0x11dc   :  { %v11835_v1 = vpop.eup %8984 }
0x11dd   :  { %v11837_v47 = vpop.eup %8986 }
0x11de   :  { %5326 = vrot.lane.b32.xlu1 %v10189_v63, %s9528_s3  ;;  %5312 = vrot.lane.b32.xlu0 %v10181_v31, %s9529_s4  ;;  %v4989_v35 = vpack.c.bf16 %v11835_v1, %v11837_v47  ;;  %v11845_v55 = vpop.eup %8988 }
0x11e0   :  { %8194 = vmatprep.mubr.msk.bf16.mxu0 %vm1316_vm7, %v4989_v35 }
0x11e1   :  { %v11848_v20 = vpop.eup %8990 }
0x11e2   :  { %v4990_v24 = vpack.c.bf16 %v11848_v20, %v11845_v55  ;;  %5314 = vrot.lane.b32.xlu1 %v10179_v23, %s9529_s4  ;;  %5316 = vrot.lane.b32.xlu0 %v10191_v14, %s9529_s4 }
0x11e4   :  { %8195 = vmatmul.mubr.msk.bf16.vlgmr.msra.gmra.mrb[116].mxu0 %vm1316_vm7, %v4990_v24 }
0x11e5   :  { %8219 = vmatpush3.bf16.xpose.msra.mxu0 %v5236_v3 }
0x11e6   :  { %8367 = vmatprep.subr.msk.bf16.mxu0 %vm1109_vm6, %v11717_v62  ;;  %5318 = vrot.lane.b32.xlu1 %v10189_v63, %s9529_s4 }
0x11e7   :  { %5585 = vrot.lane.b32.xlu0 %v10163_v54, %s9530_s0  ;;  %v5242_v54 = vsel %vm1109_vm6, %v5220_v50, 0 }
0x11ea   :  { %5587 = vrot.lane.b32.xlu1 %v10161_v53, %s9530_s0  ;;  %v5245_v53 = vsel %vm1109_vm6, %v5222_v61, 0 }
0x11eb   :  { %5589 = vrot.lane.b32.xlu0 %v10173_v9, %s9530_s0 }
0x11ed   :  { %8221 = vmatpush3.bf16.xpose.msra.mxu0 %v5239_v6 }
0x11ee   :  { %8368 = vmatprep.subr.msk.bf16.mxu0 %vm1109_vm6, %v5220_v50  ;;  %5591 = vrot.lane.b32.xlu1 %v10171_v2, %s9530_s0 }
0x11ef   :  { %5674 = vrot.lane.b32.xlu0 %v10181_v31, %s9530_s0 }
0x11f2   :  { %5680 = vrot.lane.b32.xlu1 %v10189_v63, %s9530_s0 }
0x11f3   :  { %5676 = vrot.lane.b32.xlu0 %v10179_v23, %s9530_s0 }
0x11f5   :  { %8223 = vmatpush3.bf16.xpose.msra.mxu0 %v5242_v54 }
0x11f6   :  { %8369 = vmatprep.subr.msk.bf16.mxu0 %vm1109_vm6, %v5222_v61 }
0x11f7   :  { %5678 = vrot.lane.b32.xlu0 %v10191_v14, %s9530_s0 }
0x11fd   :  { %8225 = vmatpush3.bf16.xpose.msra.mxu0 %v5245_v53 }
0x1207   :  { %v4865_v9 = vpop.xlane.xlu0 %4864 }
0x1208   :  { %v4899_v60 = vsub.f32 %v11763_v48, %v4865_v9  ;;  %v4859_v2 = vpop.xlane.xlu1 %4858  ;;  %v2589_v9 = vsel %vm1316_vm7, %v10845_v39, 0.0 }
0x1209   :  { %v4897_v31 = vsub.f32 %v11765_v51, %v4859_v2  ;;  %v2001_v51 = vsel %vm1316_vm7, %v10612_v59, 0.0  ;;  %v2007_v59 = vsel %vm1316_vm7, %v10616_v16, 0.0  ;;  %v3186_v2 = vsel %vm1316_vm7, %v11104_v8, 0.0 }
0x120a   :  { %v4921_v62 = vmul.f32 1.442695, %v4899_v60  ;;  %v3180_v60 = vsel %vm1316_vm7, %v11091_v22, 0.0  ;;  %v3177_v8 = vsel %vm1316_vm7, %v11093_v58, 0.0  ;;  %v3774_v58 = vsel %vm1316_vm7, %v11352_v7, 0.0 }
0x120b   :  { %v4917_v63 = vmul.f32 1.442695, %v4897_v31  ;;  %v4862_v13 = vpop.xlane.xlu0 %4861  ;;  %v4362_v7 = vsel %vm1316_vm7, %v11600_v25, 0.0  ;;  %v2013_v25 = vsel %vm1316_vm7, %v10657_v49, 0.0 }
0x120c   :  { %v4898_v23 = vsub.f32 %v11771_v42, %v4862_v13  ;;  %v4868_v50 = vpop.xlane.xlu1 %4867  ;;  %8992 = vpow2.f32 %v4921_v62  ;;  %v3768_v13 = vsel %vm1316_vm7, %v11339_v4, 0.0  ;;  %v3765_v4 = vsel %vm1316_vm7, %v11341_v52, 0.0 }
0x120d   :  { %v4900_v15 = vsub.f32 %v11769_v0, %v4868_v50  ;;  %8994 = vpow2.f32 %v4917_v63  ;;  %v3183_v50 = vsel %vm1316_vm7, %v11101_v41, 0.0  ;;  %v3771_v41 = vsel %vm1316_vm7, %v11349_v18, 0.0 }
0x120e   :  { %v4919_v56 = vmul.f32 1.442695, %v4898_v23  ;;  %v5341_v23 = vsel %vm1109_vm6, %v11719_v43, 0  ;;  %v5344_v43 = vsel %vm1109_vm6, %v11823_v46, 0  ;;  %v4353_v52 = vsel %vm1316_vm7, %v11589_v19, 0.0 }
0x120f   :  { %v4923_v14 = vmul.f32 1.442695, %v4900_v15  ;;  %v4356_v15 = vsel %vm1316_vm7, %v11587_v27, 0.0  ;;  %v2016_v27 = vsel %vm1316_vm7, %v10660_v34, 0.0  ;;  %v2022_v18 = vsel %vm1316_vm7, %v10663_v36, 0.0 }
0x1210   :  { %8996 = vpow2.f32 %v4919_v56  ;;  %v2604_v19 = vsel %vm1316_vm7, %v10908_v17, 0.0  ;;  %v2019_v34 = vsel %vm1316_vm7, %v10655_v5, 0.0  ;;  %v13789_v56 = vld [vmem:[#allocation96_spill] sm:$0xff] }
0x1211   :  { %8998 = vpow2.f32 %v4923_v14  ;;  %v13790_v14 = vld [vmem:[#allocation95_spill] sm:$0xff] }
0x1212   :  { %v2601_v36 = vsel %vm1316_vm7, %v13790_v14, 0.0 }
0x1214   :  { %v4877_v61 = vpop.xlane.xlu0 %4876 }
0x1215   :  { %v4903_v48 = vsub.f32 %v11787_v37, %v4877_v61  ;;  %v4871_v29 = vpop.xlane.xlu1 %4870  ;;  %v13791_v61 = vld [vmem:[#allocation123_spill] sm:$0xff] }
0x1216   :  { %2002 = vadd.xlane.f32.xlu0 %v2001_v51  ;;  %v4901_v42 = vsub.f32 %v11789_v33, %v4871_v29  ;;  %2005 = vadd.xlane.f32.xlu1 %v2004_v30  ;;  %v11887_v45 = vpop.eup %8992  ;;  %v3192_v49 = vsel %vm1316_vm7, %v13791_v61, 0.0  ;;  %v13793_v29 = vld [vmem:[#allocation205_spill] sm:$0xff]  ;;  %v13794_v30 = vld [vmem:[#allocation124_spill] sm:$0xff] }
0x1217   :  { %v4929_v0 = vmul.f32 1.442695, %v4903_v48  ;;  %v11889_v11 = vpop.eup %8994  ;;  %v13792_v48 = vld [vmem:[#allocation94_spill] sm:$0xff] }
0x1218   :  { %v4925_v40 = vmul.f32 1.442695, %v4901_v42  ;;  %v4874_v32 = vpop.xlane.xlu0 %4873  ;;  %v2607_v17 = vsel %vm1316_vm7, %v13792_v48, 0.0  ;;  %v3198_v42 = vsel %vm1316_vm7, %v13794_v30, 0.0 }
0x1219   :  { %v4902_v37 = vsub.f32 %v11795_v10, %v4874_v32  ;;  %v4880_v35 = vpop.xlane.xlu1 %4879  ;;  %9000 = vpow2.f32 %v4929_v0 }
0x121a   :  { %v11896_v24 = vpop.eup %8996  ;;  %2008 = vadd.xlane.f32.xlu0 %v2007_v59  ;;  %v4904_v33 = vsub.f32 %v11793_v44, %v4880_v35  ;;  %2593 = vadd.xlane.f32.xlu1 %v2592_v26  ;;  %9002 = vpow2.f32 %v4925_v40  ;;  %v2598_v44 = vsel %vm1316_vm7, %v10856_v12, 0.0  ;;  %v2595_v12 = vsel %vm1316_vm7, %v10853_v38, 0.0  ;;  %v13795_v40 = vld [vmem:[#allocation122_spill] sm:$0xff] }
0x121b   :  { %v11899_v3 = vpop.eup %8998  ;;  %v4927_v6 = vmul.f32 1.442695, %v4902_v37  ;;  %v4991_v10 = vpack.c.bf16 %v11896_v24, %v11889_v11  ;;  %v3189_v32 = vsel %vm1316_vm7, %v13795_v40, 0.0  ;;  %v13796_v35 = vld [vmem:[#allocation206_spill] sm:$0xff] }
0x121c   :  { %v4931_v54 = vmul.f32 1.442695, %v4904_v33  ;;  %v4992_v16 = vpack.c.bf16 %v11899_v3, %v11887_v45  ;;  %v5208_v53 = vpop.permute.xlu0 %5207  ;;  %v13797_v33 = vld [vmem:[#allocation151_spill] sm:$0xff] }
0x121d   :  { %9004 = vpow2.f32 %v4927_v6  ;;  %8198 = vmatprep.mubr.msk.bf16.mxu0 %vm1316_vm7, %v4991_v10  ;;  %v5210_v62 = vpop.permute.xlu1 %5209  ;;  %v3780_v6 = vsel %vm1316_vm7, %v13797_v33, 0.0 }
0x121e   :  { %9006 = vpow2.f32 %v4931_v54  ;;  %2011 = vadd.xlane.f32.xlu0 %v2010_v21  ;;  %2599 = vadd.xlane.f32.xlu1 %v2598_v44 }
0x121f   :  { %8199 = vmatmul.mubr.msk.bf16.gmra.mrb[120].mxu0 %vm1316_vm7, %v4992_v16  ;;  %v13798_v16 = vld [vmem:[#allocation207_spill] sm:$0xff] }
0x1220   :  { %8226 = vmatprep.mubr.msk.bf16.mxu0 %vm1109_vm6, %v5208_v53  ;;  %v13799_v53 = vld [vmem:[#allocation121_spill] sm:$0xff] }
0x1222   :  { %2590 = vadd.xlane.f32.xlu0 %v2589_v9  ;;  %3181 = vadd.xlane.f32.xlu1 %v3180_v60  ;;  %v3195_v9 = vsel %vm1316_vm7, %v13799_v53, 0.0 }
0x1223   :  { %v11916_v57 = vpop.eup %9000 }
0x1224   :  { %v11922_v31 = vpop.eup %9002 }
0x1226   :  { %2596 = vadd.xlane.f32.xlu0 %v2595_v12  ;;  %3187 = vadd.xlane.f32.xlu1 %v3186_v2  ;;  %v13800_v2 = vld [vmem:[#allocation152_spill] sm:$0xff] }
0x1227   :  { %v11924_v63 = vpop.eup %9004  ;;  %8227 = vmatmul.mubr.msk.bf16.vlgmr.msra.gmra.mrb[124].mxu0 %vm1109_vm6, %v5210_v62  ;;  %v3786_v62 = vsel %vm1316_vm7, %v13800_v2, 0.0 }
0x1228   :  { %v11927_v39 = vpop.eup %9006  ;;  %v4993_v22 = vpack.c.bf16 %v11924_v63, %v11922_v31 }
0x1229   :  { %v4994_v38 = vpack.c.bf16 %v11927_v39, %v11916_v57 }
0x122a   :  { %3178 = vadd.xlane.f32.xlu0 %v3177_v8  ;;  %3769 = vadd.xlane.f32.xlu1 %v3768_v13 }
0x122b   :  { %8210 = vmatprep.mubr.msk.bf16.mxu1 %vm1316_vm7, %v4993_v22 }
0x122c   :  { %8211 = vmatmul.mubr.msk.bf16.vlgmr.msra.gmra.mrb[132].mxu1 %vm1316_vm7, %v4994_v38  ;;  %v13801_v38 = vld [vmem:[#allocation208_spill] sm:$0xff] }
0x122d   :  { %8235 = vmatpush3.bf16.xpose.msra.mxu1 %v5341_v23  ;;  %v13802_v23 = vld [vmem:[#allocation150_spill] sm:$0xff] }
0x122e   :  { %8371 = vmatprep.subr.msk.bf16.mxu1 %vm1109_vm6, %v11823_v46  ;;  %3184 = vadd.xlane.f32.xlu0 %v3183_v50  ;;  %v4359_v46 = vsel %vm1316_vm7, %v11597_v28, 0.0  ;;  %v2610_v28 = vsel %vm1316_vm7, %v13789_v56, 0.0  ;;  %v3777_v50 = vsel %vm1316_vm7, %v13802_v23, 0.0  ;;  %v13806_v56 = vld [vmem:[#allocation178_spill] sm:$0xff] }
0x122f   :  { %3775 = vadd.xlane.f32.xlu1 %v3774_v58 }
0x1232   :  { %3766 = vadd.xlane.f32.xlu0 %v3765_v4  ;;  %v13803_v4 = vld [vmem:[#allocation179_spill] sm:$0xff] }
0x1233   :  { %4357 = vadd.xlane.f32.xlu1 %v4356_v15  ;;  %v4368_v15 = vsel %vm1316_vm7, %v13803_v4, 0.0  ;;  %v4950_v4 = vsel %vm1316_vm7, %v11848_v20, 0.0  ;;  %v4941_v20 = vsel %vm1316_vm7, %v11837_v47, 0.0 }
0x1235   :  { %8237 = vmatpush3.bf16.xpose.msra.mxu1 %v5344_v43 }
0x1236   :  { %3772 = vadd.xlane.f32.xlu0 %v3771_v41  ;;  %v13804_v41 = vld [vmem:[#allocation149_spill] sm:$0xff] }
0x1237   :  { %4363 = vadd.xlane.f32.xlu1 %v4362_v7  ;;  %v3783_v7 = vsel %vm1316_vm7, %v13804_v41, 0.0  ;;  %v4944_v41 = vsel %vm1316_vm7, %v11835_v1, 0.0  ;;  %v4959_v1 = vsel %vm1316_vm7, %v11887_v45, 0.0 }
0x123a   :  { %4354 = vadd.xlane.f32.xlu0 %v4353_v52 }
0x123b   :  { %2017 = vadd.xlane.f32.xlu1 %v2016_v27  ;;  %v13805_v27 = vld [vmem:[#allocation180_spill] sm:$0xff] }
0x123e   :  { %4360 = vadd.xlane.f32.xlu0 %v4359_v46  ;;  %v4374_v46 = vsel %vm1316_vm7, %v13805_v27, 0.0  ;;  %v4956_v27 = vsel %vm1316_vm7, %v11896_v24, 0.0 }
0x123f   :  { %2023 = vadd.xlane.f32.xlu1 %v2022_v18 }
0x1242   :  { %2014 = vadd.xlane.f32.xlu0 %v2013_v25 }
0x1243   :  { %2605 = vadd.xlane.f32.xlu1 %v2604_v19 }
0x1246   :  { %2020 = vadd.xlane.f32.xlu0 %v2019_v34 }
0x1247   :  { %2611 = vadd.xlane.f32.xlu1 %v2610_v28  ;;  %v4365_v28 = vsel %vm1316_vm7, %v13806_v56, 0.0 }
0x124a   :  { %2602 = vadd.xlane.f32.xlu0 %v2601_v36  ;;  %v13807_v36 = vld [vmem:[#allocation72_spill] sm:$0xff] }
0x124b   :  { %3193 = vadd.xlane.f32.xlu1 %v3192_v49  ;;  %v2028_v61 = vsel %vm1316_vm7, %v13807_v36, 0.0  ;;  %v13820_v36 = vld [vmem:[#allocation79_spill] sm:$0xff] }
0x124d   :  { %v4886_v51 = vpop.xlane.xlu0 %4885 }
0x124e   :  { %2608 = vadd.xlane.f32.xlu0 %v2607_v17  ;;  %v4906_v5 = vsub.f32 %v13793_v29, %v4886_v51  ;;  %v4889_v0 = vpop.xlane.xlu1 %4888  ;;  %v13808_v29 = vld [vmem:[#allocation177_spill] sm:$0xff] }
0x124f   :  { %3199 = vadd.xlane.f32.xlu1 %v3198_v42  ;;  %v4907_v26 = vsub.f32 %v13796_v35, %v4889_v0  ;;  %v13809_v42 = vld [vmem:[#allocation73_spill] sm:$0xff] }
0x1250   :  { %v4935_v59 = vmul.f32 1.442695, %v4906_v5  ;;  %v4371_v5 = vsel %vm1316_vm7, %v13808_v29, 0.0  ;;  %v2034_v0 = vsel %vm1316_vm7, %v13809_v42, 0.0 }
0x1251   :  { %v5325_v37 = vpop.permute.xlu0 %5324  ;;  %v4937_v12 = vmul.f32 1.442695, %v4907_v26  ;;  %v13811_v26 = vld [vmem:[#allocation99_spill] sm:$0xff] }
0x1252   :  { %3190 = vadd.xlane.f32.xlu0 %v3189_v32  ;;  %8372 = vmatprep.subr.msk.bf16.mxu1 %vm1109_vm6, %v5325_v37  ;;  %v4883_v10 = vpop.xlane.xlu1 %4882  ;;  %v5347_v54 = vsel %vm1109_vm6, %v5325_v37, 0  ;;  %9008 = vpow2.f32 %v4935_v59  ;;  %v13810_v37 = vld [vmem:[#allocation71_spill] sm:$0xff]  ;;  %v2616_v33 = vsel %vm1316_vm7, %v13811_v26, 0.0 }
0x1253   :  { %3781 = vadd.xlane.f32.xlu1 %v3780_v6  ;;  %v4905_v21 = vsub.f32 %v13798_v16, %v4883_v10  ;;  %8239 = vmatpush3.bf16.xpose.msra.mxu1 %v5347_v54  ;;  %v2025_v59 = vsel %vm1316_vm7, %v13810_v37, 0.0  ;;  %v13812_v10 = vld [vmem:[#allocation70_spill] sm:$0xff]  ;;  %v13813_v16 = vld [vmem:[#allocation100_spill] sm:$0xff] }
0x1254   :  { %v2031_v54 = vsel %vm1316_vm7, %v13812_v10, 0.0 }
0x1255   :  { %v4933_v44 = vmul.f32 1.442695, %v4905_v21  ;;  %v5214_v60 = vpop.permute.xlu0 %5213  ;;  %v2622_v21 = vsel %vm1316_vm7, %v13813_v16, 0.0 }
0x1256   :  { %3196 = vadd.xlane.f32.xlu0 %v3195_v9  ;;  %v4892_v22 = vpop.xlane.xlu1 %4891  ;;  %v13814_v9 = vld [vmem:[#allocation98_spill] sm:$0xff] }
0x1257   :  { %9010 = vpow2.f32 %v4933_v44  ;;  %3787 = vadd.xlane.f32.xlu1 %v3786_v62  ;;  %v4908_v8 = vsub.f32 %v13801_v38, %v4892_v22  ;;  %v13816_v22 = vld [vmem:[#allocation97_spill] sm:$0xff] }
0x1258   :  { %9012 = vpow2.f32 %v4937_v12  ;;  %v13815_v12 = vld [vmem:[#allocation127_spill] sm:$0xff]  ;;  %v2619_v38 = vsel %vm1316_vm7, %v13816_v22, 0.0 }
0x1259   :  { %v4939_v13 = vmul.f32 1.442695, %v4908_v8  ;;  %v5313_v58 = vpop.permute.xlu0 %5312  ;;  %v3204_v2 = vsel %vm1316_vm7, %v13815_v12, 0.0  ;;  %v13817_v8 = vld [vmem:[#allocation128_spill] sm:$0xff] }
0x125a   :  { %3778 = vadd.xlane.f32.xlu0 %v3777_v50  ;;  %v5212_v43 = vpop.permute.xlu1 %5211  ;;  %v13818_v50 = vld [vmem:[#allocation126_spill] sm:$0xff] }
0x125b   :  { %9014 = vpow2.f32 %v4939_v13  ;;  %4369 = vadd.xlane.f32.xlu1 %v4368_v15  ;;  %8230 = vmatprep.mubr.msk.bf16.mxu0 %vm1109_vm6, %v5212_v43  ;;  %v3210_v13 = vsel %vm1316_vm7, %v13817_v8, 0.0  ;;  %v13819_v15 = vld [vmem:[#allocation125_spill] sm:$0xff] }
0x125c   :  { %8231 = vmatmul.mubr.msk.bf16.gmra.mrb[128].mxu0 %vm1109_vm6, %v5214_v60  ;;  %v12007_v19 = vpop.eup %9008  ;;  %v2613_v60 = vsel %vm1316_vm7, %v13814_v9, 0.0  ;;  %v3207_v43 = vsel %vm1316_vm7, %v13819_v15, 0.0 }
0x125d   :  { %v5317_v52 = vpop.permute.xlu0 %5316 }
0x125e   :  { %3784 = vadd.xlane.f32.xlu0 %v3783_v7  ;;  %v5327_v18 = vpop.permute.xlu1 %5326  ;;  %v4947_v7 = vsel %vm1316_vm7, %v11845_v55, 0.0  ;;  %v4953_v55 = vsel %vm1316_vm7, %v11889_v11, 0.0  ;;  %v13821_v11 = vld [vmem:[#allocation81_spill] sm:$0xff] }
0x125f   :  { %4375 = vadd.xlane.f32.xlu1 %v4374_v46  ;;  %8373 = vmatprep.subr.msk.bf16.mxu1 %vm1109_vm6, %v5327_v18  ;;  %v5350_v25 = vsel %vm1109_vm6, %v5327_v18, 0 }
0x1260   :  { %8241 = vmatpush3.bf16.xpose.msra.mxu1 %v5350_v25 }
0x1261   :  { %v12009_v34 = vpop.eup %9010  ;;  %v5586_v14 = vpop.permute.xlu0 %5585 }
0x1262   :  { %4366 = vadd.xlane.f32.xlu0 %v4365_v28  ;;  %8250 = vmatprep.subr.bf16.mxu0 %v5586_v14  ;;  %v5315_v49 = vpop.permute.xlu1 %5314  ;;  %v4995_v48 = vpack.c.bf16 %v12007_v19, %v12009_v34  ;;  %v12017_v17 = vpop.eup %9012 }
0x1263   :  { %2029 = vadd.xlane.f32.xlu1 %v2028_v61  ;;  %8251 = vmatpush3.bf16.msra.mxu0 %v5586_v14 }
0x1264   :  { %8214 = vmatprep.mubr.msk.bf16.mxu1 %vm1316_vm7, %v4995_v48 }
0x1265   :  { %v12020_v51 = vpop.eup %9014  ;;  %v5590_v30 = vpop.permute.xlu0 %5589 }
0x1266   :  { %4372 = vadd.xlane.f32.xlu0 %v4371_v5  ;;  %v5319_v40 = vpop.permute.xlu1 %5318  ;;  %v4996_v32 = vpack.c.bf16 %v12020_v51, %v12017_v17 }
0x1267   :  { %2035 = vadd.xlane.f32.xlu1 %v2034_v0 }
0x1268   :  { %8215 = vmatmul.mubr.msk.bf16.gmra.mrb[136].mxu1 %vm1316_vm7, %v4996_v32  ;;  %v13822_v32 = vld [vmem:[#allocation78_spill] sm:$0xff] }
0x1269   :  { %v12031_v35 = vpop.permute.xlu0 %5674  ;;  %8242 = vmatprep.mubr.msk.bf16.mxu1 %vm1109_vm6, %v5313_v58  ;;  %v3201_v58 = vsel %vm1316_vm7, %v13818_v50, 0.0 }
0x126a   :  { %2026 = vadd.xlane.f32.xlu0 %v2025_v59  ;;  %8302 = vmatprep.subr.bf16.mxu1 %v12031_v35  ;;  %v5588_v6 = vpop.permute.xlu1 %5587  ;;  %v13823_v59 = vld [vmem:[#allocation80_spill] sm:$0xff] }
0x126b   :  { %2617 = vadd.xlane.f32.xlu1 %v2616_v33  ;;  %8252 = vmatprep.subr.bf16.mxu0 %v5588_v6 }
0x126c   :  { %8253 = vmatpush3.bf16.msra.mxu0 %v5588_v6 }
0x126d   :  { %8254 = vmatprep.subr.bf16.mxu0 %v5590_v30  ;;  %v12041_v44 = vpop.permute.xlu0 %5676 }
0x126e   :  { %2032 = vadd.xlane.f32.xlu0 %v2031_v54  ;;  %v5592_v53 = vpop.permute.xlu1 %5591 }
0x126f   :  { %2623 = vadd.xlane.f32.xlu1 %v2622_v21 }
0x1270   :  { %8243 = vmatmul.mubr.msk.bf16.vlgmr.msra.gmra.mrb[140].mxu1 %vm1109_vm6, %v5315_v49  ;;  %8255 = vmatpush3.bf16.msra.mxu0 %v5590_v30 }
0x1271   :  { %8306 = vmatpush3.bf16.msra.mxu1 %v12031_v35  ;;  %8246 = vmatprep.mubr.msk.bf16.mxu1 %vm1109_vm6, %v5317_v52  ;;  %v12051_v62 = vpop.permute.xlu0 %5678  ;;  %v4962_v52 = vsel %vm1316_vm7, %v11899_v3, 0.0 }
0x1272   :  { %2614 = vadd.xlane.f32.xlu0 %v2613_v60  ;;  %8256 = vmatprep.subr.bf16.mxu0 %v5592_v53  ;;  %v12061_v23 = vpop.permute.xlu1 %5680  ;;  %v13824_v60 = vld [vmem:[#allocation106_spill] sm:$0xff] }
0x1273   :  { %8303 = vmatprep.subr.bf16.mxu1 %v12041_v44  ;;  %3205 = vadd.xlane.f32.xlu1 %v3204_v2  ;;  %v13825_v2 = vld [vmem:[#allocation108_spill] sm:$0xff] }
0x1274   :  { %8257 = vmatpush3.bf16.msra.mxu0 %v5592_v53 }
0x1275   :  { %8307 = vmatpush3.bf16.msra.mxu1 %v12041_v44  ;;  %8266 = vmatprep.subr.bf16.mxu0 %v12031_v35 }
0x1276   :  { %2620 = vadd.xlane.f32.xlu0 %v2619_v38  ;;  %8304 = vmatprep.subr.bf16.mxu1 %v12051_v62 }
0x1277   :  { %3211 = vadd.xlane.f32.xlu1 %v3210_v13 }
0x1278   :  { %8247 = vmatmul.mubr.msk.bf16.gmra.mrb[144].mxu1 %vm1109_vm6, %v5319_v40 }
0x1279   :  { %8308 = vmatpush3.bf16.msra.mxu1 %v12051_v62 }
0x127a   :  { %3202 = vadd.xlane.f32.xlu0 %v3201_v58  ;;  %8305 = vmatprep.subr.bf16.mxu1 %v12061_v23 }
0x127b   :  { %4951 = vadd.xlane.f32.xlu1 %v4950_v4  ;;  %v13826_v4 = vld [vmem:[#allocation105_spill] sm:$0xff] }
0x127d   :  { %8309 = vmatpush3.bf16.msra.mxu1 %v12061_v23 }
0x127e   :  { %3208 = vadd.xlane.f32.xlu0 %v3207_v43  ;;  %v13827_v43 = vld [vmem:[#allocation107_spill] sm:$0xff] }
0x127f   :  { %4945 = vadd.xlane.f32.xlu1 %v4944_v41 }
0x1282   :  { %4948 = vadd.xlane.f32.xlu0 %v4947_v7 }
0x1283   :  { %4963 = vadd.xlane.f32.xlu1 %v4962_v52 }
0x1286   :  { %4942 = vadd.xlane.f32.xlu0 %v4941_v20  ;;  %v13854_v20 = vld [vmem:[#allocation138_spill] sm:$0xff] }
0x1287   :  { %4957 = vadd.xlane.f32.xlu1 %v4956_v27 }
0x128a   :  { %4960 = vadd.xlane.f32.xlu0 %v4959_v1 }
0x128e   :  { %4954 = vadd.xlane.f32.xlu0 %v4953_v55  ;;  %v13828_v55 = vld [vmem:[#allocation134_spill] sm:$0xff] }
0x12a3   :  { %v2003_v46 = vpop.xlane.xlu0 %2002  ;;  %v2006_v18 = vpop.xlane.xlu1 %2005 }
0x12a4   :  { %9016 = vrcp.f32 %v2003_v46 }
0x12a5   :  { %9018 = vrcp.f32 %v2006_v18  ;;  %v13829_v18 = vld [vmem:[#allocation136_spill] sm:$0xff] }
0x12a7   :  { %v2009_v3 = vpop.xlane.xlu0 %2008  ;;  %v2594_v25 = vpop.xlane.xlu1 %2593 }
0x12a8   :  { %9020 = vrcp.f32 %v2009_v3 }
0x12ab   :  { %v2012_v47 = vpop.xlane.xlu0 %2011  ;;  %v2600_v56 = vpop.xlane.xlu1 %2599 }
0x12ac   :  { %9022 = vrcp.f32 %v2012_v47 }
0x12ad   :  { %9024 = vrcp.f32 %v2594_v25 }
0x12ae   :  { %v9017_v24 = vpop.eup %9016 }
0x12af   :  { %v9019_v28 = vpop.eup %9018  ;;  %v2591_v14 = vpop.xlane.xlu0 %2590  ;;  %v12087_v61 = vmul.f32 %v9017_v24, %v13820_v36  ;;  %v13831_v36 = vld [vmem:[#allocation135_spill] sm:$0xff] }
0x12b0   :  { %v3182_v45 = vpop.xlane.xlu1 %3181  ;;  %9026 = vrcp.f32 %v2591_v14  ;;  %v12090_v49 = vmul.f32 %v9019_v28, %v13821_v11  ;;  %v13830_v14 = vld [vmem:[#allocation133_spill] sm:$0xff] }
0x12b1   :  { %9028 = vrcp.f32 %v2600_v56 }
0x12b2   :  { %v9021_v30 = vpop.eup %9020 }
0x12b3   :  { %v2597_v29 = vpop.xlane.xlu0 %2596  ;;  %v12097_v37 = vmul.f32 %v9021_v30, %v13822_v32  ;;  %v13832_v32 = vld [vmem:[#allocation162_spill] sm:$0xff]  ;;  %v13850_v30 = vld [vmem:[#allocation109_spill] sm:$0xff] }
0x12b4   :  { %v3188_v5 = vpop.xlane.xlu1 %3187  ;;  %9030 = vrcp.f32 %v2597_v29 }
0x12b5   :  { %9032 = vrcp.f32 %v3182_v45 }
0x12b6   :  { %v9023_v42 = vpop.eup %9022 }
0x12b7   :  { %v3179_v0 = vpop.xlane.xlu0 %3178  ;;  %v12094_v40 = vpop.f32.mrb[116].mxu0  ;;  %v12100_v26 = vmul.f32 %v9023_v42, %v13823_v59 }
0x12b8   :  { %v9025_v33 = vpop.eup %9024  ;;  %9034 = vrcp.f32 %v3179_v0  ;;  %v3770_v6 = vpop.xlane.xlu1 %3769 }
0x12b9   :  { %v12102_v10 = vpop.f32.mrb[117].mxu0  ;;  %9036 = vrcp.f32 %v3188_v5  ;;  %v12114_v22 = vmul.f32 %v9025_v33, %v13825_v2  ;;  %v13833_v33 = vld [vmem:[#allocation164_spill] sm:$0xff] }
0x12ba   :  { %v12104_v54 = vpop.f32.mrb[118].mxu0  ;;  %v9027_v21 = vpop.eup %9026 }
0x12bb   :  { %v12108_v53 = vpop.f32.mrb[119].mxu0  ;;  %v3185_v9 = vpop.xlane.xlu0 %3184  ;;  %v12111_v12 = vmul.f32 %v9027_v21, %v13824_v60 }
0x12bc   :  { %v9029_v38 = vpop.eup %9028  ;;  %9038 = vrcp.f32 %v3185_v9  ;;  %v3776_v8 = vpop.xlane.xlu1 %3775 }
0x12bd   :  { %9040 = vrcp.f32 %v3770_v6  ;;  %v12122_v41 = vmul.f32 %v9029_v38, %v13827_v43 }
0x12be   :  { %v9031_v50 = vpop.eup %9030 }
0x12bf   :  { %v3767_v58 = vpop.xlane.xlu0 %3766  ;;  %v12119_v15 = vmul.f32 %v9031_v50, %v13826_v4  ;;  %v9033_v7 = vpop.eup %9032 }
0x12c0   :  { %9042 = vrcp.f32 %v3767_v58  ;;  %v4358_v52 = vpop.xlane.xlu1 %4357  ;;  %v12130_v3 = vmul.f32 %v9033_v7, %v13829_v18  ;;  %v13835_v58 = vld [vmem:[#allocation163_spill] sm:$0xff] }
0x12c1   :  { %9044 = vrcp.f32 %v3776_v8  ;;  %v13834_v8 = vld [vmem:[#allocation161_spill] sm:$0xff] }
0x12c2   :  { %v9035_v27 = vpop.eup %9034 }
0x12c3   :  { %v3773_v1 = vpop.xlane.xlu0 %3772  ;;  %v12127_v46 = vmul.f32 %v9035_v27, %v13828_v55  ;;  %v9037_v25 = vpop.eup %9036  ;;  %v13836_v55 = vld [vmem:[#allocation190_spill] sm:$0xff] }
0x12c4   :  { %9046 = vrcp.f32 %v3773_v1  ;;  %v4364_v47 = vpop.xlane.xlu1 %4363  ;;  %v12138_v11 = vmul.f32 %v9037_v25, %v13831_v36  ;;  %v13837_v25 = vld [vmem:[#allocation192_spill] sm:$0xff] }
0x12c5   :  { %9048 = vrcp.f32 %v4358_v52 }
0x12c6   :  { %v9039_v24 = vpop.eup %9038 }
0x12c7   :  { %v4355_v28 = vpop.xlane.xlu0 %4354  ;;  %v12135_v45 = vmul.f32 %v9039_v24, %v13830_v14  ;;  %v9041_v29 = vpop.eup %9040  ;;  %v13858_v14 = vld [vmem:[#allocation137_spill] sm:$0xff] }
0x12c8   :  { %9050 = vrcp.f32 %v4355_v28  ;;  %v2018_v5 = vpop.xlane.xlu1 %2017  ;;  %v12146_v6 = vmul.f32 %v9041_v29, %v13833_v33 }
0x12c9   :  { %9052 = vrcp.f32 %v4364_v47 }
0x12ca   :  { %v9043_v42 = vpop.eup %9042 }
0x12cb   :  { %v4361_v0 = vpop.xlane.xlu0 %4360  ;;  %v12143_v59 = vmul.f32 %v9043_v42, %v13832_v32  ;;  %v9045_v21 = vpop.eup %9044 }
0x12cc   :  { %9054 = vrcp.f32 %v4361_v0  ;;  %v2024_v9 = vpop.xlane.xlu1 %2023  ;;  %v12154_v4 = vmul.f32 %v9045_v21, %v13835_v58  ;;  %v13840_v0 = vld [vmem:[#allocation191_spill] sm:$0xff] }
0x12cd   :  { %9056 = vrcp.f32 %v2018_v5  ;;  %v13838_v5 = vld [vmem:[#allocation189_spill] sm:$0xff] }
0x12ce   :  { %v9047_v2 = vpop.eup %9046 }
0x12cf   :  { %v2015_v38 = vpop.xlane.xlu0 %2014  ;;  %v12151_v50 = vmul.f32 %v9047_v2, %v13834_v8  ;;  %v9049_v43 = vpop.eup %9048  ;;  %v13842_v8 = vld [vmem:[#allocation83_spill] sm:$0xff] }
0x12d0   :  { %9058 = vrcp.f32 %v2015_v38  ;;  %v2606_v7 = vpop.xlane.xlu1 %2605  ;;  %v12162_v47 = vmul.f32 %v9049_v43, %v13837_v25  ;;  %v13843_v43 = vld [vmem:[#allocation85_spill] sm:$0xff] }
0x12d1   :  { %9060 = vrcp.f32 %v2024_v9 }
0x12d2   :  { %v9051_v27 = vpop.eup %9050 }
0x12d3   :  { %v2021_v1 = vpop.xlane.xlu0 %2020  ;;  %v12159_v18 = vmul.f32 %v9051_v27, %v13836_v55  ;;  %v9053_v24 = vpop.eup %9052 }
0x12d4   :  { %9062 = vrcp.f32 %v2021_v1  ;;  %v2612_v28 = vpop.xlane.xlu1 %2611  ;;  %v12170_v32 = vmul.f32 %v9053_v24, %v13840_v0 }
0x12d5   :  { %9064 = vrcp.f32 %v2606_v7 }
0x12d6   :  { %v9055_v36 = vpop.eup %9054  ;;  %13841 = vst [vmem:[#allocation95_spill] sm:$0xff] %v12170_v32 }
0x12d7   :  { %v2603_v29 = vpop.xlane.xlu0 %2602  ;;  %v12167_v42 = vmul.f32 %v9055_v36, %v13838_v5  ;;  %v9057_v33 = vpop.eup %9056  ;;  %v13844_v36 = vld [vmem:[#allocation82_spill] sm:$0xff] }
0x12d8   :  { %9066 = vrcp.f32 %v2603_v29  ;;  %v3194_v21 = vpop.xlane.xlu1 %3193  ;;  %v12178_v7 = vmul.f32 %v9057_v33, %v13843_v43  ;;  %v13848_v43 = vld [vmem:[#allocation110_spill] sm:$0xff] }
0x12d9   :  { %13839 = vst [vmem:[#allocation96_spill] sm:$0xff] %v12167_v42  ;;  %9068 = vrcp.f32 %v2612_v28  ;;  %v13846_v28 = vld [vmem:[#allocation84_spill] sm:$0xff] }
0x12da   :  { %v9059_v2 = vpop.eup %9058 }
0x12db   :  { %v2609_v38 = vpop.xlane.xlu0 %2608  ;;  %v12175_v58 = vmul.f32 %v9059_v2, %v13842_v8  ;;  %v9061_v27 = vpop.eup %9060 }
0x12dc   :  { %9070 = vrcp.f32 %v2609_v38  ;;  %v3200_v1 = vpop.xlane.xlu1 %3199  ;;  %v12186_v5 = vmul.f32 %v9061_v27, %v13846_v28 }
0x12dd   :  { %9072 = vrcp.f32 %v3194_v21  ;;  %v13849_v21 = vld [vmem:[#allocation112_spill] sm:$0xff] }
0x12de   :  { %v9063_v25 = vpop.eup %9062  ;;  %13847 = vst [vmem:[#allocation94_spill] sm:$0xff] %v12186_v5 }
0x12df   :  { %v3191_v24 = vpop.xlane.xlu0 %3190  ;;  %v12183_v29 = vmul.f32 %v9063_v25, %v13844_v36  ;;  %v9065_v0 = vpop.eup %9064 }
0x12e0   :  { %9074 = vrcp.f32 %v3191_v24  ;;  %v3782_v2 = vpop.xlane.xlu1 %3781  ;;  %v12194_v52 = vmul.f32 %v9065_v0, %v13849_v21 }
0x12e1   :  { %13845 = vst [vmem:[#allocation123_spill] sm:$0xff] %v12183_v29  ;;  %9076 = vrcp.f32 %v3200_v1  ;;  %v13852_v1 = vld [vmem:[#allocation111_spill] sm:$0xff] }
0x12e2   :  { %v9067_v38 = vpop.eup %9066 }
0x12e3   :  { %v3197_v8 = vpop.xlane.xlu0 %3196  ;;  %v12191_v9 = vmul.f32 %v9067_v38, %v13848_v43  ;;  %v9069_v25 = vpop.eup %9068 }
0x12e4   :  { %9078 = vrcp.f32 %v3197_v8  ;;  %v3788_v36 = vpop.xlane.xlu1 %3787  ;;  %v12202_v55 = vmul.f32 %v9069_v25, %v13852_v1 }
0x12e5   :  { %9080 = vrcp.f32 %v3782_v2  ;;  %v13856_v2 = vld [vmem:[#allocation140_spill] sm:$0xff] }
0x12e6   :  { %v9071_v24 = vpop.eup %9070  ;;  %13853 = vst [vmem:[#allocation124_spill] sm:$0xff] %v12202_v55 }
0x12e7   :  { %v3779_v28 = vpop.xlane.xlu0 %3778  ;;  %v12199_v33 = vmul.f32 %v9071_v24, %v13850_v30  ;;  %v9073_v38 = vpop.eup %9072 }
0x12e8   :  { %9082 = vrcp.f32 %v3779_v28  ;;  %v4370_v43 = vpop.xlane.xlu1 %4369  ;;  %v12210_v13 = vmul.f32 %v9073_v38, %v13856_v2 }
0x12e9   :  { %13851 = vst [vmem:[#allocation205_spill] sm:$0xff] %v12199_v33  ;;  %9084 = vrcp.f32 %v3788_v36  ;;  %v13860_v36 = vld [vmem:[#allocation139_spill] sm:$0xff] }
0x12ea   :  { %v9075_v8 = vpop.eup %9074  ;;  %13857 = vst [vmem:[#allocation206_spill] sm:$0xff] %v12210_v13 }
0x12eb   :  { %v3785_v21 = vpop.xlane.xlu0 %3784  ;;  %v12207_v27 = vmul.f32 %v9075_v8, %v13854_v20  ;;  %v9077_v30 = vpop.eup %9076 }
0x12ec   :  { %9086 = vrcp.f32 %v3785_v21  ;;  %v4376_v24 = vpop.xlane.xlu1 %4375  ;;  %v12218_v16 = vmul.f32 %v9077_v30, %v13860_v36 }
0x12ed   :  { %13855 = vst [vmem:[#allocation122_spill] sm:$0xff] %v12207_v27  ;;  %9088 = vrcp.f32 %v4370_v43  ;;  %v13862_v43 = vld [vmem:[#allocation166_spill] sm:$0xff] }
0x12ee   :  { %v9079_v28 = vpop.eup %9078  ;;  %13861 = vst [vmem:[#allocation207_spill] sm:$0xff] %v12218_v16  ;;  %v13866_v16 = vld [vmem:[#allocation165_spill] sm:$0xff] }
0x12ef   :  { %v4367_v1 = vpop.xlane.xlu0 %4366  ;;  %v12215_v0 = vmul.f32 %v9079_v28, %v13858_v14  ;;  %v9081_v20 = vpop.eup %9080  ;;  %v13864_v14 = vld [vmem:[#allocation168_spill] sm:$0xff] }
0x12f0   :  { %9090 = vrcp.f32 %v4367_v1  ;;  %v2030_v8 = vpop.xlane.xlu1 %2029  ;;  %v12230_v28 = vmul.f32 %v9081_v20, %v13864_v14 }
0x12f1   :  { %13859 = vst [vmem:[#allocation151_spill] sm:$0xff] %v12215_v0  ;;  %9092 = vrcp.f32 %v4376_v24 }
0x12f2   :  { %v9083_v21 = vpop.eup %9082  ;;  %v12222_v2 = vpop.f32.mrb[120].mxu0  ;;  %13865 = vst [vmem:[#allocation152_spill] sm:$0xff] %v12230_v28 }
0x12f3   :  { %v4373_v25 = vpop.xlane.xlu0 %4372  ;;  %v12224_v60 = vpop.f32.mrb[121].mxu0  ;;  %v12227_v56 = vmul.f32 %v9083_v21, %v13862_v43  ;;  %v13868_v21 = vld [vmem:[#allocation167_spill] sm:$0xff] }
0x12f4   :  { %v9085_v30 = vpop.eup %9084  ;;  %9094 = vrcp.f32 %v4373_v25  ;;  %v12232_v1 = vpop.f32.mrb[122].mxu0 }
0x12f5   :  { %13863 = vst [vmem:[#allocation121_spill] sm:$0xff] %v12227_v56  ;;  %v2036_v36 = vpop.xlane.xlu1 %2035  ;;  %v12234_v48 = vpop.f32.mrb[123].mxu0  ;;  %9096 = vrcp.f32 %v2030_v8  ;;  %v12242_v43 = vmul.f32 %v9085_v30, %v13868_v21  ;;  %v13870_v56 = vld [vmem:[#allocation194_spill] sm:$0xff] }
0x12f6   :  { %v9087_v38 = vpop.eup %9086 }
0x12f7   :  { %v2027_v0 = vpop.xlane.xlu0 %2026  ;;  %v12239_v33 = vmul.f32 %v9087_v38, %v13866_v16  ;;  %13869 = vst [vmem:[#allocation150_spill] sm:$0xff] %v12242_v43  ;;  %v9089_v20 = vpop.eup %9088  ;;  %v13872_v16 = vld [vmem:[#allocation196_spill] sm:$0xff] }
0x12f8   :  { %9098 = vrcp.f32 %v2027_v0  ;;  %v12252_v38 = vmul.f32 %v9089_v20, %v13872_v16 }
0x12f9   :  { %13867 = vst [vmem:[#allocation208_spill] sm:$0xff] %v12239_v33  ;;  %v2618_v25 = vpop.xlane.xlu1 %2617  ;;  %9100 = vrcp.f32 %v2036_v36 }
0x12fa   :  { %v9091_v55 = vpop.eup %9090  ;;  %v8228_v29 = vpop.f32.mrb[124].mxu0  ;;  %13873 = vst [vmem:[#allocation149_spill] sm:$0xff] %v12252_v38 }
0x12fb   :  { %v12246_v5 = vmul.f32 0.5, %v8228_v29  ;;  %v2033_v24 = vpop.xlane.xlu0 %2032  ;;  %v5281_v8 = vpop.f32.mrb[125].mxu0  ;;  %v12249_v28 = vmul.f32 %v9091_v55, %v13870_v56  ;;  %v13882_v29 = vld [vmem:[#allocation87_spill] sm:$0xff] }
0x12fc   :  { %v9093_v30 = vpop.eup %9092  ;;  %9102 = vrcp.f32 %v2033_v24  ;;  %v8229_v0 = vpop.f32.mrb[126].mxu0  ;;  %v12254_v42 = vmul.f32 0.5, %v5281_v8  ;;  %v13875_v24 = vld [vmem:[#allocation193_spill] sm:$0xff]  ;;  %v13877_v8 = vld [vmem:[#allocation195_spill] sm:$0xff] }
0x12fd   :  { %13871 = vst [vmem:[#allocation179_spill] sm:$0xff] %v12249_v28  ;;  %v2624_v21 = vpop.xlane.xlu1 %2623  ;;  %v5284_v14 = vpop.f32.mrb[127].mxu0  ;;  %v5439_v36 = vsel %vm1316_vm7, %v12246_v5, -inf  ;;  %9104 = vrcp.f32 %v2618_v25  ;;  %v12268_v43 = vmul.f32 %v9093_v30, %v13877_v8  ;;  %v13886_v28 = vld [vmem:[#allocation155_spill] sm:$0xff] }
0x12fe   :  { %v9095_v33 = vpop.eup %9094  ;;  %v12260_v56 = vmul.f32 0.5, %v5284_v14  ;;  %5440 = vmax.xlane.f32.xlu0 %v5439_v36  ;;  %v12274_v14 = vmul.f32 0.5, %v8229_v0  ;;  %v13884_v0 = vld [vmem:[#allocation89_spill] sm:$0xff]  ;;  %v3792_v38 = vsel %vm1316_vm7, %v13886_v28, 0.0 }
0x12ff   :  { %v2615_v55 = vpop.xlane.xlu0 %2614  ;;  %v12262_v20 = vpop.f32.mrb[132].mxu1  ;;  %v12265_v16 = vmul.f32 %v9095_v33, %v13875_v24  ;;  %13878 = vst [vmem:[#allocation72_spill] sm:$0xff] %v12268_v43  ;;  %v5433_v33 = vsel %vm1316_vm7, %v12254_v42, -inf }
0x1300   :  { %13874 = vst [vmem:[#allocation180_spill] sm:$0xff] %v12262_v20  ;;  %v9097_v32 = vpop.eup %9096  ;;  %9106 = vrcp.f32 %v2615_v55  ;;  %v12270_v27 = vpop.f32.mrb[133].mxu1  ;;  %v5436_v25 = vsel %vm1316_vm7, %v12260_v56, -inf }
0x1301   :  { %13876 = vst [vmem:[#allocation178_spill] sm:$0xff] %v12265_v16  ;;  %13879 = vst [vmem:[#allocation177_spill] sm:$0xff] %v12270_v27  ;;  %v3206_v13 = vpop.xlane.xlu1 %3205  ;;  %v12276_v36 = vpop.f32.mrb[134].mxu1  ;;  %5437 = vmax.xlane.f32.xlu1 %v5436_v25  ;;  %9108 = vrcp.f32 %v2624_v21  ;;  %v12288_v27 = vmul.f32 %v9097_v32, %v13884_v0  ;;  %v5442_v21 = vsel %vm1316_vm7, %v12274_v14, -inf  ;;  %v13889_v0 = vld [vmem:[#allocation88_spill] sm:$0xff] }
0x1302   :  { %13880 = vst [vmem:[#allocation73_spill] sm:$0xff] %v12276_v36  ;;  %v9099_v24 = vpop.eup %9098  ;;  %v12282_v55 = vpop.f32.mrb[135].mxu1  ;;  %5434 = vmax.xlane.f32.xlu0 %v5433_v33  ;;  %v13891_v33 = vld [vmem:[#allocation114_spill] sm:$0xff] }
0x1303   :  { %13881 = vst [vmem:[#allocation71_spill] sm:$0xff] %v12282_v55  ;;  %v2621_v8 = vpop.xlane.xlu0 %2620  ;;  %v12285_v20 = vmul.f32 %v9099_v24, %v13882_v29  ;;  %13885 = vst [vmem:[#allocation70_spill] sm:$0xff] %v12288_v27  ;;  %v9101_v36 = vpop.eup %9100  ;;  %v13887_v24 = vld [vmem:[#allocation86_spill] sm:$0xff]  ;;  %v13895_v27 = vld [vmem:[#allocation113_spill] sm:$0xff] }
0x1304   :  { %9110 = vrcp.f32 %v2621_v8  ;;  %v12300_v8 = vmul.f32 %v9101_v36, %v13889_v0 }
0x1305   :  { %13883 = vst [vmem:[#allocation99_spill] sm:$0xff] %v12285_v20  ;;  %v3212_v25 = vpop.xlane.xlu1 %3211  ;;  %3793 = vadd.xlane.f32.xlu1 %v3792_v38  ;;  %9112 = vrcp.f32 %v3206_v13  ;;  %v13893_v13 = vld [vmem:[#allocation116_spill] sm:$0xff] }
0x1306   :  { %v9103_v30 = vpop.eup %9102  ;;  %5443 = vmax.xlane.f32.xlu0 %v5442_v21  ;;  %13890 = vst [vmem:[#allocation98_spill] sm:$0xff] %v12300_v8  ;;  %v13899_v8 = vld [vmem:[#allocation142_spill] sm:$0xff] }
0x1307   :  { %v3203_v29 = vpop.xlane.xlu0 %3202  ;;  %v12297_v32 = vmul.f32 %v9103_v30, %v13887_v24  ;;  %v9105_v55 = vpop.eup %9104 }
0x1308   :  { %9114 = vrcp.f32 %v3203_v29  ;;  %v12308_v21 = vmul.f32 %v9105_v55, %v13893_v13 }
0x1309   :  { %13888 = vst [vmem:[#allocation100_spill] sm:$0xff] %v12297_v32  ;;  %v4952_v28 = vpop.xlane.xlu1 %4951  ;;  %9116 = vrcp.f32 %v3212_v25  ;;  %v13897_v25 = vld [vmem:[#allocation115_spill] sm:$0xff] }
0x130a   :  { %v9107_v16 = vpop.eup %9106  ;;  %13894 = vst [vmem:[#allocation97_spill] sm:$0xff] %v12308_v21  ;;  %v13903_v21 = vld [vmem:[#allocation141_spill] sm:$0xff] }
0x130b   :  { %v3209_v43 = vpop.xlane.xlu0 %3208  ;;  %v12305_v20 = vmul.f32 %v9107_v16, %v13891_v33  ;;  %v9109_v30 = vpop.eup %9108 }
0x130c   :  { %9118 = vrcp.f32 %v3209_v43  ;;  %v12316_v32 = vmul.f32 %v9109_v30, %v13897_v25 }
0x130d   :  { %13892 = vst [vmem:[#allocation127_spill] sm:$0xff] %v12305_v20  ;;  %v4946_v24 = vpop.xlane.xlu1 %4945  ;;  %9120 = vrcp.f32 %v4952_v28  ;;  %v13901_v28 = vld [vmem:[#allocation144_spill] sm:$0xff] }
0x130e   :  { %v9111_v29 = vpop.eup %9110  ;;  %13898 = vst [vmem:[#allocation126_spill] sm:$0xff] %v12316_v32 }
0x130f   :  { %v4949_v0 = vpop.xlane.xlu0 %4948  ;;  %v12313_v38 = vmul.f32 %v9111_v29, %v13895_v27  ;;  %v9113_v16 = vpop.eup %9112 }
0x1310   :  { %9122 = vrcp.f32 %v4949_v0  ;;  %v12324_v20 = vmul.f32 %v9113_v16, %v13901_v28 }
0x1311   :  { %13896 = vst [vmem:[#allocation128_spill] sm:$0xff] %v12313_v38  ;;  %v4964_v33 = vpop.xlane.xlu1 %4963  ;;  %9124 = vrcp.f32 %v4946_v24  ;;  %v13905_v24 = vld [vmem:[#allocation143_spill] sm:$0xff] }
0x1312   :  { %v9115_v43 = vpop.eup %9114  ;;  %13902 = vst [vmem:[#allocation79_spill] sm:$0xff] %v12324_v20  ;;  %v13914_v20 = vld [vmem:[#allocation156_spill] sm:$0xff] }
0x1313   :  { %v4943_v13 = vpop.xlane.xlu0 %4942  ;;  %v12321_v36 = vmul.f32 %v9115_v43, %v13899_v8  ;;  %v9117_v27 = vpop.eup %9116 }
0x1314   :  { %9126 = vrcp.f32 %v4943_v13  ;;  %v12332_v38 = vmul.f32 %v9117_v27, %v13905_v24 }
0x1315   :  { %13900 = vst [vmem:[#allocation125_spill] sm:$0xff] %v12321_v36  ;;  %9128 = vrcp.f32 %v4964_v33  ;;  %v4958_v0 = vpop.xlane.xlu1 %4957 }
0x1316   :  { %v9119_v29 = vpop.eup %9118  ;;  %13906 = vst [vmem:[#allocation78_spill] sm:$0xff] %v12332_v38 }
0x1317   :  { %v4961_v25 = vpop.xlane.xlu0 %4960  ;;  %v12329_v55 = vmul.f32 %v9119_v29, %v13903_v21  ;;  %v9121_v8 = vpop.eup %9120 }
0x1318   :  { %9130 = vrcp.f32 %v4961_v25  ;;  %v12340_v33 = vmul.f32 %v9121_v8, %v12104_v54 }
0x1319   :  { %13904 = vst [vmem:[#allocation81_spill] sm:$0xff] %v12329_v55  ;;  %9132 = vrcp.f32 %v4958_v0 }
0x131a   :  { %v9123_v43 = vpop.eup %9122 }
0x131b   :  { %v4955_v13 = vpop.xlane.xlu0 %4954  ;;  %v12337_v28 = vmul.f32 %v9123_v43, %v12094_v40  ;;  %v9125_v30 = vpop.eup %9124 }
0x131c   :  { %9134 = vrcp.f32 %v4955_v13  ;;  %v12348_v25 = vmul.f32 %v9125_v30, %v12108_v53 }
0x131e   :  { %v9127_v27 = vpop.eup %9126 }
0x131f   :  { %v12345_v29 = vmul.f32 %v9127_v27, %v12102_v10  ;;  %v9129_v0 = vpop.eup %9128 }
0x1320   :  { %v12356_v8 = vmul.f32 %v9129_v0, %v12232_v1 }
0x1322   :  { %v9131_v24 = vpop.eup %9130  ;;  %13908 = vst [vmem:[#allocation106_spill] sm:$0xff] %v12356_v8 }
0x1323   :  { %v12353_v54 = vmul.f32 %v9131_v24, %v12222_v2  ;;  %v9133_v43 = vpop.eup %9132 }
0x1324   :  { %v12364_v53 = vmul.f32 %v9133_v43, %v12234_v48 }
0x1325   :  { %13907 = vst [vmem:[#allocation80_spill] sm:$0xff] %v12353_v54 }
0x1326   :  { %v9135_v10 = vpop.eup %9134 }
0x1327   :  { %v12361_v27 = vmul.f32 %v9135_v10, %v12224_v60 }
0x132f   :  { %v8232_v16 = vpop.f32.mrb[128].mxu0 }
0x1330   :  { %v12368_v2 = vmul.f32 0.5, %v8232_v16  ;;  %v5297_v24 = vpop.f32.mrb[129].mxu0 }
0x1331   :  { %v8233_v1 = vpop.f32.mrb[130].mxu0  ;;  %v12370_v0 = vmul.f32 0.5, %v5297_v24  ;;  %v13909_v24 = vld [vmem:[#allocation154_spill] sm:$0xff] }
0x1332   :  { %v12372_v21 = vmul.f32 0.5, %v8233_v1  ;;  %v5300_v13 = vpop.f32.mrb[131].mxu0  ;;  %v5451_v60 = vsel %vm1316_vm7, %v12368_v2, -inf  ;;  %v3789_v1 = vsel %vm1316_vm7, %v13909_v24, 0.0 }
0x1333   :  { %5452 = vmax.xlane.f32.xlu0 %v5451_v60  ;;  %v12376_v10 = vmul.f32 0.5, %v5300_v13  ;;  %v5445_v16 = vsel %vm1316_vm7, %v12370_v0, -inf }
0x1334   :  { %v5454_v48 = vsel %vm1316_vm7, %v12372_v21, -inf }
0x1335   :  { %5455 = vmax.xlane.f32.xlu1 %v5454_v48  ;;  %v5448_v43 = vsel %vm1316_vm7, %v12376_v10, -inf }
0x1337   :  { %5446 = vmax.xlane.f32.xlu0 %v5445_v16 }
0x1339   :  { %5449 = vmax.xlane.f32.xlu1 %v5448_v43 }
0x133b   :  { %v12386_v30 = vpop.f32.mrb[136].mxu1  ;;  %3790 = vadd.xlane.f32.xlu0 %v3789_v1 }
0x133c   :  { %13910 = vst [vmem:[#allocation108_spill] sm:$0xff] %v12386_v30  ;;  %v12388_v13 = vpop.f32.mrb[137].mxu1 }
0x133d   :  { %13911 = vst [vmem:[#allocation105_spill] sm:$0xff] %v12388_v13  ;;  %v12390_v60 = vpop.f32.mrb[138].mxu1 }
0x133e   :  { %13912 = vst [vmem:[#allocation107_spill] sm:$0xff] %v12390_v60  ;;  %v12392_v40 = vpop.f32.mrb[139].mxu1  ;;  %v3798_v60 = vsel %vm1316_vm7, %v13914_v20, 0.0 }
0x133f   :  { %13913 = vst [vmem:[#allocation134_spill] sm:$0xff] %v12392_v40  ;;  %v13915_v40 = vld [vmem:[#allocation153_spill] sm:$0xff] }
0x1343   :  { %v8244_v48 = vpop.f32.mrb[140].mxu1 }
0x1344   :  { %v12394_v55 = vmul.f32 0.5, %v8244_v48  ;;  %v5386_v16 = vpop.f32.mrb[141].mxu1 }
0x1345   :  { %v12396_v38 = vmul.f32 0.5, %v5386_v16  ;;  %v8245_v32 = vpop.f32.mrb[142].mxu1  ;;  %v3795_v16 = vsel %vm1316_vm7, %v13915_v40, 0.0 }
0x1346   :  { %v5389_v43 = vpop.f32.mrb[143].mxu1  ;;  %v5463_v24 = vsel %vm1316_vm7, %v12394_v55, -inf  ;;  %v12402_v36 = vmul.f32 0.5, %v8245_v32 }
0x1347   :  { %5464 = vmax.xlane.f32.xlu1 %v5463_v24  ;;  %v5457_v1 = vsel %vm1316_vm7, %v12396_v38, -inf  ;;  %v12412_v24 = vmul.f32 0.5, %v5389_v43 }
0x1348   :  { %5458 = vmax.xlane.f32.xlu0 %v5457_v1  ;;  %v5466_v32 = vsel %vm1316_vm7, %v12402_v36, -inf }
0x1349   :  { %v5460_v40 = vsel %vm1316_vm7, %v12412_v24, -inf }
0x134b   :  { %3799 = vadd.xlane.f32.xlu1 %v3798_v60  ;;  %v8248_v48 = vpop.f32.mrb[144].mxu1 }
0x134c   :  { %3796 = vadd.xlane.f32.xlu0 %v3795_v16  ;;  %v5402_v30 = vpop.f32.mrb[145].mxu1  ;;  %v12420_v60 = vmul.f32 0.5, %v8248_v48  ;;  %v13918_v16 = vld [vmem:[#allocation181_spill] sm:$0xff] }
0x134d   :  { %v12408_v13 = vmul.f32 0.5, %v5402_v30  ;;  %v12410_v54 = vpop.f32.mrb[146].mxu1  ;;  %v13917_v30 = vld [vmem:[#allocation182_spill] sm:$0xff] }
0x134e   :  { %v12414_v8 = vpop.f32.mrb[147].mxu1  ;;  %v4377_v43 = vsel %vm1316_vm7, %v13917_v30, 0.0  ;;  %v5475_v1 = vsel %vm1316_vm7, %v12420_v60, -inf }
0x134f   :  { %13916 = vst [vmem:[#allocation136_spill] sm:$0xff] %v12408_v13  ;;  %5467 = vmax.xlane.f32.xlu1 %v5466_v32  ;;  %v5469_v20 = vsel %vm1316_vm7, %v12408_v13, -inf  ;;  %v4383_v32 = vsel %vm1316_vm7, %v13918_v16, 0.0  ;;  %v13919_v13 = vld [vmem:[#allocation183_spill] sm:$0xff] }
0x1350   :  { %5470 = vmax.xlane.f32.xlu0 %v5469_v20  ;;  %v4380_v48 = vsel %vm1316_vm7, %v13919_v13, 0.0  ;;  %v4965_v20 = vsel %vm1316_vm7, %v11922_v31, 0.0  ;;  %v13921_v16 = vld [vmem:[#allocation75_spill] sm:$0xff]  ;;  %v4974_v31 = vsel %vm1316_vm7, %v11927_v39, 0.0 }
0x1351   :  { %v2037_v13 = vsel %vm1316_vm7, %v13921_v16, 0.0  ;;  %v13927_v16 = vld [vmem:[#allocation101_spill] sm:$0xff] }
0x1353   :  { %5461 = vmax.xlane.f32.xlu1 %v5460_v40  ;;  %v13920_v40 = vld [vmem:[#allocation184_spill] sm:$0xff] }
0x1354   :  { %4378 = vadd.xlane.f32.xlu0 %v4377_v43  ;;  %v4386_v30 = vsel %vm1316_vm7, %v13920_v40, 0.0  ;;  %v4971_v43 = vsel %vm1316_vm7, %v11916_v57, 0.0  ;;  %v13924_v40 = vld [vmem:[#allocation102_spill] sm:$0xff] }
0x1357   :  { %5476 = vmax.xlane.f32.xlu1 %v5475_v1  ;;  %v4968_v1 = vsel %vm1316_vm7, %v11924_v63, 0.0  ;;  %v2625_v63 = vsel %vm1316_vm7, %v13924_v40, 0.0 }
0x1358   :  { %4384 = vadd.xlane.f32.xlu0 %v4383_v32  ;;  %v13922_v32 = vld [vmem:[#allocation76_spill] sm:$0xff] }
0x135b   :  { %4381 = vadd.xlane.f32.xlu1 %v4380_v48  ;;  %v2043_v48 = vsel %vm1316_vm7, %v13922_v32, 0.0 }
0x135c   :  { %4966 = vadd.xlane.f32.xlu0 %v4965_v20  ;;  %v13923_v20 = vld [vmem:[#allocation74_spill] sm:$0xff] }
0x135d   :  { %v2040_v57 = vsel %vm1316_vm7, %v13923_v20, 0.0 }
0x135f   :  { %4387 = vadd.xlane.f32.xlu1 %v4386_v30  ;;  %v13925_v30 = vld [vmem:[#allocation77_spill] sm:$0xff] }
0x1360   :  { %4972 = vadd.xlane.f32.xlu0 %v4971_v43  ;;  %v2046_v43 = vsel %vm1316_vm7, %v13925_v30, 0.0 }
0x1363   :  { %4969 = vadd.xlane.f32.xlu1 %v4968_v1  ;;  %v13926_v1 = vld [vmem:[#allocation103_spill] sm:$0xff] }
0x1364   :  { %2038 = vadd.xlane.f32.xlu0 %v2037_v13  ;;  %v2631_v39 = vsel %vm1316_vm7, %v13926_v1, 0.0  ;;  %v2628_v13 = vsel %vm1316_vm7, %v13927_v16, 0.0 }
0x1367   :  { %4975 = vadd.xlane.f32.xlu1 %v4974_v31  ;;  %v13928_v31 = vld [vmem:[#allocation130_spill] sm:$0xff] }
0x1368   :  { %2044 = vadd.xlane.f32.xlu0 %v2043_v48  ;;  %v3213_v32 = vsel %vm1316_vm7, %v13928_v31, 0.0  ;;  %v13929_v48 = vld [vmem:[#allocation104_spill] sm:$0xff] }
0x1369   :  { %v2634_v20 = vsel %vm1316_vm7, %v13929_v48, 0.0 }
0x136b   :  { %2041 = vadd.xlane.f32.xlu1 %v2040_v57  ;;  %v13930_v57 = vld [vmem:[#allocation131_spill] sm:$0xff] }
0x136c   :  { %2626 = vadd.xlane.f32.xlu0 %v2625_v63  ;;  %v3219_v40 = vsel %vm1316_vm7, %v13930_v57, 0.0  ;;  %v13931_v63 = vld [vmem:[#allocation129_spill] sm:$0xff] }
0x136d   :  { %v3216_v30 = vsel %vm1316_vm7, %v13931_v63, 0.0 }
0x136f   :  { %2047 = vadd.xlane.f32.xlu1 %v2046_v43  ;;  %v13932_v43 = vld [vmem:[#allocation158_spill] sm:$0xff] }
0x1370   :  { %2632 = vadd.xlane.f32.xlu0 %v2631_v39  ;;  %v3801_v1 = vsel %vm1316_vm7, %v13932_v43, 0.0  ;;  %v13933_v39 = vld [vmem:[#allocation132_spill] sm:$0xff] }
0x1371   :  { %v3222_v16 = vsel %vm1316_vm7, %v13933_v39, 0.0 }
0x1373   :  { %2629 = vadd.xlane.f32.xlu1 %v2628_v13  ;;  %v13934_v13 = vld [vmem:[#allocation159_spill] sm:$0xff] }
0x1374   :  { %3214 = vadd.xlane.f32.xlu0 %v3213_v32  ;;  %v3807_v31 = vsel %vm1316_vm7, %v13934_v13, 0.0  ;;  %v13935_v32 = vld [vmem:[#allocation157_spill] sm:$0xff]  ;;  %v4977_v13 = vsel %vm1316_vm7, %v12009_v34, 0.0 }
0x1375   :  { %v3804_v48 = vsel %vm1316_vm7, %v13935_v32, 0.0 }
0x1377   :  { %2635 = vadd.xlane.f32.xlu1 %v2634_v20  ;;  %v13936_v20 = vld [vmem:[#allocation186_spill] sm:$0xff] }
0x1378   :  { %3220 = vadd.xlane.f32.xlu0 %v3219_v40  ;;  %v4389_v57 = vsel %vm1316_vm7, %v13936_v20, 0.0  ;;  %v13937_v40 = vld [vmem:[#allocation160_spill] sm:$0xff] }
0x1379   :  { %v3810_v63 = vsel %vm1316_vm7, %v13937_v40, 0.0 }
0x137b   :  { %3217 = vadd.xlane.f32.xlu1 %v3216_v30  ;;  %v13938_v30 = vld [vmem:[#allocation187_spill] sm:$0xff] }
0x137c   :  { %3802 = vadd.xlane.f32.xlu0 %v3801_v1  ;;  %v4395_v43 = vsel %vm1316_vm7, %v13938_v30, 0.0  ;;  %v13939_v1 = vld [vmem:[#allocation185_spill] sm:$0xff]  ;;  %v4983_v30 = vsel %vm1316_vm7, %v12017_v17, 0.0 }
0x137d   :  { %v4392_v39 = vsel %vm1316_vm7, %v13939_v1, 0.0 }
0x137f   :  { %3223 = vadd.xlane.f32.xlu1 %v3222_v16 }
0x1380   :  { %3808 = vadd.xlane.f32.xlu0 %v3807_v31  ;;  %v12483_v31 = vmul.f32 0.5, %v12410_v54  ;;  %v12493_v54 = vmul.f32 0.5, %v12414_v8 }
0x1382   :  { %v5472_v8 = vsel %vm1316_vm7, %v12493_v54, -inf }
0x1383   :  { %3805 = vadd.xlane.f32.xlu1 %v3804_v48  ;;  %v13940_v48 = vld [vmem:[#allocation188_spill] sm:$0xff] }
0x1384   :  { %4390 = vadd.xlane.f32.xlu0 %v4389_v57  ;;  %v4398_v20 = vsel %vm1316_vm7, %v13940_v48, 0.0 }
0x1387   :  { %3811 = vadd.xlane.f32.xlu1 %v3810_v63 }
0x1388   :  { %4396 = vadd.xlane.f32.xlu0 %v4395_v43 }
0x138b   :  { %v5441_v16 = vpop.xlane.xlu0 %5440  ;;  %4393 = vadd.xlane.f32.xlu1 %v4392_v39  ;;  %v5478_v39 = vsel %vm1316_vm7, %v12483_v31, -inf }
0x138c   :  { %4978 = vadd.xlane.f32.xlu0 %v4977_v13  ;;  %v5483_v57 = vsub.f32 %v12246_v5, %v5441_v16 }
0x138e   :  { %v5438_v32 = vpop.xlane.xlu1 %5437  ;;  %v5501_v13 = vmul.f32 1.442695, %v5483_v57  ;;  %v13943_v57 = vld [vmem:[#allocation42_spill] sm:$0xff] }
0x138f   :  { %v5482_v40 = vsub.f32 %v12260_v56, %v5438_v32  ;;  %v5435_v63 = vpop.xlane.xlu0 %5434  ;;  %4399 = vadd.xlane.f32.xlu1 %v4398_v20  ;;  %v13941_v56 = vld [vmem:[#allocation39_spill] sm:$0xff]  ;;  %v13942_v32 = vld [vmem:[#allocation40_spill] sm:$0xff]  ;;  %v4980_v20 = vsel %vm1316_vm7, %v12007_v19, 0.0 }
0x1390   :  { %v5481_v43 = vsub.f32 %v12254_v42, %v5435_v63  ;;  %4984 = vadd.xlane.f32.xlu0 %v4983_v30  ;;  %v1413_v16 = vsel %vm1316_vm7, %v13941_v56, 0.0  ;;  %v1419_v48 = vsel %vm1316_vm7, %v13942_v32, 0.0  ;;  %v4986_v30 = vsel %vm1316_vm7, %v12020_v51, 0.0  ;;  %v13946_v56 = vld [vmem:[#allocation46_spill] sm:$0xff] }
0x1391   :  { %v5499_v34 = vmul.f32 1.442695, %v5482_v40  ;;  %v1425_v40 = vsel %vm1316_vm7, %v13943_v57, 0.0  ;;  %v13950_v57 = vld [vmem:[#allocation51_spill] sm:$0xff] }
0x1392   :  { %v5497_v1 = vmul.f32 1.442695, %v5481_v43  ;;  %v13944_v43 = vld [vmem:[#allocation43_spill] sm:$0xff] }
0x1393   :  { %9136 = vpow2.f32 %v5499_v34  ;;  %v5444_v5 = vpop.xlane.xlu0 %5443  ;;  %5479 = vmax.xlane.f32.xlu1 %v5478_v39  ;;  %v1431_v34 = vsel %vm1316_vm7, %v13944_v43, 0.0  ;;  %v13952_v43 = vld [vmem:[#allocation52_spill] sm:$0xff] }
0x1394   :  { %9138 = vpow2.f32 %v5497_v1  ;;  %v5484_v17 = vsub.f32 %v12274_v14, %v5444_v5  ;;  %1414 = vadd.xlane.f32.xlu0 %v1413_v16  ;;  %v1437_v16 = vsel %vm1316_vm7, %v13946_v56, 0.0  ;;  %v3794_v56 = vpop.xlane.xlu1 %3793 }
0x1395   :  { %9140 = vpow2.f32 %v5501_v13  ;;  %v13945_v13 = vld [vmem:[#allocation38_spill] sm:$0xff] }
0x1396   :  { %v5503_v42 = vmul.f32 1.442695, %v5484_v17  ;;  %v1416_v5 = vsel %vm1316_vm7, %v13945_v13, 0.0  ;;  %v13947_v17 = vld [vmem:[#allocation41_spill] sm:$0xff]  ;;  %v13954_v13 = vld [vmem:[#allocation47_spill] sm:$0xff] }
0x1397   :  { %5473 = vmax.xlane.f32.xlu1 %v5472_v8  ;;  %v13948_v8 = vld [vmem:[#allocation49_spill] sm:$0xff] }
0x1398   :  { %9142 = vpow2.f32 %v5503_v42  ;;  %1420 = vadd.xlane.f32.xlu0 %v1419_v48  ;;  %v1422_v42 = vsel %vm1316_vm7, %v13947_v17, 0.0  ;;  %v1443_v32 = vsel %vm1316_vm7, %v13948_v8, 0.0  ;;  %v13949_v48 = vld [vmem:[#allocation45_spill] sm:$0xff] }
0x1399   :  { %9144 = vrcp.f32 %v3794_v56  ;;  %v14063_v56 = vld [vmem:[#allocation79_spill] sm:$0xff] }
0x139b   :  { %4981 = vadd.xlane.f32.xlu1 %v4980_v20  ;;  %v1428_v20 = vsel %vm1316_vm7, %v13949_v48, 0.0 }
0x139c   :  { %1426 = vadd.xlane.f32.xlu0 %v1425_v40  ;;  %v13951_v40 = vld [vmem:[#allocation44_spill] sm:$0xff] }
0x139d   :  { %v12508_v14 = vpop.eup %9136 }
0x139e   :  { %v12510_v63 = vpop.eup %9138 }
0x139f   :  { %4987 = vadd.xlane.f32.xlu1 %v4986_v30  ;;  %v5577_v1 = vpack.c.bf16 %v12508_v14, %v12510_v63  ;;  %v12518_v19 = vpop.eup %9140  ;;  %v1434_v30 = vsel %vm1316_vm7, %v13951_v40, 0.0 }
0x13a0   :  { %1432 = vadd.xlane.f32.xlu0 %v1431_v34  ;;  %v13953_v34 = vld [vmem:[#allocation48_spill] sm:$0xff] }
0x13a1   :  { %8258 = vmatprep.mubr.msk.bf16.mxu0 %vm1316_vm7, %v5577_v1  ;;  %v1440_v1 = vsel %vm1316_vm7, %v13953_v34, 0.0 }
0x13a2   :  { %v12521_v39 = vpop.eup %9142 }
0x13a3   :  { %v5578_v51 = vpack.c.bf16 %v12521_v39, %v12518_v19  ;;  %1417 = vadd.xlane.f32.xlu1 %v1416_v5  ;;  %v1446_v5 = vsel %vm1316_vm7, %v13954_v13, 0.0  ;;  %v13963_v13 = vld [vmem:[#allocation170_spill] sm:$0xff] }
0x13a4   :  { %1438 = vadd.xlane.f32.xlu0 %v1437_v16  ;;  %v13956_v16 = vld [vmem:[#allocation53_spill] sm:$0xff] }
0x13a5   :  { %8259 = vmatmul.mubr.msk.bf16.vlgmr.msra.gmra.mrb[132].mxu0 %vm1316_vm7, %v5578_v51  ;;  %v1458_v17 = vsel %vm1316_vm7, %v13956_v16, 0.0  ;;  %v13966_v16 = vpack.i.bf16 %v12122_v41, %v12119_v15  ;;  %v13968_v15 = vpack.i.bf16 %v12138_v11, %v12135_v45 }
0x13a6   :  { %8267 = vmatpush3.bf16.msra.mxu0 %v12031_v35  ;;  %v1449_v35 = vsel %vm1316_vm7, %v13950_v57, 0.0 }
0x13a7   :  { %8268 = vmatprep.subr.bf16.mxu0 %v12041_v44  ;;  %1423 = vadd.xlane.f32.xlu1 %v1422_v42 }
0x13a8   :  { %1444 = vadd.xlane.f32.xlu0 %v1443_v32 }
0x13aa   :  { %8269 = vmatpush3.bf16.msra.mxu0 %v12041_v44  ;;  %v1455_v44 = vsel %vm1316_vm7, %v13952_v43, 0.0 }
0x13ab   :  { %8270 = vmatprep.subr.bf16.mxu0 %v12051_v62  ;;  %1429 = vadd.xlane.f32.xlu1 %v1428_v20 }
0x13ac   :  { %1450 = vadd.xlane.f32.xlu0 %v1449_v35  ;;  %v13957_v35 = vpack.i.bf16 %v12090_v49, %v12087_v61  ;;  %v13959_v61 = vpack.i.bf16 %v12146_v6, %v12143_v59  ;;  %v13960_v49 = vpack.i.bf16 %v12100_v26, %v12097_v37  ;;  %v13962_v59 = vpack.i.bf16 %v12114_v22, %v12111_v12 }
0x13ae   :  { %8271 = vmatpush3.bf16.msra.mxu0 %v12051_v62  ;;  %v13955_v62 = vld [vmem:[#allocation50_spill] sm:$0xff] }
0x13af   :  { %8272 = vmatprep.subr.bf16.mxu0 %v12061_v23  ;;  %1435 = vadd.xlane.f32.xlu1 %v1434_v30  ;;  %v1452_v51 = vsel %vm1316_vm7, %v13955_v62, 0.0  ;;  %v13964_v62 = vld [vmem:[#allocation172_spill] sm:$0xff] }
0x13b0   :  { %1456 = vadd.xlane.f32.xlu0 %v1455_v44 }
0x13b2   :  { %8273 = vmatpush3.bf16.msra.mxu0 %v12061_v23 }
0x13b3   :  { %1441 = vadd.xlane.f32.xlu1 %v1440_v1 }
0x13b7   :  { %1447 = vadd.xlane.f32.xlu1 %v1446_v5 }
0x13bb   :  { %1453 = vadd.xlane.f32.xlu1 %v1452_v51 }
0x13bf   :  { %1459 = vadd.xlane.f32.xlu1 %v1458_v17 }
0x13c0   :  { %v5453_v42 = vpop.xlane.xlu0 %5452 }
0x13c1   :  { %v5487_v32 = vsub.f32 %v12368_v2, %v5453_v42  ;;  %v13958_v2 = vpack.i.bf16 %v12130_v3, %v12127_v46  ;;  %v13961_v46 = vpack.i.bf16 %v12162_v47, %v12159_v18  ;;  %v13965_v47 = vpack.i.bf16 %v12348_v25, %v12345_v29 }
0x13c2   :  { %v5456_v8 = vpop.xlane.xlu1 %5455  ;;  %v13967_v29 = vpack.i.bf16 %v12178_v7, %v12175_v58  ;;  %v13969_v58 = vpack.i.bf16 %v12194_v52, %v12191_v9  ;;  %v13974_v9 = vld [vmem:[#allocation95_spill] sm:$0xff] }
0x13c3   :  { %v5488_v23 = vsub.f32 %v12372_v21, %v5456_v8  ;;  %v5509_v44 = vmul.f32 1.442695, %v5487_v32 }
0x13c4   :  { %v5447_v48 = vpop.xlane.xlu0 %5446 }
0x13c5   :  { %v5511_v20 = vmul.f32 1.442695, %v5488_v23  ;;  %v5485_v57 = vsub.f32 %v12370_v0, %v5447_v48  ;;  %v9145_v0 = vpop.eup %9144  ;;  %v13970_v48 = vpack.i.bf16 %v12154_v4, %v12151_v50 }
0x13c6   :  { %8423 = vrot.lane.b32.xlu0 %v13957_v35, %s9495_s22  ;;  %v5450_v40 = vpop.xlane.xlu1 %5449  ;;  %v12595_v51 = vmul.f32 %v9145_v0, %v13964_v62 }
0x13c7   :  { %v5505_v30 = vmul.f32 1.442695, %v5485_v57  ;;  %v5486_v43 = vsub.f32 %v12376_v10, %v5450_v40  ;;  %9146 = vpow2.f32 %v5511_v20  ;;  %v13971_v57 = vld [vmem:[#allocation206_spill] sm:$0xff]  ;;  %v13975_v40 = vld [vmem:[#allocation96_spill] sm:$0xff] }
0x13c8   :  { %v3791_v34 = vpop.xlane.xlu0 %3790 }
0x13c9   :  { %9148 = vpow2.f32 %v5505_v30  ;;  %v5507_v21 = vmul.f32 1.442695, %v5486_v43  ;;  %v13976_v30 = vpack.i.bf16 %v13974_v9, %v13975_v40  ;;  %v13999_v9 = vld [vmem:[#allocation198_spill] sm:$0xff] }
0x13ca   :  { %9150 = vrcp.f32 %v3791_v34  ;;  %8443 = vrot.lane.b32.xlu0 %v13958_v2, %s9531_s18  ;;  %v13978_v34 = vld [vmem:[#allocation121_spill] sm:$0xff]  ;;  %v13980_v2 = vld [vmem:[#allocation171_spill] sm:$0xff] }
0x13cb   :  { %9152 = vpow2.f32 %v5507_v21 }
0x13cc   :  { %9154 = vpow2.f32 %v5509_v44  ;;  %v13977_v44 = vld [vmem:[#allocation152_spill] sm:$0xff] }
0x13cd   :  { %v13979_v21 = vpack.i.bf16 %v13977_v44, %v13978_v34  ;;  %v14001_v44 = vld [vmem:[#allocation150_spill] sm:$0xff]  ;;  %v14002_v34 = vld [vmem:[#allocation208_spill] sm:$0xff] }
0x13ce   :  { %8453 = vrot.lane.b32.xlu0 %v13959_v61, %s9502_s25 }
0x13d0   :  { %8428 = vrot.lane.b32.xlu1 %v13960_v49, %s9495_s22  ;;  %v13981_v49 = vld [vmem:[#allocation169_spill] sm:$0xff] }
0x13d1   :  { %v12577_v10 = vpop.eup %9146 }
0x13d2   :  { %8463 = vrot.lane.b32.xlu0 %v13961_v46, %s9532_s6  ;;  %v13982_v46 = vpack.i.bf16 %v12340_v33, %v12337_v28 }
0x13d3   :  { %v12583_v3 = vpop.eup %9148 }
0x13d4   :  { %v9151_v1 = vpop.eup %9150  ;;  %8433 = vrot.lane.b32.xlu1 %v13962_v59, %s9533_s5  ;;  %v5465_v37 = vpop.xlane.xlu1 %5464 }
0x13d5   :  { %v12589_v26 = vpop.eup %9152  ;;  %v5459_v6 = vpop.xlane.xlu0 %5458  ;;  %v12592_v5 = vmul.f32 %v9151_v1, %v13963_v13  ;;  %v5491_v32 = vsub.f32 %v12394_v55, %v5465_v37  ;;  %v13972_v55 = vld [vmem:[#allocation122_spill] sm:$0xff]  ;;  %v13984_v13 = vld [vmem:[#allocation179_spill] sm:$0xff]  ;;  %v14056_v37 = vld [vmem:[#allocation56_spill] sm:$0xff] }
0x13d6   :  { %v12597_v18 = vpop.eup %9154  ;;  %8473 = vrot.lane.b32.xlu0 %v13965_v47, %s9534_s28  ;;  %v5579_v12 = vpack.c.bf16 %v12589_v26, %v12583_v3  ;;  %v5489_v25 = vsub.f32 %v12396_v38, %v5459_v6  ;;  %v13973_v35 = vpack.i.bf16 %v13971_v57, %v13972_v55  ;;  %v13983_v6 = vld [vmem:[#allocation149_spill] sm:$0xff]  ;;  %v13986_v47 = vld [vmem:[#allocation94_spill] sm:$0xff] }
0x13d7   :  { %v5580_v22 = vpack.c.bf16 %v12577_v10, %v12597_v18  ;;  %v5517_v20 = vmul.f32 1.442695, %v5491_v32  ;;  %v13985_v62 = vpack.i.bf16 %v13983_v6, %v13984_v13 }
0x13d8   :  { %8438 = vrot.lane.b32.xlu1 %v13966_v16, %s9533_s5  ;;  %8262 = vmatprep.mubr.msk.bf16.mxu0 %vm1316_vm7, %v5579_v12  ;;  %v3800_v17 = vpop.xlane.xlu1 %3799  ;;  %v5513_v7 = vmul.f32 1.442695, %v5489_v25  ;;  %v13987_v12 = vld [vmem:[#allocation123_spill] sm:$0xff] }
0x13d9   :  { %v3797_v42 = vpop.xlane.xlu0 %3796  ;;  %8263 = vmatmul.mubr.msk.bf16.gmra.mrb[136].mxu0 %vm1316_vm7, %v5580_v22  ;;  %9156 = vrcp.f32 %v3800_v17  ;;  %v13988_v22 = vpack.i.bf16 %v13986_v47, %v13987_v12  ;;  %v14006_v12 = vld [vmem:[#allocation72_spill] sm:$0xff] }
0x13da   :  { %8483 = vrot.lane.b32.xlu0 %v13967_v29, %s9495_s22  ;;  %9158 = vrcp.f32 %v3797_v42  ;;  %v13989_v42 = vpack.i.bf16 %v12364_v53, %v12361_v27 }
0x13db   :  { %9160 = vpow2.f32 %v5513_v7 }
0x13dc   :  { %8448 = vrot.lane.b32.xlu1 %v13968_v15, %s9531_s18  ;;  %v5468_v41 = vpop.xlane.xlu1 %5467  ;;  %v13990_v15 = vld [vmem:[#allocation124_spill] sm:$0xff] }
0x13dd   :  { %v5492_v8 = vsub.f32 %v12402_v36, %v5468_v41  ;;  %v12625_v23 = vpop.xlane.xlu0 %5470  ;;  %v13991_v41 = vld [vmem:[#allocation205_spill] sm:$0xff] }
0x13de   :  { %8493 = vrot.lane.b32.xlu0 %v13969_v58, %s9533_s5 }
0x13df   :  { %v5519_v38 = vmul.f32 1.442695, %v5492_v8  ;;  %v13992_v8 = vpack.i.bf16 %v13990_v15, %v13991_v41  ;;  %v14010_v41 = vld [vmem:[#allocation71_spill] sm:$0xff] }
0x13e0   :  { %8458 = vrot.lane.b32.xlu1 %v13970_v48, %s9502_s25  ;;  %v5462_v45 = vpop.xlane.xlu1 %5461  ;;  %v13994_v48 = vld [vmem:[#allocation99_spill] sm:$0xff] }
0x13e1   :  { %v5490_v11 = vsub.f32 %v12412_v24, %v5462_v45  ;;  %v4379_v36 = vpop.xlane.xlu0 %4378  ;;  %9162 = vpow2.f32 %v5519_v38  ;;  %v13993_v38 = vld [vmem:[#allocation70_spill] sm:$0xff] }
0x13e2   :  { %8503 = vrot.lane.b32.xlu0 %v13973_v35, %s9531_s18  ;;  %v13995_v45 = vpack.i.bf16 %v13993_v38, %v13994_v48  ;;  %v14012_v38 = vld [vmem:[#allocation80_spill] sm:$0xff] }
0x13e3   :  { %v5515_v52 = vmul.f32 1.442695, %v5490_v11  ;;  %v9157_v4 = vpop.eup %9156 }
0x13e4   :  { %8468 = vrot.lane.b32.xlu1 %v13976_v30, %s9532_s6  ;;  %v12645_v50 = vpop.xlane.xlu1 %5476  ;;  %v9159_v43 = vpop.eup %9158  ;;  %v12652_v61 = vmul.f32 %v9157_v4, %v13980_v2  ;;  %v14000_v30 = vld [vmem:[#allocation200_spill] sm:$0xff] }
0x13e5   :  { %9164 = vpow2.f32 %v5515_v52  ;;  %v4385_v24 = vpop.xlane.xlu0 %4384  ;;  %v12655_v0 = vmul.f32 %v9159_v43, %v13981_v49  ;;  %v12671_v28 = vpop.eup %9160  ;;  %v14004_v49 = vld [vmem:[#allocation197_spill] sm:$0xff] }
0x13e6   :  { %9166 = vpow2.f32 %v5517_v20  ;;  %8513 = vrot.lane.b32.xlu0 %v13979_v21, %s9502_s25  ;;  %v13997_v20 = vld [vmem:[#allocation151_spill] sm:$0xff]  ;;  %v14003_v21 = vpack.i.bf16 %v14001_v44, %v14002_v34 }
0x13e7   :  { %9168 = vrcp.f32 %v4379_v36  ;;  %v13996_v36 = vld [vmem:[#allocation207_spill] sm:$0xff] }
0x13e8   :  { %8478 = vrot.lane.b32.xlu1 %v13982_v46, %s9534_s28  ;;  %v4382_v1 = vpop.xlane.xlu1 %4381  ;;  %v13998_v57 = vpack.i.bf16 %v13996_v36, %v13997_v20  ;;  %v14015_v20 = vld [vmem:[#allocation73_spill] sm:$0xff] }
0x13e9   :  { %v4967_v59 = vpop.xlane.xlu0 %4966  ;;  %9170 = vrcp.f32 %v4382_v1  ;;  %v14005_v1 = vld [vmem:[#allocation199_spill] sm:$0xff] }
0x13ea   :  { %8523 = vrot.lane.b32.xlu0 %v13985_v62, %s9532_s6  ;;  %9172 = vrcp.f32 %v4385_v24 }
0x13eb   :  { %v12673_v17 = vpop.eup %9162 }
0x13ec   :  { %8488 = vrot.lane.b32.xlu1 %v13988_v22, %s9495_s22  ;;  %v4388_v16 = vpop.xlane.xlu1 %4387  ;;  %v14007_v22 = vld [vmem:[#allocation178_spill] sm:$0xff] }
0x13ed   :  { %9174 = vrcp.f32 %v4388_v16  ;;  %v4973_v33 = vpop.xlane.xlu0 %4972  ;;  %v14008_v16 = vpack.i.bf16 %v14006_v12, %v14007_v22 }
0x13ee   :  { %8533 = vrot.lane.b32.xlu0 %v13989_v42, %s9534_s28  ;;  %9176 = vrcp.f32 %v4967_v59  ;;  %v14009_v42 = vld [vmem:[#allocation177_spill] sm:$0xff] }
0x13ef   :  { %v12679_v29 = vpop.eup %9164 }
0x13f0   :  { %v12681_v25 = vpop.eup %9166  ;;  %8498 = vrot.lane.b32.xlu1 %v13992_v8, %s9533_s5  ;;  %v4970_v32 = vpop.xlane.xlu1 %4969  ;;  %v5581_v58 = vpack.c.bf16 %v12679_v29, %v12671_v28 }
0x13f1   :  { %v5582_v7 = vpack.c.bf16 %v12673_v17, %v12681_v25  ;;  %9178 = vrcp.f32 %v4970_v32  ;;  %v2039_v27 = vpop.xlane.xlu0 %2038  ;;  %v9169_v53 = vpop.eup %9168 }
0x13f2   :  { %8543 = vrot.lane.b32.xlu0 %v13995_v45, %s9495_s22  ;;  %8274 = vmatprep.mubr.msk.bf16.mxu0 %vm1316_vm7, %v5581_v58  ;;  %9180 = vrcp.f32 %v4973_v33  ;;  %v12702_v40 = vmul.f32 %v9169_v53, %v13999_v9  ;;  %v14011_v53 = vld [vmem:[#allocation106_spill] sm:$0xff] }
0x13f3   :  { %8275 = vmatmul.mubr.msk.bf16.vlgmr.msra.gmra.mrb[140].mxu0 %vm1316_vm7, %v5582_v7  ;;  %v9171_v11 = vpop.eup %9170  ;;  %v14013_v48 = vpack.i.bf16 %v14011_v53, %v14012_v38 }
0x13f4   :  { %8508 = vrot.lane.b32.xlu1 %v13998_v57, %s9531_s18  ;;  %v4976_v55 = vpop.xlane.xlu1 %4975  ;;  %v9173_v35 = vpop.eup %9172  ;;  %v12705_v4 = vmul.f32 %v9171_v11, %v14000_v30  ;;  %v14014_v11 = vld [vmem:[#allocation180_spill] sm:$0xff]  ;;  %v14016_v30 = vld [vmem:[#allocation98_spill] sm:$0xff] }
0x13f5   :  { %9182 = vrcp.f32 %v4976_v55  ;;  %v2045_v52 = vpop.xlane.xlu0 %2044  ;;  %v12714_v46 = vmul.f32 %v9173_v35, %v14004_v49  ;;  %v14020_v49 = vld [vmem:[#allocation93_spill] sm:$0xff] }
0x13f6   :  { %9184 = vrcp.f32 %v2039_v27 }
0x13f7   :  { %v9175_v24 = vpop.eup %9174 }
0x13f8   :  { %8518 = vrot.lane.b32.xlu1 %v14003_v21, %s9502_s25  ;;  %v2042_v2 = vpop.xlane.xlu1 %2041  ;;  %v12717_v59 = vmul.f32 %v9175_v24, %v14005_v1  ;;  %v9177_v6 = vpop.eup %9176  ;;  %v14017_v24 = vld [vmem:[#allocation100_spill] sm:$0xff]  ;;  %v14019_v21 = vld [vmem:[#allocation91_spill] sm:$0xff] }
0x13f9   :  { %9186 = vrcp.f32 %v2042_v2  ;;  %v2627_v13 = vpop.xlane.xlu0 %2626  ;;  %v12726_v15 = vmul.f32 %v9177_v6, %v14009_v42  ;;  %v14018_v44 = vpack.i.bf16 %v14016_v30, %v14017_v24  ;;  %v14022_v42 = vld [vmem:[#allocation92_spill] sm:$0xff] }
0x13fa   :  { %9188 = vrcp.f32 %v2045_v52 }
0x13fb   :  { %v9179_v47 = vpop.eup %9178 }
0x13fc   :  { %8528 = vrot.lane.b32.xlu1 %v14008_v16, %s9532_s6  ;;  %v2048_v33 = vpop.xlane.xlu1 %2047  ;;  %v12729_v8 = vmul.f32 %v9179_v47, %v14010_v41  ;;  %v9181_v32 = vpop.eup %9180  ;;  %v14021_v16 = vld [vmem:[#allocation90_spill] sm:$0xff] }
0x13fd   :  { %9190 = vrcp.f32 %v2048_v33  ;;  %v2633_v58 = vpop.xlane.xlu0 %2632  ;;  %v12738_v36 = vmul.f32 %v9181_v32, %v14014_v11  ;;  %v14024_v11 = vld [vmem:[#allocation120_spill] sm:$0xff] }
0x13fe   :  { %9192 = vrcp.f32 %v2627_v13 }
0x13ff   :  { %v9183_v27 = vpop.eup %9182 }
0x1400   :  { %8538 = vrot.lane.b32.xlu1 %v14013_v48, %s9534_s28  ;;  %v2630_v45 = vpop.xlane.xlu1 %2629  ;;  %v12741_v57 = vmul.f32 %v9183_v27, %v14015_v20  ;;  %v9185_v55 = vpop.eup %9184  ;;  %v14023_v48 = vld [vmem:[#allocation118_spill] sm:$0xff] }
0x1401   :  { %9194 = vrcp.f32 %v2630_v45  ;;  %v3215_v35 = vpop.xlane.xlu0 %3214  ;;  %v12750_v2 = vmul.f32 %v9185_v55, %v14019_v21 }
0x1402   :  { %9196 = vrcp.f32 %v2633_v58 }
0x1403   :  { %v9187_v9 = vpop.eup %9186 }
0x1404   :  { %8548 = vrot.lane.b32.xlu1 %v14018_v44, %s9495_s22  ;;  %v2636_v34 = vpop.xlane.xlu1 %2635  ;;  %v12753_v1 = vmul.f32 %v9187_v9, %v14020_v49  ;;  %v9189_v6 = vpop.eup %9188  ;;  %v5535_v44 = vsel %vm1316_vm7, %v12518_v19, 0.0  ;;  %v14026_v49 = vld [vmem:[#allocation119_spill] sm:$0xff]  ;;  %v5529_v19 = vsel %vm1316_vm7, %v12510_v63, 0.0  ;;  %v14057_v9 = vld [vmem:[#allocation62_spill] sm:$0xff] }
0x1405   :  { %9198 = vrcp.f32 %v2636_v34  ;;  %v3221_v13 = vpop.xlane.xlu0 %3220  ;;  %v12758_v33 = vmul.f32 %v9189_v6, %v14021_v16  ;;  %v14025_v34 = vld [vmem:[#allocation117_spill] sm:$0xff] }
0x1406   :  { %9200 = vrcp.f32 %v3215_v35 }
0x1407   :  { %v9191_v12 = vpop.eup %9190 }
0x1408   :  { %v3218_v22 = vpop.xlane.xlu1 %3217  ;;  %v12761_v41 = vmul.f32 %v9191_v12, %v14022_v42  ;;  %v9193_v32 = vpop.eup %9192  ;;  %v5495_v42 = vsub.f32 %v12420_v60, %v12645_v50  ;;  %v14029_v60 = vld [vmem:[#allocation136_spill] sm:$0xff] }
0x1409   :  { %9202 = vrcp.f32 %v3218_v22  ;;  %v3803_v58 = vpop.xlane.xlu0 %3802  ;;  %v12766_v45 = vmul.f32 %v9193_v32, %v14023_v48  ;;  %v5493_v50 = vsub.f32 %v14029_v60, %v12625_v23  ;;  %v14033_v60 = vld [vmem:[#allocation174_spill] sm:$0xff] }
0x140a   :  { %9204 = vrcp.f32 %v3221_v13 }
0x140b   :  { %v9195_v53 = vpop.eup %9194 }
0x140c   :  { %v3224_v38 = vpop.xlane.xlu1 %3223  ;;  %v12769_v20 = vmul.f32 %v9195_v53, %v14024_v11  ;;  %v9197_v55 = vpop.eup %9196 }
0x140d   :  { %9206 = vrcp.f32 %v3224_v38  ;;  %v3809_v35 = vpop.xlane.xlu0 %3808  ;;  %v12776_v21 = vmul.f32 %v9197_v55, %v14025_v34  ;;  %v14028_v38 = vld [vmem:[#allocation148_spill] sm:$0xff]  ;;  %v5547_v34 = vsel %vm1316_vm7, %v12597_v18, 0.0 }
0x140e   :  { %9208 = vrcp.f32 %v3809_v35 }
0x140f   :  { %v9199_v30 = vpop.eup %9198  ;;  %9210 = vrcp.f32 %v3803_v58  ;;  %v14027_v58 = vld [vmem:[#allocation146_spill] sm:$0xff] }
0x1410   :  { %v3806_v24 = vpop.xlane.xlu1 %3805  ;;  %v12779_v6 = vmul.f32 %v9199_v30, %v14026_v49  ;;  %v9201_v13 = vpop.eup %9200  ;;  %v14030_v49 = vld [vmem:[#allocation145_spill] sm:$0xff] }
0x1411   :  { %9212 = vrcp.f32 %v3806_v24  ;;  %v4391_v12 = vpop.xlane.xlu0 %4390  ;;  %5536 = vadd.xlane.f32.xlu0 %v5535_v44  ;;  %v12788_v53 = vmul.f32 %v9201_v13, %v14027_v58  ;;  %v5525_v24 = vmul.f32 1.442695, %v5495_v42  ;;  %v14032_v58 = vld [vmem:[#allocation173_spill] sm:$0xff] }
0x1412   :  { %9214 = vrcp.f32 %v4391_v12  ;;  %v14031_v12 = vld [vmem:[#allocation147_spill] sm:$0xff] }
0x1413   :  { %v9203_v16 = vpop.eup %9202 }
0x1414   :  { %v3812_v32 = vpop.xlane.xlu1 %3811  ;;  %v12791_v48 = vmul.f32 %v9203_v16, %v14028_v38  ;;  %v9205_v11 = vpop.eup %9204 }
0x1415   :  { %9216 = vrcp.f32 %v3812_v32  ;;  %v4397_v55 = vpop.xlane.xlu0 %4396  ;;  %5530 = vadd.xlane.f32.xlu0 %v5529_v19  ;;  %v12800_v13 = vmul.f32 %v9205_v11, %v14030_v49 }
0x1416   :  { %9218 = vrcp.f32 %v4397_v55  ;;  %v5521_v55 = vmul.f32 1.442695, %v5493_v50 }
0x1417   :  { %v9207_v30 = vpop.eup %9206 }
0x1418   :  { %v9209_v63 = vpop.eup %9208  ;;  %v4394_v44 = vpop.xlane.xlu1 %4393  ;;  %v12803_v16 = vmul.f32 %v9207_v30, %v14031_v12  ;;  %v5541_v30 = vsel %vm1316_vm7, %v12583_v3, 0.0  ;;  %v14035_v12 = vld [vmem:[#allocation202_spill] sm:$0xff] }
0x1419   :  { %v9211_v32 = vpop.eup %9210  ;;  %9220 = vrcp.f32 %v4394_v44  ;;  %v4979_v19 = vpop.xlane.xlu0 %4978  ;;  %5548 = vadd.xlane.f32.xlu0 %v5547_v34  ;;  %v12806_v38 = vmul.f32 %v9209_v63, %v14032_v58  ;;  %v14034_v44 = vld [vmem:[#allocation176_spill] sm:$0xff] }
0x141a   :  { %9222 = vrcp.f32 %v4979_v19  ;;  %v12813_v49 = vmul.f32 %v9211_v32, %v14033_v60  ;;  %v5559_v32 = vsel %vm1316_vm7, %v12681_v25, 0.0  ;;  %v14037_v60 = vld [vmem:[#allocation175_spill] sm:$0xff]  ;;  %v5553_v25 = vsel %vm1316_vm7, %v12671_v28, 0.0 }
0x141b   :  { %v9213_v42 = vpop.eup %9212  ;;  %9224 = vpow2.f32 %v5525_v24  ;;  %v5538_v28 = vsel %vm1316_vm7, %v12521_v39, 0.0 }
0x141c   :  { %v9215_v18 = vpop.eup %9214  ;;  %v4400_v11 = vpop.xlane.xlu1 %4399  ;;  %v12816_v34 = vmul.f32 %v9213_v42, %v14034_v44 }
0x141d   :  { %9226 = vrcp.f32 %v4400_v11  ;;  %v4985_v63 = vpop.xlane.xlu0 %4984  ;;  %5542 = vadd.xlane.f32.xlu0 %v5541_v30  ;;  %v12819_v19 = vmul.f32 %v9215_v18, %v14035_v12  ;;  %v14038_v18 = vld [vmem:[#allocation201_spill] sm:$0xff] }
0x141e   :  { %9228 = vrcp.f32 %v4985_v63 }
0x141f   :  { %14036 = vst [vmem:[#allocation133_spill] sm:$0xff] %v12819_v19  ;;  %v9217_v24 = vpop.eup %9216  ;;  %9230 = vpow2.f32 %v5521_v55 }
0x1420   :  { %v9219_v58 = vpop.eup %9218  ;;  %v5480_v3 = vpop.xlane.xlu1 %5479  ;;  %v12826_v42 = vmul.f32 %v9217_v24, %v14037_v60  ;;  %v14039_v24 = vld [vmem:[#allocation204_spill] sm:$0xff] }
0x1421   :  { %v5496_v11 = vsub.f32 %v12483_v31, %v5480_v3  ;;  %v1415_v30 = vpop.xlane.xlu0 %1414  ;;  %5560 = vadd.xlane.f32.xlu0 %v5559_v32  ;;  %v12830_v44 = vmul.f32 %v9219_v58, %v14038_v18  ;;  %v14040_v58 = vld [vmem:[#allocation105_spill] sm:$0xff] }
0x1422   :  { %9232 = vrcp.f32 %v1415_v30 }
0x1423   :  { %v9221_v55 = vpop.eup %9220  ;;  %v5527_v50 = vmul.f32 1.442695, %v5496_v11 }
0x1424   :  { %v9223_v12 = vpop.eup %9222  ;;  %v5474_v23 = vpop.xlane.xlu1 %5473  ;;  %v12837_v60 = vmul.f32 %v9221_v55, %v14039_v24 }
0x1425   :  { %v9225_v31 = vpop.eup %9224  ;;  %v5494_v3 = vsub.f32 %v12493_v54, %v5474_v23  ;;  %v1421_v32 = vpop.xlane.xlu0 %1420  ;;  %5554 = vadd.xlane.f32.xlu0 %v5553_v25  ;;  %v12841_v30 = vmul.f32 %v9223_v12, %v14040_v58  ;;  %v14042_v23 = vld [vmem:[#allocation203_spill] sm:$0xff] }
0x1426   :  { %9234 = vrcp.f32 %v1421_v32  ;;  %v5571_v54 = vsel %vm1316_vm7, %v9225_v31, 0.0  ;;  %v14043_v32 = vld [vmem:[#allocation108_spill] sm:$0xff] }
0x1427   :  { %14041 = vst [vmem:[#allocation135_spill] sm:$0xff] %v12841_v30  ;;  %v9227_v11 = vpop.eup %9226  ;;  %v5523_v63 = vmul.f32 1.442695, %v5494_v3  ;;  %9236 = vpow2.f32 %v5527_v50  ;;  %v5532_v50 = vsel %vm1316_vm7, %v12508_v14, 0.0  ;;  %v14046_v14 = vld [vmem:[#allocation54_spill] sm:$0xff] }
0x1428   :  { %v9229_v22 = vpop.eup %9228  ;;  %5539 = vadd.xlane.f32.xlu1 %v5538_v28  ;;  %v4982_v55 = vpop.xlane.xlu1 %4981  ;;  %v12849_v25 = vmul.f32 %v9227_v11, %v14042_v23 }
0x1429   :  { %v9231_v12 = vpop.eup %9230  ;;  %9238 = vpow2.f32 %v5523_v63  ;;  %v1427_v24 = vpop.xlane.xlu0 %1426  ;;  %5572 = vadd.xlane.f32.xlu0 %v5571_v54  ;;  %v12852_v58 = vmul.f32 %v9229_v22, %v14043_v32  ;;  %v14045_v54 = vld [vmem:[#allocation55_spill] sm:$0xff]  ;;  %v5550_v22 = vsel %vm1316_vm7, %v12577_v10, 0.0 }
0x142a   :  { %9240 = vrcp.f32 %v4982_v55  ;;  %v5565_v11 = vsel %vm1316_vm7, %v9231_v12, 0.0 }
0x142b   :  { %14044 = vst [vmem:[#allocation162_spill] sm:$0xff] %v12852_v58  ;;  %9242 = vrcp.f32 %v1427_v24 }
0x142c   :  { %v9233_v3 = vpop.eup %9232  ;;  %5533 = vadd.xlane.f32.xlu1 %v5532_v50  ;;  %v4988_v28 = vpop.xlane.xlu1 %4987 }
0x142d   :  { %9244 = vrcp.f32 %v4988_v28  ;;  %v1433_v63 = vpop.xlane.xlu0 %1432  ;;  %5566 = vadd.xlane.f32.xlu0 %v5565_v11  ;;  %v1663_v23 = vmul.f32 %v9233_v3, %v14045_v54  ;;  %v5544_v3 = vsel %vm1316_vm7, %v12589_v26, 0.0 }
0x142e   :  { %9246 = vrcp.f32 %v1433_v63 }
0x1430   :  { %v9235_v55 = vpop.eup %9234  ;;  %5551 = vadd.xlane.f32.xlu1 %v5550_v22  ;;  %v1418_v24 = vpop.xlane.xlu1 %1417 }
0x1431   :  { %9248 = vrcp.f32 %v1418_v24  ;;  %v1439_v32 = vpop.xlane.xlu0 %1438  ;;  %v12863_v18 = vmul.f32 %v9235_v55, %v14046_v14  ;;  %v12865_v50 = vpop.eup %9236  ;;  %v14047_v55 = vld [vmem:[#allocation134_spill] sm:$0xff] }
0x1432   :  { %9250 = vrcp.f32 %v1439_v32  ;;  %v5584_v22 = vpack.c.bf16 %v12865_v50, %v9225_v31  ;;  %v14049_v32 = vld [vmem:[#allocation59_spill] sm:$0xff]  ;;  %v5556_v31 = vsel %vm1316_vm7, %v12679_v29, 0.0 }
0x1433   :  { %v12867_v28 = vpop.eup %9238 }
0x1434   :  { %v9241_v11 = vpop.eup %9240  ;;  %5545 = vadd.xlane.f32.xlu1 %v5544_v3  ;;  %v1424_v63 = vpop.xlane.xlu1 %1423  ;;  %v5583_v10 = vpack.c.bf16 %v12867_v28, %v9231_v12  ;;  %v5562_v12 = vsel %vm1316_vm7, %v12673_v17, 0.0 }
0x1435   :  { %v9243_v54 = vpop.eup %9242  ;;  %9252 = vrcp.f32 %v1424_v63  ;;  %v1445_v24 = vpop.xlane.xlu0 %1444  ;;  %v12874_v14 = vmul.f32 %v9241_v11, %v14047_v55  ;;  %v14050_v11 = vld [vmem:[#allocation107_spill] sm:$0xff] }
0x1436   :  { %9254 = vrcp.f32 %v1445_v24  ;;  %8278 = vmatprep.mubr.msk.bf16.mxu1 %vm1316_vm7, %v5583_v10  ;;  %v12878_v39 = vmul.f32 %v9243_v54, %v14049_v32  ;;  %v14052_v24 = vmov 0   ;;  %v14053_v54 = vld [vmem:[#allocation58_spill] sm:$0xff] }
0x1437   :  { %14048 = vst [vmem:[#allocation164_spill] sm:$0xff] %v12874_v14  ;;  %v9245_v26 = vpop.eup %9244  ;;  %8279 = vmatmul.mubr.msk.bf16.vlgmr.msra.gmra.mrb[148].mxu1 %vm1316_vm7, %v5584_v22 }
0x1438   :  { %v9247_v3 = vpop.eup %9246  ;;  %5563 = vadd.xlane.f32.xlu1 %v5562_v12  ;;  %v1430_v63 = vpop.xlane.xlu1 %1429  ;;  %v12886_v55 = vmul.f32 %v9245_v26, %v14050_v11  ;;  %6710 = vmatprep.mubr.bf16.mxu1 %v14052_v24  ;;  %v14054_v26 = vld [vmem:[#allocation57_spill] sm:$0xff] }
0x1439   :  { %9256 = vrcp.f32 %v1430_v63  ;;  %v1451_v10 = vpop.xlane.xlu0 %1450  ;;  %v12890_v32 = vmul.f32 %v9247_v3, %v14053_v54  ;;  %v14055_v63 = vld [vmem:[#allocation63_spill] sm:$0xff]  ;;  %v14064_v24 = vld [vmem:[#allocation125_spill] sm:$0xff] }
0x143a   :  { %14051 = vst [vmem:[#allocation161_spill] sm:$0xff] %v12886_v55  ;;  %9258 = vrcp.f32 %v1451_v10  ;;  %v14065_v30 = vpack.i.bf16 %v14063_v56, %v14064_v24  ;;  %v14071_v24 = vld [vmem:[#allocation126_spill] sm:$0xff] }
0x143b   :  { %v9249_v22 = vpop.eup %9248 }
0x143c   :  { %v9251_v12 = vpop.eup %9250  ;;  %5557 = vadd.xlane.f32.xlu1 %v5556_v31  ;;  %v1436_v27 = vpop.xlane.xlu1 %1435  ;;  %v1664_v11 = vmul.f32 %v9249_v22, %v14054_v26  ;;  %v14059_v22 = vld [vmem:[#allocation127_spill] sm:$0xff] }
0x143d   :  { %9260 = vrcp.f32 %v1436_v27  ;;  %v1457_v52 = vpop.xlane.xlu0 %1456  ;;  %v12898_v62 = vmul.f32 %v9251_v12, %v14055_v63  ;;  %v14058_v27 = vld [vmem:[#allocation97_spill] sm:$0xff] }
0x143e   :  { %9262 = vrcp.f32 %v1457_v52  ;;  %v14060_v26 = vpack.i.bf16 %v14058_v27, %v14059_v22 }
0x143f   :  { %v9253_v3 = vpop.eup %9252 }
0x1440   :  { %v9255_v10 = vpop.eup %9254  ;;  %v1442_v54 = vpop.xlane.xlu1 %1441  ;;  %v1666_v17 = vmul.f32 %v9253_v3, %v14056_v37  ;;  %v14061_v37 = vld [vmem:[#allocation61_spill] sm:$0xff] }
0x1441   :  { %9264 = vrcp.f32 %v1442_v54  ;;  %v8424_v35 = vpop.permute.xlu0 %8423  ;;  %v12902_v29 = vmul.f32 %v9255_v10, %v14057_v9  ;;  %v14062_v9 = vld [vmem:[#allocation67_spill] sm:$0xff] }
0x1442   :  { %v8426_v31 = vunpack.i.h.bf16 %v8424_v35  ;;  %v8425_v47 = vunpack.i.l.bf16 %v8424_v35 }
0x1443   :  { %v9257_v7 = vpop.eup %9256  ;;  %8553 = vrot.lane.b32.xlu0 %v14060_v26, %s9533_s5  ;;  %v14066_v26 = vld [vmem:[#allocation60_spill] sm:$0xff] }
0x1444   :  { %v9259_v12 = vpop.eup %9258  ;;  %v6243_v52 = vsel %vm1109_vm6, %v1663_v23, %v8425_v47  ;;  %v6244_v63 = vsel %vm1109_vm6, %v1664_v11, %v8426_v31  ;;  %v1448_v43 = vpop.xlane.xlu1 %1447  ;;  %v1668_v3 = vmul.f32 %v9257_v7, %v14061_v37  ;;  %v14067_v11 = vld [vmem:[#allocation66_spill] sm:$0xff]  ;;  %v14069_v31 = vpack.i.bf16 %v12595_v51, %v12592_v5  ;;  %v14070_v37 = vld [vmem:[#allocation65_spill] sm:$0xff]  ;;  %v14075_v5 = vld [vmem:[#allocation64_spill] sm:$0xff] }
0x1445   :  { %9266 = vrcp.f32 %v1448_v43  ;;  %v8444_v54 = vpop.permute.xlu0 %8443  ;;  %v12912_v10 = vmul.f32 %v9259_v12, %v14062_v9  ;;  %v14072_v9 = vld [vmem:[#allocation128_spill] sm:$0xff] }
0x1447   :  { %v9261_v35 = vpop.eup %9260  ;;  %8563 = vrot.lane.b32.xlu0 %v14065_v30, %s9531_s18 }
0x1448   :  { %v9263_v27 = vpop.eup %9262  ;;  %v1454_v22 = vpop.xlane.xlu1 %1453  ;;  %v12919_v47 = vmul.f32 %v9261_v35, %v14066_v26  ;;  %v14073_v35 = vpack.i.bf16 %v14071_v24, %v14072_v9  ;;  %v8445_v9 = vunpack.i.l.bf16 %v8444_v54 }
0x1449   :  { %9268 = vrcp.f32 %v1454_v22  ;;  %v8454_v23 = vpop.permute.xlu0 %8453  ;;  %v12922_v7 = vmul.f32 %v9263_v27, %v14067_v11  ;;  %v14074_v27 = vpack.i.bf16 %v12705_v4, %v12702_v40  ;;  %v14076_v40 = vpack.i.bf16 %v12729_v8, %v12726_v15 }
0x144a   :  { %v8446_v4 = vunpack.i.h.bf16 %v8444_v54 }
0x144b   :  { %14068 = vst [vmem:[#allocation163_spill] sm:$0xff] %v12922_v7  ;;  %v9265_v43 = vpop.eup %9264  ;;  %8573 = vrot.lane.b32.xlu0 %v14069_v31, %s9502_s25 }
0x144c   :  { %v1460_v12 = vpop.xlane.xlu1 %1459  ;;  %v12929_v56 = vmul.f32 %v9265_v43, %v14070_v37 }
0x144d   :  { %9270 = vrcp.f32 %v1460_v12  ;;  %v8464_v30 = vpop.permute.xlu0 %8463  ;;  %8558 = vrot.lane.b32.xlu1 %v14073_v35, %s9533_s5 }
0x144f   :  { %v9267_v22 = vpop.eup %9266  ;;  %8583 = vrot.lane.b32.xlu0 %v14074_v27, %s9532_s6 }
0x1450   :  { %v8429_v26 = vpop.permute.xlu1 %8428  ;;  %v12940_v51 = vmul.f32 %v9267_v22, %v14075_v5  ;;  %v14077_v22 = vld [vmem:[#allocation69_spill] sm:$0xff]  ;;  %v8455_v5 = vunpack.i.l.bf16 %v8454_v23 }
0x1451   :  { %v8431_v11 = vunpack.i.h.bf16 %v8429_v26  ;;  %v8430_v43 = vunpack.i.l.bf16 %v8429_v26  ;;  %v8474_v31 = vpop.permute.xlu0 %8473  ;;  %v8456_v26 = vunpack.i.h.bf16 %v8454_v23 }
0x1452   :  { %v8476_v8 = vunpack.i.h.bf16 %v8474_v31 }
0x1453   :  { %v9269_v12 = vpop.eup %9268  ;;  %v6246_v37 = vsel %vm1109_vm6, %v1666_v17, %v8431_v11  ;;  %v6245_v24 = vsel %vm1109_vm6, %v12863_v18, %v8430_v43  ;;  %8593 = vrot.lane.b32.xlu0 %v14076_v40, %s9534_s28  ;;  %v8466_v18 = vunpack.i.h.bf16 %v8464_v30  ;;  %v8465_v43 = vunpack.i.l.bf16 %v8464_v30 }
0x1454   :  { %v8434_v35 = vpop.permute.xlu1 %8433  ;;  %v12950_v27 = vmul.f32 %v9269_v12, %v14077_v22  ;;  %v8475_v40 = vunpack.i.l.bf16 %v8474_v31  ;;  %v14078_v12 = vpack.i.bf16 %v12753_v1, %v12750_v2  ;;  %v14079_v1 = vld [vmem:[#allocation68_spill] sm:$0xff] }
0x1455   :  { %v8436_v17 = vunpack.i.h.bf16 %v8434_v35  ;;  %v8435_v11 = vunpack.i.l.bf16 %v8434_v35  ;;  %v8484_v7 = vpop.permute.xlu0 %8483 }
0x1456   :  { %v8486_v14 = vunpack.i.h.bf16 %v8484_v7  ;;  %v8485_v58 = vunpack.i.l.bf16 %v8484_v7 }
0x1457   :  { %v9271_v15 = vpop.eup %9270  ;;  %v6261_v55 = vsel %vm6259_vm8, %v6244_v63, %v8436_v17  ;;  %v6260_v54 = vsel %vm6259_vm8, %v6243_v52, %v8435_v11  ;;  %8603 = vrot.lane.b32.xlu0 %v14078_v12, %s9495_s22 }
0x1458   :  { %v6278_v23 = vsel %vm6276_vm9, %v6261_v55, %v8446_v4  ;;  %v6277_v35 = vsel %vm6276_vm9, %v6260_v54, %v8445_v9  ;;  %v6247_v30 = vsel %vm1109_vm6, %v12878_v39, %v8485_v58  ;;  %v6248_v7 = vsel %vm1109_vm6, %v1668_v3, %v8486_v14  ;;  %v8439_v22 = vpop.permute.xlu1 %8438 }
0x1459   :  { %v6295_v31 = vsel %vm6293_vm10, %v6278_v23, %v8456_v26  ;;  %v6294_v63 = vsel %vm6293_vm10, %v6277_v35, %v8455_v5  ;;  %v8441_v52 = vunpack.i.h.bf16 %v8439_v22  ;;  %v8440_v17 = vunpack.i.l.bf16 %v8439_v22  ;;  %v8494_v11 = vpop.permute.xlu0 %8493 }
0x145a   :  { %v8496_v19 = vunpack.i.h.bf16 %v8494_v11  ;;  %v8495_v2 = vunpack.i.l.bf16 %v8494_v11  ;;  %v12966_v12 = vmul.f32 %v9271_v15, %v14079_v1  ;;  %v6311_v55 = vsel %vm6310_vm11, %v6294_v63, %v8465_v43 }
0x145b   :  { %v6262_v4 = vsel %vm6259_vm8, %v6245_v24, %v8440_v17  ;;  %v6263_v58 = vsel %vm6259_vm8, %v6246_v37, %v8441_v52  ;;  %v14080_v39 = vpack.i.bf16 %v12769_v20, %v12766_v45  ;;  %v6312_v14 = vsel %vm6310_vm11, %v6295_v31, %v8466_v18 }
0x145c   :  { %v12977_v3 = vsel %vm6327_vm12, %v6311_v55, %v8475_v40  ;;  %v6264_v9 = vsel %vm6259_vm8, %v6247_v30, %v8495_v2  ;;  %v6265_v26 = vsel %vm6259_vm8, %v6248_v7, %v8496_v19  ;;  %v8449_v5 = vpop.permute.xlu1 %8448  ;;  %v12982_v43 = vsel %vm6327_vm12, %v6312_v14, %v8476_v8 }
0x145d   :  { %8613 = vrot.lane.b32.xlu0 %v14080_v39, %s9533_s5  ;;  %v8451_v24 = vunpack.i.h.bf16 %v8449_v5  ;;  %v8450_v37 = vunpack.i.l.bf16 %v8449_v5  ;;  %v8504_v15 = vpop.permute.xlu0 %8503  ;;  %v14081_v18 = vpack.i.bf16 %v12791_v48, %v12788_v53 }
0x145e   :  { %v8506_v54 = vunpack.i.h.bf16 %v8504_v15  ;;  %v8505_v23 = vunpack.i.l.bf16 %v8504_v15 }
0x145f   :  { %v6279_v45 = vsel %vm6276_vm9, %v6262_v4, %v8450_v37  ;;  %v6280_v20 = vsel %vm6276_vm9, %v6263_v58, %v8451_v24 }
0x1460   :  { %v6281_v19 = vsel %vm6276_vm9, %v6264_v9, %v8505_v23  ;;  %v6282_v40 = vsel %vm6276_vm9, %v6265_v26, %v8506_v54  ;;  %v8459_v8 = vpop.permute.xlu1 %8458 }
0x1461   :  { %8623 = vrot.lane.b32.xlu0 %v14081_v18, %s9531_s18  ;;  %v8461_v35 = vunpack.i.h.bf16 %v8459_v8  ;;  %v8460_v30 = vunpack.i.l.bf16 %v8459_v8  ;;  %v8514_v7 = vpop.permute.xlu0 %8513 }
0x1462   :  { %v8516_v22 = vunpack.i.h.bf16 %v8514_v7  ;;  %v8515_v31 = vunpack.i.l.bf16 %v8514_v7 }
0x1463   :  { %v6296_v63 = vsel %vm6293_vm10, %v6279_v45, %v8460_v30  ;;  %v6297_v52 = vsel %vm6293_vm10, %v6280_v20, %v8461_v35 }
0x1464   :  { %v6298_v17 = vsel %vm6293_vm10, %v6281_v19, %v8515_v31  ;;  %v6299_v11 = vsel %vm6293_vm10, %v6282_v40, %v8516_v22  ;;  %v8469_v53 = vpop.permute.xlu1 %8468 }
0x1465   :  { %v8471_v48 = vunpack.i.h.bf16 %v8469_v53  ;;  %v8470_v2 = vunpack.i.l.bf16 %v8469_v53  ;;  %v8524_v1 = vpop.permute.xlu0 %8523 }
0x1466   :  { %v8526_v55 = vunpack.i.h.bf16 %v8524_v1  ;;  %v8525_v4 = vunpack.i.l.bf16 %v8524_v1 }
0x1467   :  { %v6313_v58 = vsel %vm6310_vm11, %v6296_v63, %v8470_v2  ;;  %v6314_v39 = vsel %vm6310_vm11, %v6297_v52, %v8471_v48 }
0x1468   :  { %v6315_v14 = vsel %vm6310_vm11, %v6298_v17, %v8525_v4  ;;  %v6316_v9 = vsel %vm6310_vm11, %v6299_v11, %v8526_v55  ;;  %v8479_v26 = vpop.permute.xlu1 %8478  ;;  %v5574_v11 = vsel %vm1316_vm7, %v12865_v50, 0.0 }
0x1469   :  { %v8481_v5 = vunpack.i.h.bf16 %v8479_v26  ;;  %v8480_v24 = vunpack.i.l.bf16 %v8479_v26  ;;  %v8534_v37 = vpop.permute.xlu0 %8533 }
0x146a   :  { %v8536_v15 = vunpack.i.h.bf16 %v8534_v37  ;;  %v8535_v54 = vunpack.i.l.bf16 %v8534_v37 }
0x146b   :  { %v13001_v23 = vsel %vm6327_vm12, %v6313_v58, %v8480_v24  ;;  %v13004_v45 = vsel %vm6327_vm12, %v6314_v39, %v8481_v5 }
0x146c   :  { %v13007_v20 = vsel %vm6327_vm12, %v6315_v14, %v8535_v54  ;;  %v13010_v18 = vsel %vm6327_vm12, %v6316_v9, %v8536_v15  ;;  %v8489_v19 = vpop.permute.xlu1 %8488 }
0x146d   :  { %v8491_v40 = vunpack.i.h.bf16 %v8489_v19  ;;  %v8490_v8 = vunpack.i.l.bf16 %v8489_v19  ;;  %v8544_v35 = vpop.permute.xlu0 %8543 }
0x146e   :  { %v8546_v30 = vunpack.i.h.bf16 %v8544_v35  ;;  %v8545_v7 = vunpack.i.l.bf16 %v8544_v35 }
0x146f   :  { %v6250_v22 = vsel %vm1109_vm6, %v12919_v47, %v8491_v40  ;;  %v6249_v31 = vsel %vm1109_vm6, %v12890_v32, %v8490_v8 }
0x1470   :  { %v13018_v63 = vsel %vm1109_vm6, %v12898_v62, %v8545_v7  ;;  %v13022_v52 = vsel %vm1109_vm6, %v12929_v56, %v8546_v30  ;;  %v8499_v17 = vpop.permute.xlu1 %8498  ;;  %v5568_v62 = vsel %vm1316_vm7, %v12867_v28, 0.0 }
0x1471   :  { %v8501_v53 = vunpack.i.h.bf16 %v8499_v17  ;;  %v8500_v48 = vunpack.i.l.bf16 %v8499_v17  ;;  %5575 = vadd.xlane.f32.xlu1 %v5574_v11 }
0x1473   :  { %v6266_v47 = vsel %vm6259_vm8, %v6249_v31, %v8500_v48  ;;  %v6267_v2 = vsel %vm6259_vm8, %v6250_v22, %v8501_v53  ;;  %v14082_v53 = vld [vmem:[#allocation78_spill] sm:$0xff]  ;;  %v14083_v48 = vld [vmem:[#allocation81_spill] sm:$0xff] }
0x1474   :  { %v8509_v32 = vpop.permute.xlu1 %8508 }
0x1475   :  { %v8511_v1 = vunpack.i.h.bf16 %v8509_v32  ;;  %v8510_v55 = vunpack.i.l.bf16 %v8509_v32  ;;  %5569 = vadd.xlane.f32.xlu1 %v5568_v62  ;;  %v14085_v62 = vpack.i.bf16 %v12652_v61, %v12655_v0  ;;  %v14089_v61 = vpack.i.bf16 %v12779_v6, %v12776_v21 }
0x1477   :  { %v6283_v56 = vsel %vm6276_vm9, %v6266_v47, %v8510_v55  ;;  %v6284_v4 = vsel %vm6276_vm9, %v6267_v2, %v8511_v1  ;;  %v14084_v47 = vpack.i.bf16 %v14082_v53, %v14083_v48  ;;  %v14086_v1 = vpack.i.bf16 %v12717_v59, %v12714_v46 }
0x1478   :  { %v8260_v58 = vpop.f32.mrb[132].mxu0  ;;  %v8519_v50 = vpop.permute.xlu1 %8518  ;;  %v14087_v55 = vpack.i.bf16 %v12741_v57, %v12738_v36  ;;  %v14090_v46 = vpack.i.bf16 %v12803_v16, %v12800_v13  ;;  %v8710_v13 = vld [vmem:[#allocation7] sm:$0xff]  }
0x1479   :  { %v13032_v39 = vpop.f32.mrb[133].mxu0  ;;  %v8521_v14 = vunpack.i.h.bf16 %v8519_v50  ;;  %v8520_v9 = vunpack.i.l.bf16 %v8519_v50  ;;  %8282 = vmatprep.subr.bf16.mxu0 %v8710_v13 }
0x147a   :  { %v8261_v26 = vpop.f32.mrb[134].mxu0  ;;  %8283 = vmatpush3.bf16.msra.mxu0 %v8710_v13 }
0x147b   :  { %v6300_v5 = vsel %vm6293_vm10, %v6283_v56, %v8520_v9  ;;  %v6301_v24 = vsel %vm6293_vm10, %v6284_v4, %v8521_v14  ;;  %v13036_v37 = vpop.f32.mrb[135].mxu0 }
0x147c   :  { %v8529_v28 = vpop.permute.xlu1 %8528 }
0x147d   :  { %v8531_v15 = vunpack.i.h.bf16 %v8529_v28  ;;  %v8530_v54 = vunpack.i.l.bf16 %v8529_v28  ;;  %v8711_v28 = vld [vmem:[#allocation7 + $0x8] sm:$0xff]  }
0x147e   :  { %8284 = vmatprep.subr.bf16.mxu0 %v8711_v28 }
0x147f   :  { %v6317_v19 = vsel %vm6310_vm11, %v6300_v5, %v8530_v54  ;;  %v6318_v40 = vsel %vm6310_vm11, %v6301_v24, %v8531_v15  ;;  %8285 = vmatpush3.bf16.msra.mxu0 %v8711_v28 }
0x1480   :  { %v8539_v8 = vpop.permute.xlu1 %8538 }
0x1481   :  { %v8541_v35 = vunpack.i.h.bf16 %v8539_v8  ;;  %v8540_v30 = vunpack.i.l.bf16 %v8539_v8 }
0x1483   :  { %v13041_v7 = vsel %vm6327_vm12, %v6317_v19, %v8540_v30  ;;  %v13044_v22 = vsel %vm6327_vm12, %v6318_v40, %v8541_v35 }
0x1484   :  { %v8549_v31 = vpop.permute.xlu1 %8548 }
0x1485   :  { %v8551_v17 = vunpack.i.h.bf16 %v8549_v31  ;;  %v8550_v11 = vunpack.i.l.bf16 %v8549_v31 }
0x1486   :  { %8568 = vrot.lane.b32.xlu1 %v14084_v47, %s9531_s18 }
0x1487   :  { %v13052_v2 = vsel %vm1109_vm6, %v12940_v51, %v8551_v17  ;;  %v13056_v32 = vsel %vm1109_vm6, %v12902_v29, %v8550_v11  ;;  %v14088_v29 = vpack.i.bf16 %v12761_v41, %v12758_v33 }
0x148a   :  { %8578 = vrot.lane.b32.xlu1 %v14085_v62, %s9502_s25 }
0x148e   :  { %8588 = vrot.lane.b32.xlu1 %v14086_v1, %s9532_s6 }
0x1492   :  { %8598 = vrot.lane.b32.xlu1 %v14087_v55, %s9534_s28 }
0x1496   :  { %8608 = vrot.lane.b32.xlu1 %v14088_v29, %s9495_s22  ;;  %s9535_s22 = smov 28  }
0x149a   :  { %8618 = vrot.lane.b32.xlu1 %v14089_v61, %s9533_s5 }
0x149e   :  { %v5537_v0 = vpop.xlane.xlu0 %5536  ;;  %8628 = vrot.lane.b32.xlu1 %v14090_v46, %s9531_s18 }
0x149f   :  { %9272 = vrcp.f32 %v5537_v0  ;;  %v14091_v0 = vpack.i.bf16 %v12826_v42, %v12806_v38 }
0x14a2   :  { %v5531_v59 = vpop.xlane.xlu0 %5530 }
0x14a6   :  { %v5549_v51 = vpop.xlane.xlu0 %5548 }
0x14a9   :  { %v9273_v5 = vpop.eup %9272 }
0x14aa   :  { %v5543_v36 = vpop.xlane.xlu0 %5542  ;;  %v5781_v19 = vmul.f32 %v9273_v5, %v8260_v58 }
0x14ac   :  { %v8264_v57 = vpop.f32.mrb[136].mxu0 }
0x14ad   :  { %v5659_v56 = vpop.f32.mrb[137].mxu0 }
0x14ae   :  { %v8265_v4 = vpop.f32.mrb[138].mxu0  ;;  %v5561_v50 = vpop.xlane.xlu0 %5560 }
0x14af   :  { %v5662_v33 = vpop.f32.mrb[139].mxu0 }
0x14b2   :  { %v5555_v41 = vpop.xlane.xlu0 %5554 }
0x14b5   :  { %v5540_v14 = vpop.xlane.xlu1 %5539 }
0x14b6   :  { %9274 = vrcp.f32 %v5540_v14  ;;  %v13082_v21 = vpop.xlane.xlu0 %5572 }
0x14b7   :  { %9276 = vrcp.f32 %v5531_v59 }
0x14b9   :  { %v5534_v6 = vpop.xlane.xlu1 %5533 }
0x14ba   :  { %9278 = vrcp.f32 %v5534_v6  ;;  %v13084_v9 = vpop.xlane.xlu0 %5566 }
0x14bb   :  { %9280 = vrcp.f32 %v5549_v51 }
0x14bd   :  { %v5552_v16 = vpop.xlane.xlu1 %5551 }
0x14be   :  { %9282 = vrcp.f32 %v5552_v16  ;;  %v13086_v24 = vpop.permute.xlu0 %8553 }
0x14bf   :  { %9284 = vrcp.f32 %v5543_v36 }
0x14c0   :  { %v9275_v15 = vpop.eup %9274 }
0x14c1   :  { %v5546_v54 = vpop.xlane.xlu1 %5545  ;;  %v5782_v40 = vmul.f32 %v9275_v15, %v8261_v26  ;;  %v9277_v8 = vpop.eup %9276 }
0x14c2   :  { %9286 = vrcp.f32 %v5546_v54  ;;  %v13088_v35 = vpop.permute.xlu0 %8563  ;;  %v5779_v11 = vmul.f32 %v9277_v8, %v13032_v39 }
0x14c3   :  { %v8632_v30 = vpack.i.bf16 %v5782_v40, %v5781_v19  ;;  %9288 = vrcp.f32 %v5561_v50 }
0x14c4   :  { %v9279_v31 = vpop.eup %9278 }
0x14c5   :  { %8633 = vrot.lane.b32.xlu1 %v8632_v30, %s9535_s22  ;;  %v5564_v17 = vpop.xlane.xlu1 %5563  ;;  %v5780_v53 = vmul.f32 %v9279_v31, %v13036_v37  ;;  %v9281_v48 = vpop.eup %9280  ;;  %v14094_v31 = vld [vmem:[#allocation133_spill] sm:$0xff] }
0x14c6   :  { %9290 = vrcp.f32 %v5564_v17  ;;  %v8276_v58 = vpop.f32.mrb[140].mxu0  ;;  %v13093_v26 = vpop.permute.xlu0 %8573  ;;  %v5785_v29 = vmul.f32 %v9281_v48, %v8264_v57  ;;  %v14092_v57 = vpack.i.bf16 %v12816_v34, %v12813_v49 }
0x14c7   :  { %v5732_v47 = vpop.f32.mrb[141].mxu0  ;;  %v8637_v62 = vpack.i.bf16 %v5780_v53, %v5779_v11  ;;  %9292 = vrcp.f32 %v5555_v41 }
0x14c8   :  { %v9283_v1 = vpop.eup %9282  ;;  %v8277_v55 = vpop.f32.mrb[142].mxu0 }
0x14c9   :  { %v5735_v61 = vpop.f32.mrb[143].mxu0  ;;  %8648 = vrot.lane.b32.xlu1 %v14091_v0, %s9502_s25  ;;  %8638 = vrot.lane.b32.xlu0 %v8637_v62, %s9535_s22  ;;  %v5558_v39 = vpop.xlane.xlu1 %5557  ;;  %v5786_v37 = vmul.f32 %v9283_v1, %v8265_v4  ;;  %v14100_v1 = vld [vmem:[#allocation135_spill] sm:$0xff] }
0x14ca   :  { %v9285_v46 = vpop.eup %9284  ;;  %9294 = vrcp.f32 %v5558_v39  ;;  %v13100_v59 = vpop.permute.xlu0 %8583 }
0x14cb   :  { %v8652_v51 = vpack.i.bf16 %v5786_v37, %v5785_v29  ;;  %v5783_v50 = vmul.f32 %v9285_v46, %v5659_v56  ;;  %9296 = vrcp.f32 %v13082_v21 }
0x14cc   :  { %v9287_v36 = vpop.eup %9286  ;;  %9298 = vrcp.f32 %v13084_v9 }
0x14cd   :  { %8643 = vrot.lane.b32.xlu0 %v14092_v57, %s9502_s25  ;;  %8653 = vrot.lane.b32.xlu1 %v8652_v51, %s9535_s22  ;;  %v8559_v38 = vpop.permute.xlu1 %8558  ;;  %v5784_v42 = vmul.f32 %v9287_v36, %v5662_v33  ;;  %v9289_v4 = vpop.eup %9288  ;;  %v14093_v33 = vpack.i.bf16 %v12849_v25, %v12830_v44  ;;  %v14095_v44 = vpack.i.bf16 %v12837_v60, %v14094_v31  ;;  %v14099_v60 = vld [vmem:[#allocation164_spill] sm:$0xff] }
0x14ce   :  { %v8561_v41 = vunpack.i.h.bf16 %v8559_v38  ;;  %v8560_v14 = vunpack.i.l.bf16 %v8559_v38  ;;  %v13107_v6 = vpop.permute.xlu0 %8593  ;;  %v5789_v49 = vmul.f32 %v9289_v4, %v8276_v58 }
0x14cf   :  { %v8657_v13 = vpack.i.bf16 %v5784_v42, %v5783_v50 }
0x14d0   :  { %v9291_v16 = vpop.eup %9290  ;;  %v13111_v5 = vsel %vm6259_vm8, %v13056_v32, %v8560_v14  ;;  %v13115_v56 = vsel %vm6259_vm8, %v13052_v2, %v8561_v41 }
0x14d1   :  { %v5790_v34 = vmul.f32 %v9291_v16, %v8277_v55  ;;  %8668 = vrot.lane.b32.xlu1 %v14093_v33, %s9532_s6  ;;  %8658 = vrot.lane.b32.xlu0 %v8657_v13, %s9535_s22  ;;  %v9293_v15 = vpop.eup %9292  ;;  %v14101_v55 = vpack.i.bf16 %v14099_v60, %v14100_v1  ;;  %v8556_v1 = vunpack.i.h.bf16 %v13086_v24 }
0x14d2   :  { %v8604_v28 = vpop.permute.xlu0 %8603  ;;  %v5787_v8 = vmul.f32 %v9293_v15, %v5732_v47  ;;  %v14097_v47 = vld [vmem:[#allocation162_spill] sm:$0xff] }
0x14d3   :  { %v8672_v54 = vpack.i.bf16 %v5790_v34, %v5789_v49  ;;  %v8606_v19 = vunpack.i.h.bf16 %v8604_v28  ;;  %v8605_v40 = vunpack.i.l.bf16 %v8604_v28 }
0x14d4   :  { %v9295_v32 = vpop.eup %9294 }
0x14d5   :  { %v6255_v2 = vsel %vm1109_vm6, %v12912_v10, %v8605_v40  ;;  %v6256_v30 = vsel %vm1109_vm6, %v12950_v27, %v8606_v19  ;;  %8663 = vrot.lane.b32.xlu0 %v14095_v44, %s9532_s6  ;;  %8673 = vrot.lane.b32.xlu1 %v8672_v54, %s9535_s22  ;;  %v5788_v25 = vmul.f32 %v9295_v32, %v5735_v61  ;;  %v14096_v27 = vld [vmem:[#allocation161_spill] sm:$0xff]  ;;  %v9297_v39 = vpop.eup %9296  ;;  %v14102_v54 = vld [vmem:[#allocation163_spill] sm:$0xff] }
0x14d6   :  { %v8614_v17 = vpop.permute.xlu0 %8613  ;;  %v14098_v62 = vpack.i.bf16 %v14096_v27, %v14097_v47  ;;  %v9299_v51 = vpop.eup %9298  ;;  %v8555_v47 = vunpack.i.l.bf16 %v13086_v24 }
0x14d7   :  { %v8616_v11 = vunpack.i.h.bf16 %v8614_v17  ;;  %v8615_v53 = vunpack.i.l.bf16 %v8614_v17  ;;  %v8677_v48 = vpack.i.bf16 %v5788_v25, %v5787_v8 }
0x14d9   :  { %v13132_v58 = vsel %vm6259_vm8, %v6255_v2, %v8615_v53  ;;  %v13135_v10 = vsel %vm6259_vm8, %v6256_v30, %v8616_v11  ;;  %8688 = vrot.lane.b32.xlu1 %v14098_v62, %s9534_s28  ;;  %8678 = vrot.lane.b32.xlu0 %v8677_v48, %s9535_s22 }
0x14da   :  { %v8624_v53 = vpop.permute.xlu0 %8623 }
0x14dd   :  { %8683 = vrot.lane.b32.xlu0 %v14101_v55, %s9534_s28 }
0x14fe   :  { %v5576_v29 = vpop.xlane.xlu1 %5575 }
0x14ff   :  { %9300 = vrcp.f32 %v5576_v29 }
0x1502   :  { %v5570_v61 = vpop.xlane.xlu1 %5569 }
0x1503   :  { %9302 = vrcp.f32 %v5570_v61 }
0x1506   :  { %v13148_v0 = vpop.permute.xlu1 %8568 }
0x1509   :  { %v9301_v50 = vpop.eup %9300 }
0x150a   :  { %v8280_v37 = vpop.f32.mrb[148].mxu1  ;;  %v13150_v46 = vpop.permute.xlu1 %8578 }
0x150b   :  { %v5748_v36 = vpop.f32.mrb[149].mxu1  ;;  %v5793_v42 = vmul.f32 %v9297_v39, %v8280_v37 }
0x150c   :  { %v8281_v57 = vpop.f32.mrb[150].mxu1  ;;  %v5791_v21 = vmul.f32 %v9299_v51, %v5748_v36 }
0x150d   :  { %v9303_v38 = vpop.eup %9302  ;;  %v5794_v41 = vmul.f32 %v9301_v50, %v8281_v57  ;;  %v5751_v14 = vpop.f32.mrb[151].mxu1  ;;  %v6268_v50 = vsel %vm6259_vm8, %v13018_v63, %v8555_v47  ;;  %v8626_v57 = vunpack.i.h.bf16 %v8624_v53  ;;  %v8565_v63 = vunpack.i.l.bf16 %v13088_v35 }
0x150e   :  { %v5792_v4 = vmul.f32 %v9303_v38, %v5751_v14  ;;  %v13152_v9 = vpop.permute.xlu1 %8588  ;;  %v8625_v38 = vunpack.i.l.bf16 %v8624_v53  ;;  %v8566_v14 = vunpack.i.h.bf16 %v13088_v35 }
0x150f   :  { %v8697_v13 = vpack.i.bf16 %v5794_v41, %v5793_v42  ;;  %v6269_v41 = vsel %vm6259_vm8, %v13022_v52, %v8556_v1  ;;  %v8570_v52 = vunpack.i.l.bf16 %v13148_v0 }
0x1510   :  { %v8692_v16 = vpack.i.bf16 %v5792_v4, %v5791_v21 }
0x1511   :  { %8698 = vrot.lane.b32.xlu1 %v8697_v13, %s9535_s22 }
0x1512   :  { %8693 = vrot.lane.b32.xlu0 %v8692_v16, %s9535_s22  ;;  %v13156_v49 = vpop.permute.xlu1 %8598 }
0x1516   :  { %v8609_v34 = vpop.permute.xlu1 %8608 }
0x1517   :  { %v8611_v33 = vunpack.i.h.bf16 %v8609_v34  ;;  %v8610_v28 = vunpack.i.l.bf16 %v8609_v34 }
0x1519   :  { %v6258_v15 = vsel %vm1109_vm6, %v12966_v12, %v8611_v33  ;;  %v6257_v19 = vsel %vm1109_vm6, %v14102_v54, %v8610_v28  ;;  %v6289_v33 = vsel %vm6276_vm9, %v13132_v58, %v8625_v38  ;;  %v6290_v28 = vsel %vm6276_vm9, %v13135_v10, %v8626_v57 }
0x151a   :  { %v8619_v40 = vpop.permute.xlu1 %8618  ;;  %v8576_v10 = vunpack.i.h.bf16 %v13093_v26 }
0x151b   :  { %v8621_v32 = vunpack.i.h.bf16 %v8619_v40  ;;  %v8620_v8 = vunpack.i.l.bf16 %v8619_v40  ;;  %v8580_v40 = vunpack.i.l.bf16 %v13150_v46 }
0x151d   :  { %v6274_v2 = vsel %vm6259_vm8, %v6257_v19, %v8620_v8  ;;  %v6275_v30 = vsel %vm6259_vm8, %v6258_v15, %v8621_v32  ;;  %v8571_v15 = vunpack.i.h.bf16 %v13148_v0  ;;  %v8581_v0 = vunpack.i.h.bf16 %v13150_v46 }
0x151e   :  { %v8629_v31 = vpop.permute.xlu1 %8628  ;;  %v6287_v46 = vsel %vm6276_vm9, %v13111_v5, %v8570_v52 }
0x151f   :  { %v8631_v44 = vunpack.i.h.bf16 %v8629_v31  ;;  %v8630_v25 = vunpack.i.l.bf16 %v8629_v31  ;;  %v8590_v31 = vunpack.i.l.bf16 %v13152_v9  ;;  %v6288_v53 = vsel %vm6276_vm9, %v13115_v56, %v8571_v15 }
0x1521   :  { %v6291_v17 = vsel %vm6276_vm9, %v6274_v2, %v8630_v25  ;;  %v6292_v11 = vsel %vm6276_vm9, %v6275_v30, %v8631_v44  ;;  %v8591_v30 = vunpack.i.h.bf16 %v13152_v9  ;;  %v8575_v25 = vunpack.i.l.bf16 %v13093_v26 }
0x1522   :  { %v8585_v26 = vunpack.i.l.bf16 %v13100_v59 }
0x1537   :  { %v8634_v12 = vpop.permute.xlu1 %8633 }
0x1538   :  { %v8636_v48 = vunpack.i.h.bf16 %v8634_v12  ;;  %v8635_v27 = vunpack.i.l.bf16 %v8634_v12 }
0x153a   :  { %v6347_v62 = vsel %vm6344_vm13, %v13001_v23, %v8635_v27  ;;  %v6348_v60 = vsel %vm6344_vm13, %v13004_v45, %v8636_v48  ;;  %v6304_v48 = vsel %vm6293_vm10, %v6287_v46, %v8580_v40  ;;  %v6305_v27 = vsel %vm6293_vm10, %v6288_v53, %v8581_v0  ;;  %v13266_v53 = vld [vmem:[#allocation8] ss:$0 sm:$0xff] }
0x153b   :  { %v6366_v55 = vpack.c.bf16 %v6348_v60, %v6347_v62  ;;  %v8639_v29 = vpop.permute.xlu0 %8638  ;;  %v8649_v61 = vpop.permute.xlu1 %8648  ;;  %v6321_v5 = vsel %vm6310_vm11, %v6304_v48, %v8590_v31  ;;  %v6322_v60 = vsel %vm6310_vm11, %v6305_v27, %v8591_v30 }
0x153c   :  { %v8641_v39 = vunpack.i.h.bf16 %v8639_v29  ;;  %v8640_v37 = vunpack.i.l.bf16 %v8639_v29  ;;  %v8651_v51 = vunpack.i.h.bf16 %v8649_v61  ;;  %v8650_v36 = vunpack.i.l.bf16 %v8649_v61 }
0x153d   :  { %v6285_v29 = vsel %vm6276_vm9, %v6268_v50, %v8565_v63  ;;  %v6286_v61 = vsel %vm6276_vm9, %v6269_v41, %v8566_v14 }
0x153e   :  { %v6345_v23 = vsel %vm6344_vm13, %v12977_v3, %v8640_v37  ;;  %v6346_v45 = vsel %vm6344_vm13, %v12982_v43, %v8641_v39  ;;  %v13179_v24 = vsel %vm6293_vm10, %v6291_v17, %v8650_v36  ;;  %v13182_v42 = vsel %vm6293_vm10, %v6292_v11, %v8651_v51 }
0x153f   :  { %v6365_v21 = vpack.c.bf16 %v6346_v45, %v6345_v23  ;;  %v8644_v4 = vpop.permute.xlu0 %8643  ;;  %v8654_v13 = vpop.permute.xlu1 %8653  ;;  %v8601_v17 = vunpack.i.h.bf16 %v13156_v49  ;;  %v8600_v11 = vunpack.i.l.bf16 %v13156_v49  ;;  %v6302_v51 = vsel %vm6293_vm10, %v6285_v29, %v8575_v25 }
0x1540   :  { %v8646_v3 = vunpack.i.h.bf16 %v8644_v4  ;;  %v8645_v16 = vunpack.i.l.bf16 %v8644_v4  ;;  %v8656_v34 = vunpack.i.h.bf16 %v8654_v13  ;;  %v8655_v43 = vunpack.i.l.bf16 %v8654_v13 }
0x1541   :  { %8286 = vmatprep.mubr.msk.bf16.mxu0 %vm163_vm1, %v6365_v21  ;;  %v6319_v38 = vsel %vm6310_vm11, %v6302_v51, %v8585_v26 }
0x1542   :  { %v13196_v35 = vsel %vm6293_vm10, %v6290_v28, %v8646_v3  ;;  %v13199_v54 = vsel %vm6293_vm10, %v6289_v33, %v8645_v16  ;;  %v6351_v19 = vsel %vm6344_vm13, %v13041_v7, %v8655_v43  ;;  %v6352_v58 = vsel %vm6344_vm13, %v13044_v22, %v8656_v34  ;;  %8287 = vmatmul.mubr.msk.bf16.vlgmr.msra.gmra.mrb[144].mxu0 %vm163_vm1, %v6366_v55 }
0x1543   :  { %v6368_v32 = vpack.c.bf16 %v6352_v58, %v6351_v19  ;;  %v8659_v8 = vpop.permute.xlu0 %8658  ;;  %v8669_v2 = vpop.permute.xlu1 %8668  ;;  %v8586_v22 = vunpack.i.h.bf16 %v13100_v59  ;;  %v8595_v55 = vunpack.i.l.bf16 %v13107_v6  ;;  %v6339_v59 = vsel %vm6327_vm12, %v6322_v60, %v8601_v17 }
0x1544   :  { %v8661_v44 = vunpack.i.h.bf16 %v8659_v8  ;;  %v8660_v7 = vunpack.i.l.bf16 %v8659_v8  ;;  %v8671_v3 = vunpack.i.h.bf16 %v8669_v2  ;;  %v8670_v16 = vunpack.i.l.bf16 %v8669_v2 }
0x1545   :  { %v6336_v41 = vsel %vm6327_vm12, %v6319_v38, %v8595_v55 }
0x1546   :  { %v6350_v12 = vsel %vm6344_vm13, %v13010_v18, %v8661_v44  ;;  %v6349_v9 = vsel %vm6344_vm13, %v13007_v20, %v8660_v7  ;;  %v8596_v18 = vunpack.i.h.bf16 %v13107_v6  ;;  %v6338_v20 = vsel %vm6327_vm12, %v6321_v5, %v8600_v11 }
0x1547   :  { %v6367_v47 = vpack.c.bf16 %v6350_v12, %v6349_v9  ;;  %v8664_v49 = vpop.permute.xlu0 %8663  ;;  %v8674_v62 = vpop.permute.xlu1 %8673  ;;  %v6303_v6 = vsel %vm6293_vm10, %v6286_v61, %v8576_v10  ;;  %v6325_v58 = vsel %vm6310_vm11, %v13179_v24, %v8670_v16  ;;  %v6326_v10 = vsel %vm6310_vm11, %v13182_v42, %v8671_v3 }
0x1548   :  { %v8676_v56 = vunpack.i.h.bf16 %v8674_v62  ;;  %v8675_v1 = vunpack.i.l.bf16 %v8674_v62  ;;  %v6320_v23 = vsel %vm6310_vm11, %v6303_v6, %v8586_v22  ;;  %v8666_v43 = vunpack.i.h.bf16 %v8664_v49 }
0x1549   :  { %8290 = vmatprep.mubr.msk.bf16.mxu0 %vm163_vm1, %v6367_v47  ;;  %v6337_v14 = vsel %vm6327_vm12, %v6320_v23, %v8596_v18  ;;  %v8665_v33 = vunpack.i.l.bf16 %v8664_v49  ;;  %v14103_v49 = vld [vmem:[#allocation22_spill] sm:$0xff]  ;;  %v14105_v18 = vld [vmem:[#allocation23_spill] sm:$0xff] }
0x154a   :  { %v6355_v39 = vsel %vm6344_vm13, %v6338_v20, %v8675_v1  ;;  %v6356_v37 = vsel %vm6344_vm13, %v6339_v59, %v8676_v56  ;;  %8291 = vmatmul.mubr.msk.bf16.gmra.mrb[148].mxu0 %vm163_vm1, %v6368_v32  ;;  %v6324_v40 = vsel %vm6310_vm11, %v13196_v35, %v8666_v43  ;;  %v14104_v56 = vld [vmem:[#allocation24_spill] sm:$0xff]  ;;  %v14106_v59 = vld [vmem:[#allocation25_spill] sm:$0xff] }
0x154b   :  { %v6370_v36 = vpack.c.bf16 %v6356_v37, %v6355_v39  ;;  %v8679_v57 = vpop.permute.xlu0 %8678  ;;  %v8689_v13 = vpop.permute.xlu1 %8688  ;;  %v6323_v32 = vsel %vm6310_vm11, %v13199_v54, %v8665_v33 }
0x154c   :  { %v8681_v45 = vunpack.i.h.bf16 %v8679_v57  ;;  %v8680_v50 = vunpack.i.l.bf16 %v8679_v57  ;;  %v8691_v28 = vunpack.i.h.bf16 %v8689_v13  ;;  %v8690_v15 = vunpack.i.l.bf16 %v8689_v13  ;;  %v14108_v13 = vld [vmem:[#allocation28_spill] sm:$0xff] }
0x154e   :  { %v6354_v63 = vsel %vm6344_vm13, %v6337_v14, %v8681_v45  ;;  %v6353_v21 = vsel %vm6344_vm13, %v6336_v41, %v8680_v50  ;;  %v6342_v31 = vsel %vm6327_vm12, %v6325_v58, %v8690_v15  ;;  %v6343_v44 = vsel %vm6327_vm12, %v6326_v10, %v8691_v28  ;;  %v14107_v41 = vld [vmem:[#allocation26_spill] sm:$0xff]  ;;  %v14110_v28 = vld [vmem:[#allocation29_spill] sm:$0xff] }
0x154f   :  { %v6369_v4 = vpack.c.bf16 %v6354_v63, %v6353_v21  ;;  %v8684_v34 = vpop.permute.xlu0 %8683 }
0x1550   :  { %v8686_v52 = vunpack.i.h.bf16 %v8684_v34  ;;  %v8685_v19 = vunpack.i.l.bf16 %v8684_v34  ;;  %v14109_v34 = vld [vmem:[#allocation27_spill] sm:$0xff] }
0x1551   :  { %8294 = vmatprep.mubr.msk.bf16.mxu0 %vm163_vm1, %v6369_v4 }
0x1552   :  { %8295 = vmatmul.mubr.msk.bf16.gmra.mrb[152].mxu0 %vm163_vm1, %v6370_v36  ;;  %v6341_v24 = vsel %vm6327_vm12, %v6324_v40, %v8686_v52  ;;  %v6340_v42 = vsel %vm6327_vm12, %v6323_v32, %v8685_v19 }
0x1583   :  { %v8699_v0 = vpop.permute.xlu1 %8698 }
0x1584   :  { %v8701_v8 = vunpack.i.h.bf16 %v8699_v0  ;;  %v8700_v2 = vunpack.i.l.bf16 %v8699_v0  ;;  %v8694_v30 = vpop.permute.xlu0 %8693 }
0x1585   :  { %v8696_v7 = vunpack.i.h.bf16 %v8694_v30  ;;  %v8695_v25 = vunpack.i.l.bf16 %v8694_v30 }
0x1586   :  { %v6359_v22 = vsel %vm6344_vm13, %v6342_v31, %v8700_v2  ;;  %v6360_v35 = vsel %vm6344_vm13, %v6343_v44, %v8701_v8  ;;  %v14111_v44 = vld [vmem:[#allocation30_spill] sm:$0xff] }
0x1587   :  { %v6372_v17 = vpack.c.bf16 %v6360_v35, %v6359_v22  ;;  %v6358_v54 = vsel %vm6344_vm13, %v6341_v24, %v8696_v7  ;;  %v6357_v11 = vsel %vm6344_vm13, %v6340_v42, %v8695_v25  ;;  %v14112_v22 = vld [vmem:[#allocation32_spill] sm:$0xff] }
0x1588   :  { %v6371_v46 = vpack.c.bf16 %v6358_v54, %v6357_v11 }
0x158a   :  { %8298 = vmatprep.mubr.msk.bf16.mxu0 %vm163_vm1, %v6371_v46  ;;  %v14114_v46 = vld [vmem:[#allocation33_spill] sm:$0xff] }
0x158b   :  { %8299 = vmatmul.mubr.msk.bf16.gmra.mrb[156].mxu0 %vm163_vm1, %v6372_v17  ;;  %v14113_v17 = vld [vmem:[#allocation31_spill] sm:$0xff] }
0x1615   :  { %v8288_v12 = vpop.f32.mrb[144].mxu0 }
0x1616   :  { %v6450_v9 = vpop.f32.mrb[145].mxu0  ;;  %v6459_v26 = vadd.f32 %v8288_v12, %v13266_v53 }
0x1617   :  { %v6451_v48 = vadd.f32 %v13266_v53, %v6450_v9  ;;  %v8289_v27 = vpop.f32.mrb[146].mxu0 }
0x1618   :  { %v6453_v47 = vpop.f32.mrb[147].mxu0  ;;  %v6462_v5 = vadd.f32 %v8289_v27, %v13266_v53  ;;  %v6515_v1 = vadd.f32 %v6459_v26, %v14104_v56 }
0x1619   :  { %v6513_v62 = vadd.f32 %v6451_v48, %v14103_v49  ;;  %v6454_v60 = vadd.f32 %v13266_v53, %v6453_v47 }
0x161a   :  { %v6516_v29 = vadd.f32 %v6462_v5, %v14106_v59  ;;  %v6532_v6 = vsel %vm163_vm1, %v6515_v1, 0.0 }
0x161b   :  { %v6514_v55 = vadd.f32 %v6454_v60, %v14105_v18  ;;  %v6529_v20 = vsel %vm163_vm1, %v6513_v62, 0.0 }
0x161c   :  { %v6534_v50 = vsel %vm163_vm1, %v6516_v29, 0.0 }
0x161d   :  { %v6530_v61 = vsel %vm163_vm1, %v6514_v55, 0.0  ;;  %v8292_v39 = vpop.f32.mrb[148].mxu0 }
0x161e   :  { %v6531_v37 = vadd.f32 %v6530_v61, %v6529_v20  ;;  %v6466_v51 = vpop.f32.mrb[149].mxu0  ;;  %v6475_v36 = vadd.f32 %v8292_v39, %v13266_v53  ;;  %v14115_v20 = vld [vmem:[#allocation34_spill] sm:$0xff]  ;;  %v14116_v39 = vld [vmem:[#allocation36_spill] sm:$0xff] }
0x161f   :  { %v6467_v57 = vadd.f32 %v13266_v53, %v6466_v51  ;;  %v8293_v38 = vpop.f32.mrb[150].mxu0 }
0x1620   :  { %v6533_v23 = vadd.f32 %v6532_v6, %v6531_v37  ;;  %v6469_v45 = vpop.f32.mrb[151].mxu0  ;;  %v6478_v63 = vadd.f32 %v8293_v38, %v13266_v53  ;;  %v6519_v3 = vadd.f32 %v6475_v36, %v14108_v13  ;;  %v14117_v6 = vld [vmem:[#allocation35_spill] sm:$0xff] }
0x1621   :  { %v6517_v14 = vadd.f32 %v6467_v57, %v14107_v41  ;;  %v6470_v21 = vadd.f32 %v13266_v53, %v6469_v45 }
0x1622   :  { %v6535_v4 = vadd.f32 %v6534_v50, %v6533_v23  ;;  %v6520_v15 = vadd.f32 %v6478_v63, %v14110_v28  ;;  %v6540_v0 = vsel %vm163_vm1, %v6519_v3, 0.0  ;;  %v14118_v23 = vld [vmem:[#allocation37_spill] sm:$0xff] }
0x1623   :  { %v6536_v16 = vsel %vm163_vm1, %v6517_v14, 0.0  ;;  %v6518_v43 = vadd.f32 %v6470_v21, %v14109_v34 }
0x1624   :  { %v6537_v33 = vadd.f32 %v6536_v16, %v6535_v4  ;;  %v6542_v31 = vsel %vm163_vm1, %v6520_v15, 0.0 }
0x1625   :  { %v6538_v52 = vsel %vm163_vm1, %v6518_v43, 0.0  ;;  %v8296_v19 = vpop.f32.mrb[152].mxu0 }
0x1626   :  { %v6539_v58 = vadd.f32 %v6538_v52, %v6537_v33  ;;  %v6482_v10 = vpop.f32.mrb[153].mxu0  ;;  %v6491_v40 = vadd.f32 %v8296_v19, %v13266_v53 }
0x1627   :  { %v6483_v32 = vadd.f32 %v13266_v53, %v6482_v10  ;;  %v8297_v8 = vpop.f32.mrb[154].mxu0 }
0x1628   :  { %v6541_v2 = vadd.f32 %v6540_v0, %v6539_v58  ;;  %v6485_v30 = vpop.f32.mrb[155].mxu0  ;;  %v6494_v25 = vadd.f32 %v8297_v8, %v13266_v53  ;;  %v6523_v35 = vadd.f32 %v6491_v40, %v14112_v22  ;;  %v8725_v22 = vld [vmem:[%s13456_s15] sm:$0xff]  }
0x1629   :  { %v6521_v7 = vadd.f32 %v6483_v32, %v14111_v44  ;;  %v6486_v24 = vadd.f32 %v13266_v53, %v6485_v30  ;;  %v8714_v44 = vld [vmem:[#allocation13 + $0x4] ss:$16 sps:$4 sm:$0xff]  }
0x162a   :  { %v6543_v42 = vadd.f32 %v6542_v31, %v6541_v2  ;;  %v6524_v12 = vadd.f32 %v6494_v25, %v14114_v46  ;;  %v6554_v48 = vsel %vm163_vm1, %v6523_v35, 0.0  ;;  %v8712_v31 = vld [vmem:[#allocation13] ss:$16 sps:$4 sm:$0xff]   ;;  %6678 = vmatprep.subr.bf16.mxu1 %v8714_v44 }
0x162b   :  { %v6522_v54 = vadd.f32 %v6486_v24, %v14113_v17  ;;  %v6551_v11 = vsel %vm163_vm1, %v6521_v7, 0.0  ;;  %v8717_v7 = vld [vmem:[#allocation13 + $0x24] ss:$16 sps:$4 sm:$0xff]   ;;  %6679 = vmatpush1.bf16.msra.mxu1 %v8712_v31  ;;  %v8715_v25 = vld [vmem:[#allocation13 + $0x20] ss:$16 sps:$4 sm:$0xff]  }
0x162c   :  { %v6556_v47 = vsel %vm163_vm1, %v6524_v12, 0.0  ;;  %v6544_v18 = vrot.slane %v6543_v42, 4  ;;  %6680 = vmatprep.subr.bf16.mxu1 %v8717_v7  ;;  %v8720_v24 = vld [vmem:[#allocation13 + $0xc] ss:$16 sps:$4 sm:$0xff]   ;;  %v8726_v35 = vld [vmem:[%s13456_s15 + $0x48] sm:$0xff]   ;;  %v8732_v46 = vld [vmem:[%s13456_s15 + $0x58] sm:$0xff]  }
0x162d   :  { %v6552_v9 = vsel %vm163_vm1, %v6522_v54, 0.0  ;;  %v8727_v17 = vld [vmem:[%s13456_s15 + $0x8] sm:$0xff]   ;;  %v8728_v54 = vld [vmem:[%s13456_s15 + $0x50] sm:$0xff]   ;;  %v8734_v12 = vld [vmem:[%s13456_s15 + $0x18] sm:$0xff]  }
0x162e   :  { %v6553_v26 = vadd.f32 %v6552_v9, %v6551_v11  ;;  %v6545_v57 = vadd.f32 %v6544_v18, %v6543_v42  ;;  %v8724_v42 = vld [vmem:[%s13456_s15 + $0x40] sm:$0xff]   ;;  %v8730_v11 = vld [vmem:[%s13456_s15 + $0x10] sm:$0xff]  }
0x162f   :  { %6681 = vmatpush1.bf16.msra.mxu1 %v8715_v25  ;;  %7644 = vmatprep.subr.bf16.mxu0 %v8724_v42  ;;  %v8736_v9 = vld [vmem:[%s13456_s15 + $0x60] sm:$0xff]  }
0x1630   :  { %v6555_v27 = vadd.f32 %v6554_v48, %v6553_v26  ;;  %v6546_v21 = vrot.slane %v6545_v57, 2  ;;  %6719 = vmatprep.subr.bf16.mxu1 %v8720_v24  ;;  %7645 = vmatpush3.bf16.msra.mxu0 %v8725_v22  ;;  %v8738_v26 = vld [vmem:[%s13456_s15 + $0x20] sm:$0xff]   ;;  %v8740_v48 = vld [vmem:[%s13456_s15 + $0x68] sm:$0xff]  }
0x1631   :  { %7646 = vmatprep.subr.bf16.mxu0 %v8726_v35 }
0x1632   :  { %v6557_v49 = vadd.f32 %v6556_v47, %v6555_v27  ;;  %v6547_v3 = vadd.f32 %v6546_v21, %v6545_v57  ;;  %v8742_v27 = vld [vmem:[%s13456_s15 + $0x28] sm:$0xff]   ;;  %v8737_v57 = vld [vmem:[%s13456_s15 + $0xd0] sm:$0xff]   ;;  %v8748_v21 = vld [vmem:[%s13456_s15 + $0x78] sm:$0xff]  }
0x1634   :  { %v6548_v34 = vrot.slane %v6547_v3, 1  ;;  %7647 = vmatpush3.bf16.msra.mxu0 %v8727_v17 }
0x1635   :  { %7648 = vmatprep.subr.bf16.mxu0 %v8728_v54 }
0x1636   :  { %v6549_v28 = vadd.f32 %v6548_v34, %v6547_v3  ;;  %v8752_v3 = vld [vmem:[%s13456_s15 + $0xf0] sm:$0xff]   ;;  %v8754_v34 = vld [vmem:[%s13456_s15 + $0xf8] sm:$0xff]  }
0x1638   :  { %v6550_v19 = vmul.f32 0.015625, %v6549_v28  ;;  %7649 = vmatpush3.bf16.msra.mxu0 %v8730_v11  ;;  %v14120_v28 = vld [vmem:[#allocation21_spill] sm:$0xff] }
0x1639   :  { %7650 = vmatprep.subr.bf16.mxu0 %v8732_v46 }
0x163c   :  { %7651 = vmatpush3.bf16.msra.mxu0 %v8734_v12 }
0x163d   :  { %7652 = vmatprep.subr.bf16.mxu0 %v8736_v9 }
0x1640   :  { %7653 = vmatpush3.bf16.msra.mxu0 %v8738_v26 }
0x1641   :  { %7654 = vmatprep.subr.bf16.mxu0 %v8740_v48 }
0x1644   :  { %7655 = vmatpush3.bf16.msra.mxu0 %v8742_v27 }
0x165e   :  { %v8300_v62 = vpop.f32.mrb[156].mxu0 }
0x165f   :  { %v6498_v5 = vpop.f32.mrb[157].mxu0  ;;  %v6507_v60 = vadd.f32 %v8300_v62, %v13266_v53 }
0x1660   :  { %v6499_v56 = vadd.f32 %v13266_v53, %v6498_v5  ;;  %v8301_v1 = vpop.f32.mrb[158].mxu0 }
0x1661   :  { %v6501_v55 = vpop.f32.mrb[159].mxu0  ;;  %v6510_v29 = vadd.f32 %v8301_v1, %v13266_v53  ;;  %v6527_v37 = vadd.f32 %v6507_v60, %v14116_v39  ;;  %v7294_v60 = vld [vmem:[#allocation10] ss:$0 sm:$0xff]  ;;  %v7295_v1 = vld [vmem:[#allocation11] ss:$0 sm:$0xff]  ;;  %v14119_v39 = vmov 0  }
0x1662   :  { %v6525_v59 = vadd.f32 %v6499_v56, %v14115_v20  ;;  %v6502_v61 = vadd.f32 %v13266_v53, %v6501_v55  ;;  %v8718_v20 = vld [vmem:[#allocation13 + $0x8] ss:$16 sps:$4 sm:$0xff]  }
0x1663   :  { %v6528_v45 = vadd.f32 %v6510_v29, %v14118_v23  ;;  %v6562_v14 = vsel %vm163_vm1, %v6527_v37, 0.0  ;;  %v8723_v29 = vld [vmem:[#allocation13 + $0x2c] ss:$16 sps:$4 sm:$0xff]   ;;  %v8741_v23 = vld [vmem:[%s13456_s15 + $0xd8] sm:$0xff]  }
0x1664   :  { %v6558_v51 = vsel %vm163_vm1, %v6525_v59, 0.0  ;;  %v6526_v36 = vadd.f32 %v6502_v61, %v14117_v6  ;;  %v8721_v61 = vld [vmem:[#allocation13 + $0x28] ss:$16 sps:$4 sm:$0xff]  }
0x1665   :  { %v6559_v38 = vadd.f32 %v6558_v51, %v6557_v49  ;;  %v6564_v4 = vsel %vm163_vm1, %v6528_v45, 0.0  ;;  %v8729_v37 = vld [vmem:[%s13456_s15 + $0xc0] sm:$0xff]   ;;  %v8733_v6 = vld [vmem:[%s13456_s15 + $0xc8] sm:$0xff]   ;;  %v8743_v45 = vld [vmem:[%s13456_s15 + $0x98] sm:$0xff]  }
0x1666   :  { %v6560_v50 = vsel %vm163_vm1, %v6526_v36, 0.0  ;;  %v8731_v51 = vld [vmem:[%s13456_s15 + $0x80] sm:$0xff]   ;;  %v8735_v36 = vld [vmem:[%s13456_s15 + $0x88] sm:$0xff]  }
0x1667   :  { %v6561_v41 = vadd.f32 %v6560_v50, %v6559_v38  ;;  %v8739_v38 = vld [vmem:[%s13456_s15 + $0x90] sm:$0xff]  }
0x1668   :  { %v8744_v50 = vld [vmem:[%s13456_s15 + $0x70] sm:$0xff]  }
0x1669   :  { %v6563_v63 = vadd.f32 %v6562_v14, %v6561_v41  ;;  %v8745_v41 = vld [vmem:[%s13456_s15 + $0xe0] sm:$0xff]   ;;  %v8746_v14 = vld [vmem:[%s13456_s15 + $0x30] sm:$0xff]   ;;  %7656 = vmatprep.subr.bf16.mxu0 %v8744_v50 }
0x166a   :  { %7657 = vmatpush3.bf16.msra.mxu0 %v8746_v14 }
0x166b   :  { %v6565_v53 = vadd.f32 %v6564_v4, %v6563_v63  ;;  %v8747_v63 = vld [vmem:[%s13456_s15 + $0xa0] sm:$0xff]   ;;  %v8749_v4 = vld [vmem:[%s13456_s15 + $0xe8] sm:$0xff]   ;;  %7658 = vmatprep.subr.bf16.mxu0 %v8748_v21 }
0x166d   :  { %v6566_v13 = vrot.slane %v6565_v53, 4 }
0x166f   :  { %v6567_v16 = vadd.f32 %v6566_v13, %v6565_v53  ;;  %v8750_v53 = vld [vmem:[%s13456_s15 + $0x38] sm:$0xff]   ;;  %v8751_v13 = vld [vmem:[%s13456_s15 + $0xa8] sm:$0xff]  }
0x1670   :  { %7659 = vmatpush3.bf16.msra.mxu0 %v8750_v53 }
0x1671   :  { %v6568_v43 = vrot.slane %v6567_v16, 2 }
0x1673   :  { %v6569_v33 = vadd.f32 %v6568_v43, %v6567_v16  ;;  %v8753_v16 = vld [vmem:[%s13456_s15 + $0xb0] sm:$0xff]   ;;  %v8755_v43 = vld [vmem:[%s13456_s15 + $0xb8] sm:$0xff]  }
0x1675   :  { %v6570_v15 = vrot.slane %v6569_v33, 1 }
0x1677   :  { %v6571_v52 = vadd.f32 %v6570_v15, %v6569_v33  ;;  %v6613_v33 = vld [vmem:[%s13455_s14] sm:$0xf] }
0x1678   :  { %v6618_v15 = vrot.slane %v6613_v33, %v14120_v28 }
0x1679   :  { %v6572_v58 = vmul.f32 0.015625, %v6571_v52  ;;  %v14121_v52 = vld [vmem:[#allocation20_spill] sm:$0xff] }
0x167b   :  { %v6573_v10 = vsel %vm251_vm2, %v6550_v19, %v6572_v58  ;;  %v14122_v19 = vsub.s32 1, %v14121_v52 }
0x167c   :  { %v6575_v0 = vsel %vm6574_vm14, %v6573_v10, 0.0 }
0x167d   :  { %6576 = vadd.xlane.f32.xlu0 %v6575_v0  ;;  %v6622_v58 = vrot.slane %v6613_v33, %v14122_v19 }
0x170a   :  { %v6577_v40 = vpop.xlane.xlu0 %6576 }
0x170b   :  { %v6578_v32 = vmul.f32 0.03125, %v6577_v40 }
0x170d   :  { %v6579_v8 = vsub.f32 %v6573_v10, %v6578_v32  ;;  %v6625_v32 = vsub.s32 2, %v14121_v52 }
0x170f   :  { %v6580_v2 = vmul.f32 %v6579_v8, %v6579_v8  ;;  %v6626_v25 = vrot.slane %v6613_v33, %v6625_v32 }
0x1711   :  { %v6581_v30 = vsel %vm6574_vm14, %v6580_v2, 0.0 }
0x1712   :  { %6582 = vadd.xlane.f32.xlu1 %v6581_v30  ;;  %v6629_v30 = vsub.s32 3, %v14121_v52 }
0x1714   :  { %v6630_v42 = vrot.slane %v6613_v33, %v6629_v30 }
0x179f   :  { %v6583_v47 = vpop.xlane.xlu1 %6582 }
0x17a0   :  { %v6584_v49 = vmul.f32 0.03125, %v6583_v47 }
0x17a2   :  { %v6585_v62 = vadd.f32 1e-05, %v6584_v49 }
0x17a4   :  { %9304 = vrsqrt.f32 %v6585_v62 }
0x17ae   :  { %v9305_v5 = vpop.eup %9304 }
0x17af   :  { %v6587_v56 = vmul.f32 %v9305_v5, %v6579_v8 }
0x17b1   :  { %v6595_v18 = vmul.f32 %v7294_v60, %v6587_v56  ;;  %v7306_v56 = vld [vmem:[%s13457_s16] ss:$0 sm:$0xff] }
0x17b3   :  { %v6603_v55 = vadd.f32 %v7295_v1, %v6595_v18 }
0x17b5   :  { %v6612_v59 = vpack.c.bf16 %v6603_v55, %v6603_v55 }
0x17b7   :  { %7304 = vmatmul.mubr.msk.bf16.vlgmr.msra.gmra.mrb[152].mxu1 %vm163_vm1, %v6612_v59 }
0x17b8   :  { %6720 = vmatpush1.bf16.msra.mxu1 %v8718_v20  ;;  %6751 = vmatprep.mubr.bf16.mxu1 %v14119_v39 }
0x17b9   :  { %6721 = vmatprep.subr.bf16.mxu1 %v8723_v29 }
0x17bc   :  { %6722 = vmatpush1.bf16.msra.mxu1 %v8721_v61 }
0x17bd   :  { %7666 = vmatprep.subr.bf16.mxu1 %v8729_v37 }
0x17bf   :  { %7305 = vmatmul.mubr.msk.bf16.vlgmr.msra.gmra.mrb[156].mxu1 %vm163_vm1, %v6612_v59 }
0x17c0   :  { %7667 = vmatpush3.bf16.msra.mxu1 %v8731_v51 }
0x17c1   :  { %7668 = vmatprep.subr.bf16.mxu1 %v8733_v6 }
0x17c4   :  { %7669 = vmatpush3.bf16.msra.mxu1 %v8735_v36 }
0x17c5   :  { %7670 = vmatprep.subr.bf16.mxu1 %v8737_v57 }
0x17c8   :  { %7671 = vmatpush3.bf16.msra.mxu1 %v8739_v38 }
0x17c9   :  { %7672 = vmatprep.subr.bf16.mxu1 %v8741_v23 }
0x17cc   :  { %7673 = vmatpush3.bf16.msra.mxu1 %v8743_v45 }
0x17cd   :  { %7674 = vmatprep.subr.bf16.mxu1 %v8745_v41 }
0x17d0   :  { %7675 = vmatpush3.bf16.msra.mxu1 %v8747_v63 }
0x17d1   :  { %7676 = vmatprep.subr.bf16.mxu1 %v8749_v4 }
0x17d4   :  { %7677 = vmatpush3.bf16.msra.mxu1 %v8751_v13 }
0x17d5   :  { %7678 = vmatprep.subr.bf16.mxu1 %v8752_v3 }
0x17d8   :  { %7679 = vmatpush3.bf16.msra.mxu1 %v8753_v16 }
0x17d9   :  { %7680 = vmatprep.subr.bf16.mxu1 %v8754_v34 }
0x17dc   :  { %7681 = vmatpush3.bf16.msra.mxu1 %v8755_v43 }
0x188a   :  { %v6712_v10 = vpop.f32.mrb[152].mxu1 }
0x188b   :  { %v6713_v0 = vadd.f32 %v6712_v10, %v6618_v15  ;;  %v6714_v40 = vpop.f32.mrb[153].mxu1 }
0x188c   :  { %v6715_v8 = vadd.f32 %v6714_v40, %v6622_v58  ;;  %v6716_v2 = vpop.f32.mrb[154].mxu1 }
0x188d   :  { %v6760_v31 = vmax.f32 %v6713_v0, 0.0  ;;  %v6717_v44 = vpop.f32.mrb[155].mxu1 }
0x188e   :  { %v6761_v7 = vmax.f32 %v6715_v8, 0.0 }
0x188f   :  { %v6828_v22 = vpack.c.bf16 %v6760_v31, %v6760_v31 }
0x1890   :  { %v6829_v24 = vpack.c.bf16 %v6761_v7, %v6761_v7 }
0x1892   :  { %v6753_v35 = vpop.f32.mrb[156].mxu1  ;;  %7063 = vmatprep.mubr.bf16.mxu0 %v6829_v24 }
0x1893   :  { %v6754_v17 = vadd.f32 %v6753_v35, %v6626_v25  ;;  %v6755_v54 = vpop.f32.mrb[157].mxu1  ;;  %7064 = vmatmul.mubr.bf16.vlgmr.msra.gmra.mrb[160].mxu0 %v6828_v22 }
0x1894   :  { %v6756_v11 = vadd.f32 %v6755_v54, %v6630_v42  ;;  %v6757_v46 = vpop.f32.mrb[158].mxu1 }
0x1895   :  { %v6762_v12 = vmax.f32 %v6754_v17, 0.0  ;;  %v6758_v9 = vpop.f32.mrb[159].mxu1 }
0x1896   :  { %v6763_v26 = vmax.f32 %v6756_v11, 0.0 }
0x1897   :  { %v6830_v27 = vpack.c.bf16 %v6762_v12, %v6762_v12 }
0x1898   :  { %v6831_v48 = vpack.c.bf16 %v6763_v26, %v6763_v26 }
0x189a   :  { %7103 = vmatprep.mubr.bf16.mxu1 %v6831_v48 }
0x189b   :  { %7104 = vmatmul.mubr.bf16.vlgmr.msra.gmra.mrb[160].mxu1 %v6830_v27 }
0x1966   :  { %v7660_v47 = vpop.f32.mrb[160].mxu0 }
0x1967   :  { %v7661_v49 = vpop.f32.mrb[161].mxu0 }
0x1968   :  { %v7662_v62 = vadd.f32 %v7661_v49, %v7660_v47  ;;  %v7663_v5 = vpop.f32.mrb[162].mxu0 }
0x1969   :  { %v7664_v60 = vpop.f32.mrb[163].mxu0 }
0x196a   :  { %v7066_v55 = vadd.f32 %v7662_v62, %v7306_v56 }
0x196e   :  { %v7682_v1 = vpop.f32.mrb[160].mxu1 }
0x196f   :  { %v7683_v18 = vpop.f32.mrb[161].mxu1 }
0x1970   :  { %v7684_v20 = vadd.f32 %v7683_v18, %v7682_v1  ;;  %v7685_v59 = vpop.f32.mrb[162].mxu1 }
0x1971   :  { %v7686_v29 = vpop.f32.mrb[163].mxu1 }
0x1972   :  { %v7106_v61 = vadd.f32 %v7684_v20, %v7066_v55 }
0x1974   :  { %7111 = vst [vmem:[#allocation14] sm:$0x3] %v7106_v61  }
0x1975   :  { %9471 = shalt.err (!%p9468_p4)
}
0x1976   :  { %s9472_s3 = scalar_lea.hbm %s13458_s17, 32 }
0x1977   :  { %p9473_p5 = scmp.ne.s32.totalorder %s13458_s17, %s9472_s3  ;;  %p9476_p6 = scmp.lt.u32.totalorder %s9472_s3, %s13458_s17 }
0x1979   :  { %p9478_p7 = pnand %p9476_p6, %p9473_p5 }
0x197b   :  { %9481 = shalt.err (!%p9478_p7)
}
0x197c   :  { %s9537_s5 = smov 1  }
0x197d   :  { %7125 = dma.vmem_to_hbm [thread:$0]  %s7120_s9, 32, %s13458_s17, [#allocation4], %s9502_s25, %s9502_s25, %s9537_s5  }
0x197e   :  { %9490 = dma.done.wait [#allocation4], 32  }
0x197f   :  { %9491 = vsyncadd [#allocation4], 4294967264 }
0x1980   :  { %7129 = vsyncpa [#allocation3], 1 }
0x1981   :  { %7130 = vsyncpa [#allocation6], 1 }
0x1982   :  { %7131 = vsyncpa [#allocation9], 1 }
0x1983   :  { %7132 = vsyncpa [#allocation12], 1 }
0x1984   :  { %7133 = vsyncpa [#allocation4], 1 }

</bundles_post_ra>
